<compile_context>
chip_gen: v7x
topology: tpu7x:2x2x1
jax: 0.10.0
libtpu: 0.0.40
codegen_flags: <defaults>
</compile_context>

<pallas_src>
import functools

import jax
import jax.numpy as jnp
from jax import lax
from jax.experimental import pallas as pl
from jax.experimental.pallas import tpu as pltpu

_KW = 4            # conv kernel size
_PAD = 1           # conv padding
_NEG_SLOPE = 0.2   # LeakyReLU slope
_BN_EPS = 1e-5

_VMEM_LIMIT = 48 * 1024 * 1024        # scoped-VMEM budget (safe on v7x's 64 MiB)
_PATCH_TILE_BYTES = 8 * 1024 * 1024   # one bf16 patch tile (x2 when double-buffered)
_BN_TILE_BYTES = 4 * 1024 * 1024      # one f32 activation tile for the BN pass
_MAX_TM = 2048


def _round_up(x, m):
    return (x + m - 1) // m * m


# ---------------------------------------------------------------------------
# Pallas kernels
# ---------------------------------------------------------------------------
def _conv_gemm_kernel(p_ref, w_ref, b_ref, o_ref, *, negative_slope):
    """One row tile of: patches @ W + b, optionally fused LeakyReLU.
    Operands are bf16, accumulation is f32 on the MXU."""
    y = jnp.dot(p_ref[...], w_ref[...], preferred_element_type=jnp.float32)
    y = y + b_ref[...]
    if negative_slope is not None:
        y = jnp.where(y >= 0.0, y, negative_slope * y)
    o_ref[...] = y.astype(o_ref.dtype)


def _conv_gemm_stats_kernel(p_ref, w_ref, y_ref, stats_ref):
    """One row tile of: patches @ W (no bias), plus per-tile partial channel
    sums for training-mode BatchNorm2d.  Row 0 of the (8, C) stats block is the
    tile's sum, row 1 is the sum of squares, rows 2..7 are zero padding (so the
    block is sublane-aligned).  Partials are combined in XLA -> the grid axis
    stays "parallel" (megacore-shardable on v7x)."""
    y = jnp.dot(p_ref[...], w_ref[...], preferred_element_type=jnp.float32)
    y_ref[...] = y.astype(y_ref.dtype)
    s = jnp.sum(y, axis=0, keepdims=True)
    ss = jnp.sum(y * y, axis=0, keepdims=True)
    pad = jnp.zeros((6, s.shape[1]), jnp.float32)
    stats_ref[0] = jnp.concatenate([s, ss, pad], axis=0)


def _bn_leaky_kernel(y_ref, scale_ref, shift_ref, o_ref, *, negative_slope):
    """One row tile of BatchNorm2d (precomputed scale/shift) + LeakyReLU."""
    out = y_ref[...] * scale_ref[...] + shift_ref[...]
    out = jnp.where(out >= 0.0, out, negative_slope * out)
    o_ref[...] = out.astype(o_ref.dtype)


# ---------------------------------------------------------------------------
# pallas_call wrappers
# ---------------------------------------------------------------------------
def _conv_gemm(patches, w, b, *, leaky, tm):
    m_pad, k = patches.shape
    out_c = w.shape[1]
    kernel = functools.partial(
        _conv_gemm_kernel, negative_slope=_NEG_SLOPE if leaky else None)
    return pl.pallas_call(
        kernel,
        out_shape=jax.ShapeDtypeStruct((m_pad, out_c), jnp.float32),
        grid_spec=pltpu.PrefetchScalarGridSpec(
            num_scalar_prefetch=0,
            grid=(m_pad // tm,),
            in_specs=[
                pl.BlockSpec((tm, k), lambda i: (i, 0)),
                pl.BlockSpec((k, out_c), lambda i: (0, 0)),    # resident weight
                pl.BlockSpec((1, out_c), lambda i: (0, 0)),    # resident bias
            ],
            out_specs=pl.BlockSpec((tm, out_c), lambda i: (i, 0))),
        compiler_params=pltpu.CompilerParams(
            dimension_semantics=("parallel",),
            vmem_limit_bytes=_VMEM_LIMIT),
    )(patches, w, b)


def _conv_gemm_stats(patches, w, *, tm):
    m_pad, k = patches.shape
    out_c = w.shape[1]
    num_tiles = m_pad // tm
    return pl.pallas_call(
        _conv_gemm_stats_kernel,
        out_shape=(jax.ShapeDtypeStruct((m_pad, out_c), jnp.float32),
                   jax.ShapeDtypeStruct((num_tiles, 8, out_c), jnp.float32)),
        grid_spec=pltpu.PrefetchScalarGridSpec(
            num_scalar_prefetch=0,
            grid=(num_tiles,),
            in_specs=[
                pl.BlockSpec((tm, k), lambda i: (i, 0)),
                pl.BlockSpec((k, out_c), lambda i: (0, 0)),    # resident weight
            ],
            out_specs=(pl.BlockSpec((tm, out_c), lambda i: (i, 0)),
                       pl.BlockSpec((1, 8, out_c), lambda i: (i, 0, 0)))),
        compiler_params=pltpu.CompilerParams(
            dimension_semantics=("parallel",),
            vmem_limit_bytes=_VMEM_LIMIT),
    )(patches, w)


def _bn_leaky(y_pad, scale, shift, *, tm):
    m_pad, out_c = y_pad.shape
    kernel = functools.partial(_bn_leaky_kernel, negative_slope=_NEG_SLOPE)
    return pl.pallas_call(
        kernel,
        out_shape=jax.ShapeDtypeStruct((m_pad, out_c), jnp.float32),
        grid_spec=pltpu.PrefetchScalarGridSpec(
            num_scalar_prefetch=0,
            grid=(m_pad // tm,),
            in_specs=[
                pl.BlockSpec((tm, out_c), lambda i: (i, 0)),
                pl.BlockSpec((1, out_c), lambda i: (0, 0)),
                pl.BlockSpec((1, out_c), lambda i: (0, 0)),
            ],
            out_specs=pl.BlockSpec((tm, out_c), lambda i: (i, 0))),
        compiler_params=pltpu.CompilerParams(
            dimension_semantics=("parallel",),
            vmem_limit_bytes=_VMEM_LIMIT),
    )(y_pad, scale, shift)


# ---------------------------------------------------------------------------
# Layer wrappers (im2col glue + pallas_call)
# ---------------------------------------------------------------------------
def _im2col(x_nhwc, stride):
    """4x4 / pad-1 patch extraction.  Returns (M, 16*C) rows and out spatial."""
    n, h, w, c = x_nhwc.shape
    xp = jnp.pad(x_nhwc, ((0, 0), (_PAD, _PAD), (_PAD, _PAD), (0, 0)))
    hp, wp = h + 2 * _PAD, w + 2 * _PAD
    h_out = (hp - _KW) // stride + 1
    w_out = (wp - _KW) // stride + 1
    taps = []
    for kh in range(_KW):
        for kw in range(_KW):
            taps.append(xp[:, kh:kh + stride * h_out:stride,
                           kw:kw + stride * w_out:stride, :])
    patches = jnp.concatenate(taps, axis=-1)           # (n, h_out, w_out, 16*c)
    return patches.reshape(n * h_out * w_out, _KW * _KW * c), (n, h_out, w_out)


def _pick_tile(m, k):
    """Row tile for the GEMM: sized so one bf16 patch tile <= ~8 MiB."""
    budget = _PATCH_TILE_BYTES // max(1, 2 * k)
    tm = max(256, min(_MAX_TM, budget))
    tm = max(8, tm // 8 * 8)
    tm = min(tm, _round_up(m, 8))
    return tm, _round_up(m, tm)


def _pick_bn_tile(m_pad, out_c, tm1):
    """Larger row tile for the mem-bound BN/LeakyReLU pass (must divide m_pad)."""
    budget = _BN_TILE_BYTES // (4 * out_c)
    best = tm1
    for cand in (8192, 4096, 2048, 1024, 512):
        if cand <= budget and cand > best and m_pad % cand == 0:
            best = cand
    return best


def _pad_k(patches, w):
    """Pad the contraction dim to a 128 multiple only when needed (K > 128)."""
    k = patches.shape[1]
    if k > 128 and k % 128:
        k_pad = _round_up(k, 128)
        patches = jnp.pad(patches, ((0, 0), (0, k_pad - k)))
        w = jnp.pad(w, ((0, k_pad - k), (0, 0)))
    return patches, w


def _pad_cout(w, b):
    """Pad out-channels to 128 lanes so output stores are unmasked (lane-dense)."""
    out_c = w.shape[1]
    c_pad = _round_up(out_c, 128)
    if c_pad != out_c:
        w = jnp.pad(w, ((0, 0), (0, c_pad - out_c)))
        b = jnp.pad(b, ((0, 0), (0, c_pad - out_c)))
    return w, b, out_c


def _conv_bias_leaky_layer(x_nhwc, w, b, stride, *, leaky):
    patches, (n, ho, wo) = _im2col(x_nhwc, stride)
    m = patches.shape[0]
    patches = patches.astype(jnp.bfloat16)
    w = w.astype(jnp.bfloat16)
    patches, w = _pad_k(patches, w)
    w, b, out_c = _pad_cout(w, b)
    tm, m_pad = _pick_tile(m, patches.shape[1])
    patches = jnp.pad(patches, ((0, m_pad - m), (0, 0)))
    y = _conv_gemm(patches, w, b, leaky=leaky, tm=tm)
    return y[:m, :out_c].reshape(n, ho, wo, out_c)


def _conv_bn_leaky_layer(x_nhwc, w, gamma, beta, stride):
    patches, (n, ho, wo) = _im2col(x_nhwc, stride)
    m = patches.shape[0]
    out_c = w.shape[1]
    patches = patches.astype(jnp.bfloat16)
    w = w.astype(jnp.bfloat16)
    patches, w = _pad_k(patches, w)
    tm, m_pad = _pick_tile(m, patches.shape[1])
    patches = jnp.pad(patches, ((0, m_pad - m), (0, 0)))
    # Pass 1: conv GEMM + per-tile partial channel sums.  Padded rows are
    # all-zero and this conv has no bias, so they contribute nothing to the
    # statistics; the true element count m is used below.
    y_pad, stats = _conv_gemm_stats(patches, w, tm=tm)
    # Tiny XLA combine: fold partials and precompute the BN affine once.
    s = jnp.sum(stats[:, 0, :], axis=0)
    ss = jnp.sum(stats[:, 1, :], axis=0)
    mean = s / m
    var = ss / m - mean * mean                      # biased, training-mode var
    inv_std = lax.rsqrt(var + _BN_EPS)
    scale = gamma * inv_std[None, :]                # (1, C)
    shift = beta - mean[None, :] * scale            # (1, C)
    # Pass 2: normalize + affine + LeakyReLU with a larger mem-bound row tile.
    tm2 = _pick_bn_tile(m_pad, out_c, tm)
    out = _bn_leaky(y_pad, scale, shift, tm=tm2)
    return out[:m].reshape(n, ho, wo, out_c)


def nlayer_discriminator(x_nchw, params):
    """Forward pass matching PyTorch NLayerDiscriminator(input_nc, ndf, n_layers=3,
    norm_layer=BatchNorm2d, use_sigmoid=False) in training mode (batch stats).
    x_nchw: (N, C, H, W) float32 -> (N, 1, H_out, W_out) float32."""
    (w1, b1), bn_layers, (w_last, b_last) = params
    x = jnp.transpose(x_nchw, (0, 2, 3, 1))            # NCHW -> NHWC
    # Conv(input_nc -> ndf, s=2) + bias + LeakyReLU(0.2)
    x = _conv_bias_leaky_layer(x, w1, b1, stride=2, leaky=True)
    # (n_layers - 1) blocks of Conv(s=2, bias=False) + BN + LeakyReLU,
    # then one Conv(s=1, bias=False) + BN + LeakyReLU
    strides = [2] * (len(bn_layers) - 1) + [1]
    for (w, gamma, beta), stride in zip(bn_layers, strides):
        x = _conv_bn_leaky_layer(x, w, gamma, beta, stride)
    # Conv(ndf*8 -> 1, s=1) + bias, no activation (use_sigmoid=False)
    x = _conv_bias_leaky_layer(x, w_last, b_last, stride=1, leaky=False)
    return jnp.transpose(x, (0, 3, 1, 2))              # NHWC -> NCHW


# ---------------------------------------------------------------------------
# Parameters and pure-JAX reference
# ---------------------------------------------------------------------------
def init_params(key, input_nc, ndf=64, n_layers=3):
    """Deterministic synthetic parameters.  Each conv weight is stored as a
    (4*4*in, out) matrix in (kh, kw, in) row order — i.e. the PyTorch weight
    (out, in, kh, kw) permuted to (kh, kw, in, out) and flattened."""
    keys = iter(jax.random.split(key, 32))

    def conv_w(cin, cout):
        return 0.02 * jax.random.normal(next(keys), (_KW * _KW * cin, cout),
                                        jnp.float32)

    w1 = conv_w(input_nc, ndf)
    b1 = 0.02 * jax.random.normal(next(keys), (1, ndf), jnp.float32)

    channels = []
    nf_prev, nf = 1, 1
    for n in range(1, n_layers):
        nf_prev, nf = nf, min(2 ** n, 8)
        channels.append((ndf * nf_prev, ndf * nf))
    nf_prev, nf = nf, min(2 ** n_layers, 8)
    channels.append((ndf * nf_prev, ndf * nf))

    bn_layers = []
    for cin, cout in channels:
        w = conv_w(cin, cout)
        gamma = 1.0 + 0.1 * jax.random.normal(next(keys), (1, cout), jnp.float32)
        beta = 0.1 * jax.random.normal(next(keys), (1, cout), jnp.float32)
        bn_layers.append((w, gamma, beta))

    w_last = conv_w(ndf * nf, 1)
    b_last = 0.02 * jax.random.normal(next(keys), (1, 1), jnp.float32)
    return (w1, b1), tuple(bn_layers), (w_last, b_last)


def _reference(x_nchw, params):
    """Pure-JAX reference using real convolutions with the same bf16-operand /
    f32-accumulate numerics as the kernels (validates the im2col GEMM + BN)."""
    (w1, b1), bn_layers, (w_last, b_last) = params

    def conv(x, w_mat, stride, bias=None):
        cin, cout = x.shape[-1], w_mat.shape[1]
        w_hwio = w_mat.reshape(_KW, _KW, cin, cout)
        y = lax.conv_general_dilated(
            x.astype(jnp.bfloat16), w_hwio.astype(jnp.bfloat16),
            (stride, stride), ((_PAD, _PAD), (_PAD, _PAD)),
            dimension_numbers=("NHWC", "HWIO", "NHWC"),
            preferred_element_type=jnp.float32)
        if bias is not None:
            y = y + bias.reshape(1, 1, 1, cout)
        return y

    def leaky(v):
        return jnp.where(v >= 0, v, _NEG_SLOPE * v)

    def bn(v, gamma, beta):
        mean = v.mean(axis=(0, 1, 2), keepdims=True)
        var = ((v - mean) ** 2).mean(axis=(0, 1, 2), keepdims=True)
        return ((v - mean) * lax.rsqrt(var + _BN_EPS)
                * gamma.reshape(1, 1, 1, -1) + beta.reshape(1, 1, 1, -1))

    x = jnp.transpose(x_nchw, (0, 2, 3, 1))
    x = leaky(conv(x, w1, 2, b1))
    strides = [2] * (len(bn_layers) - 1) + [1]
    for (w, gamma, beta), s in zip(bn_layers, strides):
        x = leaky(bn(conv(x, w, s), gamma, beta))
    x = conv(x, w_last, 1, b_last)
    return jnp.transpose(x, (0, 3, 1, 2))


if __name__ == "__main__":
    key = jax.random.PRNGKey(0)
    kx, kp = jax.random.split(key)

    input_nc, ndf, n_layers = 3, 64, 3
    # 32x32 input: spatial path 32 -> 16 -> 8 -> 4 -> 3 -> 2.
    x = jax.random.normal(kx, (2, input_nc, 32, 32), jnp.float32)
    params = init_params(kp, input_nc, ndf, n_layers)

    fwd = jax.jit(nlayer_discriminator)
    out = jax.block_until_ready(fwd(x, params))
    ref = jax.block_until_ready(_reference(x, params))

    assert out.shape == (2, 1, 2, 2), out.shape
    max_err = float(jnp.max(jnp.abs(out - ref)))
    assert jnp.allclose(out, ref, atol=1e-2, rtol=1e-2), max_err
    print("KERNEL_OK")
</pallas_src>

<mosaic_0001>
module attributes {stable_mosaic.version = 11 : i64} {
  func.func @_conv_gemm_kernel(%arg0: i32, %arg1: memref<512x48xbf16, #tpu.memory_space<vmem>>, %arg2: memref<48x128xbf16, #tpu.memory_space<vmem>>, %arg3: memref<1x128xf32, #tpu.memory_space<vmem>>, %arg4: memref<512x128xf32, #tpu.memory_space<vmem>>) attributes {dimension_semantics = [#tpu.dimension_semantics<parallel>], iteration_bounds = array<i64: 1>, scalar_prefetch = 0 : i64, scratch_operands = 0 : i64, tpu.core_type = #tpu.core_type<tc>, window_params = [{transform_indices = @transform_0, window_bounds = array<i64: 512, 48>}, {pipeline_mode = #tpu.pipeline_mode<synchronous>, transform_indices = @transform_1, window_bounds = array<i64: 48, 128>}, {pipeline_mode = #tpu.pipeline_mode<synchronous>, transform_indices = @transform_2, window_bounds = array<i64: 1, 128>}, {transform_indices = @transform_3, window_bounds = array<i64: 512, 128>}]} {
    %c0 = arith.constant 0 : index
    %c0_0 = arith.constant 0 : index
    %0 = vector.load %arg1[%c0, %c0_0] : memref<512x48xbf16, #tpu.memory_space<vmem>>, vector<512x48xbf16>
    %c0_1 = arith.constant 0 : index
    %c0_2 = arith.constant 0 : index
    %1 = vector.load %arg2[%c0_1, %c0_2] : memref<48x128xbf16, #tpu.memory_space<vmem>>, vector<48x128xbf16>
    %cst = arith.constant dense<0.000000e+00> : vector<512x128xf32>
    %2 = tpu.matmul %0, %1, %cst {dimension_numbers = #tpu.dot_dimension_numbers<[1], [0], [0], [1], [0, 0, 1, 1], [], []>} : vector<512x48xbf16>, vector<48x128xbf16>, vector<512x128xf32> -> vector<512x128xf32>
    %c0_3 = arith.constant 0 : index
    %c0_4 = arith.constant 0 : index
    %3 = vector.load %arg3[%c0_3, %c0_4] : memref<1x128xf32, #tpu.memory_space<vmem>>, vector<1x128xf32>
    %4 = vector.broadcast %3 : vector<1x128xf32> to vector<512x128xf32>
    %5 = arith.addf %2, %4 : vector<512x128xf32>
    %cst_5 = arith.constant 0.000000e+00 : f32
    %6 = vector.broadcast %cst_5 : f32 to vector<512x128xf32>
    %7 = arith.cmpf oge, %5, %6 : vector<512x128xf32>
    %cst_6 = arith.constant 2.000000e-01 : f32
    %8 = vector.broadcast %cst_6 : f32 to vector<512x128xf32>
    %9 = arith.mulf %8, %5 : vector<512x128xf32>
    %10 = arith.select %7, %5, %9 : vector<512x128xi1>, vector<512x128xf32>
    %c0_7 = arith.constant 0 : index
    %c0_8 = arith.constant 0 : index
    %11 = vector.load %arg4[%c0_7, %c0_8] : memref<512x128xf32, #tpu.memory_space<vmem>>, vector<512x128xf32>
    tpu.vector_store %arg4[%c0_7, %c0_8], %10 {strides = array<i32>} : memref<512x128xf32, #tpu.memory_space<vmem>>, vector<512x128xf32>,
    return
  }
  func.func @transform_0(%arg0: i32) -> (i32, i32) {
    %c0_i32 = arith.constant 0 : i32
    %c0_i32_0 = arith.constant 0 : i32
    return %arg0, %c0_i32 : i32, i32
  }
  func.func @transform_1(%arg0: i32) -> (i32, i32) {
    %c0_i32 = arith.constant 0 : i32
    %c0_i32_0 = arith.constant 0 : i32
    %c0_i32_1 = arith.constant 0 : i32
    return %c0_i32, %c0_i32_0 : i32, i32
  }
  func.func @transform_2(%arg0: i32) -> (i32, i32) {
    %c0_i32 = arith.constant 0 : i32
    %c0_i32_0 = arith.constant 0 : i32
    %c0_i32_1 = arith.constant 0 : i32
    return %c0_i32, %c0_i32_0 : i32, i32
  }
  func.func @transform_3(%arg0: i32) -> (i32, i32) {
    %c0_i32 = arith.constant 0 : i32
    %c0_i32_0 = arith.constant 0 : i32
    return %arg0, %c0_i32 : i32, i32
  }
}

module attributes {stable_mosaic.version = 11 : i64} {
  func.func @_conv_gemm_stats_kernel(%arg0: i32, %arg1: memref<128x1024xbf16, #tpu.memory_space<vmem>>, %arg2: memref<1024x128xbf16, #tpu.memory_space<vmem>>, %arg3: memref<128x128xf32, #tpu.memory_space<vmem>>, %arg4: memref<1x8x128xf32, #tpu.memory_space<vmem>>) attributes {dimension_semantics = [#tpu.dimension_semantics<parallel>], iteration_bounds = array<i64: 1>, scalar_prefetch = 0 : i64, scratch_operands = 0 : i64, tpu.core_type = #tpu.core_type<tc>, window_params = [{transform_indices = @transform_0, window_bounds = array<i64: 128, 1024>}, {pipeline_mode = #tpu.pipeline_mode<synchronous>, transform_indices = @transform_1, window_bounds = array<i64: 1024, 128>}, {transform_indices = @transform_2, window_bounds = array<i64: 128, 128>}, {transform_indices = @transform_3, window_bounds = array<i64: 1, 8, 128>}]} {
    %c0 = arith.constant 0 : index
    %c0_0 = arith.constant 0 : index
    %0 = vector.load %arg1[%c0, %c0_0] : memref<128x1024xbf16, #tpu.memory_space<vmem>>, vector<128x1024xbf16>
    %c0_1 = arith.constant 0 : index
    %c0_2 = arith.constant 0 : index
    %1 = vector.load %arg2[%c0_1, %c0_2] : memref<1024x128xbf16, #tpu.memory_space<vmem>>, vector<1024x128xbf16>
    %cst = arith.constant dense<0.000000e+00> : vector<128x128xf32>
    %2 = tpu.matmul %0, %1, %cst {dimension_numbers = #tpu.dot_dimension_numbers<[1], [0], [0], [1], [0, 0, 1, 1], [], []>} : vector<128x1024xbf16>, vector<1024x128xbf16>, vector<128x128xf32> -> vector<128x128xf32>
    %c0_3 = arith.constant 0 : index
    %c0_4 = arith.constant 0 : index
    %3 = vector.load %arg3[%c0_3, %c0_4] : memref<128x128xf32, #tpu.memory_space<vmem>>, vector<128x128xf32>
    tpu.vector_store %arg3[%c0_3, %c0_4], %2 {strides = array<i32>} : memref<128x128xf32, #tpu.memory_space<vmem>>, vector<128x128xf32>,
    %cst_5 = arith.constant dense<0.000000e+00> : vector<128xf32>
    %4 = vector.multi_reduction <add>, %2, %cst_5 [0] : vector<128x128xf32> to vector<128xf32>
    %5 = vector.shape_cast %4 : vector<128xf32> to vector<1x128xf32>
    %6 = arith.mulf %2, %2 : vector<128x128xf32>
    %cst_6 = arith.constant dense<0.000000e+00> : vector<128xf32>
    %7 = vector.multi_reduction <add>, %6, %cst_6 [0] : vector<128x128xf32> to vector<128xf32>
    %8 = vector.shape_cast %7 : vector<128xf32> to vector<1x128xf32>
    %cst_7 = arith.constant 0.000000e+00 : f32
    %9 = vector.broadcast %cst_7 : f32 to vector<6x128xf32>
    %10 = tpu.concatenate %5, %8, %9 in 0 : vector<1x128xf32>, vector<1x128xf32>, vector<6x128xf32> -> vector<8x128xf32>
    %c0_8 = arith.constant 0 : index
    %c0_9 = arith.constant 0 : index
    %c0_10 = arith.constant 0 : index
    %11 = vector.load %arg4[%c0_8, %c0_9, %c0_10] : memref<1x8x128xf32, #tpu.memory_space<vmem>>, vector<1x8x128xf32>
    %12 = vector.shape_cast %11 : vector<1x8x128xf32> to vector<8x128xf32>
    %13 = vector.shape_cast %10 : vector<8x128xf32> to vector<1x8x128xf32>
    tpu.vector_store %arg4[%c0_8, %c0_9, %c0_10], %13 {strides = array<i32>} : memref<1x8x128xf32, #tpu.memory_space<vmem>>, vector<1x8x128xf32>,
    return
  }
  func.func @transform_0(%arg0: i32) -> (i32, i32) {
    %c0_i32 = arith.constant 0 : i32
    %c0_i32_0 = arith.constant 0 : i32
    return %arg0, %c0_i32 : i32, i32
  }
  func.func @transform_1(%arg0: i32) -> (i32, i32) {
    %c0_i32 = arith.constant 0 : i32
    %c0_i32_0 = arith.constant 0 : i32
    %c0_i32_1 = arith.constant 0 : i32
    return %c0_i32, %c0_i32_0 : i32, i32
  }
  func.func @transform_2(%arg0: i32) -> (i32, i32) {
    %c0_i32 = arith.constant 0 : i32
    %c0_i32_0 = arith.constant 0 : i32
    return %arg0, %c0_i32 : i32, i32
  }
  func.func @transform_3(%arg0: i32) -> (i32, i32, i32) {
    %c0_i32 = arith.constant 0 : i32
    %c0_i32_0 = arith.constant 0 : i32
    %c0_i32_1 = arith.constant 0 : i32
    return %arg0, %c0_i32, %c0_i32_0 : i32, i32, i32
  }
}

module attributes {stable_mosaic.version = 11 : i64} {
  func.func @_bn_leaky_kernel(%arg0: i32, %arg1: memref<128x128xf32, #tpu.memory_space<vmem>>, %arg2: memref<1x128xf32, #tpu.memory_space<vmem>>, %arg3: memref<1x128xf32, #tpu.memory_space<vmem>>, %arg4: memref<128x128xf32, #tpu.memory_space<vmem>>) attributes {dimension_semantics = [#tpu.dimension_semantics<parallel>], iteration_bounds = array<i64: 1>, scalar_prefetch = 0 : i64, scratch_operands = 0 : i64, tpu.core_type = #tpu.core_type<tc>, window_params = [{transform_indices = @transform_0, window_bounds = array<i64: 128, 128>}, {pipeline_mode = #tpu.pipeline_mode<synchronous>, transform_indices = @transform_1, window_bounds = array<i64: 1, 128>}, {pipeline_mode = #tpu.pipeline_mode<synchronous>, transform_indices = @transform_2, window_bounds = array<i64: 1, 128>}, {transform_indices = @transform_3, window_bounds = array<i64: 128, 128>}]} {
    %c0 = arith.constant 0 : index
    %c0_0 = arith.constant 0 : index
    %0 = vector.load %arg1[%c0, %c0_0] : memref<128x128xf32, #tpu.memory_space<vmem>>, vector<128x128xf32>
    %c0_1 = arith.constant 0 : index
    %c0_2 = arith.constant 0 : index
    %1 = vector.load %arg2[%c0_1, %c0_2] : memref<1x128xf32, #tpu.memory_space<vmem>>, vector<1x128xf32>
    %2 = vector.broadcast %1 : vector<1x128xf32> to vector<128x128xf32>
    %3 = arith.mulf %0, %2 : vector<128x128xf32>
    %c0_3 = arith.constant 0 : index
    %c0_4 = arith.constant 0 : index
    %4 = vector.load %arg3[%c0_3, %c0_4] : memref<1x128xf32, #tpu.memory_space<vmem>>, vector<1x128xf32>
    %5 = vector.broadcast %4 : vector<1x128xf32> to vector<128x128xf32>
    %6 = arith.addf %3, %5 : vector<128x128xf32>
    %cst = arith.constant 0.000000e+00 : f32
    %7 = vector.broadcast %cst : f32 to vector<128x128xf32>
    %8 = arith.cmpf oge, %6, %7 : vector<128x128xf32>
    %cst_5 = arith.constant 2.000000e-01 : f32
    %9 = vector.broadcast %cst_5 : f32 to vector<128x128xf32>
    %10 = arith.mulf %9, %6 : vector<128x128xf32>
    %11 = arith.select %8, %6, %10 : vector<128x128xi1>, vector<128x128xf32>
    %c0_6 = arith.constant 0 : index
    %c0_7 = arith.constant 0 : index
    %12 = vector.load %arg4[%c0_6, %c0_7] : memref<128x128xf32, #tpu.memory_space<vmem>>, vector<128x128xf32>
    tpu.vector_store %arg4[%c0_6, %c0_7], %11 {strides = array<i32>} : memref<128x128xf32, #tpu.memory_space<vmem>>, vector<128x128xf32>,
    return
  }
  func.func @transform_0(%arg0: i32) -> (i32, i32) {
    %c0_i32 = arith.constant 0 : i32
    %c0_i32_0 = arith.constant 0 : i32
    return %arg0, %c0_i32 : i32, i32
  }
  func.func @transform_1(%arg0: i32) -> (i32, i32) {
    %c0_i32 = arith.constant 0 : i32
    %c0_i32_0 = arith.constant 0 : i32
    %c0_i32_1 = arith.constant 0 : i32
    return %c0_i32, %c0_i32_0 : i32, i32
  }
  func.func @transform_2(%arg0: i32) -> (i32, i32) {
    %c0_i32 = arith.constant 0 : i32
    %c0_i32_0 = arith.constant 0 : i32
    %c0_i32_1 = arith.constant 0 : i32
    return %c0_i32, %c0_i32_0 : i32, i32
  }
  func.func @transform_3(%arg0: i32) -> (i32, i32) {
    %c0_i32 = arith.constant 0 : i32
    %c0_i32_0 = arith.constant 0 : i32
    return %arg0, %c0_i32 : i32, i32
  }
}

module attributes {stable_mosaic.version = 11 : i64} {
  func.func @_conv_gemm_stats_kernel(%arg0: i32, %arg1: memref<32x2048xbf16, #tpu.memory_space<vmem>>, %arg2: memref<2048x256xbf16, #tpu.memory_space<vmem>>, %arg3: memref<32x256xf32, #tpu.memory_space<vmem>>, %arg4: memref<1x8x256xf32, #tpu.memory_space<vmem>>) attributes {dimension_semantics = [#tpu.dimension_semantics<parallel>], iteration_bounds = array<i64: 1>, scalar_prefetch = 0 : i64, scratch_operands = 0 : i64, tpu.core_type = #tpu.core_type<tc>, window_params = [{transform_indices = @transform_0, window_bounds = array<i64: 32, 2048>}, {pipeline_mode = #tpu.pipeline_mode<synchronous>, transform_indices = @transform_1, window_bounds = array<i64: 2048, 256>}, {transform_indices = @transform_2, window_bounds = array<i64: 32, 256>}, {transform_indices = @transform_3, window_bounds = array<i64: 1, 8, 256>}]} {
    %c0 = arith.constant 0 : index
    %c0_0 = arith.constant 0 : index
    %0 = vector.load %arg1[%c0, %c0_0] : memref<32x2048xbf16, #tpu.memory_space<vmem>>, vector<32x2048xbf16>
    %c0_1 = arith.constant 0 : index
    %c0_2 = arith.constant 0 : index
    %1 = vector.load %arg2[%c0_1, %c0_2] : memref<2048x256xbf16, #tpu.memory_space<vmem>>, vector<2048x256xbf16>
    %cst = arith.constant dense<0.000000e+00> : vector<32x256xf32>
    %2 = tpu.matmul %0, %1, %cst {dimension_numbers = #tpu.dot_dimension_numbers<[1], [0], [0], [1], [0, 0, 1, 1], [], []>} : vector<32x2048xbf16>, vector<2048x256xbf16>, vector<32x256xf32> -> vector<32x256xf32>
    %c0_3 = arith.constant 0 : index
    %c0_4 = arith.constant 0 : index
    %3 = vector.load %arg3[%c0_3, %c0_4] : memref<32x256xf32, #tpu.memory_space<vmem>>, vector<32x256xf32>
    tpu.vector_store %arg3[%c0_3, %c0_4], %2 {strides = array<i32>} : memref<32x256xf32, #tpu.memory_space<vmem>>, vector<32x256xf32>,
    %cst_5 = arith.constant dense<0.000000e+00> : vector<256xf32>
    %4 = vector.multi_reduction <add>, %2, %cst_5 [0] : vector<32x256xf32> to vector<256xf32>
    %5 = vector.shape_cast %4 : vector<256xf32> to vector<1x256xf32>
    %6 = arith.mulf %2, %2 : vector<32x256xf32>
    %cst_6 = arith.constant dense<0.000000e+00> : vector<256xf32>
    %7 = vector.multi_reduction <add>, %6, %cst_6 [0] : vector<32x256xf32> to vector<256xf32>
    %8 = vector.shape_cast %7 : vector<256xf32> to vector<1x256xf32>
    %cst_7 = arith.constant 0.000000e+00 : f32
    %9 = vector.broadcast %cst_7 : f32 to vector<6x256xf32>
    %10 = tpu.concatenate %5, %8, %9 in 0 : vector<1x256xf32>, vector<1x256xf32>, vector<6x256xf32> -> vector<8x256xf32>
    %c0_8 = arith.constant 0 : index
    %c0_9 = arith.constant 0 : index
    %c0_10 = arith.constant 0 : index
    %11 = vector.load %arg4[%c0_8, %c0_9, %c0_10] : memref<1x8x256xf32, #tpu.memory_space<vmem>>, vector<1x8x256xf32>
    %12 = vector.shape_cast %11 : vector<1x8x256xf32> to vector<8x256xf32>
    %13 = vector.shape_cast %10 : vector<8x256xf32> to vector<1x8x256xf32>
    tpu.vector_store %arg4[%c0_8, %c0_9, %c0_10], %13 {strides = array<i32>} : memref<1x8x256xf32, #tpu.memory_space<vmem>>, vector<1x8x256xf32>,
    return
  }
  func.func @transform_0(%arg0: i32) -> (i32, i32) {
    %c0_i32 = arith.constant 0 : i32
    %c0_i32_0 = arith.constant 0 : i32
    return %arg0, %c0_i32 : i32, i32
  }
  func.func @transform_1(%arg0: i32) -> (i32, i32) {
    %c0_i32 = arith.constant 0 : i32
    %c0_i32_0 = arith.constant 0 : i32
    %c0_i32_1 = arith.constant 0 : i32
    return %c0_i32, %c0_i32_0 : i32, i32
  }
  func.func @transform_2(%arg0: i32) -> (i32, i32) {
    %c0_i32 = arith.constant 0 : i32
    %c0_i32_0 = arith.constant 0 : i32
    return %arg0, %c0_i32 : i32, i32
  }
  func.func @transform_3(%arg0: i32) -> (i32, i32, i32) {
    %c0_i32 = arith.constant 0 : i32
    %c0_i32_0 = arith.constant 0 : i32
    %c0_i32_1 = arith.constant 0 : i32
    return %arg0, %c0_i32, %c0_i32_0 : i32, i32, i32
  }
}

module attributes {stable_mosaic.version = 11 : i64} {
  func.func @_bn_leaky_kernel(%arg0: i32, %arg1: memref<32x256xf32, #tpu.memory_space<vmem>>, %arg2: memref<1x256xf32, #tpu.memory_space<vmem>>, %arg3: memref<1x256xf32, #tpu.memory_space<vmem>>, %arg4: memref<32x256xf32, #tpu.memory_space<vmem>>) attributes {dimension_semantics = [#tpu.dimension_semantics<parallel>], iteration_bounds = array<i64: 1>, scalar_prefetch = 0 : i64, scratch_operands = 0 : i64, tpu.core_type = #tpu.core_type<tc>, window_params = [{transform_indices = @transform_0, window_bounds = array<i64: 32, 256>}, {pipeline_mode = #tpu.pipeline_mode<synchronous>, transform_indices = @transform_1, window_bounds = array<i64: 1, 256>}, {pipeline_mode = #tpu.pipeline_mode<synchronous>, transform_indices = @transform_2, window_bounds = array<i64: 1, 256>}, {transform_indices = @transform_3, window_bounds = array<i64: 32, 256>}]} {
    %c0 = arith.constant 0 : index
    %c0_0 = arith.constant 0 : index
    %0 = vector.load %arg1[%c0, %c0_0] : memref<32x256xf32, #tpu.memory_space<vmem>>, vector<32x256xf32>
    %c0_1 = arith.constant 0 : index
    %c0_2 = arith.constant 0 : index
    %1 = vector.load %arg2[%c0_1, %c0_2] : memref<1x256xf32, #tpu.memory_space<vmem>>, vector<1x256xf32>
    %2 = vector.broadcast %1 : vector<1x256xf32> to vector<32x256xf32>
    %3 = arith.mulf %0, %2 : vector<32x256xf32>
    %c0_3 = arith.constant 0 : index
    %c0_4 = arith.constant 0 : index
    %4 = vector.load %arg3[%c0_3, %c0_4] : memref<1x256xf32, #tpu.memory_space<vmem>>, vector<1x256xf32>
    %5 = vector.broadcast %4 : vector<1x256xf32> to vector<32x256xf32>
    %6 = arith.addf %3, %5 : vector<32x256xf32>
    %cst = arith.constant 0.000000e+00 : f32
    %7 = vector.broadcast %cst : f32 to vector<32x256xf32>
    %8 = arith.cmpf oge, %6, %7 : vector<32x256xf32>
    %cst_5 = arith.constant 2.000000e-01 : f32
    %9 = vector.broadcast %cst_5 : f32 to vector<32x256xf32>
    %10 = arith.mulf %9, %6 : vector<32x256xf32>
    %11 = arith.select %8, %6, %10 : vector<32x256xi1>, vector<32x256xf32>
    %c0_6 = arith.constant 0 : index
    %c0_7 = arith.constant 0 : index
    %12 = vector.load %arg4[%c0_6, %c0_7] : memref<32x256xf32, #tpu.memory_space<vmem>>, vector<32x256xf32>
    tpu.vector_store %arg4[%c0_6, %c0_7], %11 {strides = array<i32>} : memref<32x256xf32, #tpu.memory_space<vmem>>, vector<32x256xf32>,
    return
  }
  func.func @transform_0(%arg0: i32) -> (i32, i32) {
    %c0_i32 = arith.constant 0 : i32
    %c0_i32_0 = arith.constant 0 : i32
    return %arg0, %c0_i32 : i32, i32
  }
  func.func @transform_1(%arg0: i32) -> (i32, i32) {
    %c0_i32 = arith.constant 0 : i32
    %c0_i32_0 = arith.constant 0 : i32
    %c0_i32_1 = arith.constant 0 : i32
    return %c0_i32, %c0_i32_0 : i32, i32
  }
  func.func @transform_2(%arg0: i32) -> (i32, i32) {
    %c0_i32 = arith.constant 0 : i32
    %c0_i32_0 = arith.constant 0 : i32
    %c0_i32_1 = arith.constant 0 : i32
    return %c0_i32, %c0_i32_0 : i32, i32
  }
  func.func @transform_3(%arg0: i32) -> (i32, i32) {
    %c0_i32 = arith.constant 0 : i32
    %c0_i32_0 = arith.constant 0 : i32
    return %arg0, %c0_i32 : i32, i32
  }
}

module attributes {stable_mosaic.version = 11 : i64} {
  func.func @_conv_gemm_stats_kernel(%arg0: i32, %arg1: memref<24x4096xbf16, #tpu.memory_space<vmem>>, %arg2: memref<4096x512xbf16, #tpu.memory_space<vmem>>, %arg3: memref<24x512xf32, #tpu.memory_space<vmem>>, %arg4: memref<1x8x512xf32, #tpu.memory_space<vmem>>) attributes {dimension_semantics = [#tpu.dimension_semantics<parallel>], iteration_bounds = array<i64: 1>, scalar_prefetch = 0 : i64, scratch_operands = 0 : i64, tpu.core_type = #tpu.core_type<tc>, window_params = [{transform_indices = @transform_0, window_bounds = array<i64: 24, 4096>}, {pipeline_mode = #tpu.pipeline_mode<synchronous>, transform_indices = @transform_1, window_bounds = array<i64: 4096, 512>}, {transform_indices = @transform_2, window_bounds = array<i64: 24, 512>}, {transform_indices = @transform_3, window_bounds = array<i64: 1, 8, 512>}]} {
    %c0 = arith.constant 0 : index
    %c0_0 = arith.constant 0 : index
    %0 = vector.load %arg1[%c0, %c0_0] : memref<24x4096xbf16, #tpu.memory_space<vmem>>, vector<24x4096xbf16>
    %c0_1 = arith.constant 0 : index
    %c0_2 = arith.constant 0 : index
    %1 = vector.load %arg2[%c0_1, %c0_2] : memref<4096x512xbf16, #tpu.memory_space<vmem>>, vector<4096x512xbf16>
    %cst = arith.constant dense<0.000000e+00> : vector<24x512xf32>
    %2 = tpu.matmul %0, %1, %cst {dimension_numbers = #tpu.dot_dimension_numbers<[1], [0], [0], [1], [0, 0, 1, 1], [], []>} : vector<24x4096xbf16>, vector<4096x512xbf16>, vector<24x512xf32> -> vector<24x512xf32>
    %c0_3 = arith.constant 0 : index
    %c0_4 = arith.constant 0 : index
    %3 = vector.load %arg3[%c0_3, %c0_4] : memref<24x512xf32, #tpu.memory_space<vmem>>, vector<24x512xf32>
    tpu.vector_store %arg3[%c0_3, %c0_4], %2 {strides = array<i32>} : memref<24x512xf32, #tpu.memory_space<vmem>>, vector<24x512xf32>,
    %cst_5 = arith.constant dense<0.000000e+00> : vector<512xf32>
    %4 = vector.multi_reduction <add>, %2, %cst_5 [0] : vector<24x512xf32> to vector<512xf32>
    %5 = vector.shape_cast %4 : vector<512xf32> to vector<1x512xf32>
    %6 = arith.mulf %2, %2 : vector<24x512xf32>
    %cst_6 = arith.constant dense<0.000000e+00> : vector<512xf32>
    %7 = vector.multi_reduction <add>, %6, %cst_6 [0] : vector<24x512xf32> to vector<512xf32>
    %8 = vector.shape_cast %7 : vector<512xf32> to vector<1x512xf32>
    %cst_7 = arith.constant 0.000000e+00 : f32
    %9 = vector.broadcast %cst_7 : f32 to vector<6x512xf32>
    %10 = tpu.concatenate %5, %8, %9 in 0 : vector<1x512xf32>, vector<1x512xf32>, vector<6x512xf32> -> vector<8x512xf32>
    %c0_8 = arith.constant 0 : index
    %c0_9 = arith.constant 0 : index
    %c0_10 = arith.constant 0 : index
    %11 = vector.load %arg4[%c0_8, %c0_9, %c0_10] : memref<1x8x512xf32, #tpu.memory_space<vmem>>, vector<1x8x512xf32>
    %12 = vector.shape_cast %11 : vector<1x8x512xf32> to vector<8x512xf32>
    %13 = vector.shape_cast %10 : vector<8x512xf32> to vector<1x8x512xf32>
    tpu.vector_store %arg4[%c0_8, %c0_9, %c0_10], %13 {strides = array<i32>} : memref<1x8x512xf32, #tpu.memory_space<vmem>>, vector<1x8x512xf32>,
    return
  }
  func.func @transform_0(%arg0: i32) -> (i32, i32) {
    %c0_i32 = arith.constant 0 : i32
    %c0_i32_0 = arith.constant 0 : i32
    return %arg0, %c0_i32 : i32, i32
  }
  func.func @transform_1(%arg0: i32) -> (i32, i32) {
    %c0_i32 = arith.constant 0 : i32
    %c0_i32_0 = arith.constant 0 : i32
    %c0_i32_1 = arith.constant 0 : i32
    return %c0_i32, %c0_i32_0 : i32, i32
  }
  func.func @transform_2(%arg0: i32) -> (i32, i32) {
    %c0_i32 = arith.constant 0 : i32
    %c0_i32_0 = arith.constant 0 : i32
    return %arg0, %c0_i32 : i32, i32
  }
  func.func @transform_3(%arg0: i32) -> (i32, i32, i32) {
    %c0_i32 = arith.constant 0 : i32
    %c0_i32_0 = arith.constant 0 : i32
    %c0_i32_1 = arith.constant 0 : i32
    return %arg0, %c0_i32, %c0_i32_0 : i32, i32, i32
  }
}

module attributes {stable_mosaic.version = 11 : i64} {
  func.func @_bn_leaky_kernel(%arg0: i32, %arg1: memref<24x512xf32, #tpu.memory_space<vmem>>, %arg2: memref<1x512xf32, #tpu.memory_space<vmem>>, %arg3: memref<1x512xf32, #tpu.memory_space<vmem>>, %arg4: memref<24x512xf32, #tpu.memory_space<vmem>>) attributes {dimension_semantics = [#tpu.dimension_semantics<parallel>], iteration_bounds = array<i64: 1>, scalar_prefetch = 0 : i64, scratch_operands = 0 : i64, tpu.core_type = #tpu.core_type<tc>, window_params = [{transform_indices = @transform_0, window_bounds = array<i64: 24, 512>}, {pipeline_mode = #tpu.pipeline_mode<synchronous>, transform_indices = @transform_1, window_bounds = array<i64: 1, 512>}, {pipeline_mode = #tpu.pipeline_mode<synchronous>, transform_indices = @transform_2, window_bounds = array<i64: 1, 512>}, {transform_indices = @transform_3, window_bounds = array<i64: 24, 512>}]} {
    %c0 = arith.constant 0 : index
    %c0_0 = arith.constant 0 : index
    %0 = vector.load %arg1[%c0, %c0_0] : memref<24x512xf32, #tpu.memory_space<vmem>>, vector<24x512xf32>
    %c0_1 = arith.constant 0 : index
    %c0_2 = arith.constant 0 : index
    %1 = vector.load %arg2[%c0_1, %c0_2] : memref<1x512xf32, #tpu.memory_space<vmem>>, vector<1x512xf32>
    %2 = vector.broadcast %1 : vector<1x512xf32> to vector<24x512xf32>
    %3 = arith.mulf %0, %2 : vector<24x512xf32>
    %c0_3 = arith.constant 0 : index
    %c0_4 = arith.constant 0 : index
    %4 = vector.load %arg3[%c0_3, %c0_4] : memref<1x512xf32, #tpu.memory_space<vmem>>, vector<1x512xf32>
    %5 = vector.broadcast %4 : vector<1x512xf32> to vector<24x512xf32>
    %6 = arith.addf %3, %5 : vector<24x512xf32>
    %cst = arith.constant 0.000000e+00 : f32
    %7 = vector.broadcast %cst : f32 to vector<24x512xf32>
    %8 = arith.cmpf oge, %6, %7 : vector<24x512xf32>
    %cst_5 = arith.constant 2.000000e-01 : f32
    %9 = vector.broadcast %cst_5 : f32 to vector<24x512xf32>
    %10 = arith.mulf %9, %6 : vector<24x512xf32>
    %11 = arith.select %8, %6, %10 : vector<24x512xi1>, vector<24x512xf32>
    %c0_6 = arith.constant 0 : index
    %c0_7 = arith.constant 0 : index
    %12 = vector.load %arg4[%c0_6, %c0_7] : memref<24x512xf32, #tpu.memory_space<vmem>>, vector<24x512xf32>
    tpu.vector_store %arg4[%c0_6, %c0_7], %11 {strides = array<i32>} : memref<24x512xf32, #tpu.memory_space<vmem>>, vector<24x512xf32>,
    return
  }
  func.func @transform_0(%arg0: i32) -> (i32, i32) {
    %c0_i32 = arith.constant 0 : i32
    %c0_i32_0 = arith.constant 0 : i32
    return %arg0, %c0_i32 : i32, i32
  }
  func.func @transform_1(%arg0: i32) -> (i32, i32) {
    %c0_i32 = arith.constant 0 : i32
    %c0_i32_0 = arith.constant 0 : i32
    %c0_i32_1 = arith.constant 0 : i32
    return %c0_i32, %c0_i32_0 : i32, i32
  }
  func.func @transform_2(%arg0: i32) -> (i32, i32) {
    %c0_i32 = arith.constant 0 : i32
    %c0_i32_0 = arith.constant 0 : i32
    %c0_i32_1 = arith.constant 0 : i32
    return %c0_i32, %c0_i32_0 : i32, i32
  }
  func.func @transform_3(%arg0: i32) -> (i32, i32) {
    %c0_i32 = arith.constant 0 : i32
    %c0_i32_0 = arith.constant 0 : i32
    return %arg0, %c0_i32 : i32, i32
  }
}

module attributes {stable_mosaic.version = 11 : i64} {
  func.func @_conv_gemm_kernel(%arg0: i32, %arg1: memref<8x8192xbf16, #tpu.memory_space<vmem>>, %arg2: memref<8192x128xbf16, #tpu.memory_space<vmem>>, %arg3: memref<1x128xf32, #tpu.memory_space<vmem>>, %arg4: memref<8x128xf32, #tpu.memory_space<vmem>>) attributes {dimension_semantics = [#tpu.dimension_semantics<parallel>], iteration_bounds = array<i64: 1>, scalar_prefetch = 0 : i64, scratch_operands = 0 : i64, tpu.core_type = #tpu.core_type<tc>, window_params = [{transform_indices = @transform_0, window_bounds = array<i64: 8, 8192>}, {pipeline_mode = #tpu.pipeline_mode<synchronous>, transform_indices = @transform_1, window_bounds = array<i64: 8192, 128>}, {pipeline_mode = #tpu.pipeline_mode<synchronous>, transform_indices = @transform_2, window_bounds = array<i64: 1, 128>}, {transform_indices = @transform_3, window_bounds = array<i64: 8, 128>}]} {
    %c0 = arith.constant 0 : index
    %c0_0 = arith.constant 0 : index
    %0 = vector.load %arg1[%c0, %c0_0] : memref<8x8192xbf16, #tpu.memory_space<vmem>>, vector<8x8192xbf16>
    %c0_1 = arith.constant 0 : index
    %c0_2 = arith.constant 0 : index
    %1 = vector.load %arg2[%c0_1, %c0_2] : memref<8192x128xbf16, #tpu.memory_space<vmem>>, vector<8192x128xbf16>
    %cst = arith.constant dense<0.000000e+00> : vector<8x128xf32>
    %2 = tpu.matmul %0, %1, %cst {dimension_numbers = #tpu.dot_dimension_numbers<[1], [0], [0], [1], [0, 0, 1, 1], [], []>} : vector<8x8192xbf16>, vector<8192x128xbf16>, vector<8x128xf32> -> vector<8x128xf32>
    %c0_3 = arith.constant 0 : index
    %c0_4 = arith.constant 0 : index
    %3 = vector.load %arg3[%c0_3, %c0_4] : memref<1x128xf32, #tpu.memory_space<vmem>>, vector<1x128xf32>
    %4 = vector.broadcast %3 : vector<1x128xf32> to vector<8x128xf32>
    %5 = arith.addf %2, %4 : vector<8x128xf32>
    %c0_5 = arith.constant 0 : index
    %c0_6 = arith.constant 0 : index
    %6 = vector.load %arg4[%c0_5, %c0_6] : memref<8x128xf32, #tpu.memory_space<vmem>>, vector<8x128xf32>
    tpu.vector_store %arg4[%c0_5, %c0_6], %5 {strides = array<i32>} : memref<8x128xf32, #tpu.memory_space<vmem>>, vector<8x128xf32>,
    return
  }
  func.func @transform_0(%arg0: i32) -> (i32, i32) {
    %c0_i32 = arith.constant 0 : i32
    %c0_i32_0 = arith.constant 0 : i32
    return %arg0, %c0_i32 : i32, i32
  }
  func.func @transform_1(%arg0: i32) -> (i32, i32) {
    %c0_i32 = arith.constant 0 : i32
    %c0_i32_0 = arith.constant 0 : i32
    %c0_i32_1 = arith.constant 0 : i32
    return %c0_i32, %c0_i32_0 : i32, i32
  }
  func.func @transform_2(%arg0: i32) -> (i32, i32) {
    %c0_i32 = arith.constant 0 : i32
    %c0_i32_0 = arith.constant 0 : i32
    %c0_i32_1 = arith.constant 0 : i32
    return %c0_i32, %c0_i32_0 : i32, i32
  }
  func.func @transform_3(%arg0: i32) -> (i32, i32) {
    %c0_i32 = arith.constant 0 : i32
    %c0_i32_0 = arith.constant 0 : i32
    return %arg0, %c0_i32 : i32, i32
  }
}

</mosaic_0001>

<bundles_post_ra>
// kernel: nlayer_discriminator.8
= control target key start
LH: loop header
LB: loop body
LE: loop exit
PB: predicated region body
PF: predicated region fallthrough
CT: control target
= control target key end

     0   :  { %vm270_vm0 = vcmask 392192   ;;  %s1548_s1 = inlined_call_operand.vmem [shape: bf16[48,128], index: 1, kind: input, shape index: {}]   ;;  %s1549_s0 = inlined_call_operand.vmem [shape: bf16[512,48], index: 0, kind: input, shape index: {}]   ;;  %s1550_s2 = inlined_call_operand.vmem [shape: f32[1,128], index: 2, kind: input, shape index: {}]   ;;  %s1551_s3 = inlined_call_operand.vmem [shape: f32[512,128], index: 3, kind: output, shape index: {}]  }
   0x1   :  { %v1095_v0 = vld [vmem:[%s1548_s1] sm:$0xff]   ;;  %v1096_v1 = vld [vmem:[%s1548_s1 + $0x8] sm:$0xff]   ;;  %v1097_v2 = vld [vmem:[%s1548_s1 + $0x10] sm:$0xff]  }
   0x2   :  { %1019 = vmatprep.subr.bf16.mxu0 %v1095_v0  ;;  %1089 = vmatprep.subr.bf16.mxu1 %v1095_v0  ;;  %v1098_v3 = vld [vmem:[%s1549_s0] sm:$0xff]   ;;  %v1100_v5 = vld [vmem:[%s1549_s0 + $0x8] sm:$0xff]   ;;  %v1102_v7 = vld [vmem:[%s1549_s0 + $0x10] sm:$0xff]  }
   0x3   :  { %1020 = vmatpush3.bf16.msra.mxu0 %v1095_v0  ;;  %1092 = vmatpush3.bf16.msra.mxu1 %v1095_v0  ;;  %v1099_v4 = vld [vmem:[%s1549_s0 + $0x80] sm:$0xff]   ;;  %v1101_v6 = vld [vmem:[%s1549_s0 + $0x88] sm:$0xff]   ;;  %v1103_v8 = vld [vmem:[%s1549_s0 + $0x90] sm:$0xff]  }
   0x4   :  { %1021 = vmatprep.subr.bf16.mxu0 %v1096_v1  ;;  %1090 = vmatprep.subr.bf16.mxu1 %v1096_v1  ;;  %v1104_v9 = vld [vmem:[%s1549_s0 + $0x18] sm:$0xff]   ;;  %v1106_v11 = vld [vmem:[%s1549_s0 + $0x20] sm:$0xff]   ;;  %v1108_v13 = vld [vmem:[%s1549_s0 + $0x28] sm:$0xff]  }
   0x5   :  { %1025 = vmatprep.mubr.msk.bf16.mxu0 %vm270_vm0, %v1098_v3  ;;  %1057 = vmatprep.mubr.msk.bf16.mxu1 %vm270_vm0, %v1099_v4  ;;  %v1105_v10 = vld [vmem:[%s1549_s0 + $0x98] sm:$0xff]   ;;  %v1107_v12 = vld [vmem:[%s1549_s0 + $0xa0] sm:$0xff]   ;;  %v1109_v14 = vld [vmem:[%s1549_s0 + $0xa8] sm:$0xff]  }
   0x6   :  { %v1110_v15 = vld [vmem:[%s1549_s0 + $0x30] sm:$0xff]   ;;  %v1112_v17 = vld [vmem:[%s1549_s0 + $0x38] sm:$0xff]   ;;  %v1114_v19 = vld [vmem:[%s1549_s0 + $0x40] sm:$0xff]  }
   0x7   :  { %1022 = vmatpush3.bf16.msra.mxu0 %v1096_v1  ;;  %1093 = vmatpush3.bf16.msra.mxu1 %v1096_v1  ;;  %v1111_v16 = vld [vmem:[%s1549_s0 + $0xb0] sm:$0xff]   ;;  %v1113_v18 = vld [vmem:[%s1549_s0 + $0xb8] sm:$0xff]   ;;  %v1115_v20 = vld [vmem:[%s1549_s0 + $0xc0] sm:$0xff]  }
   0x8   :  { %1023 = vmatprep.subr.bf16.mxu0 %v1097_v2  ;;  %1091 = vmatprep.subr.bf16.mxu1 %v1097_v2  ;;  %v1116_v21 = vld [vmem:[%s1549_s0 + $0x48] sm:$0xff]   ;;  %v1118_v23 = vld [vmem:[%s1549_s0 + $0x50] sm:$0xff]   ;;  %v1120_v25 = vld [vmem:[%s1549_s0 + $0x58] sm:$0xff]  }
   0x9   :  { %v1117_v22 = vld [vmem:[%s1549_s0 + $0xc8] sm:$0xff]   ;;  %v1119_v24 = vld [vmem:[%s1549_s0 + $0xd0] sm:$0xff]   ;;  %v1121_v26 = vld [vmem:[%s1549_s0 + $0xd8] sm:$0xff]  }
   0xa   :  { %v1122_v27 = vld [vmem:[%s1549_s0 + $0x60] sm:$0xff]   ;;  %v1124_v29 = vld [vmem:[%s1549_s0 + $0x68] sm:$0xff]   ;;  %v1126_v31 = vld [vmem:[%s1549_s0 + $0x70] sm:$0xff]  }
   0xb   :  { %1024 = vmatpush3.bf16.msra.mxu0 %v1097_v2  ;;  %1094 = vmatpush3.bf16.msra.mxu1 %v1097_v2  ;;  %v1123_v28 = vld [vmem:[%s1549_s0 + $0xe0] sm:$0xff]   ;;  %v1125_v30 = vld [vmem:[%s1549_s0 + $0xe8] sm:$0xff]   ;;  %v1127_v32 = vld [vmem:[%s1549_s0 + $0xf0] sm:$0xff]  }
   0xc   :  { %v1128_v33 = vld [vmem:[%s1549_s0 + $0x78] sm:$0xff]   ;;  %v1290_v35 = vld [vmem:[%s1550_s2] ss:$0 sm:$0xff] }
   0xd   :  { %v1129_v34 = vld [vmem:[%s1549_s0 + $0xf8] sm:$0xff]  }
   0xe   :  { %1026 = vmatmul.mubr.msk.bf16.vlgmr.msra.gmra.mrb[0].mxu0 %vm270_vm0, %v1100_v5  ;;  %1058 = vmatmul.mubr.msk.bf16.vlgmr.msra.gmra.mrb[0].mxu1 %vm270_vm0, %v1101_v6 }
   0xf   :  { %1029 = vmatprep.mubr.msk.bf16.mxu0 %vm270_vm0, %v1102_v7  ;;  %1061 = vmatprep.mubr.msk.bf16.mxu1 %vm270_vm0, %v1103_v8 }
  0x16   :  { %1030 = vmatmul.mubr.msk.bf16.gmra.mrb[4].mxu0 %vm270_vm0, %v1104_v9  ;;  %1062 = vmatmul.mubr.msk.bf16.gmra.mrb[4].mxu1 %vm270_vm0, %v1105_v10 }
  0x17   :  { %1033 = vmatprep.mubr.msk.bf16.mxu0 %vm270_vm0, %v1106_v11  ;;  %1065 = vmatprep.mubr.msk.bf16.mxu1 %vm270_vm0, %v1107_v12 }
  0x1e   :  { %1034 = vmatmul.mubr.msk.bf16.gmra.mrb[8].mxu0 %vm270_vm0, %v1108_v13  ;;  %1066 = vmatmul.mubr.msk.bf16.gmra.mrb[8].mxu1 %vm270_vm0, %v1109_v14 }
  0x1f   :  { %1037 = vmatprep.mubr.msk.bf16.mxu0 %vm270_vm0, %v1110_v15  ;;  %1069 = vmatprep.mubr.msk.bf16.mxu1 %vm270_vm0, %v1111_v16 }
  0x26   :  { %1038 = vmatmul.mubr.msk.bf16.gmra.mrb[12].mxu0 %vm270_vm0, %v1112_v17  ;;  %1070 = vmatmul.mubr.msk.bf16.gmra.mrb[12].mxu1 %vm270_vm0, %v1113_v18 }
  0x27   :  { %1041 = vmatprep.mubr.msk.bf16.mxu0 %vm270_vm0, %v1114_v19  ;;  %1073 = vmatprep.mubr.msk.bf16.mxu1 %vm270_vm0, %v1115_v20 }
  0x2e   :  { %1042 = vmatmul.mubr.msk.bf16.gmra.mrb[16].mxu0 %vm270_vm0, %v1116_v21  ;;  %1074 = vmatmul.mubr.msk.bf16.gmra.mrb[16].mxu1 %vm270_vm0, %v1117_v22 }
  0x2f   :  { %1045 = vmatprep.mubr.msk.bf16.mxu0 %vm270_vm0, %v1118_v23  ;;  %1077 = vmatprep.mubr.msk.bf16.mxu1 %vm270_vm0, %v1119_v24 }
  0x36   :  { %1046 = vmatmul.mubr.msk.bf16.gmra.mrb[20].mxu0 %vm270_vm0, %v1120_v25  ;;  %1078 = vmatmul.mubr.msk.bf16.gmra.mrb[20].mxu1 %vm270_vm0, %v1121_v26 }
  0x37   :  { %1049 = vmatprep.mubr.msk.bf16.mxu0 %vm270_vm0, %v1122_v27  ;;  %1081 = vmatprep.mubr.msk.bf16.mxu1 %vm270_vm0, %v1123_v28 }
  0x3e   :  { %1050 = vmatmul.mubr.msk.bf16.gmra.mrb[24].mxu0 %vm270_vm0, %v1124_v29  ;;  %1082 = vmatmul.mubr.msk.bf16.gmra.mrb[24].mxu1 %vm270_vm0, %v1125_v30 }
  0x3f   :  { %1053 = vmatprep.mubr.msk.bf16.mxu0 %vm270_vm0, %v1126_v31  ;;  %1085 = vmatprep.mubr.msk.bf16.mxu1 %vm270_vm0, %v1127_v32 }
  0x46   :  { %1054 = vmatmul.mubr.msk.bf16.gmra.mrb[28].mxu0 %vm270_vm0, %v1128_v33  ;;  %1086 = vmatmul.mubr.msk.bf16.gmra.mrb[28].mxu1 %vm270_vm0, %v1129_v34 }
  0xe1   :  { %v1027_v36 = vpop.f32.mrb[0].mxu0  ;;  %v1059_v37 = vpop.f32.mrb[0].mxu1 }
  0xe2   :  { %v410_v38 = vadd.f32 %v1027_v36, %v1290_v35  ;;  %v538_v39 = vadd.f32 %v1059_v37, %v1290_v35  ;;  %v401_v40 = vpop.f32.mrb[1].mxu0  ;;  %v529_v41 = vpop.f32.mrb[1].mxu1 }
  0xe3   :  { %v402_v42 = vadd.f32 %v1290_v35, %v401_v40  ;;  %v530_v43 = vadd.f32 %v1290_v35, %v529_v41  ;;  %v1028_v44 = vpop.f32.mrb[2].mxu0  ;;  %v1060_v45 = vpop.f32.mrb[2].mxu1 }
  0xe4   :  { %vm658_vm1 = vcmp.ge.f32.partialorder %v410_v38, 0.0  ;;  %v722_v46 = vmul.f32 0.2, %v410_v38  ;;  %vm690_vm2 = vcmp.ge.f32.partialorder %v538_v39, 0.0  ;;  %v754_v47 = vmul.f32 0.2, %v538_v39 }
  0xe5   :  { %vm656_vm3 = vcmp.ge.f32.partialorder %v402_v42, 0.0  ;;  %v720_v48 = vmul.f32 0.2, %v402_v42  ;;  %vm688_vm4 = vcmp.ge.f32.partialorder %v530_v43, 0.0  ;;  %v752_v49 = vmul.f32 0.2, %v530_v43 }
  0xe6   :  { %v786_v50 = vsel %vm658_vm1, %v410_v38, %v722_v46  ;;  %v818_v51 = vsel %vm690_vm2, %v538_v39, %v754_v47  ;;  %v413_v52 = vadd.f32 %v1028_v44, %v1290_v35  ;;  %v541_v53 = vadd.f32 %v1060_v45, %v1290_v35  ;;  %v404_v54 = vpop.f32.mrb[3].mxu0  ;;  %v532_v55 = vpop.f32.mrb[3].mxu1 }
  0xe7   :  { %850 = vst [vmem:[%s1551_s3 + $0x10] sm:$0xff] %v786_v50  ;;  %882 = vst [vmem:[%s1551_s3 + $0x110] sm:$0xff] %v818_v51  ;;  %v784_v56 = vsel %vm656_vm3, %v402_v42, %v720_v48  ;;  %v816_v57 = vsel %vm688_vm4, %v530_v43, %v752_v49  ;;  %v405_v58 = vadd.f32 %v1290_v35, %v404_v54 }
  0xe8   :  { %v533_v59 = vadd.f32 %v1290_v35, %v532_v55  ;;  %848 = vst [vmem:[%s1551_s3] sm:$0xff] %v784_v56  ;;  %880 = vst [vmem:[%s1551_s3 + $0x100] sm:$0xff] %v816_v57  ;;  %vm659_vm5 = vcmp.ge.f32.partialorder %v413_v52, 0.0  ;;  %v723_v60 = vmul.f32 0.2, %v413_v52  ;;  %vm691_vm6 = vcmp.ge.f32.partialorder %v541_v53, 0.0 }
  0xe9   :  { %v755_v61 = vmul.f32 0.2, %v541_v53  ;;  %vm657_vm7 = vcmp.ge.f32.partialorder %v405_v58, 0.0  ;;  %v721_v62 = vmul.f32 0.2, %v405_v58  ;;  %v1031_v2 = vpop.f32.mrb[4].mxu0 }
  0xea   :  { %vm689_vm8 = vcmp.ge.f32.partialorder %v533_v59, 0.0  ;;  %v753_v63 = vmul.f32 0.2, %v533_v59  ;;  %v787_v0 = vsel %vm659_vm5, %v413_v52, %v723_v60  ;;  %v1063_v3 = vpop.f32.mrb[4].mxu1  ;;  %v426_v6 = vadd.f32 %v1031_v2, %v1290_v35  ;;  %v417_v8 = vpop.f32.mrb[5].mxu0 }
  0xeb   :  { %v819_v1 = vsel %vm691_vm6, %v541_v53, %v755_v61  ;;  %851 = vst [vmem:[%s1551_s3 + $0x18] sm:$0xff] %v787_v0  ;;  %v785_v4 = vsel %vm657_vm7, %v405_v58, %v721_v62  ;;  %v554_v7 = vadd.f32 %v1063_v3, %v1290_v35  ;;  %v545_v9 = vpop.f32.mrb[5].mxu1  ;;  %v418_v10 = vadd.f32 %v1290_v35, %v417_v8  ;;  %v1032_v12 = vpop.f32.mrb[6].mxu0 }
  0xec   :  { %883 = vst [vmem:[%s1551_s3 + $0x118] sm:$0xff] %v819_v1  ;;  %v817_v5 = vsel %vm689_vm8, %v533_v59, %v753_v63  ;;  %849 = vst [vmem:[%s1551_s3 + $0x8] sm:$0xff] %v785_v4  ;;  %v546_v11 = vadd.f32 %v1290_v35, %v545_v9  ;;  %v1064_v13 = vpop.f32.mrb[6].mxu1  ;;  %vm662_vm9 = vcmp.ge.f32.partialorder %v426_v6, 0.0  ;;  %v726_v14 = vmul.f32 0.2, %v426_v6 }
  0xed   :  { %881 = vst [vmem:[%s1551_s3 + $0x108] sm:$0xff] %v817_v5  ;;  %vm694_vm10 = vcmp.ge.f32.partialorder %v554_v7, 0.0  ;;  %v758_v15 = vmul.f32 0.2, %v554_v7  ;;  %vm660_vm11 = vcmp.ge.f32.partialorder %v418_v10, 0.0  ;;  %v429_v20 = vadd.f32 %v1032_v12, %v1290_v35  ;;  %v420_v22 = vpop.f32.mrb[7].mxu0 }
  0xee   :  { %v724_v16 = vmul.f32 0.2, %v418_v10  ;;  %vm692_vm12 = vcmp.ge.f32.partialorder %v546_v11, 0.0  ;;  %v756_v17 = vmul.f32 0.2, %v546_v11  ;;  %v790_v18 = vsel %vm662_vm9, %v426_v6, %v726_v14  ;;  %v548_v23 = vpop.f32.mrb[7].mxu1 }
  0xef   :  { %v822_v19 = vsel %vm694_vm10, %v554_v7, %v758_v15  ;;  %v557_v21 = vadd.f32 %v1064_v13, %v1290_v35  ;;  %854 = vst [vmem:[%s1551_s3 + $0x30] sm:$0xff] %v790_v18  ;;  %v421_v26 = vadd.f32 %v1290_v35, %v420_v22  ;;  %v549_v27 = vadd.f32 %v1290_v35, %v548_v23 }
  0xf0   :  { %886 = vst [vmem:[%s1551_s3 + $0x130] sm:$0xff] %v822_v19  ;;  %v788_v24 = vsel %vm660_vm11, %v418_v10, %v724_v16  ;;  %v820_v25 = vsel %vm692_vm12, %v546_v11, %v756_v17  ;;  %vm663_vm13 = vcmp.ge.f32.partialorder %v429_v20, 0.0  ;;  %v727_v28 = vmul.f32 0.2, %v429_v20 }
  0xf1   :  { %852 = vst [vmem:[%s1551_s3 + $0x20] sm:$0xff] %v788_v24  ;;  %884 = vst [vmem:[%s1551_s3 + $0x120] sm:$0xff] %v820_v25  ;;  %vm695_vm14 = vcmp.ge.f32.partialorder %v557_v21, 0.0  ;;  %v759_v29 = vmul.f32 0.2, %v557_v21  ;;  %vm661_vm15 = vcmp.ge.f32.partialorder %v421_v26, 0.0 }
  0xf2   :  { %v725_v30 = vmul.f32 0.2, %v421_v26  ;;  %vm693_vm0 = vcmp.ge.f32.partialorder %v549_v27, 0.0  ;;  %v757_v31 = vmul.f32 0.2, %v549_v27  ;;  %v791_v32 = vsel %vm663_vm13, %v429_v20, %v727_v28  ;;  %v1035_v34 = vpop.f32.mrb[8].mxu0 }
  0xf3   :  { %v823_v33 = vsel %vm695_vm14, %v557_v21, %v759_v29  ;;  %v1067_v36 = vpop.f32.mrb[8].mxu1  ;;  %855 = vst [vmem:[%s1551_s3 + $0x38] sm:$0xff] %v791_v32  ;;  %v442_v39 = vadd.f32 %v1035_v34, %v1290_v35  ;;  %v433_v41 = vpop.f32.mrb[9].mxu0 }
  0xf4   :  { %887 = vst [vmem:[%s1551_s3 + $0x138] sm:$0xff] %v823_v33  ;;  %v789_v37 = vsel %vm661_vm15, %v421_v26, %v725_v30  ;;  %v821_v38 = vsel %vm693_vm0, %v549_v27, %v757_v31  ;;  %v570_v40 = vadd.f32 %v1067_v36, %v1290_v35  ;;  %v561_v42 = vpop.f32.mrb[9].mxu1  ;;  %v434_v43 = vadd.f32 %v1290_v35, %v433_v41  ;;  %v1036_v45 = vpop.f32.mrb[10].mxu0 }
  0xf5   :  { %853 = vst [vmem:[%s1551_s3 + $0x28] sm:$0xff] %v789_v37  ;;  %885 = vst [vmem:[%s1551_s3 + $0x128] sm:$0xff] %v821_v38  ;;  %v562_v44 = vadd.f32 %v1290_v35, %v561_v42  ;;  %v1068_v46 = vpop.f32.mrb[10].mxu1  ;;  %vm666_vm1 = vcmp.ge.f32.partialorder %v442_v39, 0.0  ;;  %v730_v47 = vmul.f32 0.2, %v442_v39  ;;  %v445_v53 = vadd.f32 %v1036_v45, %v1290_v35 }
  0xf6   :  { %vm698_vm2 = vcmp.ge.f32.partialorder %v570_v40, 0.0  ;;  %v762_v48 = vmul.f32 0.2, %v570_v40  ;;  %vm664_vm3 = vcmp.ge.f32.partialorder %v434_v43, 0.0  ;;  %v728_v49 = vmul.f32 0.2, %v434_v43 }
  0xf7   :  { %vm696_vm4 = vcmp.ge.f32.partialorder %v562_v44, 0.0  ;;  %v760_v50 = vmul.f32 0.2, %v562_v44  ;;  %v794_v51 = vsel %vm666_vm1, %v442_v39, %v730_v47  ;;  %v573_v54 = vadd.f32 %v1068_v46, %v1290_v35  ;;  %v436_v55 = vpop.f32.mrb[11].mxu0  ;;  %v564_v56 = vpop.f32.mrb[11].mxu1 }
  0xf8   :  { %v826_v52 = vsel %vm698_vm2, %v570_v40, %v762_v48  ;;  %858 = vst [vmem:[%s1551_s3 + $0x50] sm:$0xff] %v794_v51  ;;  %v792_v57 = vsel %vm664_vm3, %v434_v43, %v728_v49  ;;  %v437_v59 = vadd.f32 %v1290_v35, %v436_v55  ;;  %v565_v60 = vadd.f32 %v1290_v35, %v564_v56 }
  0xf9   :  { %890 = vst [vmem:[%s1551_s3 + $0x150] sm:$0xff] %v826_v52  ;;  %v824_v58 = vsel %vm696_vm4, %v562_v44, %v760_v50  ;;  %v1039_v61 = vpop.f32.mrb[12].mxu0  ;;  %v1071_v62 = vpop.f32.mrb[12].mxu1  ;;  %856 = vst [vmem:[%s1551_s3 + $0x40] sm:$0xff] %v792_v57  ;;  %vm667_vm5 = vcmp.ge.f32.partialorder %v445_v53, 0.0  ;;  %vm699_vm6 = vcmp.ge.f32.partialorder %v573_v54, 0.0 }
  0xfa   :  { %888 = vst [vmem:[%s1551_s3 + $0x140] sm:$0xff] %v824_v58  ;;  %v731_v63 = vmul.f32 0.2, %v445_v53  ;;  %v763_v0 = vmul.f32 0.2, %v573_v54  ;;  %vm665_vm7 = vcmp.ge.f32.partialorder %v437_v59, 0.0  ;;  %v458_v5 = vadd.f32 %v1039_v61, %v1290_v35 }
  0xfb   :  { %v729_v1 = vmul.f32 0.2, %v437_v59  ;;  %vm697_vm8 = vcmp.ge.f32.partialorder %v565_v60, 0.0  ;;  %v761_v2 = vmul.f32 0.2, %v565_v60  ;;  %v586_v6 = vadd.f32 %v1071_v62, %v1290_v35  ;;  %v449_v7 = vpop.f32.mrb[13].mxu0 }
  0xfc   :  { %v795_v3 = vsel %vm667_vm5, %v445_v53, %v731_v63  ;;  %v827_v4 = vsel %vm699_vm6, %v573_v54, %v763_v0  ;;  %v577_v8 = vpop.f32.mrb[13].mxu1  ;;  %v450_v11 = vadd.f32 %v1290_v35, %v449_v7  ;;  %v1040_v13 = vpop.f32.mrb[14].mxu0  ;;  %vm670_vm9 = vcmp.ge.f32.partialorder %v458_v5, 0.0 }
  0xfd   :  { %859 = vst [vmem:[%s1551_s3 + $0x58] sm:$0xff] %v795_v3  ;;  %891 = vst [vmem:[%s1551_s3 + $0x158] sm:$0xff] %v827_v4  ;;  %v793_v9 = vsel %vm665_vm7, %v437_v59, %v729_v1  ;;  %v825_v10 = vsel %vm697_vm8, %v565_v60, %v761_v2  ;;  %v578_v12 = vadd.f32 %v1290_v35, %v577_v8  ;;  %v1072_v14 = vpop.f32.mrb[14].mxu1  ;;  %v734_v15 = vmul.f32 0.2, %v458_v5  ;;  %v452_v23 = vpop.f32.mrb[15].mxu0 }
  0xfe   :  { %857 = vst [vmem:[%s1551_s3 + $0x48] sm:$0xff] %v793_v9  ;;  %889 = vst [vmem:[%s1551_s3 + $0x148] sm:$0xff] %v825_v10  ;;  %vm702_vm10 = vcmp.ge.f32.partialorder %v586_v6, 0.0  ;;  %v766_v16 = vmul.f32 0.2, %v586_v6  ;;  %vm668_vm11 = vcmp.ge.f32.partialorder %v450_v11, 0.0  ;;  %v461_v21 = vadd.f32 %v1040_v13, %v1290_v35 }
  0xff   :  { %v732_v17 = vmul.f32 0.2, %v450_v11  ;;  %vm700_vm12 = vcmp.ge.f32.partialorder %v578_v12, 0.0  ;;  %v764_v18 = vmul.f32 0.2, %v578_v12  ;;  %v798_v19 = vsel %vm670_vm9, %v458_v5, %v734_v15  ;;  %v580_v24 = vpop.f32.mrb[15].mxu1 }
 0x100   :  { %v830_v20 = vsel %vm702_vm10, %v586_v6, %v766_v16  ;;  %v589_v22 = vadd.f32 %v1072_v14, %v1290_v35  ;;  %862 = vst [vmem:[%s1551_s3 + $0x70] sm:$0xff] %v798_v19  ;;  %v453_v27 = vadd.f32 %v1290_v35, %v452_v23  ;;  %v581_v28 = vadd.f32 %v1290_v35, %v580_v24 }
 0x101   :  { %894 = vst [vmem:[%s1551_s3 + $0x170] sm:$0xff] %v830_v20  ;;  %v796_v25 = vsel %vm668_vm11, %v450_v11, %v732_v17  ;;  %v828_v26 = vsel %vm700_vm12, %v578_v12, %v764_v18  ;;  %v1043_v29 = vpop.f32.mrb[16].mxu0  ;;  %v1075_v30 = vpop.f32.mrb[16].mxu1  ;;  %vm671_vm13 = vcmp.ge.f32.partialorder %v461_v21, 0.0  ;;  %v735_v31 = vmul.f32 0.2, %v461_v21 }
 0x102   :  { %860 = vst [vmem:[%s1551_s3 + $0x60] sm:$0xff] %v796_v25  ;;  %892 = vst [vmem:[%s1551_s3 + $0x160] sm:$0xff] %v828_v26  ;;  %vm703_vm14 = vcmp.ge.f32.partialorder %v589_v22, 0.0  ;;  %v767_v32 = vmul.f32 0.2, %v589_v22  ;;  %vm669_vm15 = vcmp.ge.f32.partialorder %v453_v27, 0.0  ;;  %v474_v38 = vadd.f32 %v1043_v29, %v1290_v35 }
 0x103   :  { %v733_v33 = vmul.f32 0.2, %v453_v27  ;;  %vm701_vm0 = vcmp.ge.f32.partialorder %v581_v28, 0.0  ;;  %v765_v34 = vmul.f32 0.2, %v581_v28  ;;  %v799_v36 = vsel %vm671_vm13, %v461_v21, %v735_v31  ;;  %v465_v40 = vpop.f32.mrb[17].mxu0 }
 0x104   :  { %v831_v37 = vsel %vm703_vm14, %v589_v22, %v767_v32  ;;  %v602_v39 = vadd.f32 %v1075_v30, %v1290_v35  ;;  %v593_v41 = vpop.f32.mrb[17].mxu1  ;;  %863 = vst [vmem:[%s1551_s3 + $0x78] sm:$0xff] %v799_v36  ;;  %v466_v44 = vadd.f32 %v1290_v35, %v465_v40  ;;  %v1044_v46 = vpop.f32.mrb[18].mxu0  ;;  %vm674_vm1 = vcmp.ge.f32.partialorder %v474_v38, 0.0 }
 0x105   :  { %895 = vst [vmem:[%s1551_s3 + $0x178] sm:$0xff] %v831_v37  ;;  %v797_v42 = vsel %vm669_vm15, %v453_v27, %v733_v33  ;;  %v829_v43 = vsel %vm701_vm0, %v581_v28, %v765_v34  ;;  %v594_v45 = vadd.f32 %v1290_v35, %v593_v41  ;;  %v1076_v47 = vpop.f32.mrb[18].mxu1  ;;  %v738_v48 = vmul.f32 0.2, %v474_v38  ;;  %v468_v56 = vpop.f32.mrb[19].mxu0 }
 0x106   :  { %861 = vst [vmem:[%s1551_s3 + $0x68] sm:$0xff] %v797_v42  ;;  %893 = vst [vmem:[%s1551_s3 + $0x168] sm:$0xff] %v829_v43  ;;  %vm706_vm2 = vcmp.ge.f32.partialorder %v602_v39, 0.0  ;;  %v770_v49 = vmul.f32 0.2, %v602_v39  ;;  %vm672_vm3 = vcmp.ge.f32.partialorder %v466_v44, 0.0  ;;  %v477_v54 = vadd.f32 %v1044_v46, %v1290_v35 }
 0x107   :  { %v736_v50 = vmul.f32 0.2, %v466_v44  ;;  %vm704_vm4 = vcmp.ge.f32.partialorder %v594_v45, 0.0  ;;  %v768_v51 = vmul.f32 0.2, %v594_v45  ;;  %v802_v52 = vsel %vm674_vm1, %v474_v38, %v738_v48  ;;  %v596_v57 = vpop.f32.mrb[19].mxu1 }
 0x108   :  { %v834_v53 = vsel %vm706_vm2, %v602_v39, %v770_v49  ;;  %v605_v55 = vadd.f32 %v1076_v47, %v1290_v35  ;;  %866 = vst [vmem:[%s1551_s3 + $0x90] sm:$0xff] %v802_v52  ;;  %v469_v60 = vadd.f32 %v1290_v35, %v468_v56  ;;  %v597_v61 = vadd.f32 %v1290_v35, %v596_v57 }
 0x109   :  { %898 = vst [vmem:[%s1551_s3 + $0x190] sm:$0xff] %v834_v53  ;;  %v800_v58 = vsel %vm672_vm3, %v466_v44, %v736_v50  ;;  %v832_v59 = vsel %vm704_vm4, %v594_v45, %v768_v51  ;;  %v1047_v62 = vpop.f32.mrb[20].mxu0  ;;  %v1079_v63 = vpop.f32.mrb[20].mxu1  ;;  %vm675_vm5 = vcmp.ge.f32.partialorder %v477_v54, 0.0  ;;  %v739_v0 = vmul.f32 0.2, %v477_v54 }
 0x10a   :  { %864 = vst [vmem:[%s1551_s3 + $0x80] sm:$0xff] %v800_v58  ;;  %896 = vst [vmem:[%s1551_s3 + $0x180] sm:$0xff] %v832_v59  ;;  %vm707_vm6 = vcmp.ge.f32.partialorder %v605_v55, 0.0  ;;  %v771_v1 = vmul.f32 0.2, %v605_v55  ;;  %vm673_vm7 = vcmp.ge.f32.partialorder %v469_v60, 0.0  ;;  %v490_v6 = vadd.f32 %v1047_v62, %v1290_v35 }
 0x10b   :  { %v737_v2 = vmul.f32 0.2, %v469_v60  ;;  %vm705_vm8 = vcmp.ge.f32.partialorder %v597_v61, 0.0  ;;  %v769_v3 = vmul.f32 0.2, %v597_v61  ;;  %v803_v4 = vsel %vm675_vm5, %v477_v54, %v739_v0  ;;  %v481_v8 = vpop.f32.mrb[21].mxu0 }
 0x10c   :  { %v835_v5 = vsel %vm707_vm6, %v605_v55, %v771_v1  ;;  %v618_v7 = vadd.f32 %v1079_v63, %v1290_v35  ;;  %v609_v9 = vpop.f32.mrb[21].mxu1  ;;  %867 = vst [vmem:[%s1551_s3 + $0x98] sm:$0xff] %v803_v4  ;;  %v482_v12 = vadd.f32 %v1290_v35, %v481_v8  ;;  %v1048_v14 = vpop.f32.mrb[22].mxu0  ;;  %vm678_vm9 = vcmp.ge.f32.partialorder %v490_v6, 0.0 }
 0x10d   :  { %899 = vst [vmem:[%s1551_s3 + $0x198] sm:$0xff] %v835_v5  ;;  %v801_v10 = vsel %vm673_vm7, %v469_v60, %v737_v2  ;;  %v833_v11 = vsel %vm705_vm8, %v597_v61, %v769_v3  ;;  %v610_v13 = vadd.f32 %v1290_v35, %v609_v9  ;;  %v1080_v15 = vpop.f32.mrb[22].mxu1  ;;  %v742_v16 = vmul.f32 0.2, %v490_v6  ;;  %v484_v24 = vpop.f32.mrb[23].mxu0 }
 0x10e   :  { %865 = vst [vmem:[%s1551_s3 + $0x88] sm:$0xff] %v801_v10  ;;  %897 = vst [vmem:[%s1551_s3 + $0x188] sm:$0xff] %v833_v11  ;;  %vm710_vm10 = vcmp.ge.f32.partialorder %v618_v7, 0.0  ;;  %v774_v17 = vmul.f32 0.2, %v618_v7  ;;  %vm676_vm11 = vcmp.ge.f32.partialorder %v482_v12, 0.0  ;;  %v493_v22 = vadd.f32 %v1048_v14, %v1290_v35 }
 0x10f   :  { %v740_v18 = vmul.f32 0.2, %v482_v12  ;;  %vm708_vm12 = vcmp.ge.f32.partialorder %v610_v13, 0.0  ;;  %v772_v19 = vmul.f32 0.2, %v610_v13  ;;  %v806_v20 = vsel %vm678_vm9, %v490_v6, %v742_v16  ;;  %v612_v25 = vpop.f32.mrb[23].mxu1 }
 0x110   :  { %v838_v21 = vsel %vm710_vm10, %v618_v7, %v774_v17  ;;  %v621_v23 = vadd.f32 %v1080_v15, %v1290_v35  ;;  %870 = vst [vmem:[%s1551_s3 + $0xb0] sm:$0xff] %v806_v20  ;;  %v485_v28 = vadd.f32 %v1290_v35, %v484_v24  ;;  %v613_v29 = vadd.f32 %v1290_v35, %v612_v25 }
 0x111   :  { %902 = vst [vmem:[%s1551_s3 + $0x1b0] sm:$0xff] %v838_v21  ;;  %v804_v26 = vsel %vm676_vm11, %v482_v12, %v740_v18  ;;  %v836_v27 = vsel %vm708_vm12, %v610_v13, %v772_v19  ;;  %v1051_v30 = vpop.f32.mrb[24].mxu0  ;;  %v1083_v31 = vpop.f32.mrb[24].mxu1  ;;  %vm679_vm13 = vcmp.ge.f32.partialorder %v493_v22, 0.0  ;;  %v743_v32 = vmul.f32 0.2, %v493_v22 }
 0x112   :  { %868 = vst [vmem:[%s1551_s3 + $0xa0] sm:$0xff] %v804_v26  ;;  %900 = vst [vmem:[%s1551_s3 + $0x1a0] sm:$0xff] %v836_v27  ;;  %vm711_vm14 = vcmp.ge.f32.partialorder %v621_v23, 0.0  ;;  %v775_v33 = vmul.f32 0.2, %v621_v23  ;;  %vm677_vm15 = vcmp.ge.f32.partialorder %v485_v28, 0.0  ;;  %v506_v39 = vadd.f32 %v1051_v30, %v1290_v35 }
 0x113   :  { %v741_v34 = vmul.f32 0.2, %v485_v28  ;;  %vm709_vm0 = vcmp.ge.f32.partialorder %v613_v29, 0.0  ;;  %v773_v36 = vmul.f32 0.2, %v613_v29  ;;  %v807_v37 = vsel %vm679_vm13, %v493_v22, %v743_v32  ;;  %v497_v41 = vpop.f32.mrb[25].mxu0 }
 0x114   :  { %v839_v38 = vsel %vm711_vm14, %v621_v23, %v775_v33  ;;  %v634_v40 = vadd.f32 %v1083_v31, %v1290_v35  ;;  %v625_v42 = vpop.f32.mrb[25].mxu1  ;;  %871 = vst [vmem:[%s1551_s3 + $0xb8] sm:$0xff] %v807_v37  ;;  %v498_v45 = vadd.f32 %v1290_v35, %v497_v41  ;;  %v1052_v47 = vpop.f32.mrb[26].mxu0  ;;  %vm682_vm1 = vcmp.ge.f32.partialorder %v506_v39, 0.0 }
 0x115   :  { %903 = vst [vmem:[%s1551_s3 + $0x1b8] sm:$0xff] %v839_v38  ;;  %v805_v43 = vsel %vm677_vm15, %v485_v28, %v741_v34  ;;  %v837_v44 = vsel %vm709_vm0, %v613_v29, %v773_v36  ;;  %v626_v46 = vadd.f32 %v1290_v35, %v625_v42  ;;  %v1084_v48 = vpop.f32.mrb[26].mxu1  ;;  %v746_v49 = vmul.f32 0.2, %v506_v39  ;;  %v500_v57 = vpop.f32.mrb[27].mxu0 }
 0x116   :  { %869 = vst [vmem:[%s1551_s3 + $0xa8] sm:$0xff] %v805_v43  ;;  %901 = vst [vmem:[%s1551_s3 + $0x1a8] sm:$0xff] %v837_v44  ;;  %vm714_vm2 = vcmp.ge.f32.partialorder %v634_v40, 0.0  ;;  %v778_v50 = vmul.f32 0.2, %v634_v40  ;;  %vm680_vm3 = vcmp.ge.f32.partialorder %v498_v45, 0.0  ;;  %v509_v55 = vadd.f32 %v1052_v47, %v1290_v35 }
 0x117   :  { %v744_v51 = vmul.f32 0.2, %v498_v45  ;;  %vm712_vm4 = vcmp.ge.f32.partialorder %v626_v46, 0.0  ;;  %v776_v52 = vmul.f32 0.2, %v626_v46  ;;  %v810_v53 = vsel %vm682_vm1, %v506_v39, %v746_v49  ;;  %v628_v58 = vpop.f32.mrb[27].mxu1 }
 0x118   :  { %v842_v54 = vsel %vm714_vm2, %v634_v40, %v778_v50  ;;  %v637_v56 = vadd.f32 %v1084_v48, %v1290_v35  ;;  %874 = vst [vmem:[%s1551_s3 + $0xd0] sm:$0xff] %v810_v53  ;;  %v501_v61 = vadd.f32 %v1290_v35, %v500_v57  ;;  %v629_v62 = vadd.f32 %v1290_v35, %v628_v58 }
 0x119   :  { %906 = vst [vmem:[%s1551_s3 + $0x1d0] sm:$0xff] %v842_v54  ;;  %v808_v59 = vsel %vm680_vm3, %v498_v45, %v744_v51  ;;  %v840_v60 = vsel %vm712_vm4, %v626_v46, %v776_v52  ;;  %v1055_v63 = vpop.f32.mrb[28].mxu0  ;;  %v1087_v0 = vpop.f32.mrb[28].mxu1  ;;  %vm683_vm5 = vcmp.ge.f32.partialorder %v509_v55, 0.0  ;;  %v747_v1 = vmul.f32 0.2, %v509_v55 }
 0x11a   :  { %872 = vst [vmem:[%s1551_s3 + $0xc0] sm:$0xff] %v808_v59  ;;  %904 = vst [vmem:[%s1551_s3 + $0x1c0] sm:$0xff] %v840_v60  ;;  %vm715_vm6 = vcmp.ge.f32.partialorder %v637_v56, 0.0  ;;  %v779_v2 = vmul.f32 0.2, %v637_v56  ;;  %vm681_vm7 = vcmp.ge.f32.partialorder %v501_v61, 0.0  ;;  %v522_v7 = vadd.f32 %v1055_v63, %v1290_v35 }
 0x11b   :  { %v745_v3 = vmul.f32 0.2, %v501_v61  ;;  %vm713_vm8 = vcmp.ge.f32.partialorder %v629_v62, 0.0  ;;  %v777_v4 = vmul.f32 0.2, %v629_v62  ;;  %v811_v5 = vsel %vm683_vm5, %v509_v55, %v747_v1  ;;  %v513_v9 = vpop.f32.mrb[29].mxu0 }
 0x11c   :  { %v843_v6 = vsel %vm715_vm6, %v637_v56, %v779_v2  ;;  %v650_v8 = vadd.f32 %v1087_v0, %v1290_v35  ;;  %v641_v10 = vpop.f32.mrb[29].mxu1  ;;  %875 = vst [vmem:[%s1551_s3 + $0xd8] sm:$0xff] %v811_v5  ;;  %v514_v13 = vadd.f32 %v1290_v35, %v513_v9  ;;  %v1056_v15 = vpop.f32.mrb[30].mxu0  ;;  %vm686_vm9 = vcmp.ge.f32.partialorder %v522_v7, 0.0 }
 0x11d   :  { %907 = vst [vmem:[%s1551_s3 + $0x1d8] sm:$0xff] %v843_v6  ;;  %v809_v11 = vsel %vm681_vm7, %v501_v61, %v745_v3  ;;  %v841_v12 = vsel %vm713_vm8, %v629_v62, %v777_v4  ;;  %v642_v14 = vadd.f32 %v1290_v35, %v641_v10  ;;  %v1088_v16 = vpop.f32.mrb[30].mxu1  ;;  %v750_v17 = vmul.f32 0.2, %v522_v7  ;;  %v516_v25 = vpop.f32.mrb[31].mxu0 }
 0x11e   :  { %873 = vst [vmem:[%s1551_s3 + $0xc8] sm:$0xff] %v809_v11  ;;  %905 = vst [vmem:[%s1551_s3 + $0x1c8] sm:$0xff] %v841_v12  ;;  %vm718_vm10 = vcmp.ge.f32.partialorder %v650_v8, 0.0  ;;  %v782_v18 = vmul.f32 0.2, %v650_v8  ;;  %vm684_vm11 = vcmp.ge.f32.partialorder %v514_v13, 0.0  ;;  %v525_v23 = vadd.f32 %v1056_v15, %v1290_v35 }
 0x11f   :  { %v748_v19 = vmul.f32 0.2, %v514_v13  ;;  %vm716_vm12 = vcmp.ge.f32.partialorder %v642_v14, 0.0  ;;  %v780_v20 = vmul.f32 0.2, %v642_v14  ;;  %v814_v21 = vsel %vm686_vm9, %v522_v7, %v750_v17  ;;  %v644_v26 = vpop.f32.mrb[31].mxu1 }
 0x120   :  { %v846_v22 = vsel %vm718_vm10, %v650_v8, %v782_v18  ;;  %v653_v24 = vadd.f32 %v1088_v16, %v1290_v35  ;;  %878 = vst [vmem:[%s1551_s3 + $0xf0] sm:$0xff] %v814_v21  ;;  %v517_v29 = vadd.f32 %v1290_v35, %v516_v25  ;;  %v645_v30 = vadd.f32 %v1290_v35, %v644_v26 }
 0x121   :  { %910 = vst [vmem:[%s1551_s3 + $0x1f0] sm:$0xff] %v846_v22  ;;  %v812_v27 = vsel %vm684_vm11, %v514_v13, %v748_v19  ;;  %v844_v28 = vsel %vm716_vm12, %v642_v14, %v780_v20  ;;  %vm687_vm13 = vcmp.ge.f32.partialorder %v525_v23, 0.0  ;;  %v751_v31 = vmul.f32 0.2, %v525_v23 }
 0x122   :  { %876 = vst [vmem:[%s1551_s3 + $0xe0] sm:$0xff] %v812_v27  ;;  %908 = vst [vmem:[%s1551_s3 + $0x1e0] sm:$0xff] %v844_v28  ;;  %vm719_vm14 = vcmp.ge.f32.partialorder %v653_v24, 0.0  ;;  %v783_v32 = vmul.f32 0.2, %v653_v24  ;;  %vm685_vm15 = vcmp.ge.f32.partialorder %v517_v29, 0.0 }
 0x123   :  { %v749_v33 = vmul.f32 0.2, %v517_v29  ;;  %vm717_vm0 = vcmp.ge.f32.partialorder %v645_v30, 0.0  ;;  %v781_v34 = vmul.f32 0.2, %v645_v30  ;;  %v815_v36 = vsel %vm687_vm13, %v525_v23, %v751_v31 }
 0x124   :  { %v847_v37 = vsel %vm719_vm14, %v653_v24, %v783_v32  ;;  %879 = vst [vmem:[%s1551_s3 + $0xf8] sm:$0xff] %v815_v36 }
 0x125   :  { %911 = vst [vmem:[%s1551_s3 + $0x1f8] sm:$0xff] %v847_v37  ;;  %v813_v35 = vsel %vm685_vm15, %v517_v29, %v749_v33  ;;  %v845_v38 = vsel %vm717_vm0, %v645_v30, %v781_v34 }
 0x126   :  { %877 = vst [vmem:[%s1551_s3 + $0xe8] sm:$0xff] %v813_v35  ;;  %909 = vst [vmem:[%s1551_s3 + $0x1e8] sm:$0xff] %v845_v38 }

// kernel: nlayer_discriminator.10
= control target key start
LH: loop header
LB: loop body
LE: loop exit
PB: predicated region body
PF: predicated region fallthrough
CT: control target
= control target key end

     0   :  { %s305_s0 = inlined_call_operand.vmem [shape: f32[128,128], index: 0, kind: input, shape index: {}]   ;;  %s306_s1 = inlined_call_operand.vmem [shape: f32[1,128], index: 1, kind: input, shape index: {}]   ;;  %s307_s2 = inlined_call_operand.vmem [shape: f32[1,128], index: 2, kind: input, shape index: {}]   ;;  %s308_s3 = inlined_call_operand.vmem [shape: f32[128,128], index: 3, kind: output, shape index: {}]  }
   0x1   :  { %v14_v0 = vld [vmem:[%s305_s0] sm:$0xff]  ;;  %v15_v4 = vld [vmem:[%s305_s0 + $0x8] sm:$0xff]  ;;  %v16_v5 = vld [vmem:[%s305_s0 + $0x10] sm:$0xff] }
   0x2   :  { %v172_v1 = vld [vmem:[%s306_s1] ss:$0 sm:$0xff]  ;;  %v17_v6 = vld [vmem:[%s305_s0 + $0x18] sm:$0xff]  ;;  %v19_v11 = vld [vmem:[%s305_s0 + $0x28] sm:$0xff] }
   0x3   :  { %v177_v2 = vld [vmem:[%s307_s2] ss:$0 sm:$0xff]  ;;  %v37_v3 = vmul.f32 %v172_v1, %v14_v0  ;;  %v38_v7 = vmul.f32 %v172_v1, %v15_v4  ;;  %v39_v8 = vmul.f32 %v172_v1, %v16_v5  ;;  %v40_v9 = vmul.f32 %v172_v1, %v17_v6  ;;  %v20_v12 = vld [vmem:[%s305_s0 + $0x30] sm:$0xff]  ;;  %v21_v17 = vld [vmem:[%s305_s0 + $0x38] sm:$0xff] }
   0x4   :  { %v18_v10 = vld [vmem:[%s305_s0 + $0x20] sm:$0xff]  ;;  %v42_v15 = vmul.f32 %v172_v1, %v19_v11  ;;  %v43_v16 = vmul.f32 %v172_v1, %v20_v12  ;;  %v44_v21 = vmul.f32 %v172_v1, %v21_v17  ;;  %v23_v30 = vld [vmem:[%s305_s0 + $0x48] sm:$0xff]  ;;  %v24_v31 = vld [vmem:[%s305_s0 + $0x50] sm:$0xff] }
   0x5   :  { %v60_v13 = vadd.f32 %v177_v2, %v37_v3  ;;  %v41_v14 = vmul.f32 %v172_v1, %v18_v10  ;;  %v61_v18 = vadd.f32 %v177_v2, %v38_v7  ;;  %v62_v19 = vadd.f32 %v177_v2, %v39_v8  ;;  %v22_v25 = vld [vmem:[%s305_s0 + $0x40] sm:$0xff]  ;;  %v25_v43 = vld [vmem:[%s305_s0 + $0x58] sm:$0xff]  ;;  %v27_v45 = vld [vmem:[%s305_s0 + $0x68] sm:$0xff] }
   0x6   :  { %v63_v20 = vadd.f32 %v177_v2, %v40_v9  ;;  %v65_v24 = vadd.f32 %v177_v2, %v42_v15  ;;  %v66_v37 = vadd.f32 %v177_v2, %v43_v16  ;;  %v67_v38 = vadd.f32 %v177_v2, %v44_v21  ;;  %v26_v44 = vld [vmem:[%s305_s0 + $0x60] sm:$0xff]  ;;  %v28_v56 = vld [vmem:[%s305_s0 + $0x70] sm:$0xff]  ;;  %v29_v4 = vld [vmem:[%s305_s0 + $0x78] sm:$0xff] }
   0x7   :  { %vm76_vm0 = vcmp.ge.f32.partialorder %v60_v13, 0.0  ;;  %v92_v22 = vmul.f32 0.2, %v60_v13  ;;  %v64_v23 = vadd.f32 %v177_v2, %v41_v14  ;;  %vm77_vm1 = vcmp.ge.f32.partialorder %v61_v18, 0.0 }
   0x8   :  { %v93_v26 = vmul.f32 0.2, %v61_v18  ;;  %vm78_vm2 = vcmp.ge.f32.partialorder %v62_v19, 0.0  ;;  %v94_v27 = vmul.f32 0.2, %v62_v19  ;;  %vm79_vm3 = vcmp.ge.f32.partialorder %v63_v20, 0.0 }
   0x9   :  { %v108_v28 = vsel %vm76_vm0, %v60_v13, %v92_v22  ;;  %v95_v29 = vmul.f32 0.2, %v63_v20  ;;  %vm80_vm4 = vcmp.ge.f32.partialorder %v64_v23, 0.0  ;;  %v96_v34 = vmul.f32 0.2, %v64_v23 }
   0xa   :  { %124 = vst [vmem:[%s308_s3] sm:$0xff] %v108_v28  ;;  %v109_v32 = vsel %vm77_vm1, %v61_v18, %v93_v26  ;;  %v110_v33 = vsel %vm78_vm2, %v62_v19, %v94_v27  ;;  %vm81_vm5 = vcmp.ge.f32.partialorder %v65_v24, 0.0  ;;  %v97_v36 = vmul.f32 0.2, %v65_v24 }
   0xb   :  { %125 = vst [vmem:[%s308_s3 + $0x8] sm:$0xff] %v109_v32  ;;  %126 = vst [vmem:[%s308_s3 + $0x10] sm:$0xff] %v110_v33  ;;  %v111_v35 = vsel %vm79_vm3, %v63_v20, %v95_v29  ;;  %v112_v39 = vsel %vm80_vm4, %v64_v23, %v96_v34  ;;  %v45_v40 = vmul.f32 %v172_v1, %v22_v25  ;;  %vm82_vm6 = vcmp.ge.f32.partialorder %v66_v37, 0.0 }
   0xc   :  { %127 = vst [vmem:[%s308_s3 + $0x18] sm:$0xff] %v111_v35  ;;  %v46_v41 = vmul.f32 %v172_v1, %v23_v30  ;;  %v47_v42 = vmul.f32 %v172_v1, %v24_v31  ;;  %128 = vst [vmem:[%s308_s3 + $0x20] sm:$0xff] %v112_v39  ;;  %v113_v46 = vsel %vm81_vm5, %v65_v24, %v97_v36  ;;  %v98_v47 = vmul.f32 0.2, %v66_v37 }
   0xd   :  { %vm83_vm7 = vcmp.ge.f32.partialorder %v67_v38, 0.0  ;;  %129 = vst [vmem:[%s308_s3 + $0x28] sm:$0xff] %v113_v46  ;;  %v99_v48 = vmul.f32 0.2, %v67_v38  ;;  %v68_v49 = vadd.f32 %v177_v2, %v45_v40  ;;  %v48_v53 = vmul.f32 %v172_v1, %v25_v43 }
   0xe   :  { %v69_v50 = vadd.f32 %v177_v2, %v46_v41  ;;  %v70_v51 = vadd.f32 %v177_v2, %v47_v42  ;;  %v114_v52 = vsel %vm82_vm6, %v66_v37, %v98_v47  ;;  %v49_v54 = vmul.f32 %v172_v1, %v26_v44 }
   0xf   :  { %v50_v55 = vmul.f32 %v172_v1, %v27_v45  ;;  %130 = vst [vmem:[%s308_s3 + $0x30] sm:$0xff] %v114_v52  ;;  %v115_v57 = vsel %vm83_vm7, %v67_v38, %v99_v48  ;;  %vm84_vm8 = vcmp.ge.f32.partialorder %v68_v49, 0.0  ;;  %v100_v58 = vmul.f32 0.2, %v68_v49 }
  0x10   :  { %vm85_vm9 = vcmp.ge.f32.partialorder %v69_v50, 0.0  ;;  %131 = vst [vmem:[%s308_s3 + $0x38] sm:$0xff] %v115_v57  ;;  %v101_v59 = vmul.f32 0.2, %v69_v50  ;;  %vm86_vm10 = vcmp.ge.f32.partialorder %v70_v51, 0.0  ;;  %v71_v61 = vadd.f32 %v177_v2, %v48_v53 }
  0x11   :  { %v102_v60 = vmul.f32 0.2, %v70_v51  ;;  %v116_v62 = vsel %vm84_vm8, %v68_v49, %v100_v58  ;;  %v72_v63 = vadd.f32 %v177_v2, %v49_v54  ;;  %v73_v0 = vadd.f32 %v177_v2, %v50_v55 }
  0x12   :  { %v51_v3 = vmul.f32 %v172_v1, %v28_v56  ;;  %132 = vst [vmem:[%s308_s3 + $0x40] sm:$0xff] %v116_v62  ;;  %v117_v5 = vsel %vm85_vm9, %v69_v50, %v101_v59  ;;  %vm87_vm11 = vcmp.ge.f32.partialorder %v71_v61, 0.0  ;;  %v103_v7 = vmul.f32 0.2, %v71_v61 }
  0x13   :  { %v118_v6 = vsel %vm86_vm10, %v70_v51, %v102_v60  ;;  %133 = vst [vmem:[%s308_s3 + $0x48] sm:$0xff] %v117_v5  ;;  %vm88_vm12 = vcmp.ge.f32.partialorder %v72_v63, 0.0  ;;  %v104_v8 = vmul.f32 0.2, %v72_v63  ;;  %vm89_vm13 = vcmp.ge.f32.partialorder %v73_v0, 0.0 }
  0x14   :  { %134 = vst [vmem:[%s308_s3 + $0x50] sm:$0xff] %v118_v6  ;;  %v105_v9 = vmul.f32 0.2, %v73_v0  ;;  %v119_v10 = vsel %vm87_vm11, %v71_v61, %v103_v7  ;;  %v74_v11 = vadd.f32 %v177_v2, %v51_v3  ;;  %v52_v12 = vmul.f32 %v172_v1, %v29_v4 }
  0x15   :  { %135 = vst [vmem:[%s308_s3 + $0x58] sm:$0xff] %v119_v10  ;;  %v120_v13 = vsel %vm88_vm12, %v72_v63, %v104_v8 }
  0x16   :  { %v121_v14 = vsel %vm89_vm13, %v73_v0, %v105_v9  ;;  %136 = vst [vmem:[%s308_s3 + $0x60] sm:$0xff] %v120_v13  ;;  %vm90_vm14 = vcmp.ge.f32.partialorder %v74_v11, 0.0  ;;  %v106_v15 = vmul.f32 0.2, %v74_v11  ;;  %v75_v16 = vadd.f32 %v177_v2, %v52_v12 }
  0x17   :  { %137 = vst [vmem:[%s308_s3 + $0x68] sm:$0xff] %v121_v14 }
  0x18   :  { %v122_v17 = vsel %vm90_vm14, %v74_v11, %v106_v15  ;;  %vm91_vm15 = vcmp.ge.f32.partialorder %v75_v16, 0.0  ;;  %v107_v1 = vmul.f32 0.2, %v75_v16 }
  0x19   :  { %138 = vst [vmem:[%s308_s3 + $0x70] sm:$0xff] %v122_v17 }
  0x1a   :  { %v123_v18 = vsel %vm91_vm15, %v75_v16, %v107_v1 }
  0x1b   :  { %139 = vst [vmem:[%s308_s3 + $0x78] sm:$0xff] %v123_v18 }

// kernel: nlayer_discriminator.9
= control target key start
LH: loop header
LB: loop body
LE: loop exit
PB: predicated region body
PF: predicated region fallthrough
CT: control target
= control target key end

     0   :  { %vm1372_vm0 = vcmask 1040384   ;;  %vm1374_vm1 = vcmask 1041408   ;;  %s2336_s1 = inlined_call_operand.vmem [shape: bf16[1024,128], index: 1, kind: input, shape index: {}]   ;;  %s2337_s0 = inlined_call_operand.vmem [shape: bf16[128,1024], index: 0, kind: input, shape index: {}]   ;;  %s2338_s2 = inlined_call_operand.vmem [shape: f32[128,128], index: 2, kind: output, shape index: {0}]   ;;  %s2339_s3 = inlined_call_operand.vmem [shape: f32[1,8,128], index: 3, kind: output, shape index: {1}]  }
   0x1   :  { %v1769_v0 = vld [vmem:[%s2336_s1 + $0x40] sm:$0xff]   ;;  %v1773_v4 = vld [vmem:[%s2336_s1 + $0x48] sm:$0xff]   ;;  %v1777_v8 = vld [vmem:[%s2336_s1 + $0x50] sm:$0xff]  }
   0x2   :  { %v1770_v1 = vld [vmem:[%s2336_s1 + $0xc0] sm:$0xff]   ;;  %1513 = vmatprep.subr.bf16.mxu0 %v1769_v0  ;;  %v1774_v5 = vld [vmem:[%s2336_s1 + $0xc8] sm:$0xff]   ;;  %v1778_v9 = vld [vmem:[%s2336_s1 + $0xd0] sm:$0xff]  }
   0x3   :  { %v1771_v2 = vld [vmem:[%s2336_s1] sm:$0xff]   ;;  %1577 = vmatprep.subr.bf16.mxu1 %v1770_v1  ;;  %v1775_v6 = vld [vmem:[%s2336_s1 + $0x8] sm:$0xff]   ;;  %v1779_v10 = vld [vmem:[%s2336_s1 + $0x10] sm:$0xff]  }
   0x4   :  { %v1772_v3 = vld [vmem:[%s2336_s1 + $0x80] sm:$0xff]   ;;  %1514 = vmatpush3.bf16.msra.mxu0 %v1771_v2  ;;  %v1776_v7 = vld [vmem:[%s2336_s1 + $0x88] sm:$0xff]   ;;  %v1780_v11 = vld [vmem:[%s2336_s1 + $0x90] sm:$0xff]  }
   0x5   :  { %1578 = vmatpush3.bf16.msra.mxu1 %v1772_v3  ;;  %1515 = vmatprep.subr.bf16.mxu0 %v1773_v4  ;;  %v1781_v12 = vld [vmem:[%s2336_s1 + $0x58] sm:$0xff]   ;;  %v1785_v16 = vld [vmem:[%s2336_s1 + $0x60] sm:$0xff]   ;;  %v1789_v20 = vld [vmem:[%s2336_s1 + $0x68] sm:$0xff]  }
   0x6   :  { %1579 = vmatprep.subr.bf16.mxu1 %v1774_v5  ;;  %v1782_v13 = vld [vmem:[%s2336_s1 + $0xd8] sm:$0xff]   ;;  %v1786_v17 = vld [vmem:[%s2336_s1 + $0xe0] sm:$0xff]   ;;  %v1790_v21 = vld [vmem:[%s2336_s1 + $0xe8] sm:$0xff]  }
   0x7   :  { %v1783_v14 = vld [vmem:[%s2336_s1 + $0x18] sm:$0xff]   ;;  %v1787_v18 = vld [vmem:[%s2336_s1 + $0x20] sm:$0xff]   ;;  %v1791_v22 = vld [vmem:[%s2336_s1 + $0x28] sm:$0xff]  }
   0x8   :  { %1516 = vmatpush3.bf16.msra.mxu0 %v1775_v6  ;;  %v1784_v15 = vld [vmem:[%s2336_s1 + $0x98] sm:$0xff]   ;;  %v1788_v19 = vld [vmem:[%s2336_s1 + $0xa0] sm:$0xff]   ;;  %v1792_v23 = vld [vmem:[%s2336_s1 + $0xa8] sm:$0xff]  }
   0x9   :  { %1580 = vmatpush3.bf16.msra.mxu1 %v1776_v7  ;;  %1517 = vmatprep.subr.bf16.mxu0 %v1777_v8  ;;  %v1793_v24 = vld [vmem:[%s2336_s1 + $0x70] sm:$0xff]   ;;  %v1797_v28 = vld [vmem:[%s2336_s1 + $0x78] sm:$0xff]   ;;  %v14_v32 = vld [vmem:[%s2337_s0] sm:$0xff] }
   0xa   :  { %1581 = vmatprep.subr.bf16.mxu1 %v1778_v9  ;;  %v1794_v25 = vld [vmem:[%s2336_s1 + $0xf0] sm:$0xff]   ;;  %v1798_v29 = vld [vmem:[%s2336_s1 + $0xf8] sm:$0xff]   ;;  %v18_v33 = vld [vmem:[%s2337_s0 + $0x20] sm:$0xff] }
   0xb   :  { %v1795_v26 = vld [vmem:[%s2336_s1 + $0x30] sm:$0xff]   ;;  %v1799_v30 = vld [vmem:[%s2336_s1 + $0x38] sm:$0xff]   ;;  %v15_v34 = vld [vmem:[%s2337_s0 + $0x8] sm:$0xff]  ;;  %v1385_v35 = vcombine.low %v14_v32, %v18_v33  ;;  %v1386_v36 = vcombine.high %v14_v32, %v18_v33 }
   0xc   :  { %1518 = vmatpush3.bf16.msra.mxu0 %v1779_v10  ;;  %v1796_v27 = vld [vmem:[%s2336_s1 + $0xb0] sm:$0xff]   ;;  %v1800_v31 = vld [vmem:[%s2336_s1 + $0xb8] sm:$0xff]   ;;  %v19_v37 = vld [vmem:[%s2337_s0 + $0x28] sm:$0xff] }
   0xd   :  { %1582 = vmatpush3.bf16.msra.mxu1 %v1780_v11  ;;  %1519 = vmatprep.subr.bf16.mxu0 %v1781_v12  ;;  %v1387_v38 = vcombine.low %v15_v34, %v19_v37  ;;  %v1388_v39 = vcombine.high %v15_v34, %v19_v37  ;;  %v1801_v40 = vld [vmem:[%s2336_s1 + $0x140] sm:$0xff]   ;;  %v23_v47 = vld [vmem:[%s2337_s0 + $0x48] sm:$0xff]  ;;  %v1809_v62 = vld [vmem:[%s2336_s1 + $0x150] sm:$0xff]  }
   0xe   :  { %1583 = vmatprep.subr.bf16.mxu1 %v1782_v13  ;;  %942 = vmatprep.mubr.bf16.mxu0 %v1386_v36  ;;  %v1802_v41 = vld [vmem:[%s2336_s1 + $0x100] sm:$0xff]   ;;  %v27_v48 = vld [vmem:[%s2337_s0 + $0x68] sm:$0xff]  ;;  %v1810_v63 = vld [vmem:[%s2336_s1 + $0x110] sm:$0xff]  }
   0xf   :  { %1039 = vmatprep.mubr.bf16.mxu1 %v1388_v39  ;;  %v1803_v42 = vld [vmem:[%s2336_s1 + $0x1c0] sm:$0xff]   ;;  %v1396_v49 = vcombine.high %v23_v47, %v27_v48  ;;  %v1805_v50 = vld [vmem:[%s2336_s1 + $0x148] sm:$0xff]   ;;  %v1395_v53 = vcombine.low %v23_v47, %v27_v48  ;;  %v1811_v0 = vld [vmem:[%s2336_s1 + $0x1d0] sm:$0xff]  }
  0x10   :  { %1520 = vmatpush3.bf16.msra.mxu0 %v1783_v14  ;;  %v1804_v43 = vld [vmem:[%s2336_s1 + $0x180] sm:$0xff]   ;;  %v1806_v52 = vld [vmem:[%s2336_s1 + $0x108] sm:$0xff]   ;;  %v1812_v1 = vld [vmem:[%s2336_s1 + $0x190] sm:$0xff]  }
  0x11   :  { %1584 = vmatpush3.bf16.msra.mxu1 %v1784_v15  ;;  %1521 = vmatprep.subr.bf16.mxu0 %v1785_v16  ;;  %v22_v44 = vld [vmem:[%s2337_s0 + $0x40] sm:$0xff]  ;;  %v1807_v54 = vld [vmem:[%s2336_s1 + $0x1c8] sm:$0xff]   ;;  %v1813_v10 = vld [vmem:[%s2336_s1 + $0x158] sm:$0xff]  }
  0x12   :  { %1585 = vmatprep.subr.bf16.mxu1 %v1786_v17  ;;  %v26_v45 = vld [vmem:[%s2337_s0 + $0x60] sm:$0xff]  ;;  %v1808_v55 = vld [vmem:[%s2336_s1 + $0x188] sm:$0xff]   ;;  %v1814_v11 = vld [vmem:[%s2336_s1 + $0x118] sm:$0xff]  }
  0x13   :  { %v1394_v46 = vcombine.high %v22_v44, %v26_v45  ;;  %v1393_v51 = vcombine.low %v22_v44, %v26_v45  ;;  %v30_v56 = vld [vmem:[%s2337_s0 + $0x80] sm:$0xff]  ;;  %v31_v58 = vld [vmem:[%s2337_s0 + $0x88] sm:$0xff]  ;;  %v1815_v12 = vld [vmem:[%s2336_s1 + $0x1d8] sm:$0xff]  }
  0x14   :  { %1522 = vmatpush3.bf16.msra.mxu0 %v1787_v18  ;;  %v34_v57 = vld [vmem:[%s2337_s0 + $0xa0] sm:$0xff]  ;;  %v35_v59 = vld [vmem:[%s2337_s0 + $0xa8] sm:$0xff]  ;;  %v1816_v13 = vld [vmem:[%s2336_s1 + $0x198] sm:$0xff]  }
  0x15   :  { %1586 = vmatpush3.bf16.msra.mxu1 %v1788_v19  ;;  %1523 = vmatprep.subr.bf16.mxu0 %v1789_v20  ;;  %v1402_v60 = vcombine.high %v30_v56, %v34_v57  ;;  %v1404_v61 = vcombine.high %v31_v58, %v35_v59  ;;  %v1401_v2 = vcombine.low %v30_v56, %v34_v57  ;;  %v38_v3 = vld [vmem:[%s2337_s0 + $0xc0] sm:$0xff]  ;;  %v39_v5 = vld [vmem:[%s2337_s0 + $0xc8] sm:$0xff]  ;;  %v1826_v39 = vld [vmem:[%s2336_s1 + $0x130] sm:$0xff]  }
  0x16   :  { %1587 = vmatprep.subr.bf16.mxu1 %v1790_v21  ;;  %v42_v4 = vld [vmem:[%s2337_s0 + $0xe0] sm:$0xff]  ;;  %v1403_v6 = vcombine.low %v31_v58, %v35_v59  ;;  %v43_v8 = vld [vmem:[%s2337_s0 + $0xe8] sm:$0xff]  ;;  %v1830_v48 = vld [vmem:[%s2336_s1 + $0x138] sm:$0xff]  }
  0x17   :  { %v1410_v7 = vcombine.high %v38_v3, %v42_v4  ;;  %v1412_v9 = vcombine.high %v39_v5, %v43_v8  ;;  %v46_v14 = vld [vmem:[%s2337_s0 + $0x100] sm:$0xff]  ;;  %v47_v16 = vld [vmem:[%s2337_s0 + $0x108] sm:$0xff]  ;;  %v1409_v19 = vcombine.low %v38_v3, %v42_v4  ;;  %v1411_v21 = vcombine.low %v39_v5, %v43_v8  ;;  %v25_v8 = vld [vmem:[%s2337_s0 + $0x58] sm:$0xff] }
  0x18   :  { %1524 = vmatpush3.bf16.msra.mxu0 %v1791_v22  ;;  %v50_v15 = vld [vmem:[%s2337_s0 + $0x120] sm:$0xff]  ;;  %v51_v17 = vld [vmem:[%s2337_s0 + $0x128] sm:$0xff] }
  0x19   :  { %1588 = vmatpush3.bf16.msra.mxu1 %v1792_v23  ;;  %1525 = vmatprep.subr.bf16.mxu0 %v1793_v24  ;;  %v1817_v18 = vld [vmem:[%s2336_s1 + $0x160] sm:$0xff]   ;;  %v1418_v22 = vcombine.high %v46_v14, %v50_v15  ;;  %v1420_v24 = vcombine.high %v47_v16, %v51_v17  ;;  %v1823_v32 = vld [vmem:[%s2336_s1 + $0x1e8] sm:$0xff]   ;;  %v1417_v34 = vcombine.low %v46_v14, %v50_v15  ;;  %v32_v14 = vld [vmem:[%s2337_s0 + $0x90] sm:$0xff] }
  0x1a   :  { %1589 = vmatprep.subr.bf16.mxu1 %v1794_v25  ;;  %v1818_v20 = vld [vmem:[%s2336_s1 + $0x120] sm:$0xff]   ;;  %v1824_v33 = vld [vmem:[%s2336_s1 + $0x1a8] sm:$0xff]   ;;  %v36_v15 = vld [vmem:[%s2337_s0 + $0xb0] sm:$0xff] }
  0x1b   :  { %v1819_v23 = vld [vmem:[%s2336_s1 + $0x1e0] sm:$0xff]   ;;  %v63_v44 = vld [vmem:[%s2337_s0 + $0x188] sm:$0xff] }
  0x1c   :  { %1526 = vmatpush3.bf16.msra.mxu0 %v1795_v26  ;;  %v1820_v25 = vld [vmem:[%s2336_s1 + $0x1a0] sm:$0xff]   ;;  %v67_v45 = vld [vmem:[%s2337_s0 + $0x1a8] sm:$0xff] }
  0x1d   :  { %1590 = vmatpush3.bf16.msra.mxu1 %v1796_v27  ;;  %1527 = vmatprep.subr.bf16.mxu0 %v1797_v28  ;;  %v54_v26 = vld [vmem:[%s2337_s0 + $0x140] sm:$0xff]  ;;  %v1821_v28 = vld [vmem:[%s2336_s1 + $0x168] sm:$0xff]   ;;  %v1435_v59 = vcombine.low %v63_v44, %v67_v45 }
  0x1e   :  { %1591 = vmatprep.subr.bf16.mxu1 %v1798_v29  ;;  %v58_v27 = vld [vmem:[%s2337_s0 + $0x160] sm:$0xff]  ;;  %v55_v29 = vld [vmem:[%s2337_s0 + $0x148] sm:$0xff] }
  0x1f   :  { %v1426_v36 = vcombine.high %v54_v26, %v58_v27  ;;  %v1425_v47 = vcombine.low %v54_v26, %v58_v27  ;;  %v71_v56 = vld [vmem:[%s2337_s0 + $0x1c8] sm:$0xff]  ;;  %v1405_v26 = vcombine.low %v32_v14, %v36_v15 }
  0x20   :  { %1528 = vmatpush3.bf16.msra.mxu0 %v1799_v30  ;;  %v59_v30 = vld [vmem:[%s2337_s0 + $0x168] sm:$0xff] }
  0x21   :  { %1592 = vmatpush3.bf16.msra.mxu1 %v1800_v31  ;;  %1641 = vmatprep.subr.bf16.mxu0 %v1801_v40  ;;  %v1822_v31 = vld [vmem:[%s2336_s1 + $0x128] sm:$0xff]   ;;  %v1428_v37 = vcombine.high %v55_v29, %v59_v30  ;;  %v1827_v40 = vld [vmem:[%s2336_s1 + $0x1f0] sm:$0xff]  }
  0x22   :  { %1705 = vmatprep.subr.bf16.mxu1 %v1803_v42  ;;  %v66_v42 = vld [vmem:[%s2337_s0 + $0x1a0] sm:$0xff]  ;;  %v75_v57 = vld [vmem:[%s2337_s0 + $0x1e8] sm:$0xff] }
  0x23   :  { %943 = vmatmul.mubr.bf16.vlgmr.msra.gmra.mrb[0].mxu0 %v1385_v35  ;;  %v1419_v35 = vcombine.low %v47_v16, %v51_v17  ;;  %v1443_v3 = vcombine.low %v71_v56, %v75_v57  ;;  %v33_v16 = vld [vmem:[%s2337_s0 + $0x98] sm:$0xff] }
  0x24   :  { %1040 = vmatmul.mubr.bf16.vlgmr.msra.gmra.mrb[0].mxu1 %v1387_v38  ;;  %1642 = vmatpush3.bf16.msra.mxu0 %v1802_v41  ;;  %v1825_v38 = vld [vmem:[%s2336_s1 + $0x170] sm:$0xff]   ;;  %v62_v41 = vld [vmem:[%s2337_s0 + $0x180] sm:$0xff]  ;;  %v37_v17 = vld [vmem:[%s2337_s0 + $0xb8] sm:$0xff] }
  0x25   :  { %1706 = vmatpush3.bf16.msra.mxu1 %v1804_v43  ;;  %950 = vmatprep.mubr.bf16.mxu0 %v1394_v46  ;;  %v1828_v43 = vld [vmem:[%s2336_s1 + $0x1b0] sm:$0xff]   ;;  %v1829_v46 = vld [vmem:[%s2336_s1 + $0x178] sm:$0xff]   ;;  %v1433_v58 = vcombine.low %v62_v41, %v66_v42  ;;  %v1407_v27 = vcombine.low %v33_v16, %v37_v17 }
  0x26   :  { %1047 = vmatprep.mubr.bf16.mxu1 %v1396_v49  ;;  %1643 = vmatprep.subr.bf16.mxu0 %v1805_v50  ;;  %v1427_v49 = vcombine.low %v55_v29, %v59_v30  ;;  %v1434_v50 = vcombine.high %v62_v41, %v66_v42  ;;  %v48_v30 = vld [vmem:[%s2337_s0 + $0x110] sm:$0xff]  ;;  %v61_v41 = vld [vmem:[%s2337_s0 + $0x178] sm:$0xff] }
  0x27   :  { %1707 = vmatprep.subr.bf16.mxu1 %v1807_v54  ;;  %v70_v54 = vld [vmem:[%s2337_s0 + $0x1c0] sm:$0xff] }
  0x28   :  { %1644 = vmatpush3.bf16.msra.mxu0 %v1806_v52  ;;  %v1436_v52 = vcombine.high %v63_v44, %v67_v45 }
  0x29   :  { %1708 = vmatpush3.bf16.msra.mxu1 %v1808_v55  ;;  %1645 = vmatprep.subr.bf16.mxu0 %v1809_v62  ;;  %v74_v55 = vld [vmem:[%s2337_s0 + $0x1e0] sm:$0xff]  ;;  %v16_v62 = vld [vmem:[%s2337_s0 + $0x10] sm:$0xff] }
  0x2a   :  { %1709 = vmatprep.subr.bf16.mxu1 %v1811_v0  ;;  %v17_v0 = vld [vmem:[%s2337_s0 + $0x18] sm:$0xff] }
  0x2b   :  { %951 = vmatmul.mubr.bf16.gmra.mrb[4].mxu0 %v1393_v51  ;;  %v1831_v51 = vld [vmem:[%s2336_s1 + $0x1f8] sm:$0xff]  }
  0x2c   :  { %1048 = vmatmul.mubr.bf16.gmra.mrb[4].mxu1 %v1395_v53  ;;  %958 = vmatprep.mubr.bf16.mxu0 %v1402_v60  ;;  %v1832_v53 = vld [vmem:[%s2336_s1 + $0x1b8] sm:$0xff]   ;;  %v1442_v60 = vcombine.high %v70_v54, %v74_v55 }
  0x2d   :  { %1055 = vmatprep.mubr.bf16.mxu1 %v1404_v61  ;;  %1646 = vmatpush3.bf16.msra.mxu0 %v1810_v63  ;;  %v1444_v61 = vcombine.high %v71_v56, %v75_v57  ;;  %v20_v63 = vld [vmem:[%s2337_s0 + $0x30] sm:$0xff]  ;;  %v73_v56 = vld [vmem:[%s2337_s0 + $0x1d8] sm:$0xff] }
  0x2e   :  { %1710 = vmatpush3.bf16.msra.mxu1 %v1812_v1  ;;  %1647 = vmatprep.subr.bf16.mxu0 %v1813_v10  ;;  %v21_v1 = vld [vmem:[%s2337_s0 + $0x38] sm:$0xff]  ;;  %v1390_v4 = vcombine.high %v16_v62, %v20_v63  ;;  %v1389_v10 = vcombine.low %v16_v62, %v20_v63 }
  0x2f   :  { %1711 = vmatprep.subr.bf16.mxu1 %v1815_v12  ;;  %v1392_v5 = vcombine.high %v17_v0, %v21_v1  ;;  %v77_v57 = vld [vmem:[%s2337_s0 + $0x1f8] sm:$0xff] }
  0x30   :  { %v1447_v63 = vcombine.low %v73_v56, %v77_v57 }
  0x31   :  { %1648 = vmatpush3.bf16.msra.mxu0 %v1814_v11  ;;  %v1391_v11 = vcombine.low %v17_v0, %v21_v1 }
  0x32   :  { %1712 = vmatpush3.bf16.msra.mxu1 %v1816_v13  ;;  %1649 = vmatprep.subr.bf16.mxu0 %v1817_v18 }
  0x33   :  { %959 = vmatmul.mubr.bf16.gmra.mrb[8].mxu0 %v1401_v2  ;;  %1713 = vmatprep.subr.bf16.mxu1 %v1819_v23  ;;  %v1441_v2 = vcombine.low %v70_v54, %v74_v55  ;;  %v44_v23 = vld [vmem:[%s2337_s0 + $0xf0] sm:$0xff] }
  0x34   :  { %1056 = vmatmul.mubr.bf16.gmra.mrb[8].mxu1 %v1403_v6  ;;  %966 = vmatprep.mubr.bf16.mxu0 %v1410_v7  ;;  %v24_v6 = vld [vmem:[%s2337_s0 + $0x50] sm:$0xff] }
  0x35   :  { %1063 = vmatprep.mubr.bf16.mxu1 %v1412_v9  ;;  %1650 = vmatpush3.bf16.msra.mxu0 %v1818_v20  ;;  %v28_v7 = vld [vmem:[%s2337_s0 + $0x70] sm:$0xff]  ;;  %v29_v9 = vld [vmem:[%s2337_s0 + $0x78] sm:$0xff]  ;;  %v1406_v20 = vcombine.high %v32_v14, %v36_v15 }
  0x36   :  { %1714 = vmatpush3.bf16.msra.mxu1 %v1820_v25  ;;  %1651 = vmatprep.subr.bf16.mxu0 %v1821_v28  ;;  %v1398_v12 = vcombine.high %v24_v6, %v28_v7  ;;  %v1400_v13 = vcombine.high %v25_v8, %v29_v9  ;;  %v1397_v18 = vcombine.low %v24_v6, %v28_v7  ;;  %v45_v25 = vld [vmem:[%s2337_s0 + $0xf8] sm:$0xff]  ;;  %v72_v54 = vld [vmem:[%s2337_s0 + $0x1d0] sm:$0xff] }
  0x37   :  { %1715 = vmatprep.subr.bf16.mxu1 %v1823_v32  ;;  %v49_v32 = vld [vmem:[%s2337_s0 + $0x118] sm:$0xff]  ;;  %v76_v55 = vld [vmem:[%s2337_s0 + $0x1f0] sm:$0xff] }
  0x38   :  { %v1445_v62 = vcombine.low %v72_v54, %v76_v55 }
  0x39   :  { %1652 = vmatpush3.bf16.msra.mxu0 %v1822_v31  ;;  %v52_v31 = vld [vmem:[%s2337_s0 + $0x130] sm:$0xff] }
  0x3a   :  { %1716 = vmatpush3.bf16.msra.mxu1 %v1824_v33  ;;  %1653 = vmatprep.subr.bf16.mxu0 %v1825_v38  ;;  %v53_v33 = vld [vmem:[%s2337_s0 + $0x138] sm:$0xff]  ;;  %v56_v38 = vld [vmem:[%s2337_s0 + $0x150] sm:$0xff]  ;;  %v1421_v42 = vcombine.low %v48_v30, %v52_v31 }
  0x3b   :  { %967 = vmatmul.mubr.bf16.gmra.mrb[12].mxu0 %v1409_v19  ;;  %1717 = vmatprep.subr.bf16.mxu1 %v1827_v40  ;;  %v1399_v19 = vcombine.low %v25_v8, %v29_v9  ;;  %v57_v40 = vld [vmem:[%s2337_s0 + $0x158] sm:$0xff] }
  0x3c   :  { %1064 = vmatmul.mubr.bf16.gmra.mrb[12].mxu1 %v1411_v21  ;;  %974 = vmatprep.mubr.bf16.mxu0 %v1418_v22  ;;  %v1408_v21 = vcombine.high %v33_v16, %v37_v17  ;;  %v40_v22 = vld [vmem:[%s2337_s0 + $0xd0] sm:$0xff]  ;;  %v1432_v45 = vcombine.high %v57_v40, %v61_v41 }
  0x3d   :  { %1071 = vmatprep.mubr.bf16.mxu1 %v1420_v24  ;;  %1654 = vmatpush3.bf16.msra.mxu0 %v1826_v39  ;;  %v41_v24 = vld [vmem:[%s2337_s0 + $0xd8] sm:$0xff]  ;;  %v1414_v28 = vcombine.high %v40_v22, %v44_v23  ;;  %v60_v39 = vld [vmem:[%s2337_s0 + $0x170] sm:$0xff] }
  0x3e   :  { %1718 = vmatpush3.bf16.msra.mxu1 %v1828_v43  ;;  %1655 = vmatprep.subr.bf16.mxu0 %v1829_v46  ;;  %v1416_v29 = vcombine.high %v41_v24, %v45_v25  ;;  %v1423_v43 = vcombine.low %v49_v32, %v53_v33  ;;  %v1430_v44 = vcombine.high %v56_v38, %v60_v39  ;;  %v64_v46 = vld [vmem:[%s2337_s0 + $0x190] sm:$0xff] }
  0x3f   :  { %1719 = vmatprep.subr.bf16.mxu1 %v1831_v51  ;;  %v1431_v51 = vcombine.low %v57_v40, %v61_v41 }
  0x41   :  { %1656 = vmatpush3.bf16.msra.mxu0 %v1830_v48  ;;  %v65_v48 = vld [vmem:[%s2337_s0 + $0x198] sm:$0xff] }
  0x42   :  { %1720 = vmatpush3.bf16.msra.mxu1 %v1832_v53 }
  0x43   :  { %975 = vmatmul.mubr.bf16.gmra.mrb[16].mxu0 %v1417_v34  ;;  %v1413_v34 = vcombine.low %v40_v22, %v44_v23 }
  0x44   :  { %1072 = vmatmul.mubr.bf16.gmra.mrb[16].mxu1 %v1419_v35  ;;  %982 = vmatprep.mubr.bf16.mxu0 %v1426_v36  ;;  %v1415_v35 = vcombine.low %v41_v24, %v45_v25  ;;  %v1422_v36 = vcombine.high %v48_v30, %v52_v31 }
  0x45   :  { %1079 = vmatprep.mubr.bf16.mxu1 %v1428_v37  ;;  %v1424_v37 = vcombine.high %v49_v32, %v53_v33 }
  0x4b   :  { %983 = vmatmul.mubr.bf16.gmra.mrb[20].mxu0 %v1425_v47  ;;  %v68_v47 = vld [vmem:[%s2337_s0 + $0x1b0] sm:$0xff] }
  0x4c   :  { %1080 = vmatmul.mubr.bf16.gmra.mrb[20].mxu1 %v1427_v49  ;;  %990 = vmatprep.mubr.bf16.mxu0 %v1434_v50  ;;  %v69_v49 = vld [vmem:[%s2337_s0 + $0x1b8] sm:$0xff]  ;;  %v1429_v50 = vcombine.low %v56_v38, %v60_v39 }
  0x4d   :  { %1087 = vmatprep.mubr.bf16.mxu1 %v1436_v52  ;;  %v1438_v52 = vcombine.high %v64_v46, %v68_v47  ;;  %v1440_v53 = vcombine.high %v65_v48, %v69_v49 }
  0x53   :  { %991 = vmatmul.mubr.bf16.gmra.mrb[24].mxu0 %v1433_v58  ;;  %v1437_v58 = vcombine.low %v64_v46, %v68_v47 }
  0x54   :  { %1088 = vmatmul.mubr.bf16.gmra.mrb[24].mxu1 %v1435_v59  ;;  %998 = vmatprep.mubr.bf16.mxu0 %v1442_v60  ;;  %v1439_v59 = vcombine.low %v65_v48, %v69_v49  ;;  %v1446_v60 = vcombine.high %v72_v54, %v76_v55 }
  0x55   :  { %1095 = vmatprep.mubr.bf16.mxu1 %v1444_v61  ;;  %v1448_v61 = vcombine.high %v73_v56, %v77_v57 }
  0x5b   :  { %999 = vmatmul.mubr.bf16.gmra.mrb[28].mxu0 %v1441_v2 }
  0x5c   :  { %1096 = vmatmul.mubr.bf16.gmra.mrb[28].mxu1 %v1443_v3  ;;  %1136 = vmatprep.mubr.bf16.mxu0 %v1390_v4 }
  0x5d   :  { %1233 = vmatprep.mubr.bf16.mxu1 %v1392_v5 }
  0x63   :  { %1137 = vmatmul.mubr.bf16.vlgmr.msra.gmra.mrb[32].mxu0 %v1389_v10 }
  0x64   :  { %1234 = vmatmul.mubr.bf16.vlgmr.msra.gmra.mrb[32].mxu1 %v1391_v11  ;;  %1144 = vmatprep.mubr.bf16.mxu0 %v1398_v12 }
  0x65   :  { %1241 = vmatprep.mubr.bf16.mxu1 %v1400_v13 }
  0x6b   :  { %1145 = vmatmul.mubr.bf16.gmra.mrb[36].mxu0 %v1397_v18 }
  0x6c   :  { %1242 = vmatmul.mubr.bf16.gmra.mrb[36].mxu1 %v1399_v19  ;;  %1152 = vmatprep.mubr.bf16.mxu0 %v1406_v20 }
  0x6d   :  { %1249 = vmatprep.mubr.bf16.mxu1 %v1408_v21 }
  0x73   :  { %1153 = vmatmul.mubr.bf16.gmra.mrb[40].mxu0 %v1405_v26 }
  0x74   :  { %1250 = vmatmul.mubr.bf16.gmra.mrb[40].mxu1 %v1407_v27  ;;  %1160 = vmatprep.mubr.bf16.mxu0 %v1414_v28 }
  0x75   :  { %1257 = vmatprep.mubr.bf16.mxu1 %v1416_v29 }
  0x7b   :  { %1161 = vmatmul.mubr.bf16.gmra.mrb[44].mxu0 %v1413_v34 }
  0x7c   :  { %1258 = vmatmul.mubr.bf16.gmra.mrb[44].mxu1 %v1415_v35  ;;  %1168 = vmatprep.mubr.bf16.mxu0 %v1422_v36 }
  0x7d   :  { %1265 = vmatprep.mubr.bf16.mxu1 %v1424_v37 }
  0x83   :  { %1169 = vmatmul.mubr.bf16.gmra.mrb[48].mxu0 %v1421_v42 }
  0x84   :  { %1266 = vmatmul.mubr.bf16.gmra.mrb[48].mxu1 %v1423_v43  ;;  %1176 = vmatprep.mubr.bf16.mxu0 %v1430_v44 }
  0x85   :  { %1273 = vmatprep.mubr.bf16.mxu1 %v1432_v45 }
  0x8b   :  { %1177 = vmatmul.mubr.bf16.gmra.mrb[52].mxu0 %v1429_v50 }
  0x8c   :  { %1274 = vmatmul.mubr.bf16.gmra.mrb[52].mxu1 %v1431_v51  ;;  %1184 = vmatprep.mubr.bf16.mxu0 %v1438_v52 }
  0x8d   :  { %1281 = vmatprep.mubr.bf16.mxu1 %v1440_v53 }
  0x93   :  { %1185 = vmatmul.mubr.bf16.gmra.mrb[56].mxu0 %v1437_v58 }
  0x94   :  { %1282 = vmatmul.mubr.bf16.gmra.mrb[56].mxu1 %v1439_v59  ;;  %1192 = vmatprep.mubr.bf16.mxu0 %v1446_v60 }
  0x95   :  { %1289 = vmatprep.mubr.bf16.mxu1 %v1448_v61 }
  0x9b   :  { %1193 = vmatmul.mubr.bf16.gmra.mrb[60].mxu0 %v1445_v62 }
  0x9c   :  { %1290 = vmatmul.mubr.bf16.gmra.mrb[60].mxu1 %v1447_v63 }
  0xf6   :  { %v1529_v0 = vpop.f32.mrb[0].mxu0 }
  0xf7   :  { %v1593_v1 = vpop.f32.mrb[0].mxu1  ;;  %v1530_v2 = vpop.f32.mrb[1].mxu0 }
  0xf8   :  { %v1531_v3 = vadd.f32 %v1530_v2, %v1529_v0  ;;  %v1594_v4 = vpop.f32.mrb[1].mxu1  ;;  %v1532_v5 = vpop.f32.mrb[2].mxu0 }
  0xf9   :  { %v1595_v6 = vadd.f32 %v1594_v4, %v1593_v1  ;;  %v1596_v7 = vpop.f32.mrb[2].mxu1  ;;  %v1533_v8 = vpop.f32.mrb[3].mxu0 }
  0xfa   :  { %v1534_v9 = vadd.f32 %v1533_v8, %v1532_v5  ;;  %v1597_v10 = vpop.f32.mrb[3].mxu1 }
  0xfb   :  { %v2237_v11 = vadd.f32 %v1595_v6, %v1531_v3  ;;  %v1598_v12 = vadd.f32 %v1597_v10, %v1596_v7 }
  0xfd   :  { %v2239_v13 = vadd.f32 %v1598_v12, %v1534_v9 }
  0xfe   :  { %v1535_v14 = vpop.f32.mrb[4].mxu0 }
  0xff   :  { %v1599_v15 = vpop.f32.mrb[4].mxu1  ;;  %v1536_v16 = vpop.f32.mrb[5].mxu0 }
 0x100   :  { %v1537_v17 = vadd.f32 %v1536_v16, %v1535_v14  ;;  %v1600_v18 = vpop.f32.mrb[5].mxu1  ;;  %v1538_v19 = vpop.f32.mrb[6].mxu0 }
 0x101   :  { %v1601_v20 = vadd.f32 %v1600_v18, %v1599_v15  ;;  %v1602_v21 = vpop.f32.mrb[6].mxu1  ;;  %v1539_v22 = vpop.f32.mrb[7].mxu0 }
 0x102   :  { %v1540_v23 = vadd.f32 %v1539_v22, %v1538_v19  ;;  %v1603_v24 = vpop.f32.mrb[7].mxu1 }
 0x103   :  { %v2241_v25 = vadd.f32 %v1601_v20, %v1537_v17  ;;  %v1604_v26 = vadd.f32 %v1603_v24, %v1602_v21 }
 0x105   :  { %v2243_v27 = vadd.f32 %v1604_v26, %v1540_v23 }
 0x106   :  { %v1541_v28 = vpop.f32.mrb[8].mxu0 }
 0x107   :  { %v1605_v29 = vpop.f32.mrb[8].mxu1  ;;  %v1542_v30 = vpop.f32.mrb[9].mxu0 }
 0x108   :  { %v1543_v31 = vadd.f32 %v1542_v30, %v1541_v28  ;;  %v1606_v32 = vpop.f32.mrb[9].mxu1  ;;  %v1544_v33 = vpop.f32.mrb[10].mxu0 }
 0x109   :  { %v1607_v34 = vadd.f32 %v1606_v32, %v1605_v29  ;;  %v1608_v35 = vpop.f32.mrb[10].mxu1  ;;  %v1545_v36 = vpop.f32.mrb[11].mxu0 }
 0x10a   :  { %v1546_v37 = vadd.f32 %v1545_v36, %v1544_v33  ;;  %v1609_v38 = vpop.f32.mrb[11].mxu1 }
 0x10b   :  { %v2245_v39 = vadd.f32 %v1607_v34, %v1543_v31  ;;  %v1610_v40 = vadd.f32 %v1609_v38, %v1608_v35 }
 0x10d   :  { %v2247_v41 = vadd.f32 %v1610_v40, %v1546_v37 }
 0x10e   :  { %v1547_v42 = vpop.f32.mrb[12].mxu0 }
 0x10f   :  { %v1611_v43 = vpop.f32.mrb[12].mxu1  ;;  %v1548_v44 = vpop.f32.mrb[13].mxu0 }
 0x110   :  { %v1549_v45 = vadd.f32 %v1548_v44, %v1547_v42  ;;  %v1612_v46 = vpop.f32.mrb[13].mxu1  ;;  %v1550_v47 = vpop.f32.mrb[14].mxu0 }
 0x111   :  { %v1613_v48 = vadd.f32 %v1612_v46, %v1611_v43  ;;  %v1614_v49 = vpop.f32.mrb[14].mxu1  ;;  %v1551_v50 = vpop.f32.mrb[15].mxu0 }
 0x112   :  { %v1552_v51 = vadd.f32 %v1551_v50, %v1550_v47  ;;  %v1615_v52 = vpop.f32.mrb[15].mxu1 }
 0x113   :  { %v2249_v53 = vadd.f32 %v1613_v48, %v1549_v45  ;;  %v1616_v54 = vadd.f32 %v1615_v52, %v1614_v49 }
 0x115   :  { %v2251_v55 = vadd.f32 %v1616_v54, %v1552_v51 }
 0x116   :  { %v1553_v56 = vpop.f32.mrb[16].mxu0 }
 0x117   :  { %v1617_v57 = vpop.f32.mrb[16].mxu1  ;;  %v1554_v58 = vpop.f32.mrb[17].mxu0 }
 0x118   :  { %v1555_v59 = vadd.f32 %v1554_v58, %v1553_v56  ;;  %v1618_v60 = vpop.f32.mrb[17].mxu1  ;;  %v1556_v61 = vpop.f32.mrb[18].mxu0 }
 0x119   :  { %v1619_v62 = vadd.f32 %v1618_v60, %v1617_v57  ;;  %v1620_v63 = vpop.f32.mrb[18].mxu1  ;;  %v1557_v0 = vpop.f32.mrb[19].mxu0 }
 0x11a   :  { %v1558_v1 = vadd.f32 %v1557_v0, %v1556_v61  ;;  %v1621_v2 = vpop.f32.mrb[19].mxu1 }
 0x11b   :  { %v2253_v3 = vadd.f32 %v1619_v62, %v1555_v59  ;;  %v1622_v4 = vadd.f32 %v1621_v2, %v1620_v63 }
 0x11d   :  { %v2255_v5 = vadd.f32 %v1622_v4, %v1558_v1 }
 0x11e   :  { %v1559_v6 = vpop.f32.mrb[20].mxu0 }
 0x11f   :  { %v1623_v7 = vpop.f32.mrb[20].mxu1  ;;  %v1560_v8 = vpop.f32.mrb[21].mxu0 }
 0x120   :  { %v1561_v9 = vadd.f32 %v1560_v8, %v1559_v6  ;;  %v1624_v10 = vpop.f32.mrb[21].mxu1  ;;  %v1562_v12 = vpop.f32.mrb[22].mxu0 }
 0x121   :  { %v1625_v14 = vadd.f32 %v1624_v10, %v1623_v7  ;;  %v1626_v15 = vpop.f32.mrb[22].mxu1  ;;  %v1563_v16 = vpop.f32.mrb[23].mxu0 }
 0x122   :  { %v1564_v17 = vadd.f32 %v1563_v16, %v1562_v12  ;;  %v1627_v18 = vpop.f32.mrb[23].mxu1 }
 0x123   :  { %v2257_v19 = vadd.f32 %v1625_v14, %v1561_v9  ;;  %v1628_v20 = vadd.f32 %v1627_v18, %v1626_v15 }
 0x125   :  { %v2259_v21 = vadd.f32 %v1628_v20, %v1564_v17 }
 0x126   :  { %v1565_v22 = vpop.f32.mrb[24].mxu0 }
 0x127   :  { %v1629_v23 = vpop.f32.mrb[24].mxu1  ;;  %v1566_v24 = vpop.f32.mrb[25].mxu0 }
 0x128   :  { %v1567_v26 = vadd.f32 %v1566_v24, %v1565_v22  ;;  %v1630_v28 = vpop.f32.mrb[25].mxu1  ;;  %v1568_v29 = vpop.f32.mrb[26].mxu0 }
 0x129   :  { %v1631_v30 = vadd.f32 %v1630_v28, %v1629_v23  ;;  %v1632_v31 = vpop.f32.mrb[26].mxu1  ;;  %v1569_v32 = vpop.f32.mrb[27].mxu0 }
 0x12a   :  { %v1570_v33 = vadd.f32 %v1569_v32, %v1568_v29  ;;  %v1633_v34 = vpop.f32.mrb[27].mxu1 }
 0x12b   :  { %v2261_v35 = vadd.f32 %v1631_v30, %v1567_v26  ;;  %v1634_v36 = vadd.f32 %v1633_v34, %v1632_v31 }
 0x12d   :  { %v2263_v37 = vadd.f32 %v1634_v36, %v1570_v33 }
 0x12e   :  { %v1571_v38 = vpop.f32.mrb[28].mxu0 }
 0x12f   :  { %v1635_v40 = vpop.f32.mrb[28].mxu1  ;;  %v1572_v42 = vpop.f32.mrb[29].mxu0 }
 0x130   :  { %v1573_v43 = vadd.f32 %v1572_v42, %v1571_v38  ;;  %v1636_v44 = vpop.f32.mrb[29].mxu1  ;;  %v1574_v45 = vpop.f32.mrb[30].mxu0 }
 0x131   :  { %v1637_v46 = vadd.f32 %v1636_v44, %v1635_v40  ;;  %v1638_v47 = vpop.f32.mrb[30].mxu1  ;;  %v1575_v48 = vpop.f32.mrb[31].mxu0 }
 0x132   :  { %v1576_v49 = vadd.f32 %v1575_v48, %v1574_v45  ;;  %v1639_v50 = vpop.f32.mrb[31].mxu1 }
 0x133   :  { %v2265_v51 = vadd.f32 %v1637_v46, %v1573_v43  ;;  %v1640_v52 = vadd.f32 %v1639_v50, %v1638_v47 }
 0x135   :  { %v2267_v54 = vadd.f32 %v1640_v52, %v1576_v49 }
 0x136   :  { %v1657_v56 = vpop.f32.mrb[32].mxu0 }
 0x137   :  { %v1721_v57 = vpop.f32.mrb[32].mxu1  ;;  %v1658_v58 = vpop.f32.mrb[33].mxu0 }
 0x138   :  { %v1659_v59 = vadd.f32 %v1658_v58, %v1657_v56  ;;  %v1722_v60 = vpop.f32.mrb[33].mxu1  ;;  %v1660_v61 = vpop.f32.mrb[34].mxu0 }
 0x139   :  { %v1723_v62 = vadd.f32 %v1722_v60, %v1721_v57  ;;  %v1724_v63 = vpop.f32.mrb[34].mxu1  ;;  %v1661_v0 = vpop.f32.mrb[35].mxu0 }
 0x13a   :  { %v1139_v1 = vadd.f32 %v1659_v59, %v2237_v11  ;;  %v1662_v2 = vadd.f32 %v1661_v0, %v1660_v61  ;;  %v1725_v4 = vpop.f32.mrb[35].mxu1 }
 0x13b   :  { %v1726_v6 = vadd.f32 %v1725_v4, %v1724_v63 }
 0x13c   :  { %v1236_v7 = vadd.f32 %v1723_v62, %v1139_v1  ;;  %v1142_v8 = vadd.f32 %v1662_v2, %v2239_v13 }
 0x13e   :  { %1298 = vst [vmem:[%s2338_s2] sm:$0xff] %v1236_v7  ;;  %v1239_v9 = vadd.f32 %v1726_v6, %v1142_v8  ;;  %v1663_v10 = vpop.f32.mrb[36].mxu0  ;;  %v1335_v15 = vmul.f32 %v1236_v7, %v1236_v7 }
 0x13f   :  { %v1727_v12 = vpop.f32.mrb[36].mxu1  ;;  %v1664_v14 = vpop.f32.mrb[37].mxu0 }
 0x140   :  { %1299 = vst [vmem:[%s2338_s2 + $0x8] sm:$0xff] %v1239_v9  ;;  %v1314_v11 = vadd.f32 %v1239_v9, %v1236_v7  ;;  %v1336_v16 = vmul.f32 %v1239_v9, %v1239_v9  ;;  %v1665_v17 = vadd.f32 %v1664_v14, %v1663_v10  ;;  %v1728_v18 = vpop.f32.mrb[37].mxu1  ;;  %v1666_v20 = vpop.f32.mrb[38].mxu0 }
 0x141   :  { %v1729_v22 = vadd.f32 %v1728_v18, %v1727_v12  ;;  %v1730_v13 = vpop.f32.mrb[38].mxu1  ;;  %v1667_v23 = vpop.f32.mrb[39].mxu0 }
 0x142   :  { %v1351_v24 = vadd.f32 %v1336_v16, %v1335_v15  ;;  %v1147_v26 = vadd.f32 %v1665_v17, %v2241_v25  ;;  %v1668_v28 = vadd.f32 %v1667_v23, %v1666_v20  ;;  %v1731_v29 = vpop.f32.mrb[39].mxu1 }
 0x143   :  { %v1732_v30 = vadd.f32 %v1731_v29, %v1730_v13 }
 0x144   :  { %v1244_v31 = vadd.f32 %v1729_v22, %v1147_v26  ;;  %v1150_v32 = vadd.f32 %v1668_v28, %v2243_v27 }
 0x146   :  { %1300 = vst [vmem:[%s2338_s2 + $0x10] sm:$0xff] %v1244_v31  ;;  %v1315_v33 = vadd.f32 %v1314_v11, %v1244_v31  ;;  %v1337_v34 = vmul.f32 %v1244_v31, %v1244_v31  ;;  %v1247_v36 = vadd.f32 %v1732_v30, %v1150_v32  ;;  %v1669_v38 = vpop.f32.mrb[40].mxu0 }
 0x147   :  { %v1733_v40 = vpop.f32.mrb[40].mxu1  ;;  %v1670_v42 = vpop.f32.mrb[41].mxu0 }
 0x148   :  { %v1352_v43 = vadd.f32 %v1351_v24, %v1337_v34  ;;  %1301 = vst [vmem:[%s2338_s2 + $0x18] sm:$0xff] %v1247_v36  ;;  %v1316_v25 = vadd.f32 %v1315_v33, %v1247_v36  ;;  %v1338_v44 = vmul.f32 %v1247_v36, %v1247_v36  ;;  %v1671_v45 = vadd.f32 %v1670_v42, %v1669_v38  ;;  %v1734_v46 = vpop.f32.mrb[41].mxu1  ;;  %v1672_v27 = vpop.f32.mrb[42].mxu0 }
 0x149   :  { %v1735_v47 = vadd.f32 %v1734_v46, %v1733_v40  ;;  %v1736_v48 = vpop.f32.mrb[42].mxu1  ;;  %v1673_v49 = vpop.f32.mrb[43].mxu0 }
 0x14a   :  { %v1353_v50 = vadd.f32 %v1352_v43, %v1338_v44  ;;  %v1155_v52 = vadd.f32 %v1671_v45, %v2245_v39  ;;  %v1674_v56 = vadd.f32 %v1673_v49, %v1672_v27  ;;  %v1737_v57 = vpop.f32.mrb[43].mxu1 }
 0x14b   :  { %v1738_v58 = vadd.f32 %v1737_v57, %v1736_v48 }
 0x14c   :  { %v1252_v59 = vadd.f32 %v1735_v47, %v1155_v52  ;;  %v1158_v60 = vadd.f32 %v1674_v56, %v2247_v41 }
 0x14e   :  { %1302 = vst [vmem:[%s2338_s2 + $0x20] sm:$0xff] %v1252_v59  ;;  %v1317_v61 = vadd.f32 %v1316_v25, %v1252_v59  ;;  %v1339_v62 = vmul.f32 %v1252_v59, %v1252_v59  ;;  %v1255_v63 = vadd.f32 %v1738_v58, %v1158_v60  ;;  %v1675_v0 = vpop.f32.mrb[44].mxu0 }
 0x14f   :  { %v1739_v1 = vpop.f32.mrb[44].mxu1  ;;  %v1676_v2 = vpop.f32.mrb[45].mxu0 }
 0x150   :  { %v1354_v4 = vadd.f32 %v1353_v50, %v1339_v62  ;;  %1303 = vst [vmem:[%s2338_s2 + $0x28] sm:$0xff] %v1255_v63  ;;  %v1318_v39 = vadd.f32 %v1317_v61, %v1255_v63  ;;  %v1340_v6 = vmul.f32 %v1255_v63, %v1255_v63  ;;  %v1677_v7 = vadd.f32 %v1676_v2, %v1675_v0  ;;  %v1740_v8 = vpop.f32.mrb[45].mxu1  ;;  %v1678_v41 = vpop.f32.mrb[46].mxu0 }
 0x151   :  { %v1741_v9 = vadd.f32 %v1740_v8, %v1739_v1  ;;  %v1742_v10 = vpop.f32.mrb[46].mxu1  ;;  %v1679_v12 = vpop.f32.mrb[47].mxu0 }
 0x152   :  { %v1355_v14 = vadd.f32 %v1354_v4, %v1340_v6  ;;  %v1163_v15 = vadd.f32 %v1677_v7, %v2249_v53  ;;  %v1680_v11 = vadd.f32 %v1679_v12, %v1678_v41  ;;  %v1743_v16 = vpop.f32.mrb[47].mxu1 }
 0x153   :  { %v1744_v17 = vadd.f32 %v1743_v16, %v1742_v10 }
 0x154   :  { %v1260_v18 = vadd.f32 %v1741_v9, %v1163_v15  ;;  %v1166_v20 = vadd.f32 %v1680_v11, %v2251_v55 }
 0x156   :  { %1304 = vst [vmem:[%s2338_s2 + $0x30] sm:$0xff] %v1260_v18  ;;  %v1319_v22 = vadd.f32 %v1318_v39, %v1260_v18  ;;  %v1341_v13 = vmul.f32 %v1260_v18, %v1260_v18  ;;  %v1263_v23 = vadd.f32 %v1744_v17, %v1166_v20  ;;  %v1681_v24 = vpop.f32.mrb[48].mxu0 }
 0x157   :  { %v1745_v26 = vpop.f32.mrb[48].mxu1  ;;  %v1682_v28 = vpop.f32.mrb[49].mxu0 }
 0x158   :  { %v1356_v29 = vadd.f32 %v1355_v14, %v1341_v13  ;;  %1305 = vst [vmem:[%s2338_s2 + $0x38] sm:$0xff] %v1263_v23  ;;  %v1320_v53 = vadd.f32 %v1319_v22, %v1263_v23  ;;  %v1342_v30 = vmul.f32 %v1263_v23, %v1263_v23  ;;  %v1683_v31 = vadd.f32 %v1682_v28, %v1681_v24  ;;  %v1746_v32 = vpop.f32.mrb[49].mxu1  ;;  %v1684_v55 = vpop.f32.mrb[50].mxu0 }
 0x159   :  { %v1747_v33 = vadd.f32 %v1746_v32, %v1745_v26  ;;  %v1748_v34 = vpop.f32.mrb[50].mxu1  ;;  %v1685_v36 = vpop.f32.mrb[51].mxu0 }
 0x15a   :  { %v1357_v38 = vadd.f32 %v1356_v29, %v1342_v30  ;;  %v1171_v40 = vadd.f32 %v1683_v31, %v2253_v3  ;;  %v1686_v42 = vadd.f32 %v1685_v36, %v1684_v55  ;;  %v1749_v43 = vpop.f32.mrb[51].mxu1 }
 0x15b   :  { %v1750_v25 = vadd.f32 %v1749_v43, %v1748_v34 }
 0x15c   :  { %v1268_v44 = vadd.f32 %v1747_v33, %v1171_v40  ;;  %v1174_v45 = vadd.f32 %v1686_v42, %v2255_v5 }
 0x15e   :  { %1306 = vst [vmem:[%s2338_s2 + $0x40] sm:$0xff] %v1268_v44  ;;  %v1321_v46 = vadd.f32 %v1320_v53, %v1268_v44  ;;  %v1343_v27 = vmul.f32 %v1268_v44, %v1268_v44  ;;  %v1271_v47 = vadd.f32 %v1750_v25, %v1174_v45  ;;  %v1687_v48 = vpop.f32.mrb[52].mxu0 }
 0x15f   :  { %v1751_v49 = vpop.f32.mrb[52].mxu1  ;;  %v1688_v50 = vpop.f32.mrb[53].mxu0 }
 0x160   :  { %v1358_v52 = vadd.f32 %v1357_v38, %v1343_v27  ;;  %1307 = vst [vmem:[%s2338_s2 + $0x48] sm:$0xff] %v1271_v47  ;;  %v1322_v3 = vadd.f32 %v1321_v46, %v1271_v47  ;;  %v1344_v56 = vmul.f32 %v1271_v47, %v1271_v47  ;;  %v1689_v57 = vadd.f32 %v1688_v50, %v1687_v48  ;;  %v1752_v58 = vpop.f32.mrb[53].mxu1  ;;  %v1690_v5 = vpop.f32.mrb[54].mxu0 }
 0x161   :  { %v1753_v59 = vadd.f32 %v1752_v58, %v1751_v49  ;;  %v1754_v60 = vpop.f32.mrb[54].mxu1  ;;  %v1691_v61 = vpop.f32.mrb[55].mxu0 }
 0x162   :  { %v1359_v62 = vadd.f32 %v1358_v52, %v1344_v56  ;;  %v1179_v63 = vadd.f32 %v1689_v57, %v2257_v19  ;;  %v1692_v0 = vadd.f32 %v1691_v61, %v1690_v5  ;;  %v1755_v1 = vpop.f32.mrb[55].mxu1 }
 0x163   :  { %v1756_v2 = vadd.f32 %v1755_v1, %v1754_v60 }
 0x164   :  { %v1276_v4 = vadd.f32 %v1753_v59, %v1179_v63  ;;  %v1182_v39 = vadd.f32 %v1692_v0, %v2259_v21 }
 0x166   :  { %1308 = vst [vmem:[%s2338_s2 + $0x50] sm:$0xff] %v1276_v4  ;;  %v1323_v6 = vadd.f32 %v1322_v3, %v1276_v4  ;;  %v1345_v7 = vmul.f32 %v1276_v4, %v1276_v4  ;;  %v1279_v8 = vadd.f32 %v1756_v2, %v1182_v39  ;;  %v1693_v41 = vpop.f32.mrb[56].mxu0 }
 0x167   :  { %v1757_v9 = vpop.f32.mrb[56].mxu1  ;;  %v1694_v10 = vpop.f32.mrb[57].mxu0 }
 0x168   :  { %v1360_v12 = vadd.f32 %v1359_v62, %v1345_v7  ;;  %1309 = vst [vmem:[%s2338_s2 + $0x58] sm:$0xff] %v1279_v8  ;;  %v1324_v19 = vadd.f32 %v1323_v6, %v1279_v8  ;;  %v1346_v14 = vmul.f32 %v1279_v8, %v1279_v8  ;;  %v1695_v15 = vadd.f32 %v1694_v10, %v1693_v41  ;;  %v1758_v11 = vpop.f32.mrb[57].mxu1  ;;  %v1696_v21 = vpop.f32.mrb[58].mxu0 }
 0x169   :  { %v1759_v16 = vadd.f32 %v1758_v11, %v1757_v9  ;;  %v1760_v17 = vpop.f32.mrb[58].mxu1  ;;  %v1697_v18 = vpop.f32.mrb[59].mxu0 }
 0x16a   :  { %v1361_v20 = vadd.f32 %v1360_v12, %v1346_v14  ;;  %v1187_v22 = vadd.f32 %v1695_v15, %v2261_v35  ;;  %v1698_v13 = vadd.f32 %v1697_v18, %v1696_v21  ;;  %v1761_v23 = vpop.f32.mrb[59].mxu1 }
 0x16b   :  { %v1762_v24 = vadd.f32 %v1761_v23, %v1760_v17 }
 0x16c   :  { %v1284_v26 = vadd.f32 %v1759_v16, %v1187_v22  ;;  %v1190_v28 = vadd.f32 %v1698_v13, %v2263_v37 }
 0x16e   :  { %1310 = vst [vmem:[%s2338_s2 + $0x60] sm:$0xff] %v1284_v26  ;;  %v1325_v29 = vadd.f32 %v1324_v19, %v1284_v26  ;;  %v1347_v53 = vmul.f32 %v1284_v26, %v1284_v26  ;;  %v1287_v30 = vadd.f32 %v1762_v24, %v1190_v28  ;;  %v1699_v31 = vpop.f32.mrb[60].mxu0 }
 0x16f   :  { %v1763_v32 = vpop.f32.mrb[60].mxu1  ;;  %v1700_v55 = vpop.f32.mrb[61].mxu0 }
 0x170   :  { %v1362_v33 = vadd.f32 %v1361_v20, %v1347_v53  ;;  %1311 = vst [vmem:[%s2338_s2 + $0x68] sm:$0xff] %v1287_v30  ;;  %v1326_v35 = vadd.f32 %v1325_v29, %v1287_v30  ;;  %v1348_v34 = vmul.f32 %v1287_v30, %v1287_v30  ;;  %v1701_v36 = vadd.f32 %v1700_v55, %v1699_v31  ;;  %v1764_v38 = vpop.f32.mrb[61].mxu1  ;;  %v1702_v37 = vpop.f32.mrb[62].mxu0 }
 0x171   :  { %v1765_v40 = vadd.f32 %v1764_v38, %v1763_v32  ;;  %v1766_v42 = vpop.f32.mrb[62].mxu1  ;;  %v1703_v43 = vpop.f32.mrb[63].mxu0 }
 0x172   :  { %v1363_v25 = vadd.f32 %v1362_v33, %v1348_v34  ;;  %v1195_v44 = vadd.f32 %v1701_v36, %v2265_v51  ;;  %v1704_v45 = vadd.f32 %v1703_v43, %v1702_v37  ;;  %v1767_v46 = vpop.f32.mrb[63].mxu1 }
 0x173   :  { %v1768_v27 = vadd.f32 %v1767_v46, %v1766_v42 }
 0x174   :  { %v1292_v47 = vadd.f32 %v1765_v40, %v1195_v44  ;;  %v1198_v48 = vadd.f32 %v1704_v45, %v2267_v54 }
 0x176   :  { %1312 = vst [vmem:[%s2338_s2 + $0x70] sm:$0xff] %v1292_v47  ;;  %v1327_v49 = vadd.f32 %v1326_v35, %v1292_v47  ;;  %v1349_v50 = vmul.f32 %v1292_v47, %v1292_v47  ;;  %v1295_v52 = vadd.f32 %v1768_v27, %v1198_v48 }
 0x178   :  { %v1364_v3 = vadd.f32 %v1363_v25, %v1349_v50  ;;  %1313 = vst [vmem:[%s2338_s2 + $0x78] sm:$0xff] %v1295_v52  ;;  %v1328_v56 = vadd.f32 %v1327_v49, %v1295_v52  ;;  %v1350_v51 = vmul.f32 %v1295_v52, %v1295_v52 }
 0x17a   :  { %v1329_v57 = vrot.slane %v1328_v56, 4  ;;  %v1365_v58 = vadd.f32 %v1364_v3, %v1350_v51 }
 0x17c   :  { %v1330_v5 = vadd.f32 %v1329_v57, %v1328_v56  ;;  %v1366_v59 = vrot.slane %v1365_v58, 4 }
 0x17e   :  { %v1331_v60 = vrot.slane %v1330_v5, 2  ;;  %v1367_v54 = vadd.f32 %v1366_v59, %v1365_v58 }
 0x180   :  { %v1332_v61 = vadd.f32 %v1331_v60, %v1330_v5  ;;  %v1368_v62 = vrot.slane %v1367_v54, 2 }
 0x182   :  { %v1333_v63 = vrot.slane %v1332_v61, 1  ;;  %v1369_v0 = vadd.f32 %v1368_v62, %v1367_v54 }
 0x184   :  { %v1370_v1 = vrot.slane %v1369_v0, 1  ;;  %v1334_v2 = vadd.f32 %v1333_v63, %v1332_v61 }
 0x186   :  { %v1371_v4 = vadd.f32 %v1370_v1, %v1369_v0 }
 0x188   :  { %v1373_v39 = vsel %vm1372_vm0, %v1334_v2, %v1371_v4 }
 0x189   :  { %v1375_v6 = vsel %vm1374_vm1, %v1373_v39, 0.0 }
 0x18a   :  { %1376 = vst [vmem:[%s2339_s3] sm:$0xff] %v1375_v6 }

// kernel: nlayer_discriminator.12
= control target key start
LH: loop header
LB: loop body
LE: loop exit
PB: predicated region body
PF: predicated region fallthrough
CT: control target
= control target key end

     0   :  { %v24_v0 = vlaneseq  ;;  %s172_s1 = inlined_call_operand.vmem [shape: f32[1,256], index: 1, kind: input, shape index: {}]   ;;  %s173_s2 = inlined_call_operand.vmem [shape: f32[1,256], index: 2, kind: input, shape index: {}]   ;;  %s174_s0 = inlined_call_operand.vmem [shape: f32[32,256], index: 0, kind: input, shape index: {}]   ;;  %s175_s3 = inlined_call_operand.vmem [shape: f32[32,256], index: 3, kind: output, shape index: {}]  }
   0x1   :  { %v22_v2 = vld [vmem:[%s172_s1] sm:$0x3]  ;;  %v15_v6 = vld [vmem:[%s174_s0 + $0x8] sm:$0xff]  ;;  %v16_v8 = vld [vmem:[%s174_s0 + $0x10] sm:$0xff] }
   0x2   :  { %v25_v1 = vshrl.u32 %v24_v0, 7  ;;  %v42_v3 = vld [vmem:[%s173_s2] sm:$0x3]  ;;  %v17_v9 = vld [vmem:[%s174_s0 + $0x18] sm:$0xff]  ;;  %v19_v15 = vld [vmem:[%s174_s0 + $0x28] sm:$0xff] }
   0x3   :  { %v14_v4 = vld [vmem:[%s174_s0] sm:$0xff]  ;;  %v20_v16 = vld [vmem:[%s174_s0 + $0x30] sm:$0xff]  ;;  %v21_v17 = vld [vmem:[%s174_s0 + $0x38] sm:$0xff] }
   0x4   :  { %v26_v5 = vsub.s32 0, %v25_v1  ;;  %v30_v7 = vsub.s32 1, %v25_v1  ;;  %v18_v10 = vld [vmem:[%s174_s0 + $0x20] sm:$0xff] }
   0x6   :  { %v27_v11 = vrot.slane %v22_v2, %v26_v5  ;;  %v47_v12 = vrot.slane %v42_v3, %v26_v5  ;;  %v31_v13 = vrot.slane %v22_v2, %v30_v7  ;;  %v51_v14 = vrot.slane %v42_v3, %v30_v7 }
   0x8   :  { %v34_v18 = vmul.f32 %v27_v11, %v14_v4  ;;  %v35_v19 = vmul.f32 %v31_v13, %v15_v6  ;;  %v36_v20 = vmul.f32 %v27_v11, %v16_v8  ;;  %v37_v21 = vmul.f32 %v31_v13, %v17_v9 }
   0x9   :  { %v38_v22 = vmul.f32 %v27_v11, %v18_v10  ;;  %v39_v23 = vmul.f32 %v31_v13, %v19_v15  ;;  %v40_v24 = vmul.f32 %v27_v11, %v20_v16  ;;  %v41_v25 = vmul.f32 %v31_v13, %v21_v17 }
   0xa   :  { %v54_v26 = vadd.f32 %v47_v12, %v34_v18  ;;  %v55_v27 = vadd.f32 %v51_v14, %v35_v19  ;;  %v56_v28 = vadd.f32 %v47_v12, %v36_v20  ;;  %v57_v29 = vadd.f32 %v51_v14, %v37_v21 }
   0xb   :  { %v58_v30 = vadd.f32 %v47_v12, %v38_v22  ;;  %v59_v31 = vadd.f32 %v51_v14, %v39_v23  ;;  %v60_v32 = vadd.f32 %v47_v12, %v40_v24  ;;  %v61_v33 = vadd.f32 %v51_v14, %v41_v25 }
   0xc   :  { %vm62_vm0 = vcmp.ge.f32.partialorder %v54_v26, 0.0  ;;  %v70_v34 = vmul.f32 0.2, %v54_v26  ;;  %vm63_vm1 = vcmp.ge.f32.partialorder %v55_v27, 0.0  ;;  %v71_v35 = vmul.f32 0.2, %v55_v27 }
   0xd   :  { %vm64_vm2 = vcmp.ge.f32.partialorder %v56_v28, 0.0  ;;  %v72_v36 = vmul.f32 0.2, %v56_v28  ;;  %vm65_vm3 = vcmp.ge.f32.partialorder %v57_v29, 0.0  ;;  %v73_v37 = vmul.f32 0.2, %v57_v29 }
   0xe   :  { %v78_v38 = vsel %vm62_vm0, %v54_v26, %v70_v34  ;;  %v79_v39 = vsel %vm63_vm1, %v55_v27, %v71_v35  ;;  %vm66_vm4 = vcmp.ge.f32.partialorder %v58_v30, 0.0  ;;  %v74_v40 = vmul.f32 0.2, %v58_v30 }
   0xf   :  { %86 = vst [vmem:[%s175_s3] sm:$0xff] %v78_v38  ;;  %87 = vst [vmem:[%s175_s3 + $0x8] sm:$0xff] %v79_v39  ;;  %v80_v41 = vsel %vm64_vm2, %v56_v28, %v72_v36  ;;  %v81_v42 = vsel %vm65_vm3, %v57_v29, %v73_v37  ;;  %vm67_vm5 = vcmp.ge.f32.partialorder %v59_v31, 0.0  ;;  %v75_v43 = vmul.f32 0.2, %v59_v31 }
  0x10   :  { %88 = vst [vmem:[%s175_s3 + $0x10] sm:$0xff] %v80_v41  ;;  %89 = vst [vmem:[%s175_s3 + $0x18] sm:$0xff] %v81_v42  ;;  %v82_v44 = vsel %vm66_vm4, %v58_v30, %v74_v40  ;;  %vm68_vm6 = vcmp.ge.f32.partialorder %v60_v32, 0.0  ;;  %v76_v45 = vmul.f32 0.2, %v60_v32  ;;  %vm69_vm7 = vcmp.ge.f32.partialorder %v61_v33, 0.0 }
  0x11   :  { %90 = vst [vmem:[%s175_s3 + $0x20] sm:$0xff] %v82_v44  ;;  %v83_v46 = vsel %vm67_vm5, %v59_v31, %v75_v43  ;;  %v77_v47 = vmul.f32 0.2, %v61_v33 }
  0x12   :  { %91 = vst [vmem:[%s175_s3 + $0x28] sm:$0xff] %v83_v46  ;;  %v84_v48 = vsel %vm68_vm6, %v60_v32, %v76_v45 }
  0x13   :  { %92 = vst [vmem:[%s175_s3 + $0x30] sm:$0xff] %v84_v48  ;;  %v85_v49 = vsel %vm69_vm7, %v61_v33, %v77_v47 }
  0x14   :  { %93 = vst [vmem:[%s175_s3 + $0x38] sm:$0xff] %v85_v49 }

// kernel: nlayer_discriminator.11
= control target key start
LH: loop header
LB: loop body
LE: loop exit
PB: predicated region body
PF: predicated region fallthrough
CT: control target
= control target key end

     0   :  { %vm2217_vm0 = vcmask 1040384   ;;  %vm2220_vm1 = vcmask 1041408   ;;  %s3923_s1 = inlined_call_operand.vmem [shape: bf16[2048,256], index: 1, kind: input, shape index: {}]   ;;  %s3924_s0 = inlined_call_operand.vmem [shape: bf16[32,2048], index: 0, kind: input, shape index: {}]   ;;  %s3925_s2 = inlined_call_operand.vmem [shape: f32[32,256], index: 2, kind: output, shape index: {0}]   ;;  %s3926_s3 = inlined_call_operand.vmem [shape: f32[1,8,256], index: 3, kind: output, shape index: {1}]  }
   0x1   :  { %v2577_v0 = vld [vmem:[%s3923_s1 + $0x4] ss:$8 sps:$4 sm:$0xff]   ;;  %v2581_v2 = vld [vmem:[%s3923_s1] ss:$8 sps:$4 sm:$0xff]   ;;  %v2583_v4 = vld [vmem:[%s3923_s1 + $0x14] ss:$8 sps:$4 sm:$0xff]  }
   0x2   :  { %v2579_v1 = vld [vmem:[%s3923_s1 + $0x404] ss:$8 sps:$4 sm:$0xff]   ;;  %1741 = vmatprep.subr.bf16.mxu1 %v2577_v0  ;;  %v2582_v3 = vld [vmem:[%s3923_s1 + $0x400] ss:$8 sps:$4 sm:$0xff]   ;;  %v2585_v5 = vld [vmem:[%s3923_s1 + $0x414] ss:$8 sps:$4 sm:$0xff]  }
   0x3   :  { %1953 = vmatprep.subr.bf16.mxu0 %v2579_v1  ;;  %1742 = vmatpush1.bf16.msra.mxu1 %v2581_v2  ;;  %v2587_v6 = vld [vmem:[%s3923_s1 + $0x10] ss:$8 sps:$4 sm:$0xff]   ;;  %v2589_v8 = vld [vmem:[%s3923_s1 + $0x24] ss:$8 sps:$4 sm:$0xff]   ;;  %v2593_v10 = vld [vmem:[%s3923_s1 + $0x20] ss:$8 sps:$4 sm:$0xff]  }
   0x4   :  { %1954 = vmatpush1.bf16.msra.mxu0 %v2582_v3  ;;  %1743 = vmatprep.subr.bf16.mxu1 %v2583_v4  ;;  %v2588_v7 = vld [vmem:[%s3923_s1 + $0x410] ss:$8 sps:$4 sm:$0xff]   ;;  %v2591_v9 = vld [vmem:[%s3923_s1 + $0x424] ss:$8 sps:$4 sm:$0xff]   ;;  %v2594_v11 = vld [vmem:[%s3923_s1 + $0x420] ss:$8 sps:$4 sm:$0xff]  }
   0x5   :  { %1955 = vmatprep.subr.bf16.mxu0 %v2585_v5  ;;  %v2595_v12 = vld [vmem:[%s3923_s1 + $0x34] ss:$8 sps:$4 sm:$0xff]   ;;  %v2599_v14 = vld [vmem:[%s3923_s1 + $0x30] ss:$8 sps:$4 sm:$0xff]   ;;  %v2601_v16 = vld [vmem:[%s3923_s1 + $0x44] ss:$8 sps:$4 sm:$0xff]  }
   0x6   :  { %v2597_v13 = vld [vmem:[%s3923_s1 + $0x434] ss:$8 sps:$4 sm:$0xff]   ;;  %v2600_v15 = vld [vmem:[%s3923_s1 + $0x430] ss:$8 sps:$4 sm:$0xff]   ;;  %v2603_v17 = vld [vmem:[%s3923_s1 + $0x444] ss:$8 sps:$4 sm:$0xff]  }
   0x7   :  { %1744 = vmatpush1.bf16.msra.mxu1 %v2587_v6  ;;  %v2605_v18 = vld [vmem:[%s3923_s1 + $0x40] ss:$8 sps:$4 sm:$0xff]   ;;  %v2607_v20 = vld [vmem:[%s3923_s1 + $0x54] ss:$8 sps:$4 sm:$0xff]   ;;  %v2611_v22 = vld [vmem:[%s3923_s1 + $0x50] ss:$8 sps:$4 sm:$0xff]  }
   0x8   :  { %1956 = vmatpush1.bf16.msra.mxu0 %v2588_v7  ;;  %1745 = vmatprep.subr.bf16.mxu1 %v2589_v8  ;;  %v2606_v19 = vld [vmem:[%s3923_s1 + $0x440] ss:$8 sps:$4 sm:$0xff]   ;;  %v2609_v21 = vld [vmem:[%s3923_s1 + $0x454] ss:$8 sps:$4 sm:$0xff]   ;;  %v2612_v23 = vld [vmem:[%s3923_s1 + $0x450] ss:$8 sps:$4 sm:$0xff]  }
   0x9   :  { %1957 = vmatprep.subr.bf16.mxu0 %v2591_v9  ;;  %v2613_v24 = vld [vmem:[%s3923_s1 + $0x64] ss:$8 sps:$4 sm:$0xff]   ;;  %v2617_v26 = vld [vmem:[%s3923_s1 + $0x60] ss:$8 sps:$4 sm:$0xff]   ;;  %v2619_v28 = vld [vmem:[%s3923_s1 + $0x74] ss:$8 sps:$4 sm:$0xff]  }
   0xa   :  { %v2615_v25 = vld [vmem:[%s3923_s1 + $0x464] ss:$8 sps:$4 sm:$0xff]   ;;  %v2618_v27 = vld [vmem:[%s3923_s1 + $0x460] ss:$8 sps:$4 sm:$0xff]   ;;  %v2621_v29 = vld [vmem:[%s3923_s1 + $0x474] ss:$8 sps:$4 sm:$0xff]  }
   0xb   :  { %1746 = vmatpush1.bf16.msra.mxu1 %v2593_v10  ;;  %v2623_v30 = vld [vmem:[%s3923_s1 + $0x70] ss:$8 sps:$4 sm:$0xff]   ;;  %v2625_v32 = vld [vmem:[%s3923_s1 + $0x84] ss:$8 sps:$4 sm:$0xff]   ;;  %v2629_v34 = vld [vmem:[%s3923_s1 + $0x80] ss:$8 sps:$4 sm:$0xff]  }
   0xc   :  { %1958 = vmatpush1.bf16.msra.mxu0 %v2594_v11  ;;  %1747 = vmatprep.subr.bf16.mxu1 %v2595_v12  ;;  %v2624_v31 = vld [vmem:[%s3923_s1 + $0x470] ss:$8 sps:$4 sm:$0xff]   ;;  %v2627_v33 = vld [vmem:[%s3923_s1 + $0x484] ss:$8 sps:$4 sm:$0xff]   ;;  %v2630_v35 = vld [vmem:[%s3923_s1 + $0x480] ss:$8 sps:$4 sm:$0xff]  }
   0xd   :  { %1959 = vmatprep.subr.bf16.mxu0 %v2597_v13  ;;  %v2631_v36 = vld [vmem:[%s3923_s1 + $0x94] ss:$8 sps:$4 sm:$0xff]   ;;  %v2635_v38 = vld [vmem:[%s3923_s1 + $0x90] ss:$8 sps:$4 sm:$0xff]   ;;  %v2637_v40 = vld [vmem:[%s3923_s1 + $0xa4] ss:$8 sps:$4 sm:$0xff]  }
   0xe   :  { %v2633_v37 = vld [vmem:[%s3923_s1 + $0x494] ss:$8 sps:$4 sm:$0xff]   ;;  %v2636_v39 = vld [vmem:[%s3923_s1 + $0x490] ss:$8 sps:$4 sm:$0xff]   ;;  %v2639_v41 = vld [vmem:[%s3923_s1 + $0x4a4] ss:$8 sps:$4 sm:$0xff]  }
   0xf   :  { %1748 = vmatpush1.bf16.msra.mxu1 %v2599_v14  ;;  %v2641_v42 = vld [vmem:[%s3923_s1 + $0xa0] ss:$8 sps:$4 sm:$0xff]   ;;  %v2643_v44 = vld [vmem:[%s3923_s1 + $0xb4] ss:$8 sps:$4 sm:$0xff]   ;;  %v2647_v46 = vld [vmem:[%s3923_s1 + $0xb0] ss:$8 sps:$4 sm:$0xff]  }
  0x10   :  { %1960 = vmatpush1.bf16.msra.mxu0 %v2600_v15  ;;  %1749 = vmatprep.subr.bf16.mxu1 %v2601_v16  ;;  %v2642_v43 = vld [vmem:[%s3923_s1 + $0x4a0] ss:$8 sps:$4 sm:$0xff]   ;;  %v2645_v45 = vld [vmem:[%s3923_s1 + $0x4b4] ss:$8 sps:$4 sm:$0xff]   ;;  %v2648_v47 = vld [vmem:[%s3923_s1 + $0x4b0] ss:$8 sps:$4 sm:$0xff]  }
  0x11   :  { %1961 = vmatprep.subr.bf16.mxu0 %v2603_v17  ;;  %v13_v48 = vld [vmem:[%s3924_s0] sm:$0xff]  ;;  %v2655_v58 = vld [vmem:[%s3923_s1 + $0xd4] ss:$8 sps:$4 sm:$0xff]   ;;  %v2659_v60 = vld [vmem:[%s3923_s1 + $0xd0] ss:$8 sps:$4 sm:$0xff]  }
  0x12   :  { %v21_v49 = vld [vmem:[%s3924_s0 + $0x40] sm:$0xff]  ;;  %v2657_v59 = vld [vmem:[%s3923_s1 + $0x4d4] ss:$8 sps:$4 sm:$0xff]   ;;  %v2660_v61 = vld [vmem:[%s3923_s1 + $0x4d0] ss:$8 sps:$4 sm:$0xff]  }
  0x13   :  { %1750 = vmatpush1.bf16.msra.mxu1 %v2605_v18  ;;  %v2649_v50 = vld [vmem:[%s3923_s1 + $0xc4] ss:$8 sps:$4 sm:$0xff]   ;;  %v2234_v52 = vcombine.high %v13_v48, %v21_v49  ;;  %v2653_v56 = vld [vmem:[%s3923_s1 + $0xc0] ss:$8 sps:$4 sm:$0xff]   ;;  %v2667_v2 = vld [vmem:[%s3923_s1 + $0xf4] ss:$8 sps:$4 sm:$0xff]   ;;  %v2233_v8 = vcombine.low %v13_v48, %v21_v49 }
  0x14   :  { %1962 = vmatpush1.bf16.msra.mxu0 %v2606_v19  ;;  %1751 = vmatprep.subr.bf16.mxu1 %v2607_v20  ;;  %v2651_v51 = vld [vmem:[%s3923_s1 + $0x4c4] ss:$8 sps:$4 sm:$0xff]   ;;  %v2654_v57 = vld [vmem:[%s3923_s1 + $0x4c0] ss:$8 sps:$4 sm:$0xff]   ;;  %v2669_v3 = vld [vmem:[%s3923_s1 + $0x4f4] ss:$8 sps:$4 sm:$0xff]  }
  0x15   :  { %1963 = vmatprep.subr.bf16.mxu0 %v2609_v21  ;;  %v17_v53 = vld [vmem:[%s3924_s0 + $0x20] sm:$0xff]  ;;  %1773 = vmatprep.mubr.bf16.mxu1 %v2234_v52  ;;  %v2671_v4 = vld [vmem:[%s3923_s1 + $0xf0] ss:$8 sps:$4 sm:$0xff]   ;;  %v2681_v12 = vld [vmem:[%s3923_s1 + $0x114] ss:$8 sps:$4 sm:$0xff]  }
  0x16   :  { %v25_v54 = vld [vmem:[%s3924_s0 + $0x60] sm:$0xff]  ;;  %v2672_v5 = vld [vmem:[%s3923_s1 + $0x4f0] ss:$8 sps:$4 sm:$0xff]   ;;  %v2684_v13 = vld [vmem:[%s3923_s1 + $0x514] ss:$8 sps:$4 sm:$0xff]  }
  0x17   :  { %1752 = vmatpush1.bf16.msra.mxu1 %v2611_v22  ;;  %v2242_v55 = vcombine.high %v17_v53, %v25_v54  ;;  %v2661_v62 = vld [vmem:[%s3923_s1 + $0xe4] ss:$8 sps:$4 sm:$0xff]   ;;  %v2665_v0 = vld [vmem:[%s3923_s1 + $0xe0] ss:$8 sps:$4 sm:$0xff]   ;;  %v2241_v10 = vcombine.low %v17_v53, %v25_v54  ;;  %v2679_v14 = vld [vmem:[%s3923_s1 + $0x110] ss:$8 sps:$4 sm:$0xff]  }
  0x18   :  { %1964 = vmatpush1.bf16.msra.mxu0 %v2612_v23  ;;  %1753 = vmatprep.subr.bf16.mxu1 %v2613_v24  ;;  %v2663_v63 = vld [vmem:[%s3923_s1 + $0x4e4] ss:$8 sps:$4 sm:$0xff]   ;;  %v2666_v1 = vld [vmem:[%s3923_s1 + $0x4e0] ss:$8 sps:$4 sm:$0xff]   ;;  %v2682_v15 = vld [vmem:[%s3923_s1 + $0x510] ss:$8 sps:$4 sm:$0xff]  }
  0x19   :  { %1965 = vmatprep.subr.bf16.mxu0 %v2615_v25  ;;  %1985 = vmatprep.mubr.bf16.mxu0 %v2242_v55  ;;  %v2675_v6 = vld [vmem:[%s3923_s1 + $0x104] ss:$8 sps:$4 sm:$0xff]   ;;  %v2673_v9 = vld [vmem:[%s3923_s1 + $0x100] ss:$8 sps:$4 sm:$0xff]   ;;  %v2693_v20 = vld [vmem:[%s3923_s1 + $0x134] ss:$8 sps:$4 sm:$0xff]  }
  0x1a   :  { %v2678_v7 = vld [vmem:[%s3923_s1 + $0x504] ss:$8 sps:$4 sm:$0xff]   ;;  %v2676_v11 = vld [vmem:[%s3923_s1 + $0x500] ss:$8 sps:$4 sm:$0xff]   ;;  %v2696_v21 = vld [vmem:[%s3923_s1 + $0x534] ss:$8 sps:$4 sm:$0xff]  }
  0x1b   :  { %1754 = vmatpush1.bf16.msra.mxu1 %v2617_v26  ;;  %v2687_v16 = vld [vmem:[%s3923_s1 + $0x124] ss:$8 sps:$4 sm:$0xff]   ;;  %v2685_v18 = vld [vmem:[%s3923_s1 + $0x120] ss:$8 sps:$4 sm:$0xff]   ;;  %v2691_v22 = vld [vmem:[%s3923_s1 + $0x130] ss:$8 sps:$4 sm:$0xff]  }
  0x1c   :  { %1966 = vmatpush1.bf16.msra.mxu0 %v2618_v27  ;;  %1755 = vmatprep.subr.bf16.mxu1 %v2619_v28  ;;  %v2690_v17 = vld [vmem:[%s3923_s1 + $0x524] ss:$8 sps:$4 sm:$0xff]   ;;  %v2688_v19 = vld [vmem:[%s3923_s1 + $0x520] ss:$8 sps:$4 sm:$0xff]   ;;  %v2694_v23 = vld [vmem:[%s3923_s1 + $0x530] ss:$8 sps:$4 sm:$0xff]  }
  0x1d   :  { %1967 = vmatprep.subr.bf16.mxu0 %v2621_v29  ;;  %v2699_v24 = vld [vmem:[%s3923_s1 + $0x144] ss:$8 sps:$4 sm:$0xff]   ;;  %v2697_v26 = vld [vmem:[%s3923_s1 + $0x140] ss:$8 sps:$4 sm:$0xff]   ;;  %v2705_v28 = vld [vmem:[%s3923_s1 + $0x154] ss:$8 sps:$4 sm:$0xff]  }
  0x1e   :  { %v2702_v25 = vld [vmem:[%s3923_s1 + $0x544] ss:$8 sps:$4 sm:$0xff]   ;;  %v2700_v27 = vld [vmem:[%s3923_s1 + $0x540] ss:$8 sps:$4 sm:$0xff]   ;;  %v2708_v29 = vld [vmem:[%s3923_s1 + $0x554] ss:$8 sps:$4 sm:$0xff]  }
  0x1f   :  { %1756 = vmatpush1.bf16.msra.mxu1 %v2623_v30  ;;  %v29_v30 = vld [vmem:[%s3924_s0 + $0x80] sm:$0xff]  ;;  %v3302_v49 = vld [vmem:[%s3924_s0 + $0x28] sm:$0xff]  ;;  %v2718_v52 = vld [vmem:[%s3923_s1 + $0x570] ss:$8 sps:$4 sm:$0xff]  }
  0x20   :  { %1968 = vmatpush1.bf16.msra.mxu0 %v2624_v31  ;;  %1757 = vmatprep.subr.bf16.mxu1 %v2625_v32  ;;  %v37_v31 = vld [vmem:[%s3924_s0 + $0xc0] sm:$0xff]  ;;  %v2703_v32 = vld [vmem:[%s3923_s1 + $0x150] ss:$8 sps:$4 sm:$0xff]  }
  0x21   :  { %1969 = vmatprep.subr.bf16.mxu0 %v2627_v33  ;;  %v2250_v33 = vcombine.high %v29_v30, %v37_v31  ;;  %v2723_v54 = vld [vmem:[%s3923_s1 + $0x184] ss:$8 sps:$4 sm:$0xff]  }
  0x22   :  { %v2726_v55 = vld [vmem:[%s3923_s1 + $0x584] ss:$8 sps:$4 sm:$0xff]  }
  0x23   :  { %1758 = vmatpush1.bf16.msra.mxu1 %v2629_v34  ;;  %v2706_v34 = vld [vmem:[%s3923_s1 + $0x550] ss:$8 sps:$4 sm:$0xff]  }
  0x24   :  { %1970 = vmatpush1.bf16.msra.mxu0 %v2630_v35  ;;  %1759 = vmatprep.subr.bf16.mxu1 %v2631_v36  ;;  %v33_v35 = vld [vmem:[%s3924_s0 + $0xa0] sm:$0xff] }
  0x25   :  { %1971 = vmatprep.subr.bf16.mxu0 %v2633_v37  ;;  %v41_v36 = vld [vmem:[%s3924_s0 + $0xe0] sm:$0xff]  ;;  %v2249_v37 = vcombine.low %v29_v30, %v37_v31  ;;  %v2777_v30 = vld [vmem:[%s3923_s1 + $0x214] ss:$8 sps:$4 sm:$0xff]  }
  0x26   :  { %v2780_v31 = vld [vmem:[%s3923_s1 + $0x614] ss:$8 sps:$4 sm:$0xff]  }
  0x27   :  { %1760 = vmatpush1.bf16.msra.mxu1 %v2635_v38  ;;  %v2711_v38 = vld [vmem:[%s3923_s1 + $0x164] ss:$8 sps:$4 sm:$0xff]  }
  0x28   :  { %1972 = vmatpush1.bf16.msra.mxu0 %v2636_v39  ;;  %1761 = vmatprep.subr.bf16.mxu1 %v2637_v40  ;;  %v2258_v39 = vcombine.high %v33_v35, %v41_v36  ;;  %v2257_v40 = vcombine.low %v33_v35, %v41_v36  ;;  %v2775_v36 = vld [vmem:[%s3923_s1 + $0x210] ss:$8 sps:$4 sm:$0xff]  }
  0x29   :  { %1973 = vmatprep.subr.bf16.mxu0 %v2639_v41  ;;  %v2714_v41 = vld [vmem:[%s3923_s1 + $0x564] ss:$8 sps:$4 sm:$0xff]  }
  0x2b   :  { %1762 = vmatpush1.bf16.msra.mxu1 %v2641_v42  ;;  %v2709_v42 = vld [vmem:[%s3923_s1 + $0x160] ss:$8 sps:$4 sm:$0xff]  }
  0x2c   :  { %1974 = vmatpush1.bf16.msra.mxu0 %v2642_v43  ;;  %1763 = vmatprep.subr.bf16.mxu1 %v2643_v44  ;;  %v2712_v43 = vld [vmem:[%s3923_s1 + $0x560] ss:$8 sps:$4 sm:$0xff]  }
  0x2d   :  { %1975 = vmatprep.subr.bf16.mxu0 %v2645_v45  ;;  %v3284_v44 = vld [vmem:[%s3924_s0 + $0x8] sm:$0xff] }
  0x2e   :  { %v3289_v45 = vld [vmem:[%s3924_s0 + $0x48] sm:$0xff] }
  0x2f   :  { %1764 = vmatpush1.bf16.msra.mxu1 %v2647_v46  ;;  %v2717_v46 = vld [vmem:[%s3923_s1 + $0x174] ss:$8 sps:$4 sm:$0xff]   ;;  %v2236_v48 = vcombine.high %v3284_v44, %v3289_v45 }
  0x30   :  { %1976 = vmatpush1.bf16.msra.mxu0 %v2648_v47  ;;  %1765 = vmatprep.subr.bf16.mxu1 %v2649_v50  ;;  %v2720_v47 = vld [vmem:[%s3923_s1 + $0x574] ss:$8 sps:$4 sm:$0xff]   ;;  %v3307_v50 = vld [vmem:[%s3924_s0 + $0x68] sm:$0xff] }
  0x31   :  { %1977 = vmatprep.subr.bf16.mxu0 %v2651_v51  ;;  %v2715_v51 = vld [vmem:[%s3923_s1 + $0x170] ss:$8 sps:$4 sm:$0xff]   ;;  %v2244_v53 = vcombine.high %v3302_v49, %v3307_v50 }
  0x33   :  { %1766 = vmatpush1.bf16.msra.mxu1 %v2653_v56  ;;  %v2721_v56 = vld [vmem:[%s3923_s1 + $0x180] ss:$8 sps:$4 sm:$0xff]  }
  0x34   :  { %1978 = vmatpush1.bf16.msra.mxu0 %v2654_v57  ;;  %1767 = vmatprep.subr.bf16.mxu1 %v2655_v58  ;;  %v2724_v57 = vld [vmem:[%s3923_s1 + $0x580] ss:$8 sps:$4 sm:$0xff]   ;;  %v2729_v58 = vld [vmem:[%s3923_s1 + $0x194] ss:$8 sps:$4 sm:$0xff]  }
  0x35   :  { %1979 = vmatprep.subr.bf16.mxu0 %v2657_v59  ;;  %v2732_v59 = vld [vmem:[%s3923_s1 + $0x594] ss:$8 sps:$4 sm:$0xff]  }
  0x37   :  { %1768 = vmatpush1.bf16.msra.mxu1 %v2659_v60  ;;  %v2727_v60 = vld [vmem:[%s3923_s1 + $0x190] ss:$8 sps:$4 sm:$0xff]  }
  0x38   :  { %1980 = vmatpush1.bf16.msra.mxu0 %v2660_v61  ;;  %1769 = vmatprep.subr.bf16.mxu1 %v2661_v62  ;;  %v2730_v61 = vld [vmem:[%s3923_s1 + $0x590] ss:$8 sps:$4 sm:$0xff]   ;;  %v2735_v62 = vld [vmem:[%s3923_s1 + $0x1a4] ss:$8 sps:$4 sm:$0xff]  }
  0x39   :  { %1981 = vmatprep.subr.bf16.mxu0 %v2663_v63  ;;  %v2738_v63 = vld [vmem:[%s3923_s1 + $0x5a4] ss:$8 sps:$4 sm:$0xff]  }
  0x3b   :  { %1770 = vmatpush1.bf16.msra.mxu1 %v2665_v0  ;;  %v2733_v0 = vld [vmem:[%s3923_s1 + $0x1a0] ss:$8 sps:$4 sm:$0xff]  }
  0x3c   :  { %1982 = vmatpush1.bf16.msra.mxu0 %v2666_v1  ;;  %1771 = vmatprep.subr.bf16.mxu1 %v2667_v2  ;;  %v2736_v1 = vld [vmem:[%s3923_s1 + $0x5a0] ss:$8 sps:$4 sm:$0xff]   ;;  %v2741_v2 = vld [vmem:[%s3923_s1 + $0x1b4] ss:$8 sps:$4 sm:$0xff]  }
  0x3d   :  { %1983 = vmatprep.subr.bf16.mxu0 %v2669_v3  ;;  %v2744_v3 = vld [vmem:[%s3923_s1 + $0x5b4] ss:$8 sps:$4 sm:$0xff]  }
  0x3f   :  { %1772 = vmatpush1.bf16.msra.mxu1 %v2671_v4  ;;  %v2739_v4 = vld [vmem:[%s3923_s1 + $0x1b0] ss:$8 sps:$4 sm:$0xff]  }
  0x40   :  { %1984 = vmatpush1.bf16.msra.mxu0 %v2672_v5  ;;  %1794 = vmatprep.subr.bf16.mxu1 %v2675_v6  ;;  %v2742_v5 = vld [vmem:[%s3923_s1 + $0x5b0] ss:$8 sps:$4 sm:$0xff]   ;;  %v2747_v6 = vld [vmem:[%s3923_s1 + $0x1c4] ss:$8 sps:$4 sm:$0xff]  }
  0x41   :  { %2006 = vmatprep.subr.bf16.mxu0 %v2678_v7  ;;  %v2750_v7 = vld [vmem:[%s3923_s1 + $0x5c4] ss:$8 sps:$4 sm:$0xff]  }
  0x42   :  { %1774 = vmatmul.mubr.bf16.vlgmr.msra.gmra.mrb[0].mxu1 %v2233_v8  ;;  %v2745_v8 = vld [vmem:[%s3923_s1 + $0x1c0] ss:$8 sps:$4 sm:$0xff]  }
  0x43   :  { %1986 = vmatmul.mubr.bf16.vlgmr.msra.gmra.mrb[0].mxu0 %v2241_v10  ;;  %1795 = vmatpush1.bf16.msra.mxu1 %v2673_v9  ;;  %v2748_v9 = vld [vmem:[%s3923_s1 + $0x5c0] ss:$8 sps:$4 sm:$0xff]   ;;  %v2753_v10 = vld [vmem:[%s3923_s1 + $0x1d4] ss:$8 sps:$4 sm:$0xff]  }
  0x44   :  { %2007 = vmatpush1.bf16.msra.mxu0 %v2676_v11  ;;  %1796 = vmatprep.subr.bf16.mxu1 %v2681_v12  ;;  %v2756_v11 = vld [vmem:[%s3923_s1 + $0x5d4] ss:$8 sps:$4 sm:$0xff]   ;;  %v2751_v12 = vld [vmem:[%s3923_s1 + $0x1d0] ss:$8 sps:$4 sm:$0xff]  }
  0x45   :  { %2008 = vmatprep.subr.bf16.mxu0 %v2684_v13  ;;  %1783 = vmatprep.mubr.bf16.mxu1 %v2250_v33  ;;  %v2754_v13 = vld [vmem:[%s3923_s1 + $0x5d0] ss:$8 sps:$4 sm:$0xff]   ;;  %v42_v33 = vld [vmem:[%s3924_s0 + $0xe8] sm:$0xff] }
  0x46   :  { %1995 = vmatprep.mubr.bf16.mxu0 %v2258_v39  ;;  %v2786_v39 = vld [vmem:[%s3923_s1 + $0x624] ss:$8 sps:$4 sm:$0xff]  }
  0x47   :  { %1797 = vmatpush1.bf16.msra.mxu1 %v2679_v14  ;;  %v2759_v14 = vld [vmem:[%s3923_s1 + $0x1e4] ss:$8 sps:$4 sm:$0xff]  }
  0x48   :  { %2009 = vmatpush1.bf16.msra.mxu0 %v2682_v15  ;;  %1798 = vmatprep.subr.bf16.mxu1 %v2687_v16  ;;  %v2762_v15 = vld [vmem:[%s3923_s1 + $0x5e4] ss:$8 sps:$4 sm:$0xff]   ;;  %v2757_v16 = vld [vmem:[%s3923_s1 + $0x1e0] ss:$8 sps:$4 sm:$0xff]  }
  0x49   :  { %2010 = vmatprep.subr.bf16.mxu0 %v2690_v17  ;;  %v2760_v17 = vld [vmem:[%s3923_s1 + $0x5e0] ss:$8 sps:$4 sm:$0xff]  }
  0x4a   :  { %1784 = vmatmul.mubr.bf16.gmra.mrb[4].mxu1 %v2249_v37  ;;  %v2778_v37 = vld [vmem:[%s3923_s1 + $0x610] ss:$8 sps:$4 sm:$0xff]  }
  0x4b   :  { %1799 = vmatpush1.bf16.msra.mxu1 %v2685_v18  ;;  %1996 = vmatmul.mubr.bf16.gmra.mrb[4].mxu0 %v2257_v40  ;;  %v2765_v18 = vld [vmem:[%s3923_s1 + $0x1f4] ss:$8 sps:$4 sm:$0xff]   ;;  %v2781_v40 = vld [vmem:[%s3923_s1 + $0x220] ss:$8 sps:$4 sm:$0xff]  }
  0x4c   :  { %2011 = vmatpush1.bf16.msra.mxu0 %v2688_v19  ;;  %1800 = vmatprep.subr.bf16.mxu1 %v2693_v20  ;;  %v2768_v19 = vld [vmem:[%s3923_s1 + $0x5f4] ss:$8 sps:$4 sm:$0xff]   ;;  %v2763_v20 = vld [vmem:[%s3923_s1 + $0x1f0] ss:$8 sps:$4 sm:$0xff]  }
  0x4d   :  { %2012 = vmatprep.subr.bf16.mxu0 %v2696_v21  ;;  %1826 = vmatprep.mubr.bf16.mxu1 %v2236_v48  ;;  %v2766_v21 = vld [vmem:[%s3923_s1 + $0x5f0] ss:$8 sps:$4 sm:$0xff]   ;;  %v2789_v48 = vld [vmem:[%s3923_s1 + $0x234] ss:$8 sps:$4 sm:$0xff]  }
  0x4e   :  { %2038 = vmatprep.mubr.bf16.mxu0 %v2244_v53  ;;  %v2790_v53 = vld [vmem:[%s3923_s1 + $0x630] ss:$8 sps:$4 sm:$0xff]  }
  0x4f   :  { %1801 = vmatpush1.bf16.msra.mxu1 %v2691_v22  ;;  %v2771_v22 = vld [vmem:[%s3923_s1 + $0x204] ss:$8 sps:$4 sm:$0xff]  }
  0x50   :  { %2013 = vmatpush1.bf16.msra.mxu0 %v2694_v23  ;;  %1802 = vmatprep.subr.bf16.mxu1 %v2699_v24  ;;  %v2774_v23 = vld [vmem:[%s3923_s1 + $0x604] ss:$8 sps:$4 sm:$0xff]   ;;  %v2769_v24 = vld [vmem:[%s3923_s1 + $0x200] ss:$8 sps:$4 sm:$0xff]  }
  0x51   :  { %2014 = vmatprep.subr.bf16.mxu0 %v2702_v25  ;;  %v2772_v25 = vld [vmem:[%s3923_s1 + $0x600] ss:$8 sps:$4 sm:$0xff]  }
  0x53   :  { %1803 = vmatpush1.bf16.msra.mxu1 %v2697_v26  ;;  %v30_v26 = vld [vmem:[%s3924_s0 + $0x88] sm:$0xff] }
  0x54   :  { %2015 = vmatpush1.bf16.msra.mxu0 %v2700_v27  ;;  %1804 = vmatprep.subr.bf16.mxu1 %v2705_v28  ;;  %v2235_v27 = vcombine.low %v3284_v44, %v3289_v45  ;;  %v2243_v28 = vcombine.low %v3302_v49, %v3307_v50  ;;  %v3473_v45 = vld [vmem:[%s3924_s0 + $0x50] sm:$0xff] }
  0x55   :  { %2016 = vmatprep.subr.bf16.mxu0 %v2708_v29  ;;  %v38_v29 = vld [vmem:[%s3924_s0 + $0xc8] sm:$0xff]  ;;  %v2792_v49 = vld [vmem:[%s3923_s1 + $0x634] ss:$8 sps:$4 sm:$0xff]  }
  0x57   :  { %1805 = vmatpush1.bf16.msra.mxu1 %v2703_v32  ;;  %v34_v32 = vld [vmem:[%s3924_s0 + $0xa8] sm:$0xff] }
  0x58   :  { %2017 = vmatpush1.bf16.msra.mxu0 %v2706_v34  ;;  %1806 = vmatprep.subr.bf16.mxu1 %v2711_v38  ;;  %v2252_v34 = vcombine.high %v30_v26, %v38_v29  ;;  %v2260_v35 = vcombine.high %v34_v32, %v42_v33  ;;  %v2783_v38 = vld [vmem:[%s3923_s1 + $0x224] ss:$8 sps:$4 sm:$0xff]   ;;  %v2259_v44 = vcombine.low %v34_v32, %v42_v33  ;;  %v2853_v32 = vld [vmem:[%s3923_s1 + $0x2e0] ss:$8 sps:$4 sm:$0xff]  }
  0x59   :  { %2018 = vmatprep.subr.bf16.mxu0 %v2714_v41  ;;  %v2784_v41 = vld [vmem:[%s3923_s1 + $0x620] ss:$8 sps:$4 sm:$0xff]  }
  0x5a   :  { %v2856_v33 = vld [vmem:[%s3923_s1 + $0x6e0] ss:$8 sps:$4 sm:$0xff]  }
  0x5b   :  { %1807 = vmatpush1.bf16.msra.mxu1 %v2709_v42  ;;  %v3468_v42 = vld [vmem:[%s3924_s0 + $0x10] sm:$0xff] }
  0x5c   :  { %2019 = vmatpush1.bf16.msra.mxu0 %v2712_v43  ;;  %1808 = vmatprep.subr.bf16.mxu1 %v2717_v46  ;;  %v2251_v43 = vcombine.low %v30_v26, %v38_v29  ;;  %v3478_v46 = vld [vmem:[%s3924_s0 + $0x30] sm:$0xff]  ;;  %v2238_v50 = vcombine.high %v3468_v42, %v3473_v45 }
  0x5d   :  { %2020 = vmatprep.subr.bf16.mxu0 %v2720_v47  ;;  %v3483_v47 = vld [vmem:[%s3924_s0 + $0x70] sm:$0xff] }
  0x5e   :  { %v2849_v26 = vld [vmem:[%s3923_s1 + $0x2d4] ss:$8 sps:$4 sm:$0xff]   ;;  %v2850_v29 = vld [vmem:[%s3923_s1 + $0x6d0] ss:$8 sps:$4 sm:$0xff]  }
  0x5f   :  { %1809 = vmatpush1.bf16.msra.mxu1 %v2715_v51  ;;  %v2246_v51 = vcombine.high %v3478_v46, %v3483_v47 }
  0x60   :  { %2021 = vmatpush1.bf16.msra.mxu0 %v2718_v52  ;;  %1810 = vmatprep.subr.bf16.mxu1 %v2723_v54  ;;  %v2787_v52 = vld [vmem:[%s3923_s1 + $0x230] ss:$8 sps:$4 sm:$0xff]   ;;  %v2795_v54 = vld [vmem:[%s3923_s1 + $0x244] ss:$8 sps:$4 sm:$0xff]  }
  0x61   :  { %2022 = vmatprep.subr.bf16.mxu0 %v2726_v55  ;;  %v2798_v55 = vld [vmem:[%s3923_s1 + $0x644] ss:$8 sps:$4 sm:$0xff]  }
  0x63   :  { %1811 = vmatpush1.bf16.msra.mxu1 %v2721_v56  ;;  %v2793_v56 = vld [vmem:[%s3923_s1 + $0x240] ss:$8 sps:$4 sm:$0xff]  }
  0x64   :  { %2023 = vmatpush1.bf16.msra.mxu0 %v2724_v57  ;;  %1812 = vmatprep.subr.bf16.mxu1 %v2729_v58  ;;  %v2796_v57 = vld [vmem:[%s3923_s1 + $0x640] ss:$8 sps:$4 sm:$0xff]   ;;  %v2801_v58 = vld [vmem:[%s3923_s1 + $0x254] ss:$8 sps:$4 sm:$0xff]  }
  0x65   :  { %2024 = vmatprep.subr.bf16.mxu0 %v2732_v59  ;;  %v2804_v59 = vld [vmem:[%s3923_s1 + $0x654] ss:$8 sps:$4 sm:$0xff]  }
  0x67   :  { %1813 = vmatpush1.bf16.msra.mxu1 %v2727_v60  ;;  %v2799_v60 = vld [vmem:[%s3923_s1 + $0x250] ss:$8 sps:$4 sm:$0xff]  }
  0x68   :  { %2025 = vmatpush1.bf16.msra.mxu0 %v2730_v61  ;;  %1814 = vmatprep.subr.bf16.mxu1 %v2735_v62  ;;  %v2802_v61 = vld [vmem:[%s3923_s1 + $0x650] ss:$8 sps:$4 sm:$0xff]   ;;  %v2807_v62 = vld [vmem:[%s3923_s1 + $0x264] ss:$8 sps:$4 sm:$0xff]  }
  0x69   :  { %2026 = vmatprep.subr.bf16.mxu0 %v2738_v63  ;;  %v2810_v63 = vld [vmem:[%s3923_s1 + $0x664] ss:$8 sps:$4 sm:$0xff]  }
  0x6b   :  { %1815 = vmatpush1.bf16.msra.mxu1 %v2733_v0  ;;  %v2805_v0 = vld [vmem:[%s3923_s1 + $0x260] ss:$8 sps:$4 sm:$0xff]  }
  0x6c   :  { %2027 = vmatpush1.bf16.msra.mxu0 %v2736_v1  ;;  %1816 = vmatprep.subr.bf16.mxu1 %v2741_v2  ;;  %v2808_v1 = vld [vmem:[%s3923_s1 + $0x660] ss:$8 sps:$4 sm:$0xff]   ;;  %v2813_v2 = vld [vmem:[%s3923_s1 + $0x274] ss:$8 sps:$4 sm:$0xff]  }
  0x6d   :  { %2028 = vmatprep.subr.bf16.mxu0 %v2744_v3  ;;  %v2816_v3 = vld [vmem:[%s3923_s1 + $0x674] ss:$8 sps:$4 sm:$0xff]  }
  0x6f   :  { %1817 = vmatpush1.bf16.msra.mxu1 %v2739_v4  ;;  %v2811_v4 = vld [vmem:[%s3923_s1 + $0x270] ss:$8 sps:$4 sm:$0xff]  }
  0x70   :  { %2029 = vmatpush1.bf16.msra.mxu0 %v2742_v5  ;;  %1818 = vmatprep.subr.bf16.mxu1 %v2747_v6  ;;  %v2814_v5 = vld [vmem:[%s3923_s1 + $0x670] ss:$8 sps:$4 sm:$0xff]   ;;  %v2819_v6 = vld [vmem:[%s3923_s1 + $0x284] ss:$8 sps:$4 sm:$0xff]  }
  0x71   :  { %2030 = vmatprep.subr.bf16.mxu0 %v2750_v7  ;;  %v2822_v7 = vld [vmem:[%s3923_s1 + $0x684] ss:$8 sps:$4 sm:$0xff]  }
  0x73   :  { %1819 = vmatpush1.bf16.msra.mxu1 %v2745_v8  ;;  %v2817_v8 = vld [vmem:[%s3923_s1 + $0x280] ss:$8 sps:$4 sm:$0xff]  }
  0x74   :  { %2031 = vmatpush1.bf16.msra.mxu0 %v2748_v9  ;;  %1820 = vmatprep.subr.bf16.mxu1 %v2753_v10  ;;  %v2820_v9 = vld [vmem:[%s3923_s1 + $0x680] ss:$8 sps:$4 sm:$0xff]   ;;  %v2825_v10 = vld [vmem:[%s3923_s1 + $0x294] ss:$8 sps:$4 sm:$0xff]  }
  0x75   :  { %2032 = vmatprep.subr.bf16.mxu0 %v2756_v11  ;;  %v2828_v11 = vld [vmem:[%s3923_s1 + $0x694] ss:$8 sps:$4 sm:$0xff]  }
  0x77   :  { %1821 = vmatpush1.bf16.msra.mxu1 %v2751_v12  ;;  %v2823_v12 = vld [vmem:[%s3923_s1 + $0x290] ss:$8 sps:$4 sm:$0xff]  }
  0x78   :  { %2033 = vmatpush1.bf16.msra.mxu0 %v2754_v13  ;;  %1822 = vmatprep.subr.bf16.mxu1 %v2759_v14  ;;  %v2826_v13 = vld [vmem:[%s3923_s1 + $0x690] ss:$8 sps:$4 sm:$0xff]   ;;  %v2831_v14 = vld [vmem:[%s3923_s1 + $0x2a4] ss:$8 sps:$4 sm:$0xff]  }
  0x79   :  { %2034 = vmatprep.subr.bf16.mxu0 %v2762_v15  ;;  %v2834_v15 = vld [vmem:[%s3923_s1 + $0x6a4] ss:$8 sps:$4 sm:$0xff]  }
  0x7b   :  { %1823 = vmatpush1.bf16.msra.mxu1 %v2757_v16  ;;  %v2829_v16 = vld [vmem:[%s3923_s1 + $0x2a0] ss:$8 sps:$4 sm:$0xff]  }
  0x7c   :  { %2035 = vmatpush1.bf16.msra.mxu0 %v2760_v17  ;;  %1824 = vmatprep.subr.bf16.mxu1 %v2765_v18  ;;  %v2832_v17 = vld [vmem:[%s3923_s1 + $0x6a0] ss:$8 sps:$4 sm:$0xff]   ;;  %v2837_v18 = vld [vmem:[%s3923_s1 + $0x2b4] ss:$8 sps:$4 sm:$0xff]  }
  0x7d   :  { %2036 = vmatprep.subr.bf16.mxu0 %v2768_v19  ;;  %v2840_v19 = vld [vmem:[%s3923_s1 + $0x6b4] ss:$8 sps:$4 sm:$0xff]  }
  0x7f   :  { %1825 = vmatpush1.bf16.msra.mxu1 %v2763_v20  ;;  %v2835_v20 = vld [vmem:[%s3923_s1 + $0x2b0] ss:$8 sps:$4 sm:$0xff]  }
  0x80   :  { %2037 = vmatpush1.bf16.msra.mxu0 %v2766_v21  ;;  %1847 = vmatprep.subr.bf16.mxu1 %v2771_v22  ;;  %v2838_v21 = vld [vmem:[%s3923_s1 + $0x6b0] ss:$8 sps:$4 sm:$0xff]   ;;  %v2843_v22 = vld [vmem:[%s3923_s1 + $0x2c4] ss:$8 sps:$4 sm:$0xff]  }
  0x81   :  { %2059 = vmatprep.subr.bf16.mxu0 %v2774_v23  ;;  %v2846_v23 = vld [vmem:[%s3923_s1 + $0x6c4] ss:$8 sps:$4 sm:$0xff]  }
  0x82   :  { %1827 = vmatmul.mubr.bf16.vlgmr.msra.gmra.mrb[0].mxu1 %v2235_v27  ;;  %v2852_v27 = vld [vmem:[%s3923_s1 + $0x6d4] ss:$8 sps:$4 sm:$0xff]  }
  0x83   :  { %2039 = vmatmul.mubr.bf16.vlgmr.msra.gmra.mrb[0].mxu0 %v2243_v28  ;;  %1848 = vmatpush1.bf16.msra.mxu1 %v2769_v24  ;;  %v2841_v24 = vld [vmem:[%s3923_s1 + $0x2c0] ss:$8 sps:$4 sm:$0xff]   ;;  %v2847_v28 = vld [vmem:[%s3923_s1 + $0x2d0] ss:$8 sps:$4 sm:$0xff]  }
  0x84   :  { %2060 = vmatpush1.bf16.msra.mxu0 %v2772_v25  ;;  %1849 = vmatprep.subr.bf16.mxu1 %v2777_v30  ;;  %v2844_v25 = vld [vmem:[%s3923_s1 + $0x6c0] ss:$8 sps:$4 sm:$0xff]   ;;  %v2855_v30 = vld [vmem:[%s3923_s1 + $0x2e4] ss:$8 sps:$4 sm:$0xff]  }
  0x85   :  { %2061 = vmatprep.subr.bf16.mxu0 %v2780_v31  ;;  %1836 = vmatprep.mubr.bf16.mxu1 %v2252_v34  ;;  %v2858_v31 = vld [vmem:[%s3923_s1 + $0x6e4] ss:$8 sps:$4 sm:$0xff]   ;;  %v2861_v34 = vld [vmem:[%s3923_s1 + $0x2f4] ss:$8 sps:$4 sm:$0xff]  }
  0x86   :  { %2048 = vmatprep.mubr.bf16.mxu0 %v2260_v35  ;;  %v2864_v35 = vld [vmem:[%s3923_s1 + $0x6f4] ss:$8 sps:$4 sm:$0xff]  }
  0x87   :  { %1850 = vmatpush1.bf16.msra.mxu1 %v2775_v36  ;;  %v2859_v36 = vld [vmem:[%s3923_s1 + $0x2f0] ss:$8 sps:$4 sm:$0xff]  }
  0x88   :  { %2062 = vmatpush1.bf16.msra.mxu0 %v2778_v37  ;;  %1851 = vmatprep.subr.bf16.mxu1 %v2783_v38  ;;  %v2862_v37 = vld [vmem:[%s3923_s1 + $0x6f0] ss:$8 sps:$4 sm:$0xff]   ;;  %v2867_v38 = vld [vmem:[%s3923_s1 + $0x304] ss:$8 sps:$4 sm:$0xff]  }
  0x89   :  { %2063 = vmatprep.subr.bf16.mxu0 %v2786_v39  ;;  %v2870_v39 = vld [vmem:[%s3923_s1 + $0x704] ss:$8 sps:$4 sm:$0xff]  }
  0x8a   :  { %1837 = vmatmul.mubr.bf16.gmra.mrb[4].mxu1 %v2251_v43  ;;  %v2245_v43 = vcombine.low %v3478_v46, %v3483_v47  ;;  %v2873_v46 = vld [vmem:[%s3923_s1 + $0x314] ss:$8 sps:$4 sm:$0xff]  }
  0x8b   :  { %2049 = vmatmul.mubr.bf16.gmra.mrb[4].mxu0 %v2259_v44  ;;  %1852 = vmatpush1.bf16.msra.mxu1 %v2781_v40  ;;  %v31_v40 = vld [vmem:[%s3924_s0 + $0x90] sm:$0xff] }
  0x8c   :  { %2064 = vmatpush1.bf16.msra.mxu0 %v2784_v41  ;;  %1853 = vmatprep.subr.bf16.mxu1 %v2789_v48  ;;  %v2237_v41 = vcombine.low %v3468_v42, %v3473_v45  ;;  %v39_v44 = vld [vmem:[%s3924_s0 + $0xd0] sm:$0xff]  ;;  %v2865_v42 = vld [vmem:[%s3923_s1 + $0x300] ss:$8 sps:$4 sm:$0xff]  }
  0x8d   :  { %2065 = vmatprep.subr.bf16.mxu0 %v2792_v49  ;;  %1879 = vmatprep.mubr.bf16.mxu1 %v2238_v50  ;;  %v35_v48 = vld [vmem:[%s3924_s0 + $0xb0] sm:$0xff]  ;;  %v2868_v45 = vld [vmem:[%s3923_s1 + $0x700] ss:$8 sps:$4 sm:$0xff]   ;;  %v2254_v50 = vcombine.high %v31_v40, %v39_v44 }
  0x8e   :  { %2091 = vmatprep.mubr.bf16.mxu0 %v2246_v51  ;;  %v43_v49 = vld [vmem:[%s3924_s0 + $0xf0] sm:$0xff] }
  0x8f   :  { %1854 = vmatpush1.bf16.msra.mxu1 %v2787_v52  ;;  %v2876_v47 = vld [vmem:[%s3923_s1 + $0x714] ss:$8 sps:$4 sm:$0xff]   ;;  %v2262_v51 = vcombine.high %v35_v48, %v43_v49  ;;  %v2871_v52 = vld [vmem:[%s3923_s1 + $0x310] ss:$8 sps:$4 sm:$0xff]  }
  0x90   :  { %2066 = vmatpush1.bf16.msra.mxu0 %v2790_v53  ;;  %1855 = vmatprep.subr.bf16.mxu1 %v2795_v54  ;;  %v2874_v53 = vld [vmem:[%s3923_s1 + $0x710] ss:$8 sps:$4 sm:$0xff]   ;;  %v2879_v54 = vld [vmem:[%s3923_s1 + $0x324] ss:$8 sps:$4 sm:$0xff]  }
  0x91   :  { %2067 = vmatprep.subr.bf16.mxu0 %v2798_v55  ;;  %v2882_v55 = vld [vmem:[%s3923_s1 + $0x724] ss:$8 sps:$4 sm:$0xff]  }
  0x93   :  { %1856 = vmatpush1.bf16.msra.mxu1 %v2793_v56  ;;  %v3694_v56 = vld [vmem:[%s3924_s0 + $0x18] sm:$0xff] }
  0x94   :  { %2068 = vmatpush1.bf16.msra.mxu0 %v2796_v57  ;;  %1857 = vmatprep.subr.bf16.mxu1 %v2801_v58  ;;  %v2253_v57 = vcombine.low %v31_v40, %v39_v44  ;;  %v2261_v58 = vcombine.low %v35_v48, %v43_v49  ;;  %v2937_v40 = vld [vmem:[%s3923_s1 + $0x3c0] ss:$8 sps:$4 sm:$0xff]   ;;  %v2948_v44 = vld [vmem:[%s3923_s1 + $0x7d4] ss:$8 sps:$4 sm:$0xff]   ;;  %v2943_v48 = vld [vmem:[%s3923_s1 + $0x3d0] ss:$8 sps:$4 sm:$0xff]  }
  0x95   :  { %2069 = vmatprep.subr.bf16.mxu0 %v2804_v59  ;;  %v3699_v59 = vld [vmem:[%s3924_s0 + $0x58] sm:$0xff] }
  0x96   :  { %v2946_v49 = vld [vmem:[%s3923_s1 + $0x7d0] ss:$8 sps:$4 sm:$0xff]  }
  0x97   :  { %1858 = vmatpush1.bf16.msra.mxu1 %v2799_v60  ;;  %v3704_v60 = vld [vmem:[%s3924_s0 + $0x38] sm:$0xff] }
  0x98   :  { %2070 = vmatpush1.bf16.msra.mxu0 %v2802_v61  ;;  %1859 = vmatprep.subr.bf16.mxu1 %v2807_v62  ;;  %v3709_v61 = vld [vmem:[%s3924_s0 + $0x78] sm:$0xff]  ;;  %v2877_v62 = vld [vmem:[%s3923_s1 + $0x320] ss:$8 sps:$4 sm:$0xff]  }
  0x99   :  { %2071 = vmatprep.subr.bf16.mxu0 %v2810_v63  ;;  %v2880_v63 = vld [vmem:[%s3923_s1 + $0x720] ss:$8 sps:$4 sm:$0xff]  }
  0x9b   :  { %1860 = vmatpush1.bf16.msra.mxu1 %v2805_v0  ;;  %v2885_v0 = vld [vmem:[%s3923_s1 + $0x334] ss:$8 sps:$4 sm:$0xff]  }
  0x9c   :  { %2072 = vmatpush1.bf16.msra.mxu0 %v2808_v1  ;;  %1861 = vmatprep.subr.bf16.mxu1 %v2813_v2  ;;  %v2888_v1 = vld [vmem:[%s3923_s1 + $0x734] ss:$8 sps:$4 sm:$0xff]   ;;  %v2240_v2 = vcombine.high %v3694_v56, %v3699_v59 }
  0x9d   :  { %2073 = vmatprep.subr.bf16.mxu0 %v2816_v3  ;;  %v2248_v3 = vcombine.high %v3704_v60, %v3709_v61 }
  0x9f   :  { %1862 = vmatpush1.bf16.msra.mxu1 %v2811_v4  ;;  %v2883_v4 = vld [vmem:[%s3923_s1 + $0x330] ss:$8 sps:$4 sm:$0xff]  }
  0xa0   :  { %2074 = vmatpush1.bf16.msra.mxu0 %v2814_v5  ;;  %1863 = vmatprep.subr.bf16.mxu1 %v2819_v6  ;;  %v2886_v5 = vld [vmem:[%s3923_s1 + $0x730] ss:$8 sps:$4 sm:$0xff]   ;;  %v2891_v6 = vld [vmem:[%s3923_s1 + $0x344] ss:$8 sps:$4 sm:$0xff]  }
  0xa1   :  { %2075 = vmatprep.subr.bf16.mxu0 %v2822_v7  ;;  %v2894_v7 = vld [vmem:[%s3923_s1 + $0x744] ss:$8 sps:$4 sm:$0xff]  }
  0xa3   :  { %1864 = vmatpush1.bf16.msra.mxu1 %v2817_v8  ;;  %v2889_v8 = vld [vmem:[%s3923_s1 + $0x340] ss:$8 sps:$4 sm:$0xff]  }
  0xa4   :  { %2076 = vmatpush1.bf16.msra.mxu0 %v2820_v9  ;;  %1865 = vmatprep.subr.bf16.mxu1 %v2825_v10  ;;  %v2892_v9 = vld [vmem:[%s3923_s1 + $0x740] ss:$8 sps:$4 sm:$0xff]   ;;  %v2897_v10 = vld [vmem:[%s3923_s1 + $0x354] ss:$8 sps:$4 sm:$0xff]  }
  0xa5   :  { %2077 = vmatprep.subr.bf16.mxu0 %v2828_v11  ;;  %v2900_v11 = vld [vmem:[%s3923_s1 + $0x754] ss:$8 sps:$4 sm:$0xff]  }
  0xa7   :  { %1866 = vmatpush1.bf16.msra.mxu1 %v2823_v12  ;;  %v2895_v12 = vld [vmem:[%s3923_s1 + $0x350] ss:$8 sps:$4 sm:$0xff]  }
  0xa8   :  { %2078 = vmatpush1.bf16.msra.mxu0 %v2826_v13  ;;  %1867 = vmatprep.subr.bf16.mxu1 %v2831_v14  ;;  %v2898_v13 = vld [vmem:[%s3923_s1 + $0x750] ss:$8 sps:$4 sm:$0xff]   ;;  %v2903_v14 = vld [vmem:[%s3923_s1 + $0x364] ss:$8 sps:$4 sm:$0xff]  }
  0xa9   :  { %2079 = vmatprep.subr.bf16.mxu0 %v2834_v15  ;;  %v2906_v15 = vld [vmem:[%s3923_s1 + $0x764] ss:$8 sps:$4 sm:$0xff]  }
  0xab   :  { %1868 = vmatpush1.bf16.msra.mxu1 %v2829_v16  ;;  %v2901_v16 = vld [vmem:[%s3923_s1 + $0x360] ss:$8 sps:$4 sm:$0xff]  }
  0xac   :  { %2080 = vmatpush1.bf16.msra.mxu0 %v2832_v17  ;;  %1869 = vmatprep.subr.bf16.mxu1 %v2837_v18  ;;  %v2904_v17 = vld [vmem:[%s3923_s1 + $0x760] ss:$8 sps:$4 sm:$0xff]   ;;  %v2909_v18 = vld [vmem:[%s3923_s1 + $0x374] ss:$8 sps:$4 sm:$0xff]  }
  0xad   :  { %2081 = vmatprep.subr.bf16.mxu0 %v2840_v19  ;;  %v2912_v19 = vld [vmem:[%s3923_s1 + $0x774] ss:$8 sps:$4 sm:$0xff]  }
  0xaf   :  { %1870 = vmatpush1.bf16.msra.mxu1 %v2835_v20  ;;  %v2907_v20 = vld [vmem:[%s3923_s1 + $0x370] ss:$8 sps:$4 sm:$0xff]  }
  0xb0   :  { %2082 = vmatpush1.bf16.msra.mxu0 %v2838_v21  ;;  %1871 = vmatprep.subr.bf16.mxu1 %v2843_v22  ;;  %v2910_v21 = vld [vmem:[%s3923_s1 + $0x770] ss:$8 sps:$4 sm:$0xff]   ;;  %v2915_v22 = vld [vmem:[%s3923_s1 + $0x384] ss:$8 sps:$4 sm:$0xff]  }
  0xb1   :  { %2083 = vmatprep.subr.bf16.mxu0 %v2846_v23  ;;  %v2918_v23 = vld [vmem:[%s3923_s1 + $0x784] ss:$8 sps:$4 sm:$0xff]  }
  0xb3   :  { %1872 = vmatpush1.bf16.msra.mxu1 %v2841_v24  ;;  %v2913_v24 = vld [vmem:[%s3923_s1 + $0x380] ss:$8 sps:$4 sm:$0xff]  }
  0xb4   :  { %2084 = vmatpush1.bf16.msra.mxu0 %v2844_v25  ;;  %1873 = vmatprep.subr.bf16.mxu1 %v2849_v26  ;;  %v2916_v25 = vld [vmem:[%s3923_s1 + $0x780] ss:$8 sps:$4 sm:$0xff]   ;;  %v2921_v26 = vld [vmem:[%s3923_s1 + $0x394] ss:$8 sps:$4 sm:$0xff]  }
  0xb5   :  { %2085 = vmatprep.subr.bf16.mxu0 %v2852_v27  ;;  %v2924_v27 = vld [vmem:[%s3923_s1 + $0x794] ss:$8 sps:$4 sm:$0xff]  }
  0xb7   :  { %1874 = vmatpush1.bf16.msra.mxu1 %v2847_v28  ;;  %v2919_v28 = vld [vmem:[%s3923_s1 + $0x390] ss:$8 sps:$4 sm:$0xff]  }
  0xb8   :  { %2086 = vmatpush1.bf16.msra.mxu0 %v2850_v29  ;;  %1875 = vmatprep.subr.bf16.mxu1 %v2855_v30  ;;  %v2922_v29 = vld [vmem:[%s3923_s1 + $0x790] ss:$8 sps:$4 sm:$0xff]   ;;  %v2927_v30 = vld [vmem:[%s3923_s1 + $0x3a4] ss:$8 sps:$4 sm:$0xff]  }
  0xb9   :  { %2087 = vmatprep.subr.bf16.mxu0 %v2858_v31  ;;  %v2930_v31 = vld [vmem:[%s3923_s1 + $0x7a4] ss:$8 sps:$4 sm:$0xff]  }
  0xbb   :  { %1876 = vmatpush1.bf16.msra.mxu1 %v2853_v32  ;;  %v2925_v32 = vld [vmem:[%s3923_s1 + $0x3a0] ss:$8 sps:$4 sm:$0xff]  }
  0xbc   :  { %2088 = vmatpush1.bf16.msra.mxu0 %v2856_v33  ;;  %1877 = vmatprep.subr.bf16.mxu1 %v2861_v34  ;;  %v2928_v33 = vld [vmem:[%s3923_s1 + $0x7a0] ss:$8 sps:$4 sm:$0xff]   ;;  %v2933_v34 = vld [vmem:[%s3923_s1 + $0x3b4] ss:$8 sps:$4 sm:$0xff]  }
  0xbd   :  { %2089 = vmatprep.subr.bf16.mxu0 %v2864_v35  ;;  %v2936_v35 = vld [vmem:[%s3923_s1 + $0x7b4] ss:$8 sps:$4 sm:$0xff]  }
  0xbf   :  { %1878 = vmatpush1.bf16.msra.mxu1 %v2859_v36  ;;  %v2931_v36 = vld [vmem:[%s3923_s1 + $0x3b0] ss:$8 sps:$4 sm:$0xff]  }
  0xc0   :  { %2090 = vmatpush1.bf16.msra.mxu0 %v2862_v37  ;;  %1900 = vmatprep.subr.bf16.mxu1 %v2867_v38  ;;  %v2934_v37 = vld [vmem:[%s3923_s1 + $0x7b0] ss:$8 sps:$4 sm:$0xff]   ;;  %v2939_v38 = vld [vmem:[%s3923_s1 + $0x3c4] ss:$8 sps:$4 sm:$0xff]  }
  0xc1   :  { %2112 = vmatprep.subr.bf16.mxu0 %v2870_v39  ;;  %v2942_v39 = vld [vmem:[%s3923_s1 + $0x7c4] ss:$8 sps:$4 sm:$0xff]  }
  0xc2   :  { %1880 = vmatmul.mubr.bf16.vlgmr.msra.gmra.mrb[0].mxu1 %v2237_v41  ;;  %v2940_v41 = vld [vmem:[%s3923_s1 + $0x7c0] ss:$8 sps:$4 sm:$0xff]  }
  0xc3   :  { %2092 = vmatmul.mubr.bf16.vlgmr.msra.gmra.mrb[0].mxu0 %v2245_v43  ;;  %1901 = vmatpush1.bf16.msra.mxu1 %v2865_v42  ;;  %v2945_v43 = vld [vmem:[%s3923_s1 + $0x3d4] ss:$8 sps:$4 sm:$0xff]   ;;  %v2951_v42 = vld [vmem:[%s3923_s1 + $0x3e4] ss:$8 sps:$4 sm:$0xff]  }
  0xc4   :  { %2113 = vmatpush1.bf16.msra.mxu0 %v2868_v45  ;;  %1902 = vmatprep.subr.bf16.mxu1 %v2873_v46  ;;  %v2954_v45 = vld [vmem:[%s3923_s1 + $0x7e4] ss:$8 sps:$4 sm:$0xff]   ;;  %v2949_v46 = vld [vmem:[%s3923_s1 + $0x3e0] ss:$8 sps:$4 sm:$0xff]  }
  0xc5   :  { %2114 = vmatprep.subr.bf16.mxu0 %v2876_v47  ;;  %1889 = vmatprep.mubr.bf16.mxu1 %v2254_v50  ;;  %v2952_v47 = vld [vmem:[%s3923_s1 + $0x7e0] ss:$8 sps:$4 sm:$0xff]   ;;  %v2957_v50 = vld [vmem:[%s3923_s1 + $0x3f4] ss:$8 sps:$4 sm:$0xff]  }
  0xc6   :  { %2101 = vmatprep.mubr.bf16.mxu0 %v2262_v51  ;;  %v2960_v51 = vld [vmem:[%s3923_s1 + $0x7f4] ss:$8 sps:$4 sm:$0xff]  }
  0xc7   :  { %1903 = vmatpush1.bf16.msra.mxu1 %v2871_v52  ;;  %v2955_v52 = vld [vmem:[%s3923_s1 + $0x3f0] ss:$8 sps:$4 sm:$0xff]  }
  0xc8   :  { %2115 = vmatpush1.bf16.msra.mxu0 %v2874_v53  ;;  %1904 = vmatprep.subr.bf16.mxu1 %v2879_v54  ;;  %v2958_v53 = vld [vmem:[%s3923_s1 + $0x7f0] ss:$8 sps:$4 sm:$0xff]  }
  0xc9   :  { %2116 = vmatprep.subr.bf16.mxu0 %v2882_v55  ;;  %v32_v54 = vld [vmem:[%s3924_s0 + $0x98] sm:$0xff] }
  0xca   :  { %1890 = vmatmul.mubr.bf16.gmra.mrb[4].mxu1 %v2253_v57  ;;  %v40_v55 = vld [vmem:[%s3924_s0 + $0xd8] sm:$0xff] }
  0xcb   :  { %2102 = vmatmul.mubr.bf16.gmra.mrb[4].mxu0 %v2261_v58  ;;  %1905 = vmatpush1.bf16.msra.mxu1 %v2877_v62  ;;  %v36_v57 = vld [vmem:[%s3924_s0 + $0xb8] sm:$0xff]  ;;  %v2239_v62 = vcombine.low %v3694_v56, %v3699_v59 }
  0xcc   :  { %2117 = vmatpush1.bf16.msra.mxu0 %v2880_v63  ;;  %1906 = vmatprep.subr.bf16.mxu1 %v2885_v0  ;;  %v44_v58 = vld [vmem:[%s3924_s0 + $0xf8] sm:$0xff]  ;;  %v2247_v63 = vcombine.low %v3704_v60, %v3709_v61  ;;  %v2256_v0 = vcombine.high %v32_v54, %v40_v55 }
  0xcd   :  { %2118 = vmatprep.subr.bf16.mxu0 %v2888_v1  ;;  %1932 = vmatprep.mubr.bf16.mxu1 %v2240_v2  ;;  %v2264_v1 = vcombine.high %v36_v57, %v44_v58  ;;  %v2255_v2 = vcombine.low %v32_v54, %v40_v55 }
  0xce   :  { %2144 = vmatprep.mubr.bf16.mxu0 %v2248_v3  ;;  %v2263_v3 = vcombine.low %v36_v57, %v44_v58 }
  0xcf   :  { %1907 = vmatpush1.bf16.msra.mxu1 %v2883_v4 }
  0xd0   :  { %2119 = vmatpush1.bf16.msra.mxu0 %v2886_v5  ;;  %1908 = vmatprep.subr.bf16.mxu1 %v2891_v6 }
  0xd1   :  { %2120 = vmatprep.subr.bf16.mxu0 %v2894_v7 }
  0xd3   :  { %1909 = vmatpush1.bf16.msra.mxu1 %v2889_v8 }
  0xd4   :  { %2121 = vmatpush1.bf16.msra.mxu0 %v2892_v9  ;;  %1910 = vmatprep.subr.bf16.mxu1 %v2897_v10 }
  0xd5   :  { %2122 = vmatprep.subr.bf16.mxu0 %v2900_v11 }
  0xd7   :  { %1911 = vmatpush1.bf16.msra.mxu1 %v2895_v12 }
  0xd8   :  { %2123 = vmatpush1.bf16.msra.mxu0 %v2898_v13  ;;  %1912 = vmatprep.subr.bf16.mxu1 %v2903_v14 }
  0xd9   :  { %2124 = vmatprep.subr.bf16.mxu0 %v2906_v15 }
  0xdb   :  { %1913 = vmatpush1.bf16.msra.mxu1 %v2901_v16 }
  0xdc   :  { %2125 = vmatpush1.bf16.msra.mxu0 %v2904_v17  ;;  %1914 = vmatprep.subr.bf16.mxu1 %v2909_v18 }
  0xdd   :  { %2126 = vmatprep.subr.bf16.mxu0 %v2912_v19 }
  0xdf   :  { %1915 = vmatpush1.bf16.msra.mxu1 %v2907_v20 }
  0xe0   :  { %2127 = vmatpush1.bf16.msra.mxu0 %v2910_v21  ;;  %1916 = vmatprep.subr.bf16.mxu1 %v2915_v22 }
  0xe1   :  { %2128 = vmatprep.subr.bf16.mxu0 %v2918_v23 }
  0xe3   :  { %1917 = vmatpush1.bf16.msra.mxu1 %v2913_v24 }
  0xe4   :  { %2129 = vmatpush1.bf16.msra.mxu0 %v2916_v25  ;;  %1918 = vmatprep.subr.bf16.mxu1 %v2921_v26 }
  0xe5   :  { %2130 = vmatprep.subr.bf16.mxu0 %v2924_v27 }
  0xe7   :  { %1919 = vmatpush1.bf16.msra.mxu1 %v2919_v28 }
  0xe8   :  { %2131 = vmatpush1.bf16.msra.mxu0 %v2922_v29  ;;  %1920 = vmatprep.subr.bf16.mxu1 %v2927_v30 }
  0xe9   :  { %2132 = vmatprep.subr.bf16.mxu0 %v2930_v31 }
  0xeb   :  { %1921 = vmatpush1.bf16.msra.mxu1 %v2925_v32 }
  0xec   :  { %2133 = vmatpush1.bf16.msra.mxu0 %v2928_v33  ;;  %1922 = vmatprep.subr.bf16.mxu1 %v2933_v34 }
  0xed   :  { %2134 = vmatprep.subr.bf16.mxu0 %v2936_v35 }
  0xef   :  { %1923 = vmatpush1.bf16.msra.mxu1 %v2931_v36 }
  0xf0   :  { %2135 = vmatpush1.bf16.msra.mxu0 %v2934_v37  ;;  %1924 = vmatprep.subr.bf16.mxu1 %v2939_v38 }
  0xf1   :  { %2136 = vmatprep.subr.bf16.mxu0 %v2942_v39 }
  0xf3   :  { %1925 = vmatpush1.bf16.msra.mxu1 %v2937_v40 }
  0xf4   :  { %2137 = vmatpush1.bf16.msra.mxu0 %v2940_v41  ;;  %1926 = vmatprep.subr.bf16.mxu1 %v2945_v43 }
  0xf5   :  { %2138 = vmatprep.subr.bf16.mxu0 %v2948_v44 }
  0xf7   :  { %1927 = vmatpush1.bf16.msra.mxu1 %v2943_v48 }
  0xf8   :  { %2139 = vmatpush1.bf16.msra.mxu0 %v2946_v49  ;;  %1928 = vmatprep.subr.bf16.mxu1 %v2951_v42 }
  0xf9   :  { %2140 = vmatprep.subr.bf16.mxu0 %v2954_v45 }
  0xfb   :  { %1929 = vmatpush1.bf16.msra.mxu1 %v2949_v46 }
  0xfc   :  { %2141 = vmatpush1.bf16.msra.mxu0 %v2952_v47  ;;  %1930 = vmatprep.subr.bf16.mxu1 %v2957_v50 }
  0xfd   :  { %2142 = vmatprep.subr.bf16.mxu0 %v2960_v51 }
  0xff   :  { %1931 = vmatpush1.bf16.msra.mxu1 %v2955_v52 }
 0x100   :  { %2143 = vmatpush1.bf16.msra.mxu0 %v2958_v53 }
 0x102   :  { %1933 = vmatmul.mubr.bf16.vlgmr.msra.gmra.mrb[0].mxu1 %v2239_v62 }
 0x103   :  { %2145 = vmatmul.mubr.bf16.vlgmr.msra.gmra.mrb[0].mxu0 %v2247_v63  ;;  %1942 = vmatprep.mubr.bf16.mxu1 %v2256_v0 }
 0x104   :  { %2154 = vmatprep.mubr.bf16.mxu0 %v2264_v1 }
 0x10a   :  { %1943 = vmatmul.mubr.bf16.gmra.mrb[4].mxu1 %v2255_v2 }
 0x10b   :  { %2155 = vmatmul.mubr.bf16.gmra.mrb[4].mxu0 %v2263_v3 }
 0x1d5   :  { %v1934_v4 = vpop.f32.mrb[0].mxu1 }
 0x1d6   :  { %v2146_v5 = vpop.f32.mrb[0].mxu0  ;;  %v1936_v7 = vpop.f32.mrb[1].mxu1 }
 0x1d7   :  { %v2521_v6 = vadd.f32 %v2146_v5, %v1934_v4  ;;  %v2148_v56 = vpop.f32.mrb[1].mxu0  ;;  %v1938_v8 = vpop.f32.mrb[2].mxu1 }
 0x1d8   :  { %v2522_v59 = vadd.f32 %v2148_v56, %v1936_v7  ;;  %v2150_v60 = vpop.f32.mrb[2].mxu0  ;;  %v1940_v9 = vpop.f32.mrb[3].mxu1 }
 0x1d9   :  { %2165 = vst [vmem:[%s3925_s2] sm:$0xff] %v2521_v6  ;;  %v2523_v61 = vadd.f32 %v2150_v60, %v1938_v8  ;;  %v2152_v10 = vpop.f32.mrb[3].mxu0  ;;  %v2191_v12 = vmul.f32 %v2521_v6, %v2521_v6 }
 0x1da   :  { %2166 = vst [vmem:[%s3925_s2 + $0x8] sm:$0xff] %v2522_v59  ;;  %v2524_v11 = vadd.f32 %v2152_v10, %v1940_v9  ;;  %v2192_v15 = vmul.f32 %v2522_v59, %v2522_v59 }
 0x1db   :  { %2167 = vst [vmem:[%s3925_s2 + $0x10] sm:$0xff] %v2523_v61  ;;  %v2173_v13 = vadd.f32 %v2523_v61, %v2521_v6  ;;  %v2193_v14 = vmul.f32 %v2523_v61, %v2523_v61 }
 0x1dc   :  { %2168 = vst [vmem:[%s3925_s2 + $0x18] sm:$0xff] %v2524_v11  ;;  %v2182_v16 = vadd.f32 %v2524_v11, %v2522_v59  ;;  %v2194_v17 = vmul.f32 %v2524_v11, %v2524_v11 }
 0x1dd   :  { %v2199_v18 = vadd.f32 %v2193_v14, %v2191_v12  ;;  %v1944_v20 = vpop.f32.mrb[4].mxu1 }
 0x1de   :  { %v2208_v19 = vadd.f32 %v2194_v17, %v2192_v15  ;;  %v2156_v21 = vpop.f32.mrb[4].mxu0  ;;  %v1946_v23 = vpop.f32.mrb[5].mxu1 }
 0x1df   :  { %v2525_v22 = vadd.f32 %v2156_v21, %v1944_v20  ;;  %v2158_v24 = vpop.f32.mrb[5].mxu0  ;;  %v1948_v26 = vpop.f32.mrb[6].mxu1 }
 0x1e0   :  { %v2526_v25 = vadd.f32 %v2158_v24, %v1946_v23  ;;  %v2160_v27 = vpop.f32.mrb[6].mxu0  ;;  %v1950_v31 = vpop.f32.mrb[7].mxu1 }
 0x1e1   :  { %2169 = vst [vmem:[%s3925_s2 + $0x20] sm:$0xff] %v2525_v22  ;;  %v2174_v28 = vadd.f32 %v2525_v22, %v2173_v13  ;;  %v2195_v29 = vmul.f32 %v2525_v22, %v2525_v22  ;;  %v2527_v30 = vadd.f32 %v2160_v27, %v1948_v26  ;;  %v2162_v32 = vpop.f32.mrb[7].mxu0 }
 0x1e2   :  { %2170 = vst [vmem:[%s3925_s2 + $0x28] sm:$0xff] %v2526_v25  ;;  %v2183_v33 = vadd.f32 %v2526_v25, %v2182_v16  ;;  %v2196_v34 = vmul.f32 %v2526_v25, %v2526_v25  ;;  %v2528_v35 = vadd.f32 %v2162_v32, %v1950_v31 }
 0x1e3   :  { %v2200_v36 = vadd.f32 %v2199_v18, %v2195_v29  ;;  %2171 = vst [vmem:[%s3925_s2 + $0x30] sm:$0xff] %v2527_v30  ;;  %v2175_v37 = vadd.f32 %v2527_v30, %v2174_v28  ;;  %v2197_v38 = vmul.f32 %v2527_v30, %v2527_v30 }
 0x1e4   :  { %v2209_v39 = vadd.f32 %v2208_v19, %v2196_v34  ;;  %2172 = vst [vmem:[%s3925_s2 + $0x38] sm:$0xff] %v2528_v35  ;;  %v2184_v40 = vadd.f32 %v2528_v35, %v2183_v33  ;;  %v2198_v41 = vmul.f32 %v2528_v35, %v2528_v35 }
 0x1e5   :  { %v2176_v43 = vrot.slane %v2175_v37, 4  ;;  %v2201_v44 = vadd.f32 %v2200_v36, %v2197_v38 }
 0x1e6   :  { %v2185_v48 = vrot.slane %v2184_v40, 4  ;;  %v2210_v49 = vadd.f32 %v2209_v39, %v2198_v41 }
 0x1e7   :  { %v2177_v42 = vadd.f32 %v2176_v43, %v2175_v37  ;;  %v2202_v45 = vrot.slane %v2201_v44, 4 }
 0x1e8   :  { %v2186_v46 = vadd.f32 %v2185_v48, %v2184_v40  ;;  %v2211_v47 = vrot.slane %v2210_v49, 4 }
 0x1e9   :  { %v2178_v50 = vrot.slane %v2177_v42, 2  ;;  %v2203_v51 = vadd.f32 %v2202_v45, %v2201_v44 }
 0x1ea   :  { %v2187_v52 = vrot.slane %v2186_v46, 2  ;;  %v2212_v53 = vadd.f32 %v2211_v47, %v2210_v49 }
 0x1eb   :  { %v2179_v54 = vadd.f32 %v2178_v50, %v2177_v42  ;;  %v2204_v55 = vrot.slane %v2203_v51, 2 }
 0x1ec   :  { %v2188_v57 = vadd.f32 %v2187_v52, %v2186_v46  ;;  %v2213_v58 = vrot.slane %v2212_v53, 2 }
 0x1ed   :  { %v2180_v62 = vrot.slane %v2179_v54, 1  ;;  %v2205_v63 = vadd.f32 %v2204_v55, %v2203_v51 }
 0x1ee   :  { %v2189_v0 = vrot.slane %v2188_v57, 1  ;;  %v2214_v1 = vadd.f32 %v2213_v58, %v2212_v53 }
 0x1ef   :  { %v2206_v2 = vrot.slane %v2205_v63, 1  ;;  %v2181_v4 = vadd.f32 %v2180_v62, %v2179_v54 }
 0x1f0   :  { %v2215_v3 = vrot.slane %v2214_v1, 1  ;;  %v2190_v6 = vadd.f32 %v2189_v0, %v2188_v57 }
 0x1f1   :  { %v2207_v5 = vadd.f32 %v2206_v2, %v2205_v63 }
 0x1f2   :  { %v2216_v7 = vadd.f32 %v2215_v3, %v2214_v1 }
 0x1f3   :  { %v2218_v56 = vsel %vm2217_vm0, %v2181_v4, %v2207_v5 }
 0x1f4   :  { %v2221_v59 = vsel %vm2220_vm1, %v2218_v56, 0.0  ;;  %v2219_v8 = vsel %vm2217_vm0, %v2190_v6, %v2216_v7 }
 0x1f5   :  { %2223 = vst [vmem:[%s3926_s3] sm:$0xff] %v2221_v59  ;;  %v2222_v60 = vsel %vm2220_vm1, %v2219_v8, 0.0 }
 0x1f6   :  { %2224 = vst [vmem:[%s3926_s3 + $0x8] sm:$0xff] %v2222_v60 }

// kernel: nlayer_discriminator.14
= control target key start
LH: loop header
LB: loop body
LE: loop exit
PB: predicated region body
PF: predicated region fallthrough
CT: control target
= control target key end

     0   :  { %v28_v0 = vlaneseq  ;;  %s254_s1 = inlined_call_operand.vmem [shape: f32[1,512], index: 1, kind: input, shape index: {}]   ;;  %s255_s2 = inlined_call_operand.vmem [shape: f32[1,512], index: 2, kind: input, shape index: {}]   ;;  %s256_s0 = inlined_call_operand.vmem [shape: f32[24,512], index: 0, kind: input, shape index: {}]   ;;  %s257_s3 = inlined_call_operand.vmem [shape: f32[24,512], index: 3, kind: output, shape index: {}]  }
   0x1   :  { %v26_v2 = vld [vmem:[%s254_s1] sm:$0xf]  ;;  %v15_v6 = vld [vmem:[%s256_s0 + $0x8] sm:$0xff]  ;;  %v16_v10 = vld [vmem:[%s256_s0 + $0x10] sm:$0xff] }
   0x2   :  { %v29_v1 = vshrl.u32 %v28_v0, 7  ;;  %v60_v3 = vld [vmem:[%s255_s2] sm:$0xf]  ;;  %v19_v12 = vld [vmem:[%s256_s0 + $0x28] sm:$0xff]  ;;  %v17_v17 = vld [vmem:[%s256_s0 + $0x18] sm:$0xff] }
   0x3   :  { %v14_v4 = vld [vmem:[%s256_s0] sm:$0xff]  ;;  %v20_v18 = vld [vmem:[%s256_s0 + $0x30] sm:$0xff]  ;;  %v21_v19 = vld [vmem:[%s256_s0 + $0x38] sm:$0xff] }
   0x4   :  { %v30_v5 = vsub.s32 0, %v29_v1  ;;  %v34_v7 = vsub.s32 1, %v29_v1  ;;  %v38_v8 = vsub.s32 2, %v29_v1  ;;  %v42_v9 = vsub.s32 3, %v29_v1  ;;  %v18_v11 = vld [vmem:[%s256_s0 + $0x20] sm:$0xff]  ;;  %v23_v48 = vld [vmem:[%s256_s0 + $0x48] sm:$0xff] }
   0x5   :  { %v22_v47 = vld [vmem:[%s256_s0 + $0x40] sm:$0xff]  ;;  %v24_v52 = vld [vmem:[%s256_s0 + $0x50] sm:$0xff]  ;;  %v25_v53 = vld [vmem:[%s256_s0 + $0x58] sm:$0xff] }
   0x6   :  { %v31_v13 = vrot.slane %v26_v2, %v30_v5  ;;  %v187_v14 = vrot.slane %v60_v3, %v30_v5  ;;  %v35_v15 = vrot.slane %v26_v2, %v34_v7  ;;  %v189_v16 = vrot.slane %v60_v3, %v34_v7 }
   0x7   :  { %v39_v20 = vrot.slane %v26_v2, %v38_v8  ;;  %v73_v21 = vrot.slane %v60_v3, %v38_v8  ;;  %v43_v22 = vrot.slane %v26_v2, %v42_v9  ;;  %v77_v23 = vrot.slane %v60_v3, %v42_v9 }
   0x8   :  { %v48_v24 = vmul.f32 %v31_v13, %v14_v4  ;;  %v49_v25 = vmul.f32 %v35_v15, %v15_v6  ;;  %v52_v26 = vmul.f32 %v31_v13, %v18_v11  ;;  %v53_v27 = vmul.f32 %v35_v15, %v19_v12 }
   0x9   :  { %v50_v28 = vmul.f32 %v39_v20, %v16_v10  ;;  %v51_v29 = vmul.f32 %v43_v22, %v17_v17  ;;  %v54_v30 = vmul.f32 %v39_v20, %v20_v18  ;;  %v55_v31 = vmul.f32 %v43_v22, %v21_v19 }
   0xa   :  { %v82_v32 = vadd.f32 %v187_v14, %v48_v24  ;;  %v83_v33 = vadd.f32 %v189_v16, %v49_v25  ;;  %v86_v34 = vadd.f32 %v187_v14, %v52_v26  ;;  %v87_v35 = vadd.f32 %v189_v16, %v53_v27 }
   0xb   :  { %v84_v36 = vadd.f32 %v73_v21, %v50_v28  ;;  %v85_v37 = vadd.f32 %v77_v23, %v51_v29  ;;  %v88_v38 = vadd.f32 %v73_v21, %v54_v30  ;;  %v89_v39 = vadd.f32 %v77_v23, %v55_v31 }
   0xc   :  { %vm94_vm0 = vcmp.ge.f32.partialorder %v82_v32, 0.0  ;;  %v106_v40 = vmul.f32 0.2, %v82_v32  ;;  %vm95_vm1 = vcmp.ge.f32.partialorder %v83_v33, 0.0  ;;  %v107_v41 = vmul.f32 0.2, %v83_v33 }
   0xd   :  { %vm96_vm2 = vcmp.ge.f32.partialorder %v84_v36, 0.0  ;;  %v108_v42 = vmul.f32 0.2, %v84_v36  ;;  %vm97_vm3 = vcmp.ge.f32.partialorder %v85_v37, 0.0  ;;  %v109_v43 = vmul.f32 0.2, %v85_v37 }
   0xe   :  { %v118_v44 = vsel %vm94_vm0, %v82_v32, %v106_v40  ;;  %v119_v45 = vsel %vm95_vm1, %v83_v33, %v107_v41  ;;  %vm98_vm4 = vcmp.ge.f32.partialorder %v86_v34, 0.0  ;;  %v110_v46 = vmul.f32 0.2, %v86_v34 }
   0xf   :  { %130 = vst [vmem:[%s257_s3] sm:$0xff] %v118_v44  ;;  %131 = vst [vmem:[%s257_s3 + $0x8] sm:$0xff] %v119_v45  ;;  %v120_v49 = vsel %vm96_vm2, %v84_v36, %v108_v42  ;;  %v121_v50 = vsel %vm97_vm3, %v85_v37, %v109_v43  ;;  %vm99_vm5 = vcmp.ge.f32.partialorder %v87_v35, 0.0  ;;  %v111_v51 = vmul.f32 0.2, %v87_v35 }
  0x10   :  { %132 = vst [vmem:[%s257_s3 + $0x10] sm:$0xff] %v120_v49  ;;  %133 = vst [vmem:[%s257_s3 + $0x18] sm:$0xff] %v121_v50  ;;  %v122_v54 = vsel %vm98_vm4, %v86_v34, %v110_v46  ;;  %vm100_vm6 = vcmp.ge.f32.partialorder %v88_v38, 0.0  ;;  %v112_v55 = vmul.f32 0.2, %v88_v38  ;;  %vm101_vm7 = vcmp.ge.f32.partialorder %v89_v39, 0.0 }
  0x11   :  { %134 = vst [vmem:[%s257_s3 + $0x20] sm:$0xff] %v122_v54  ;;  %v123_v56 = vsel %vm99_vm5, %v87_v35, %v111_v51  ;;  %v113_v57 = vmul.f32 0.2, %v89_v39  ;;  %v56_v58 = vmul.f32 %v31_v13, %v22_v47  ;;  %v57_v59 = vmul.f32 %v35_v15, %v23_v48 }
  0x12   :  { %135 = vst [vmem:[%s257_s3 + $0x28] sm:$0xff] %v123_v56  ;;  %v124_v60 = vsel %vm100_vm6, %v88_v38, %v112_v55  ;;  %v58_v61 = vmul.f32 %v39_v20, %v24_v52  ;;  %v59_v62 = vmul.f32 %v43_v22, %v25_v53 }
  0x13   :  { %136 = vst [vmem:[%s257_s3 + $0x30] sm:$0xff] %v124_v60  ;;  %v125_v63 = vsel %vm101_vm7, %v89_v39, %v113_v57  ;;  %v90_v0 = vadd.f32 %v187_v14, %v56_v58  ;;  %v91_v1 = vadd.f32 %v189_v16, %v57_v59 }
  0x14   :  { %137 = vst [vmem:[%s257_s3 + $0x38] sm:$0xff] %v125_v63  ;;  %v92_v2 = vadd.f32 %v73_v21, %v58_v61  ;;  %v93_v3 = vadd.f32 %v77_v23, %v59_v62 }
  0x15   :  { %vm102_vm8 = vcmp.ge.f32.partialorder %v90_v0, 0.0  ;;  %v114_v4 = vmul.f32 0.2, %v90_v0  ;;  %vm103_vm9 = vcmp.ge.f32.partialorder %v91_v1, 0.0  ;;  %v115_v5 = vmul.f32 0.2, %v91_v1 }
  0x16   :  { %vm104_vm10 = vcmp.ge.f32.partialorder %v92_v2, 0.0  ;;  %v116_v6 = vmul.f32 0.2, %v92_v2  ;;  %vm105_vm11 = vcmp.ge.f32.partialorder %v93_v3, 0.0  ;;  %v117_v7 = vmul.f32 0.2, %v93_v3 }
  0x17   :  { %v126_v8 = vsel %vm102_vm8, %v90_v0, %v114_v4  ;;  %v127_v9 = vsel %vm103_vm9, %v91_v1, %v115_v5 }
  0x18   :  { %138 = vst [vmem:[%s257_s3 + $0x40] sm:$0xff] %v126_v8  ;;  %139 = vst [vmem:[%s257_s3 + $0x48] sm:$0xff] %v127_v9  ;;  %v128_v10 = vsel %vm104_vm10, %v92_v2, %v116_v6  ;;  %v129_v11 = vsel %vm105_vm11, %v93_v3, %v117_v7 }
  0x19   :  { %140 = vst [vmem:[%s257_s3 + $0x50] sm:$0xff] %v128_v10  ;;  %141 = vst [vmem:[%s257_s3 + $0x58] sm:$0xff] %v129_v11 }

// kernel: nlayer_discriminator.13
= control target key start
LH: loop header
LB: loop body
LE: loop exit
PB: predicated region body
PF: predicated region fallthrough
CT: control target
= control target key end

     0   :  { %vm8197_vm0 = vcmask 1040384   ;;  %vm8202_vm1 = vcmask 1041408   ;;  %s14527_s1 = inlined_call_operand.vmem [shape: bf16[4096,512], index: 1, kind: input, shape index: {}]   ;;  %s14528_s0 = inlined_call_operand.vmem [shape: bf16[24,4096], index: 0, kind: input, shape index: {}]   ;;  %s14529_s2 = inlined_call_operand.vmem [shape: f32[24,512], index: 2, kind: output, shape index: {0}]   ;;  %s14530_s3 = inlined_call_operand.vmem [shape: f32[1,8,512], index: 3, kind: output, shape index: {1}]  }
   0x1   :  { %v9547_v0 = vld [vmem:[%s14527_s1 + $0x4] ss:$16 sps:$4 sm:$0xff]   ;;  %v9549_v1 = vld [vmem:[%s14527_s1 + $0xc] ss:$16 sps:$4 sm:$0xff]   ;;  %v9551_v2 = vld [vmem:[%s14527_s1] ss:$16 sps:$4 sm:$0xff]  }
   0x2   :  { %6477 = vmatprep.subr.bf16.mxu0 %v9547_v0  ;;  %v9552_v3 = vld [vmem:[%s14527_s1 + $0x8] ss:$16 sps:$4 sm:$0xff]   ;;  %7293 = vmatprep.subr.bf16.mxu1 %v9549_v1  ;;  %v9553_v4 = vld [vmem:[%s14527_s1 + $0x24] ss:$16 sps:$4 sm:$0xff]   ;;  %v9555_v5 = vld [vmem:[%s14527_s1 + $0x2c] ss:$16 sps:$4 sm:$0xff]  }
   0x3   :  { %6478 = vmatpush1.bf16.msra.mxu0 %v9551_v2  ;;  %7294 = vmatpush1.bf16.msra.mxu1 %v9552_v3  ;;  %v9557_v6 = vld [vmem:[%s14527_s1 + $0x20] ss:$16 sps:$4 sm:$0xff]   ;;  %v9558_v7 = vld [vmem:[%s14527_s1 + $0x28] ss:$16 sps:$4 sm:$0xff]   ;;  %v9559_v8 = vld [vmem:[%s14527_s1 + $0x44] ss:$16 sps:$4 sm:$0xff]  }
   0x4   :  { %6479 = vmatprep.subr.bf16.mxu0 %v9553_v4  ;;  %7295 = vmatprep.subr.bf16.mxu1 %v9555_v5  ;;  %v9561_v9 = vld [vmem:[%s14527_s1 + $0x4c] ss:$16 sps:$4 sm:$0xff]   ;;  %v9563_v10 = vld [vmem:[%s14527_s1 + $0x40] ss:$16 sps:$4 sm:$0xff]   ;;  %v9564_v11 = vld [vmem:[%s14527_s1 + $0x48] ss:$16 sps:$4 sm:$0xff]  }
   0x5   :  { %v9565_v12 = vld [vmem:[%s14527_s1 + $0x64] ss:$16 sps:$4 sm:$0xff]   ;;  %v9567_v13 = vld [vmem:[%s14527_s1 + $0x6c] ss:$16 sps:$4 sm:$0xff]   ;;  %v9569_v14 = vld [vmem:[%s14527_s1 + $0x60] ss:$16 sps:$4 sm:$0xff]  }
   0x6   :  { %v9570_v15 = vld [vmem:[%s14527_s1 + $0x68] ss:$16 sps:$4 sm:$0xff]   ;;  %v9571_v16 = vld [vmem:[%s14527_s1 + $0x84] ss:$16 sps:$4 sm:$0xff]   ;;  %v9573_v17 = vld [vmem:[%s14527_s1 + $0x8c] ss:$16 sps:$4 sm:$0xff]  }
   0x7   :  { %6480 = vmatpush1.bf16.msra.mxu0 %v9557_v6  ;;  %7296 = vmatpush1.bf16.msra.mxu1 %v9558_v7  ;;  %v9575_v18 = vld [vmem:[%s14527_s1 + $0x80] ss:$16 sps:$4 sm:$0xff]   ;;  %v9576_v19 = vld [vmem:[%s14527_s1 + $0x88] ss:$16 sps:$4 sm:$0xff]   ;;  %v9577_v20 = vld [vmem:[%s14527_s1 + $0xa4] ss:$16 sps:$4 sm:$0xff]  }
   0x8   :  { %6481 = vmatprep.subr.bf16.mxu0 %v9559_v8  ;;  %7297 = vmatprep.subr.bf16.mxu1 %v9561_v9  ;;  %v9579_v21 = vld [vmem:[%s14527_s1 + $0xac] ss:$16 sps:$4 sm:$0xff]   ;;  %v9581_v22 = vld [vmem:[%s14527_s1 + $0xa0] ss:$16 sps:$4 sm:$0xff]   ;;  %v9582_v23 = vld [vmem:[%s14527_s1 + $0xa8] ss:$16 sps:$4 sm:$0xff]  }
   0x9   :  { %v9583_v24 = vld [vmem:[%s14527_s1 + $0xc4] ss:$16 sps:$4 sm:$0xff]   ;;  %v9585_v25 = vld [vmem:[%s14527_s1 + $0xcc] ss:$16 sps:$4 sm:$0xff]   ;;  %v9587_v26 = vld [vmem:[%s14527_s1 + $0xc0] ss:$16 sps:$4 sm:$0xff]  }
   0xa   :  { %v9588_v27 = vld [vmem:[%s14527_s1 + $0xc8] ss:$16 sps:$4 sm:$0xff]   ;;  %v9589_v28 = vld [vmem:[%s14527_s1 + $0xe4] ss:$16 sps:$4 sm:$0xff]   ;;  %v9591_v29 = vld [vmem:[%s14527_s1 + $0xec] ss:$16 sps:$4 sm:$0xff]  }
   0xb   :  { %6482 = vmatpush1.bf16.msra.mxu0 %v9563_v10  ;;  %7298 = vmatpush1.bf16.msra.mxu1 %v9564_v11  ;;  %v9593_v30 = vld [vmem:[%s14527_s1 + $0xe0] ss:$16 sps:$4 sm:$0xff]   ;;  %v9594_v31 = vld [vmem:[%s14527_s1 + $0xe8] ss:$16 sps:$4 sm:$0xff]   ;;  %v9595_v32 = vld [vmem:[%s14527_s1 + $0x104] ss:$16 sps:$4 sm:$0xff]  }
   0xc   :  { %6483 = vmatprep.subr.bf16.mxu0 %v9565_v12  ;;  %7299 = vmatprep.subr.bf16.mxu1 %v9567_v13  ;;  %v9597_v33 = vld [vmem:[%s14527_s1 + $0x10c] ss:$16 sps:$4 sm:$0xff]   ;;  %v9599_v34 = vld [vmem:[%s14527_s1 + $0x100] ss:$16 sps:$4 sm:$0xff]   ;;  %v9600_v35 = vld [vmem:[%s14527_s1 + $0x108] ss:$16 sps:$4 sm:$0xff]  }
   0xd   :  { %v9601_v36 = vld [vmem:[%s14527_s1 + $0x124] ss:$16 sps:$4 sm:$0xff]   ;;  %v9603_v37 = vld [vmem:[%s14527_s1 + $0x12c] ss:$16 sps:$4 sm:$0xff]   ;;  %v9605_v38 = vld [vmem:[%s14527_s1 + $0x120] ss:$16 sps:$4 sm:$0xff]  }
   0xe   :  { %v9606_v39 = vld [vmem:[%s14527_s1 + $0x128] ss:$16 sps:$4 sm:$0xff]   ;;  %v9607_v40 = vld [vmem:[%s14527_s1 + $0x144] ss:$16 sps:$4 sm:$0xff]   ;;  %v9609_v41 = vld [vmem:[%s14527_s1 + $0x14c] ss:$16 sps:$4 sm:$0xff]  }
   0xf   :  { %6484 = vmatpush1.bf16.msra.mxu0 %v9569_v14  ;;  %7300 = vmatpush1.bf16.msra.mxu1 %v9570_v15  ;;  %v9611_v42 = vld [vmem:[%s14527_s1 + $0x140] ss:$16 sps:$4 sm:$0xff]   ;;  %v9612_v43 = vld [vmem:[%s14527_s1 + $0x148] ss:$16 sps:$4 sm:$0xff]   ;;  %v9613_v44 = vld [vmem:[%s14527_s1 + $0x164] ss:$16 sps:$4 sm:$0xff]  }
  0x10   :  { %6485 = vmatprep.subr.bf16.mxu0 %v9571_v16  ;;  %7301 = vmatprep.subr.bf16.mxu1 %v9573_v17  ;;  %v9615_v45 = vld [vmem:[%s14527_s1 + $0x16c] ss:$16 sps:$4 sm:$0xff]   ;;  %v13_v46 = vld [vmem:[%s14528_s0] sm:$0xff]  ;;  %v9618_v49 = vld [vmem:[%s14527_s1 + $0x168] ss:$16 sps:$4 sm:$0xff]  }
  0x11   :  { %v29_v47 = vld [vmem:[%s14528_s0 + $0x80] sm:$0xff]  ;;  %v9621_v52 = vld [vmem:[%s14527_s1 + $0x18c] ss:$16 sps:$4 sm:$0xff]   ;;  %v9624_v54 = vld [vmem:[%s14527_s1 + $0x188] ss:$16 sps:$4 sm:$0xff]  }
  0x12   :  { %v9617_v48 = vld [vmem:[%s14527_s1 + $0x160] ss:$16 sps:$4 sm:$0xff]   ;;  %v8220_v50 = vcombine.high %v13_v46, %v29_v47  ;;  %v9619_v51 = vld [vmem:[%s14527_s1 + $0x184] ss:$16 sps:$4 sm:$0xff]   ;;  %v9627_v56 = vld [vmem:[%s14527_s1 + $0x1ac] ss:$16 sps:$4 sm:$0xff]   ;;  %v8219_v5 = vcombine.low %v13_v46, %v29_v47 }
  0x13   :  { %6486 = vmatpush1.bf16.msra.mxu0 %v9575_v18  ;;  %7302 = vmatpush1.bf16.msra.mxu1 %v9576_v19  ;;  %v9623_v53 = vld [vmem:[%s14527_s1 + $0x180] ss:$16 sps:$4 sm:$0xff]   ;;  %v9625_v55 = vld [vmem:[%s14527_s1 + $0x1a4] ss:$16 sps:$4 sm:$0xff]   ;;  %v9630_v58 = vld [vmem:[%s14527_s1 + $0x1a8] ss:$16 sps:$4 sm:$0xff]  }
  0x14   :  { %6487 = vmatprep.subr.bf16.mxu0 %v9577_v20  ;;  %7303 = vmatprep.subr.bf16.mxu1 %v9579_v21  ;;  %v9629_v57 = vld [vmem:[%s14527_s1 + $0x1a0] ss:$16 sps:$4 sm:$0xff]   ;;  %v9631_v59 = vld [vmem:[%s14527_s1 + $0x1c4] ss:$16 sps:$4 sm:$0xff]   ;;  %v9633_v60 = vld [vmem:[%s14527_s1 + $0x1cc] ss:$16 sps:$4 sm:$0xff]  }
  0x15   :  { %6509 = vmatprep.mubr.bf16.mxu0 %v8220_v50  ;;  %7325 = vmatprep.mubr.bf16.mxu1 %v8220_v50  ;;  %v9635_v61 = vld [vmem:[%s14527_s1 + $0x1c0] ss:$16 sps:$4 sm:$0xff]   ;;  %v9636_v62 = vld [vmem:[%s14527_s1 + $0x1c8] ss:$16 sps:$4 sm:$0xff]   ;;  %v9637_v63 = vld [vmem:[%s14527_s1 + $0x1e4] ss:$16 sps:$4 sm:$0xff]  }
  0x16   :  { %v9639_v0 = vld [vmem:[%s14527_s1 + $0x1ec] ss:$16 sps:$4 sm:$0xff]   ;;  %v9641_v1 = vld [vmem:[%s14527_s1 + $0x1e0] ss:$16 sps:$4 sm:$0xff]   ;;  %v9642_v2 = vld [vmem:[%s14527_s1 + $0x1e8] ss:$16 sps:$4 sm:$0xff]  }
  0x17   :  { %6488 = vmatpush1.bf16.msra.mxu0 %v9581_v22  ;;  %7304 = vmatpush1.bf16.msra.mxu1 %v9582_v23  ;;  %v9645_v3 = vld [vmem:[%s14527_s1 + $0x204] ss:$16 sps:$4 sm:$0xff]   ;;  %v9648_v4 = vld [vmem:[%s14527_s1 + $0x20c] ss:$16 sps:$4 sm:$0xff]   ;;  %v9643_v6 = vld [vmem:[%s14527_s1 + $0x200] ss:$16 sps:$4 sm:$0xff]  }
  0x18   :  { %6489 = vmatprep.subr.bf16.mxu0 %v9583_v24  ;;  %7305 = vmatprep.subr.bf16.mxu1 %v9585_v25  ;;  %v9646_v7 = vld [vmem:[%s14527_s1 + $0x208] ss:$16 sps:$4 sm:$0xff]   ;;  %v9651_v8 = vld [vmem:[%s14527_s1 + $0x224] ss:$16 sps:$4 sm:$0xff]   ;;  %v9654_v9 = vld [vmem:[%s14527_s1 + $0x22c] ss:$16 sps:$4 sm:$0xff]  }
  0x19   :  { %v9649_v10 = vld [vmem:[%s14527_s1 + $0x220] ss:$16 sps:$4 sm:$0xff]   ;;  %v9652_v11 = vld [vmem:[%s14527_s1 + $0x228] ss:$16 sps:$4 sm:$0xff]   ;;  %v9657_v12 = vld [vmem:[%s14527_s1 + $0x244] ss:$16 sps:$4 sm:$0xff]  }
  0x1a   :  { %v9660_v13 = vld [vmem:[%s14527_s1 + $0x24c] ss:$16 sps:$4 sm:$0xff]   ;;  %v9655_v14 = vld [vmem:[%s14527_s1 + $0x240] ss:$16 sps:$4 sm:$0xff]   ;;  %v9658_v15 = vld [vmem:[%s14527_s1 + $0x248] ss:$16 sps:$4 sm:$0xff]  }
  0x1b   :  { %6490 = vmatpush1.bf16.msra.mxu0 %v9587_v26  ;;  %7306 = vmatpush1.bf16.msra.mxu1 %v9588_v27  ;;  %v9663_v16 = vld [vmem:[%s14527_s1 + $0x264] ss:$16 sps:$4 sm:$0xff]   ;;  %v9666_v17 = vld [vmem:[%s14527_s1 + $0x26c] ss:$16 sps:$4 sm:$0xff]   ;;  %v9661_v18 = vld [vmem:[%s14527_s1 + $0x260] ss:$16 sps:$4 sm:$0xff]  }
  0x1c   :  { %6491 = vmatprep.subr.bf16.mxu0 %v9589_v28  ;;  %7307 = vmatprep.subr.bf16.mxu1 %v9591_v29  ;;  %v9664_v19 = vld [vmem:[%s14527_s1 + $0x268] ss:$16 sps:$4 sm:$0xff]   ;;  %v9669_v20 = vld [vmem:[%s14527_s1 + $0x284] ss:$16 sps:$4 sm:$0xff]   ;;  %v9672_v21 = vld [vmem:[%s14527_s1 + $0x28c] ss:$16 sps:$4 sm:$0xff]  }
  0x1d   :  { %v9667_v22 = vld [vmem:[%s14527_s1 + $0x280] ss:$16 sps:$4 sm:$0xff]   ;;  %v9670_v23 = vld [vmem:[%s14527_s1 + $0x288] ss:$16 sps:$4 sm:$0xff]   ;;  %v9675_v24 = vld [vmem:[%s14527_s1 + $0x2a4] ss:$16 sps:$4 sm:$0xff]  }
  0x1e   :  { %v45_v25 = vld [vmem:[%s14528_s0 + $0x100] sm:$0xff]  ;;  %v9678_v26 = vld [vmem:[%s14527_s1 + $0x2ac] ss:$16 sps:$4 sm:$0xff]  }
  0x1f   :  { %6492 = vmatpush1.bf16.msra.mxu0 %v9593_v30  ;;  %7308 = vmatpush1.bf16.msra.mxu1 %v9594_v31  ;;  %v8252_v27 = vcombine.high %v45_v25, %v45_v25  ;;  %v8251_v28 = vcombine.low %v45_v25, %v45_v25  ;;  %v9673_v29 = vld [vmem:[%s14527_s1 + $0x2a0] ss:$16 sps:$4 sm:$0xff]   ;;  %v9676_v30 = vld [vmem:[%s14527_s1 + $0x2a8] ss:$16 sps:$4 sm:$0xff]   ;;  %v9681_v31 = vld [vmem:[%s14527_s1 + $0x2c4] ss:$16 sps:$4 sm:$0xff]  }
  0x20   :  { %6493 = vmatprep.subr.bf16.mxu0 %v9595_v32  ;;  %7309 = vmatprep.subr.bf16.mxu1 %v9597_v33  ;;  %v9684_v32 = vld [vmem:[%s14527_s1 + $0x2cc] ss:$16 sps:$4 sm:$0xff]   ;;  %v9699_v46 = vld [vmem:[%s14527_s1 + $0x324] ss:$16 sps:$4 sm:$0xff]  }
  0x21   :  { %v11417_v33 = vld [vmem:[%s14528_s0 + $0x8] sm:$0xff]  ;;  %v9705_v50 = vld [vmem:[%s14527_s1 + $0x344] ss:$16 sps:$4 sm:$0xff]  }
  0x22   :  { %v9702_v47 = vld [vmem:[%s14527_s1 + $0x32c] ss:$16 sps:$4 sm:$0xff]  }
  0x23   :  { %6494 = vmatpush1.bf16.msra.mxu0 %v9599_v34  ;;  %7310 = vmatpush1.bf16.msra.mxu1 %v9600_v35  ;;  %v11422_v34 = vld [vmem:[%s14528_s0 + $0x88] sm:$0xff]  ;;  %v9679_v35 = vld [vmem:[%s14527_s1 + $0x2c0] ss:$16 sps:$4 sm:$0xff]  }
  0x24   :  { %6495 = vmatprep.subr.bf16.mxu0 %v9601_v36  ;;  %7311 = vmatprep.subr.bf16.mxu1 %v9603_v37  ;;  %v8222_v36 = vcombine.high %v11417_v33, %v11422_v34  ;;  %v9682_v37 = vld [vmem:[%s14527_s1 + $0x2c8] ss:$16 sps:$4 sm:$0xff]  }
  0x27   :  { %6496 = vmatpush1.bf16.msra.mxu0 %v9605_v38  ;;  %7312 = vmatpush1.bf16.msra.mxu1 %v9606_v39  ;;  %v9687_v38 = vld [vmem:[%s14527_s1 + $0x2e4] ss:$16 sps:$4 sm:$0xff]   ;;  %v9690_v39 = vld [vmem:[%s14527_s1 + $0x2ec] ss:$16 sps:$4 sm:$0xff]  }
  0x28   :  { %6497 = vmatprep.subr.bf16.mxu0 %v9607_v40  ;;  %7313 = vmatprep.subr.bf16.mxu1 %v9609_v41  ;;  %v9685_v40 = vld [vmem:[%s14527_s1 + $0x2e0] ss:$16 sps:$4 sm:$0xff]   ;;  %v9688_v41 = vld [vmem:[%s14527_s1 + $0x2e8] ss:$16 sps:$4 sm:$0xff]  }
  0x2b   :  { %6498 = vmatpush1.bf16.msra.mxu0 %v9611_v42  ;;  %7314 = vmatpush1.bf16.msra.mxu1 %v9612_v43  ;;  %v9693_v42 = vld [vmem:[%s14527_s1 + $0x304] ss:$16 sps:$4 sm:$0xff]   ;;  %v9696_v43 = vld [vmem:[%s14527_s1 + $0x30c] ss:$16 sps:$4 sm:$0xff]  }
  0x2c   :  { %6499 = vmatprep.subr.bf16.mxu0 %v9613_v44  ;;  %7315 = vmatprep.subr.bf16.mxu1 %v9615_v45  ;;  %v9691_v44 = vld [vmem:[%s14527_s1 + $0x300] ss:$16 sps:$4 sm:$0xff]   ;;  %v9694_v45 = vld [vmem:[%s14527_s1 + $0x308] ss:$16 sps:$4 sm:$0xff]  }
  0x2f   :  { %6500 = vmatpush1.bf16.msra.mxu0 %v9617_v48  ;;  %7316 = vmatpush1.bf16.msra.mxu1 %v9618_v49  ;;  %v9697_v48 = vld [vmem:[%s14527_s1 + $0x320] ss:$16 sps:$4 sm:$0xff]   ;;  %v9700_v49 = vld [vmem:[%s14527_s1 + $0x328] ss:$16 sps:$4 sm:$0xff]  }
  0x30   :  { %6501 = vmatprep.subr.bf16.mxu0 %v9619_v51  ;;  %7317 = vmatprep.subr.bf16.mxu1 %v9621_v52  ;;  %v9708_v51 = vld [vmem:[%s14527_s1 + $0x34c] ss:$16 sps:$4 sm:$0xff]   ;;  %v9703_v52 = vld [vmem:[%s14527_s1 + $0x340] ss:$16 sps:$4 sm:$0xff]  }
  0x33   :  { %6502 = vmatpush1.bf16.msra.mxu0 %v9623_v53  ;;  %7318 = vmatpush1.bf16.msra.mxu1 %v9624_v54  ;;  %v9706_v53 = vld [vmem:[%s14527_s1 + $0x348] ss:$16 sps:$4 sm:$0xff]   ;;  %v9711_v54 = vld [vmem:[%s14527_s1 + $0x364] ss:$16 sps:$4 sm:$0xff]  }
  0x34   :  { %6503 = vmatprep.subr.bf16.mxu0 %v9625_v55  ;;  %7319 = vmatprep.subr.bf16.mxu1 %v9627_v56  ;;  %v9714_v55 = vld [vmem:[%s14527_s1 + $0x36c] ss:$16 sps:$4 sm:$0xff]   ;;  %v9709_v56 = vld [vmem:[%s14527_s1 + $0x360] ss:$16 sps:$4 sm:$0xff]  }
  0x37   :  { %6504 = vmatpush1.bf16.msra.mxu0 %v9629_v57  ;;  %7320 = vmatpush1.bf16.msra.mxu1 %v9630_v58  ;;  %v9712_v57 = vld [vmem:[%s14527_s1 + $0x368] ss:$16 sps:$4 sm:$0xff]   ;;  %v9717_v58 = vld [vmem:[%s14527_s1 + $0x384] ss:$16 sps:$4 sm:$0xff]  }
  0x38   :  { %6505 = vmatprep.subr.bf16.mxu0 %v9631_v59  ;;  %7321 = vmatprep.subr.bf16.mxu1 %v9633_v60  ;;  %v9720_v59 = vld [vmem:[%s14527_s1 + $0x38c] ss:$16 sps:$4 sm:$0xff]   ;;  %v9715_v60 = vld [vmem:[%s14527_s1 + $0x380] ss:$16 sps:$4 sm:$0xff]  }
  0x3b   :  { %6506 = vmatpush1.bf16.msra.mxu0 %v9635_v61  ;;  %7322 = vmatpush1.bf16.msra.mxu1 %v9636_v62  ;;  %v9718_v61 = vld [vmem:[%s14527_s1 + $0x388] ss:$16 sps:$4 sm:$0xff]   ;;  %v9723_v62 = vld [vmem:[%s14527_s1 + $0x3a4] ss:$16 sps:$4 sm:$0xff]  }
  0x3c   :  { %6507 = vmatprep.subr.bf16.mxu0 %v9637_v63  ;;  %7323 = vmatprep.subr.bf16.mxu1 %v9639_v0  ;;  %v9726_v63 = vld [vmem:[%s14527_s1 + $0x3ac] ss:$16 sps:$4 sm:$0xff]   ;;  %v9721_v0 = vld [vmem:[%s14527_s1 + $0x3a0] ss:$16 sps:$4 sm:$0xff]  }
  0x3f   :  { %6508 = vmatpush1.bf16.msra.mxu0 %v9641_v1  ;;  %7324 = vmatpush1.bf16.msra.mxu1 %v9642_v2  ;;  %v9724_v1 = vld [vmem:[%s14527_s1 + $0x3a8] ss:$16 sps:$4 sm:$0xff]   ;;  %v9730_v2 = vld [vmem:[%s14527_s1 + $0x3c4] ss:$16 sps:$4 sm:$0xff]  }
  0x40   :  { %6528 = vmatprep.subr.bf16.mxu0 %v9645_v3  ;;  %7344 = vmatprep.subr.bf16.mxu1 %v9648_v4  ;;  %v9733_v3 = vld [vmem:[%s14527_s1 + $0x3cc] ss:$16 sps:$4 sm:$0xff]   ;;  %v9728_v4 = vld [vmem:[%s14527_s1 + $0x3c0] ss:$16 sps:$4 sm:$0xff]  }
  0x42   :  { %6510 = vmatmul.mubr.bf16.vlgmr.msra.gmra.mrb[0].mxu0 %v8219_v5  ;;  %7326 = vmatmul.mubr.bf16.vlgmr.msra.gmra.mrb[0].mxu1 %v8219_v5  ;;  %v9731_v5 = vld [vmem:[%s14527_s1 + $0x3c8] ss:$16 sps:$4 sm:$0xff]  }
  0x43   :  { %6529 = vmatpush1.bf16.msra.mxu0 %v9643_v6  ;;  %7345 = vmatpush1.bf16.msra.mxu1 %v9646_v7  ;;  %v9737_v6 = vld [vmem:[%s14527_s1 + $0x3e4] ss:$16 sps:$4 sm:$0xff]   ;;  %v9740_v7 = vld [vmem:[%s14527_s1 + $0x3ec] ss:$16 sps:$4 sm:$0xff]  }
  0x44   :  { %6530 = vmatprep.subr.bf16.mxu0 %v9651_v8  ;;  %7346 = vmatprep.subr.bf16.mxu1 %v9654_v9  ;;  %v9735_v8 = vld [vmem:[%s14527_s1 + $0x3e0] ss:$16 sps:$4 sm:$0xff]   ;;  %v9738_v9 = vld [vmem:[%s14527_s1 + $0x3e8] ss:$16 sps:$4 sm:$0xff]  }
  0x45   :  { %6519 = vmatprep.mubr.bf16.mxu0 %v8252_v27  ;;  %7335 = vmatprep.mubr.bf16.mxu1 %v8252_v27  ;;  %v11589_v27 = vld [vmem:[%s14528_s0 + $0x90] sm:$0xff] }
  0x47   :  { %6531 = vmatpush1.bf16.msra.mxu0 %v9649_v10  ;;  %7347 = vmatpush1.bf16.msra.mxu1 %v9652_v11  ;;  %v9743_v10 = vld [vmem:[%s14527_s1 + $0x404] ss:$16 sps:$4 sm:$0xff]   ;;  %v9746_v11 = vld [vmem:[%s14527_s1 + $0x40c] ss:$16 sps:$4 sm:$0xff]  }
  0x48   :  { %6532 = vmatprep.subr.bf16.mxu0 %v9657_v12  ;;  %7348 = vmatprep.subr.bf16.mxu1 %v9660_v13  ;;  %v8221_v12 = vcombine.low %v11417_v33, %v11422_v34  ;;  %v46_v13 = vld [vmem:[%s14528_s0 + $0x108] sm:$0xff]  ;;  %v9767_v33 = vld [vmem:[%s14527_s1 + $0x484] ss:$16 sps:$4 sm:$0xff]  }
  0x49   :  { %v8253_v25 = vcombine.low %v46_v13, %v46_v13  ;;  %v9770_v34 = vld [vmem:[%s14527_s1 + $0x48c] ss:$16 sps:$4 sm:$0xff]  }
  0x4a   :  { %6520 = vmatmul.mubr.bf16.gmra.mrb[4].mxu0 %v8251_v28  ;;  %7336 = vmatmul.mubr.bf16.gmra.mrb[4].mxu1 %v8251_v28  ;;  %v9761_v28 = vld [vmem:[%s14527_s1 + $0x464] ss:$16 sps:$4 sm:$0xff]  }
  0x4b   :  { %6533 = vmatpush1.bf16.msra.mxu0 %v9655_v14  ;;  %7349 = vmatpush1.bf16.msra.mxu1 %v9658_v15  ;;  %v9741_v14 = vld [vmem:[%s14527_s1 + $0x400] ss:$16 sps:$4 sm:$0xff]   ;;  %v9744_v15 = vld [vmem:[%s14527_s1 + $0x408] ss:$16 sps:$4 sm:$0xff]  }
  0x4c   :  { %6534 = vmatprep.subr.bf16.mxu0 %v9663_v16  ;;  %7350 = vmatprep.subr.bf16.mxu1 %v9666_v17  ;;  %v9749_v16 = vld [vmem:[%s14527_s1 + $0x424] ss:$16 sps:$4 sm:$0xff]   ;;  %v9752_v17 = vld [vmem:[%s14527_s1 + $0x42c] ss:$16 sps:$4 sm:$0xff]  }
  0x4d   :  { %6560 = vmatprep.mubr.bf16.mxu0 %v8222_v36  ;;  %7376 = vmatprep.mubr.bf16.mxu1 %v8222_v36  ;;  %v9768_v36 = vld [vmem:[%s14527_s1 + $0x488] ss:$16 sps:$4 sm:$0xff]  }
  0x4f   :  { %6535 = vmatpush1.bf16.msra.mxu0 %v9661_v18  ;;  %7351 = vmatpush1.bf16.msra.mxu1 %v9664_v19  ;;  %v8254_v18 = vcombine.high %v46_v13, %v46_v13  ;;  %v9747_v19 = vld [vmem:[%s14527_s1 + $0x420] ss:$16 sps:$4 sm:$0xff]   ;;  %v9835_v13 = vld [vmem:[%s14527_s1 + $0x5e4] ss:$16 sps:$4 sm:$0xff]  }
  0x50   :  { %6536 = vmatprep.subr.bf16.mxu0 %v9669_v20  ;;  %7352 = vmatprep.subr.bf16.mxu1 %v9672_v21  ;;  %v9750_v20 = vld [vmem:[%s14527_s1 + $0x428] ss:$16 sps:$4 sm:$0xff]   ;;  %v9755_v21 = vld [vmem:[%s14527_s1 + $0x444] ss:$16 sps:$4 sm:$0xff]  }
  0x53   :  { %6537 = vmatpush1.bf16.msra.mxu0 %v9667_v22  ;;  %7353 = vmatpush1.bf16.msra.mxu1 %v9670_v23  ;;  %v9758_v22 = vld [vmem:[%s14527_s1 + $0x44c] ss:$16 sps:$4 sm:$0xff]   ;;  %v9753_v23 = vld [vmem:[%s14527_s1 + $0x440] ss:$16 sps:$4 sm:$0xff]  }
  0x54   :  { %6538 = vmatprep.subr.bf16.mxu0 %v9675_v24  ;;  %7354 = vmatprep.subr.bf16.mxu1 %v9678_v26  ;;  %v9756_v24 = vld [vmem:[%s14527_s1 + $0x448] ss:$16 sps:$4 sm:$0xff]   ;;  %v11584_v26 = vld [vmem:[%s14528_s0 + $0x10] sm:$0xff] }
  0x57   :  { %6539 = vmatpush1.bf16.msra.mxu0 %v9673_v29  ;;  %7355 = vmatpush1.bf16.msra.mxu1 %v9676_v30  ;;  %v9764_v29 = vld [vmem:[%s14527_s1 + $0x46c] ss:$16 sps:$4 sm:$0xff]   ;;  %v8224_v30 = vcombine.high %v11584_v26, %v11589_v27 }
  0x58   :  { %6540 = vmatprep.subr.bf16.mxu0 %v9681_v31  ;;  %7356 = vmatprep.subr.bf16.mxu1 %v9684_v32  ;;  %v9759_v31 = vld [vmem:[%s14527_s1 + $0x460] ss:$16 sps:$4 sm:$0xff]   ;;  %v9762_v32 = vld [vmem:[%s14527_s1 + $0x468] ss:$16 sps:$4 sm:$0xff]  }
  0x5b   :  { %6541 = vmatpush1.bf16.msra.mxu0 %v9679_v35  ;;  %7357 = vmatpush1.bf16.msra.mxu1 %v9682_v37  ;;  %v9765_v35 = vld [vmem:[%s14527_s1 + $0x480] ss:$16 sps:$4 sm:$0xff]   ;;  %v9773_v37 = vld [vmem:[%s14527_s1 + $0x4a4] ss:$16 sps:$4 sm:$0xff]  }
  0x5c   :  { %6542 = vmatprep.subr.bf16.mxu0 %v9687_v38  ;;  %7358 = vmatprep.subr.bf16.mxu1 %v9690_v39  ;;  %v9776_v38 = vld [vmem:[%s14527_s1 + $0x4ac] ss:$16 sps:$4 sm:$0xff]   ;;  %v9771_v39 = vld [vmem:[%s14527_s1 + $0x4a0] ss:$16 sps:$4 sm:$0xff]  }
  0x5f   :  { %6543 = vmatpush1.bf16.msra.mxu0 %v9685_v40  ;;  %7359 = vmatpush1.bf16.msra.mxu1 %v9688_v41  ;;  %v9774_v40 = vld [vmem:[%s14527_s1 + $0x4a8] ss:$16 sps:$4 sm:$0xff]   ;;  %v9779_v41 = vld [vmem:[%s14527_s1 + $0x4c4] ss:$16 sps:$4 sm:$0xff]  }
  0x60   :  { %6544 = vmatprep.subr.bf16.mxu0 %v9693_v42  ;;  %7360 = vmatprep.subr.bf16.mxu1 %v9696_v43  ;;  %v9782_v42 = vld [vmem:[%s14527_s1 + $0x4cc] ss:$16 sps:$4 sm:$0xff]   ;;  %v9777_v43 = vld [vmem:[%s14527_s1 + $0x4c0] ss:$16 sps:$4 sm:$0xff]  }
  0x63   :  { %6545 = vmatpush1.bf16.msra.mxu0 %v9691_v44  ;;  %7361 = vmatpush1.bf16.msra.mxu1 %v9694_v45  ;;  %v9780_v44 = vld [vmem:[%s14527_s1 + $0x4c8] ss:$16 sps:$4 sm:$0xff]   ;;  %v9785_v45 = vld [vmem:[%s14527_s1 + $0x4e4] ss:$16 sps:$4 sm:$0xff]  }
  0x64   :  { %6546 = vmatprep.subr.bf16.mxu0 %v9699_v46  ;;  %7362 = vmatprep.subr.bf16.mxu1 %v9702_v47  ;;  %v9788_v46 = vld [vmem:[%s14527_s1 + $0x4ec] ss:$16 sps:$4 sm:$0xff]   ;;  %v9783_v47 = vld [vmem:[%s14527_s1 + $0x4e0] ss:$16 sps:$4 sm:$0xff]  }
  0x67   :  { %6547 = vmatpush1.bf16.msra.mxu0 %v9697_v48  ;;  %7363 = vmatpush1.bf16.msra.mxu1 %v9700_v49  ;;  %v9786_v48 = vld [vmem:[%s14527_s1 + $0x4e8] ss:$16 sps:$4 sm:$0xff]   ;;  %v9791_v49 = vld [vmem:[%s14527_s1 + $0x504] ss:$16 sps:$4 sm:$0xff]  }
  0x68   :  { %6548 = vmatprep.subr.bf16.mxu0 %v9705_v50  ;;  %7364 = vmatprep.subr.bf16.mxu1 %v9708_v51  ;;  %v9794_v50 = vld [vmem:[%s14527_s1 + $0x50c] ss:$16 sps:$4 sm:$0xff]   ;;  %v9789_v51 = vld [vmem:[%s14527_s1 + $0x500] ss:$16 sps:$4 sm:$0xff]  }
  0x6b   :  { %6549 = vmatpush1.bf16.msra.mxu0 %v9703_v52  ;;  %7365 = vmatpush1.bf16.msra.mxu1 %v9706_v53  ;;  %v9792_v52 = vld [vmem:[%s14527_s1 + $0x508] ss:$16 sps:$4 sm:$0xff]   ;;  %v9797_v53 = vld [vmem:[%s14527_s1 + $0x524] ss:$16 sps:$4 sm:$0xff]  }
  0x6c   :  { %6550 = vmatprep.subr.bf16.mxu0 %v9711_v54  ;;  %7366 = vmatprep.subr.bf16.mxu1 %v9714_v55  ;;  %v9800_v54 = vld [vmem:[%s14527_s1 + $0x52c] ss:$16 sps:$4 sm:$0xff]   ;;  %v9795_v55 = vld [vmem:[%s14527_s1 + $0x520] ss:$16 sps:$4 sm:$0xff]  }
  0x6f   :  { %6551 = vmatpush1.bf16.msra.mxu0 %v9709_v56  ;;  %7367 = vmatpush1.bf16.msra.mxu1 %v9712_v57  ;;  %v9798_v56 = vld [vmem:[%s14527_s1 + $0x528] ss:$16 sps:$4 sm:$0xff]   ;;  %v9803_v57 = vld [vmem:[%s14527_s1 + $0x544] ss:$16 sps:$4 sm:$0xff]  }
  0x70   :  { %6552 = vmatprep.subr.bf16.mxu0 %v9717_v58  ;;  %7368 = vmatprep.subr.bf16.mxu1 %v9720_v59  ;;  %v9806_v58 = vld [vmem:[%s14527_s1 + $0x54c] ss:$16 sps:$4 sm:$0xff]   ;;  %v9801_v59 = vld [vmem:[%s14527_s1 + $0x540] ss:$16 sps:$4 sm:$0xff]  }
  0x73   :  { %6553 = vmatpush1.bf16.msra.mxu0 %v9715_v60  ;;  %7369 = vmatpush1.bf16.msra.mxu1 %v9718_v61  ;;  %v9804_v60 = vld [vmem:[%s14527_s1 + $0x548] ss:$16 sps:$4 sm:$0xff]   ;;  %v9809_v61 = vld [vmem:[%s14527_s1 + $0x564] ss:$16 sps:$4 sm:$0xff]  }
  0x74   :  { %6554 = vmatprep.subr.bf16.mxu0 %v9723_v62  ;;  %7370 = vmatprep.subr.bf16.mxu1 %v9726_v63  ;;  %v9812_v62 = vld [vmem:[%s14527_s1 + $0x56c] ss:$16 sps:$4 sm:$0xff]   ;;  %v9807_v63 = vld [vmem:[%s14527_s1 + $0x560] ss:$16 sps:$4 sm:$0xff]  }
  0x77   :  { %6555 = vmatpush1.bf16.msra.mxu0 %v9721_v0  ;;  %7371 = vmatpush1.bf16.msra.mxu1 %v9724_v1  ;;  %v9810_v0 = vld [vmem:[%s14527_s1 + $0x568] ss:$16 sps:$4 sm:$0xff]   ;;  %v9815_v1 = vld [vmem:[%s14527_s1 + $0x584] ss:$16 sps:$4 sm:$0xff]  }
  0x78   :  { %6556 = vmatprep.subr.bf16.mxu0 %v9730_v2  ;;  %7372 = vmatprep.subr.bf16.mxu1 %v9733_v3  ;;  %v9818_v2 = vld [vmem:[%s14527_s1 + $0x58c] ss:$16 sps:$4 sm:$0xff]   ;;  %v9813_v3 = vld [vmem:[%s14527_s1 + $0x580] ss:$16 sps:$4 sm:$0xff]  }
  0x7b   :  { %6557 = vmatpush1.bf16.msra.mxu0 %v9728_v4  ;;  %7373 = vmatpush1.bf16.msra.mxu1 %v9731_v5  ;;  %v9816_v4 = vld [vmem:[%s14527_s1 + $0x588] ss:$16 sps:$4 sm:$0xff]   ;;  %v9821_v5 = vld [vmem:[%s14527_s1 + $0x5a4] ss:$16 sps:$4 sm:$0xff]  }
  0x7c   :  { %6558 = vmatprep.subr.bf16.mxu0 %v9737_v6  ;;  %7374 = vmatprep.subr.bf16.mxu1 %v9740_v7  ;;  %v9824_v6 = vld [vmem:[%s14527_s1 + $0x5ac] ss:$16 sps:$4 sm:$0xff]   ;;  %v9819_v7 = vld [vmem:[%s14527_s1 + $0x5a0] ss:$16 sps:$4 sm:$0xff]  }
  0x7f   :  { %6559 = vmatpush1.bf16.msra.mxu0 %v9735_v8  ;;  %7375 = vmatpush1.bf16.msra.mxu1 %v9738_v9  ;;  %v9822_v8 = vld [vmem:[%s14527_s1 + $0x5a8] ss:$16 sps:$4 sm:$0xff]   ;;  %v9828_v9 = vld [vmem:[%s14527_s1 + $0x5c4] ss:$16 sps:$4 sm:$0xff]  }
  0x80   :  { %6579 = vmatprep.subr.bf16.mxu0 %v9743_v10  ;;  %7395 = vmatprep.subr.bf16.mxu1 %v9746_v11  ;;  %v9831_v10 = vld [vmem:[%s14527_s1 + $0x5cc] ss:$16 sps:$4 sm:$0xff]   ;;  %v9826_v11 = vld [vmem:[%s14527_s1 + $0x5c0] ss:$16 sps:$4 sm:$0xff]  }
  0x82   :  { %6561 = vmatmul.mubr.bf16.vlgmr.msra.gmra.mrb[0].mxu0 %v8221_v12  ;;  %7377 = vmatmul.mubr.bf16.vlgmr.msra.gmra.mrb[0].mxu1 %v8221_v12  ;;  %v9829_v12 = vld [vmem:[%s14527_s1 + $0x5c8] ss:$16 sps:$4 sm:$0xff]  }
  0x83   :  { %6580 = vmatpush1.bf16.msra.mxu0 %v9741_v14  ;;  %7396 = vmatpush1.bf16.msra.mxu1 %v9744_v15  ;;  %v9838_v14 = vld [vmem:[%s14527_s1 + $0x5ec] ss:$16 sps:$4 sm:$0xff]   ;;  %v9833_v15 = vld [vmem:[%s14527_s1 + $0x5e0] ss:$16 sps:$4 sm:$0xff]  }
  0x84   :  { %6581 = vmatprep.subr.bf16.mxu0 %v9749_v16  ;;  %7397 = vmatprep.subr.bf16.mxu1 %v9752_v17  ;;  %v9836_v16 = vld [vmem:[%s14527_s1 + $0x5e8] ss:$16 sps:$4 sm:$0xff]   ;;  %v9841_v17 = vld [vmem:[%s14527_s1 + $0x604] ss:$16 sps:$4 sm:$0xff]  }
  0x85   :  { %6570 = vmatprep.mubr.bf16.mxu0 %v8254_v18  ;;  %7386 = vmatprep.mubr.bf16.mxu1 %v8254_v18  ;;  %v9844_v18 = vld [vmem:[%s14527_s1 + $0x60c] ss:$16 sps:$4 sm:$0xff]  }
  0x87   :  { %6582 = vmatpush1.bf16.msra.mxu0 %v9747_v19  ;;  %7398 = vmatpush1.bf16.msra.mxu1 %v9750_v20  ;;  %v8223_v19 = vcombine.low %v11584_v26, %v11589_v27  ;;  %v9839_v20 = vld [vmem:[%s14527_s1 + $0x600] ss:$16 sps:$4 sm:$0xff]   ;;  %v9848_v27 = vld [vmem:[%s14527_s1 + $0x628] ss:$16 sps:$4 sm:$0xff]  }
  0x88   :  { %6583 = vmatprep.subr.bf16.mxu0 %v9755_v21  ;;  %7399 = vmatprep.subr.bf16.mxu1 %v9758_v22  ;;  %v47_v21 = vld [vmem:[%s14528_s0 + $0x110] sm:$0xff]  ;;  %v9842_v22 = vld [vmem:[%s14527_s1 + $0x608] ss:$16 sps:$4 sm:$0xff]  }
  0x89   :  { %v9845_v26 = vld [vmem:[%s14527_s1 + $0x620] ss:$16 sps:$4 sm:$0xff]  }
  0x8a   :  { %6571 = vmatmul.mubr.bf16.gmra.mrb[4].mxu0 %v8253_v25  ;;  %7387 = vmatmul.mubr.bf16.gmra.mrb[4].mxu1 %v8253_v25  ;;  %v8256_v25 = vcombine.high %v47_v21, %v47_v21 }
  0x8b   :  { %6584 = vmatpush1.bf16.msra.mxu0 %v9753_v23  ;;  %7400 = vmatpush1.bf16.msra.mxu1 %v9756_v24  ;;  %v9847_v23 = vld [vmem:[%s14527_s1 + $0x624] ss:$16 sps:$4 sm:$0xff]   ;;  %v9850_v24 = vld [vmem:[%s14527_s1 + $0x62c] ss:$16 sps:$4 sm:$0xff]  }
  0x8c   :  { %6585 = vmatprep.subr.bf16.mxu0 %v9761_v28  ;;  %7401 = vmatprep.subr.bf16.mxu1 %v9764_v29  ;;  %v9853_v28 = vld [vmem:[%s14527_s1 + $0x644] ss:$16 sps:$4 sm:$0xff]   ;;  %v9856_v29 = vld [vmem:[%s14527_s1 + $0x64c] ss:$16 sps:$4 sm:$0xff]  }
  0x8d   :  { %6611 = vmatprep.mubr.bf16.mxu0 %v8224_v30  ;;  %7427 = vmatprep.mubr.bf16.mxu1 %v8224_v30  ;;  %v9851_v30 = vld [vmem:[%s14527_s1 + $0x640] ss:$16 sps:$4 sm:$0xff]  }
  0x8f   :  { %6586 = vmatpush1.bf16.msra.mxu0 %v9759_v31  ;;  %7402 = vmatpush1.bf16.msra.mxu1 %v9762_v32  ;;  %v8255_v31 = vcombine.low %v47_v21, %v47_v21  ;;  %v11790_v32 = vld [vmem:[%s14528_s0 + $0x18] sm:$0xff] }
  0x90   :  { %6587 = vmatprep.subr.bf16.mxu0 %v9767_v33  ;;  %7403 = vmatprep.subr.bf16.mxu1 %v9770_v34  ;;  %v11795_v33 = vld [vmem:[%s14528_s0 + $0x98] sm:$0xff] }
  0x91   :  { %v9854_v34 = vld [vmem:[%s14527_s1 + $0x648] ss:$16 sps:$4 sm:$0xff]   ;;  %v9936_v21 = vld [vmem:[%s14527_s1 + $0x7ec] ss:$16 sps:$4 sm:$0xff]  }
  0x93   :  { %6588 = vmatpush1.bf16.msra.mxu0 %v9765_v35  ;;  %7404 = vmatpush1.bf16.msra.mxu1 %v9768_v36  ;;  %v9859_v35 = vld [vmem:[%s14527_s1 + $0x664] ss:$16 sps:$4 sm:$0xff]   ;;  %v9862_v36 = vld [vmem:[%s14527_s1 + $0x66c] ss:$16 sps:$4 sm:$0xff]  }
  0x94   :  { %6589 = vmatprep.subr.bf16.mxu0 %v9773_v37  ;;  %7405 = vmatprep.subr.bf16.mxu1 %v9776_v38  ;;  %v8226_v37 = vcombine.high %v11790_v32, %v11795_v33  ;;  %v9857_v38 = vld [vmem:[%s14527_s1 + $0x660] ss:$16 sps:$4 sm:$0xff]  }
  0x97   :  { %6590 = vmatpush1.bf16.msra.mxu0 %v9771_v39  ;;  %7406 = vmatpush1.bf16.msra.mxu1 %v9774_v40  ;;  %v9860_v39 = vld [vmem:[%s14527_s1 + $0x668] ss:$16 sps:$4 sm:$0xff]   ;;  %v9865_v40 = vld [vmem:[%s14527_s1 + $0x684] ss:$16 sps:$4 sm:$0xff]  }
  0x98   :  { %6591 = vmatprep.subr.bf16.mxu0 %v9779_v41  ;;  %7407 = vmatprep.subr.bf16.mxu1 %v9782_v42  ;;  %v9868_v41 = vld [vmem:[%s14527_s1 + $0x68c] ss:$16 sps:$4 sm:$0xff]   ;;  %v9863_v42 = vld [vmem:[%s14527_s1 + $0x680] ss:$16 sps:$4 sm:$0xff]  }
  0x9b   :  { %6592 = vmatpush1.bf16.msra.mxu0 %v9777_v43  ;;  %7408 = vmatpush1.bf16.msra.mxu1 %v9780_v44  ;;  %v9866_v43 = vld [vmem:[%s14527_s1 + $0x688] ss:$16 sps:$4 sm:$0xff]   ;;  %v9871_v44 = vld [vmem:[%s14527_s1 + $0x6a4] ss:$16 sps:$4 sm:$0xff]  }
  0x9c   :  { %6593 = vmatprep.subr.bf16.mxu0 %v9785_v45  ;;  %7409 = vmatprep.subr.bf16.mxu1 %v9788_v46  ;;  %v9874_v45 = vld [vmem:[%s14527_s1 + $0x6ac] ss:$16 sps:$4 sm:$0xff]   ;;  %v9869_v46 = vld [vmem:[%s14527_s1 + $0x6a0] ss:$16 sps:$4 sm:$0xff]  }
  0x9f   :  { %6594 = vmatpush1.bf16.msra.mxu0 %v9783_v47  ;;  %7410 = vmatpush1.bf16.msra.mxu1 %v9786_v48  ;;  %v9872_v47 = vld [vmem:[%s14527_s1 + $0x6a8] ss:$16 sps:$4 sm:$0xff]   ;;  %v9877_v48 = vld [vmem:[%s14527_s1 + $0x6c4] ss:$16 sps:$4 sm:$0xff]  }
  0xa0   :  { %6595 = vmatprep.subr.bf16.mxu0 %v9791_v49  ;;  %7411 = vmatprep.subr.bf16.mxu1 %v9794_v50  ;;  %v9880_v49 = vld [vmem:[%s14527_s1 + $0x6cc] ss:$16 sps:$4 sm:$0xff]   ;;  %v9875_v50 = vld [vmem:[%s14527_s1 + $0x6c0] ss:$16 sps:$4 sm:$0xff]  }
  0xa3   :  { %6596 = vmatpush1.bf16.msra.mxu0 %v9789_v51  ;;  %7412 = vmatpush1.bf16.msra.mxu1 %v9792_v52  ;;  %v9878_v51 = vld [vmem:[%s14527_s1 + $0x6c8] ss:$16 sps:$4 sm:$0xff]   ;;  %v9883_v52 = vld [vmem:[%s14527_s1 + $0x6e4] ss:$16 sps:$4 sm:$0xff]  }
  0xa4   :  { %6597 = vmatprep.subr.bf16.mxu0 %v9797_v53  ;;  %7413 = vmatprep.subr.bf16.mxu1 %v9800_v54  ;;  %v9886_v53 = vld [vmem:[%s14527_s1 + $0x6ec] ss:$16 sps:$4 sm:$0xff]   ;;  %v9881_v54 = vld [vmem:[%s14527_s1 + $0x6e0] ss:$16 sps:$4 sm:$0xff]  }
  0xa7   :  { %6598 = vmatpush1.bf16.msra.mxu0 %v9795_v55  ;;  %7414 = vmatpush1.bf16.msra.mxu1 %v9798_v56  ;;  %v9884_v55 = vld [vmem:[%s14527_s1 + $0x6e8] ss:$16 sps:$4 sm:$0xff]   ;;  %v9889_v56 = vld [vmem:[%s14527_s1 + $0x704] ss:$16 sps:$4 sm:$0xff]  }
  0xa8   :  { %6599 = vmatprep.subr.bf16.mxu0 %v9803_v57  ;;  %7415 = vmatprep.subr.bf16.mxu1 %v9806_v58  ;;  %v9892_v57 = vld [vmem:[%s14527_s1 + $0x70c] ss:$16 sps:$4 sm:$0xff]   ;;  %v9887_v58 = vld [vmem:[%s14527_s1 + $0x700] ss:$16 sps:$4 sm:$0xff]  }
  0xab   :  { %6600 = vmatpush1.bf16.msra.mxu0 %v9801_v59  ;;  %7416 = vmatpush1.bf16.msra.mxu1 %v9804_v60  ;;  %v9890_v59 = vld [vmem:[%s14527_s1 + $0x708] ss:$16 sps:$4 sm:$0xff]   ;;  %v9895_v60 = vld [vmem:[%s14527_s1 + $0x724] ss:$16 sps:$4 sm:$0xff]  }
  0xac   :  { %6601 = vmatprep.subr.bf16.mxu0 %v9809_v61  ;;  %7417 = vmatprep.subr.bf16.mxu1 %v9812_v62  ;;  %v9898_v61 = vld [vmem:[%s14527_s1 + $0x72c] ss:$16 sps:$4 sm:$0xff]   ;;  %v9893_v62 = vld [vmem:[%s14527_s1 + $0x720] ss:$16 sps:$4 sm:$0xff]  }
  0xaf   :  { %6602 = vmatpush1.bf16.msra.mxu0 %v9807_v63  ;;  %7418 = vmatpush1.bf16.msra.mxu1 %v9810_v0  ;;  %v9896_v63 = vld [vmem:[%s14527_s1 + $0x728] ss:$16 sps:$4 sm:$0xff]   ;;  %v9901_v0 = vld [vmem:[%s14527_s1 + $0x744] ss:$16 sps:$4 sm:$0xff]  }
  0xb0   :  { %6603 = vmatprep.subr.bf16.mxu0 %v9815_v1  ;;  %7419 = vmatprep.subr.bf16.mxu1 %v9818_v2  ;;  %v9904_v1 = vld [vmem:[%s14527_s1 + $0x74c] ss:$16 sps:$4 sm:$0xff]   ;;  %v9899_v2 = vld [vmem:[%s14527_s1 + $0x740] ss:$16 sps:$4 sm:$0xff]  }
  0xb3   :  { %6604 = vmatpush1.bf16.msra.mxu0 %v9813_v3  ;;  %7420 = vmatpush1.bf16.msra.mxu1 %v9816_v4  ;;  %v9902_v3 = vld [vmem:[%s14527_s1 + $0x748] ss:$16 sps:$4 sm:$0xff]   ;;  %v9907_v4 = vld [vmem:[%s14527_s1 + $0x764] ss:$16 sps:$4 sm:$0xff]  }
  0xb4   :  { %6605 = vmatprep.subr.bf16.mxu0 %v9821_v5  ;;  %7421 = vmatprep.subr.bf16.mxu1 %v9824_v6  ;;  %v9910_v5 = vld [vmem:[%s14527_s1 + $0x76c] ss:$16 sps:$4 sm:$0xff]   ;;  %v9905_v6 = vld [vmem:[%s14527_s1 + $0x760] ss:$16 sps:$4 sm:$0xff]  }
  0xb7   :  { %6606 = vmatpush1.bf16.msra.mxu0 %v9819_v7  ;;  %7422 = vmatpush1.bf16.msra.mxu1 %v9822_v8  ;;  %v9908_v7 = vld [vmem:[%s14527_s1 + $0x768] ss:$16 sps:$4 sm:$0xff]   ;;  %v9913_v8 = vld [vmem:[%s14527_s1 + $0x784] ss:$16 sps:$4 sm:$0xff]  }
  0xb8   :  { %6607 = vmatprep.subr.bf16.mxu0 %v9828_v9  ;;  %7423 = vmatprep.subr.bf16.mxu1 %v9831_v10  ;;  %v9916_v9 = vld [vmem:[%s14527_s1 + $0x78c] ss:$16 sps:$4 sm:$0xff]   ;;  %v9911_v10 = vld [vmem:[%s14527_s1 + $0x780] ss:$16 sps:$4 sm:$0xff]  }
  0xbb   :  { %6608 = vmatpush1.bf16.msra.mxu0 %v9826_v11  ;;  %7424 = vmatpush1.bf16.msra.mxu1 %v9829_v12  ;;  %v9914_v11 = vld [vmem:[%s14527_s1 + $0x788] ss:$16 sps:$4 sm:$0xff]   ;;  %v9919_v12 = vld [vmem:[%s14527_s1 + $0x7a4] ss:$16 sps:$4 sm:$0xff]  }
  0xbc   :  { %6609 = vmatprep.subr.bf16.mxu0 %v9835_v13  ;;  %7425 = vmatprep.subr.bf16.mxu1 %v9838_v14  ;;  %v9922_v13 = vld [vmem:[%s14527_s1 + $0x7ac] ss:$16 sps:$4 sm:$0xff]   ;;  %v9917_v14 = vld [vmem:[%s14527_s1 + $0x7a0] ss:$16 sps:$4 sm:$0xff]  }
  0xbf   :  { %6610 = vmatpush1.bf16.msra.mxu0 %v9833_v15  ;;  %7426 = vmatpush1.bf16.msra.mxu1 %v9836_v16  ;;  %v9920_v15 = vld [vmem:[%s14527_s1 + $0x7a8] ss:$16 sps:$4 sm:$0xff]   ;;  %v9926_v16 = vld [vmem:[%s14527_s1 + $0x7c4] ss:$16 sps:$4 sm:$0xff]  }
  0xc0   :  { %6630 = vmatprep.subr.bf16.mxu0 %v9841_v17  ;;  %7446 = vmatprep.subr.bf16.mxu1 %v9844_v18  ;;  %v9929_v17 = vld [vmem:[%s14527_s1 + $0x7cc] ss:$16 sps:$4 sm:$0xff]   ;;  %v9924_v18 = vld [vmem:[%s14527_s1 + $0x7c0] ss:$16 sps:$4 sm:$0xff]  }
  0xc2   :  { %6612 = vmatmul.mubr.bf16.vlgmr.msra.gmra.mrb[0].mxu0 %v8223_v19  ;;  %7428 = vmatmul.mubr.bf16.vlgmr.msra.gmra.mrb[0].mxu1 %v8223_v19  ;;  %v9927_v19 = vld [vmem:[%s14527_s1 + $0x7c8] ss:$16 sps:$4 sm:$0xff]  }
  0xc3   :  { %6631 = vmatpush1.bf16.msra.mxu0 %v9839_v20  ;;  %7447 = vmatpush1.bf16.msra.mxu1 %v9842_v22  ;;  %v9933_v20 = vld [vmem:[%s14527_s1 + $0x7e4] ss:$16 sps:$4 sm:$0xff]   ;;  %v9931_v22 = vld [vmem:[%s14527_s1 + $0x7e0] ss:$16 sps:$4 sm:$0xff]  }
  0xc4   :  { %6632 = vmatprep.subr.bf16.mxu0 %v9847_v23  ;;  %7448 = vmatprep.subr.bf16.mxu1 %v9850_v24  ;;  %v9934_v23 = vld [vmem:[%s14527_s1 + $0x7e8] ss:$16 sps:$4 sm:$0xff]   ;;  %v9939_v24 = vld [vmem:[%s14527_s1 + $0x804] ss:$16 sps:$4 sm:$0xff]  }
  0xc5   :  { %6621 = vmatprep.mubr.bf16.mxu0 %v8256_v25  ;;  %7437 = vmatprep.mubr.bf16.mxu1 %v8256_v25  ;;  %v9942_v25 = vld [vmem:[%s14527_s1 + $0x80c] ss:$16 sps:$4 sm:$0xff]  }
  0xc7   :  { %6633 = vmatpush1.bf16.msra.mxu0 %v9845_v26  ;;  %7449 = vmatpush1.bf16.msra.mxu1 %v9848_v27  ;;  %v8225_v26 = vcombine.low %v11790_v32, %v11795_v33  ;;  %v9937_v27 = vld [vmem:[%s14527_s1 + $0x800] ss:$16 sps:$4 sm:$0xff]  }
  0xc8   :  { %6634 = vmatprep.subr.bf16.mxu0 %v9853_v28  ;;  %7450 = vmatprep.subr.bf16.mxu1 %v9856_v29  ;;  %v48_v28 = vld [vmem:[%s14528_s0 + $0x118] sm:$0xff]  ;;  %v9943_v33 = vld [vmem:[%s14527_s1 + $0x820] ss:$16 sps:$4 sm:$0xff]  }
  0xc9   :  { %v9940_v29 = vld [vmem:[%s14527_s1 + $0x808] ss:$16 sps:$4 sm:$0xff]   ;;  %v8258_v32 = vcombine.high %v48_v28, %v48_v28 }
  0xca   :  { %6622 = vmatmul.mubr.bf16.gmra.mrb[4].mxu0 %v8255_v31  ;;  %7438 = vmatmul.mubr.bf16.gmra.mrb[4].mxu1 %v8255_v31  ;;  %v9948_v31 = vld [vmem:[%s14527_s1 + $0x82c] ss:$16 sps:$4 sm:$0xff]  }
  0xcb   :  { %6635 = vmatpush1.bf16.msra.mxu0 %v9851_v30  ;;  %7451 = vmatpush1.bf16.msra.mxu1 %v9854_v34  ;;  %v9945_v30 = vld [vmem:[%s14527_s1 + $0x824] ss:$16 sps:$4 sm:$0xff]   ;;  %v9946_v34 = vld [vmem:[%s14527_s1 + $0x828] ss:$16 sps:$4 sm:$0xff]  }
  0xcc   :  { %6636 = vmatprep.subr.bf16.mxu0 %v9859_v35  ;;  %7452 = vmatprep.subr.bf16.mxu1 %v9862_v36  ;;  %v9951_v35 = vld [vmem:[%s14527_s1 + $0x844] ss:$16 sps:$4 sm:$0xff]   ;;  %v9954_v36 = vld [vmem:[%s14527_s1 + $0x84c] ss:$16 sps:$4 sm:$0xff]  }
  0xcd   :  { %6662 = vmatprep.mubr.bf16.mxu0 %v8226_v37  ;;  %7478 = vmatprep.mubr.bf16.mxu1 %v8226_v37  ;;  %v9949_v37 = vld [vmem:[%s14527_s1 + $0x840] ss:$16 sps:$4 sm:$0xff]  }
  0xcf   :  { %6637 = vmatpush1.bf16.msra.mxu0 %v9857_v38  ;;  %7453 = vmatpush1.bf16.msra.mxu1 %v9860_v39  ;;  %v11999_v38 = vld [vmem:[%s14528_s0 + $0x20] sm:$0xff]  ;;  %v8257_v39 = vcombine.low %v48_v28, %v48_v28  ;;  %v10034_v28 = vld [vmem:[%s14527_s1 + $0x9ec] ss:$16 sps:$4 sm:$0xff]  }
  0xd0   :  { %6638 = vmatprep.subr.bf16.mxu0 %v9865_v40  ;;  %7454 = vmatprep.subr.bf16.mxu1 %v9868_v41  ;;  %v12004_v40 = vld [vmem:[%s14528_s0 + $0xa0] sm:$0xff]  ;;  %v9952_v41 = vld [vmem:[%s14527_s1 + $0x848] ss:$16 sps:$4 sm:$0xff]  }
  0xd3   :  { %6639 = vmatpush1.bf16.msra.mxu0 %v9863_v42  ;;  %7455 = vmatpush1.bf16.msra.mxu1 %v9866_v43  ;;  %v9957_v42 = vld [vmem:[%s14527_s1 + $0x864] ss:$16 sps:$4 sm:$0xff]   ;;  %v9960_v43 = vld [vmem:[%s14527_s1 + $0x86c] ss:$16 sps:$4 sm:$0xff]  }
  0xd4   :  { %6640 = vmatprep.subr.bf16.mxu0 %v9871_v44  ;;  %7456 = vmatprep.subr.bf16.mxu1 %v9874_v45  ;;  %v8228_v44 = vcombine.high %v11999_v38, %v12004_v40  ;;  %v9955_v45 = vld [vmem:[%s14527_s1 + $0x860] ss:$16 sps:$4 sm:$0xff]  }
  0xd7   :  { %6641 = vmatpush1.bf16.msra.mxu0 %v9869_v46  ;;  %7457 = vmatpush1.bf16.msra.mxu1 %v9872_v47  ;;  %v9958_v46 = vld [vmem:[%s14527_s1 + $0x868] ss:$16 sps:$4 sm:$0xff]   ;;  %v9963_v47 = vld [vmem:[%s14527_s1 + $0x884] ss:$16 sps:$4 sm:$0xff]  }
  0xd8   :  { %6642 = vmatprep.subr.bf16.mxu0 %v9877_v48  ;;  %7458 = vmatprep.subr.bf16.mxu1 %v9880_v49  ;;  %v9966_v48 = vld [vmem:[%s14527_s1 + $0x88c] ss:$16 sps:$4 sm:$0xff]   ;;  %v9961_v49 = vld [vmem:[%s14527_s1 + $0x880] ss:$16 sps:$4 sm:$0xff]  }
  0xdb   :  { %6643 = vmatpush1.bf16.msra.mxu0 %v9875_v50  ;;  %7459 = vmatpush1.bf16.msra.mxu1 %v9878_v51  ;;  %v9964_v50 = vld [vmem:[%s14527_s1 + $0x888] ss:$16 sps:$4 sm:$0xff]   ;;  %v9969_v51 = vld [vmem:[%s14527_s1 + $0x8a4] ss:$16 sps:$4 sm:$0xff]  }
  0xdc   :  { %6644 = vmatprep.subr.bf16.mxu0 %v9883_v52  ;;  %7460 = vmatprep.subr.bf16.mxu1 %v9886_v53  ;;  %v9972_v52 = vld [vmem:[%s14527_s1 + $0x8ac] ss:$16 sps:$4 sm:$0xff]   ;;  %v9967_v53 = vld [vmem:[%s14527_s1 + $0x8a0] ss:$16 sps:$4 sm:$0xff]  }
  0xdf   :  { %6645 = vmatpush1.bf16.msra.mxu0 %v9881_v54  ;;  %7461 = vmatpush1.bf16.msra.mxu1 %v9884_v55  ;;  %v9970_v54 = vld [vmem:[%s14527_s1 + $0x8a8] ss:$16 sps:$4 sm:$0xff]   ;;  %v9975_v55 = vld [vmem:[%s14527_s1 + $0x8c4] ss:$16 sps:$4 sm:$0xff]  }
  0xe0   :  { %6646 = vmatprep.subr.bf16.mxu0 %v9889_v56  ;;  %7462 = vmatprep.subr.bf16.mxu1 %v9892_v57  ;;  %v9978_v56 = vld [vmem:[%s14527_s1 + $0x8cc] ss:$16 sps:$4 sm:$0xff]   ;;  %v9973_v57 = vld [vmem:[%s14527_s1 + $0x8c0] ss:$16 sps:$4 sm:$0xff]  }
  0xe3   :  { %6647 = vmatpush1.bf16.msra.mxu0 %v9887_v58  ;;  %7463 = vmatpush1.bf16.msra.mxu1 %v9890_v59  ;;  %v9976_v58 = vld [vmem:[%s14527_s1 + $0x8c8] ss:$16 sps:$4 sm:$0xff]   ;;  %v9981_v59 = vld [vmem:[%s14527_s1 + $0x8e4] ss:$16 sps:$4 sm:$0xff]  }
  0xe4   :  { %6648 = vmatprep.subr.bf16.mxu0 %v9895_v60  ;;  %7464 = vmatprep.subr.bf16.mxu1 %v9898_v61  ;;  %v9984_v60 = vld [vmem:[%s14527_s1 + $0x8ec] ss:$16 sps:$4 sm:$0xff]   ;;  %v9979_v61 = vld [vmem:[%s14527_s1 + $0x8e0] ss:$16 sps:$4 sm:$0xff]  }
  0xe7   :  { %6649 = vmatpush1.bf16.msra.mxu0 %v9893_v62  ;;  %7465 = vmatpush1.bf16.msra.mxu1 %v9896_v63  ;;  %v9982_v62 = vld [vmem:[%s14527_s1 + $0x8e8] ss:$16 sps:$4 sm:$0xff]   ;;  %v9987_v63 = vld [vmem:[%s14527_s1 + $0x904] ss:$16 sps:$4 sm:$0xff]  }
  0xe8   :  { %6650 = vmatprep.subr.bf16.mxu0 %v9901_v0  ;;  %7466 = vmatprep.subr.bf16.mxu1 %v9904_v1  ;;  %v9990_v0 = vld [vmem:[%s14527_s1 + $0x90c] ss:$16 sps:$4 sm:$0xff]   ;;  %v9985_v1 = vld [vmem:[%s14527_s1 + $0x900] ss:$16 sps:$4 sm:$0xff]  }
  0xeb   :  { %6651 = vmatpush1.bf16.msra.mxu0 %v9899_v2  ;;  %7467 = vmatpush1.bf16.msra.mxu1 %v9902_v3  ;;  %v9988_v2 = vld [vmem:[%s14527_s1 + $0x908] ss:$16 sps:$4 sm:$0xff]   ;;  %v9993_v3 = vld [vmem:[%s14527_s1 + $0x924] ss:$16 sps:$4 sm:$0xff]  }
  0xec   :  { %6652 = vmatprep.subr.bf16.mxu0 %v9907_v4  ;;  %7468 = vmatprep.subr.bf16.mxu1 %v9910_v5  ;;  %v9996_v4 = vld [vmem:[%s14527_s1 + $0x92c] ss:$16 sps:$4 sm:$0xff]   ;;  %v9991_v5 = vld [vmem:[%s14527_s1 + $0x920] ss:$16 sps:$4 sm:$0xff]  }
  0xef   :  { %6653 = vmatpush1.bf16.msra.mxu0 %v9905_v6  ;;  %7469 = vmatpush1.bf16.msra.mxu1 %v9908_v7  ;;  %v9994_v6 = vld [vmem:[%s14527_s1 + $0x928] ss:$16 sps:$4 sm:$0xff]   ;;  %v9999_v7 = vld [vmem:[%s14527_s1 + $0x944] ss:$16 sps:$4 sm:$0xff]  }
  0xf0   :  { %6654 = vmatprep.subr.bf16.mxu0 %v9913_v8  ;;  %7470 = vmatprep.subr.bf16.mxu1 %v9916_v9  ;;  %v10002_v8 = vld [vmem:[%s14527_s1 + $0x94c] ss:$16 sps:$4 sm:$0xff]   ;;  %v9997_v9 = vld [vmem:[%s14527_s1 + $0x940] ss:$16 sps:$4 sm:$0xff]  }
  0xf3   :  { %6655 = vmatpush1.bf16.msra.mxu0 %v9911_v10  ;;  %7471 = vmatpush1.bf16.msra.mxu1 %v9914_v11  ;;  %v10000_v10 = vld [vmem:[%s14527_s1 + $0x948] ss:$16 sps:$4 sm:$0xff]   ;;  %v10005_v11 = vld [vmem:[%s14527_s1 + $0x964] ss:$16 sps:$4 sm:$0xff]  }
  0xf4   :  { %6656 = vmatprep.subr.bf16.mxu0 %v9919_v12  ;;  %7472 = vmatprep.subr.bf16.mxu1 %v9922_v13  ;;  %v10008_v12 = vld [vmem:[%s14527_s1 + $0x96c] ss:$16 sps:$4 sm:$0xff]   ;;  %v10003_v13 = vld [vmem:[%s14527_s1 + $0x960] ss:$16 sps:$4 sm:$0xff]  }
  0xf7   :  { %6657 = vmatpush1.bf16.msra.mxu0 %v9917_v14  ;;  %7473 = vmatpush1.bf16.msra.mxu1 %v9920_v15  ;;  %v10006_v14 = vld [vmem:[%s14527_s1 + $0x968] ss:$16 sps:$4 sm:$0xff]   ;;  %v10011_v15 = vld [vmem:[%s14527_s1 + $0x984] ss:$16 sps:$4 sm:$0xff]  }
  0xf8   :  { %6658 = vmatprep.subr.bf16.mxu0 %v9926_v16  ;;  %7474 = vmatprep.subr.bf16.mxu1 %v9929_v17  ;;  %v10014_v16 = vld [vmem:[%s14527_s1 + $0x98c] ss:$16 sps:$4 sm:$0xff]   ;;  %v10009_v17 = vld [vmem:[%s14527_s1 + $0x980] ss:$16 sps:$4 sm:$0xff]  }
  0xfb   :  { %6659 = vmatpush1.bf16.msra.mxu0 %v9924_v18  ;;  %7475 = vmatpush1.bf16.msra.mxu1 %v9927_v19  ;;  %v10012_v18 = vld [vmem:[%s14527_s1 + $0x988] ss:$16 sps:$4 sm:$0xff]   ;;  %v10017_v19 = vld [vmem:[%s14527_s1 + $0x9a4] ss:$16 sps:$4 sm:$0xff]  }
  0xfc   :  { %6660 = vmatprep.subr.bf16.mxu0 %v9933_v20  ;;  %7476 = vmatprep.subr.bf16.mxu1 %v9936_v21  ;;  %v10020_v20 = vld [vmem:[%s14527_s1 + $0x9ac] ss:$16 sps:$4 sm:$0xff]   ;;  %v10015_v21 = vld [vmem:[%s14527_s1 + $0x9a0] ss:$16 sps:$4 sm:$0xff]  }
  0xff   :  { %6661 = vmatpush1.bf16.msra.mxu0 %v9931_v22  ;;  %7477 = vmatpush1.bf16.msra.mxu1 %v9934_v23  ;;  %v10018_v22 = vld [vmem:[%s14527_s1 + $0x9a8] ss:$16 sps:$4 sm:$0xff]   ;;  %v10024_v23 = vld [vmem:[%s14527_s1 + $0x9c4] ss:$16 sps:$4 sm:$0xff]  }
 0x100   :  { %6681 = vmatprep.subr.bf16.mxu0 %v9939_v24  ;;  %7497 = vmatprep.subr.bf16.mxu1 %v9942_v25  ;;  %v10027_v24 = vld [vmem:[%s14527_s1 + $0x9cc] ss:$16 sps:$4 sm:$0xff]   ;;  %v10022_v25 = vld [vmem:[%s14527_s1 + $0x9c0] ss:$16 sps:$4 sm:$0xff]  }
 0x102   :  { %6663 = vmatmul.mubr.bf16.vlgmr.msra.gmra.mrb[0].mxu0 %v8225_v26  ;;  %7479 = vmatmul.mubr.bf16.vlgmr.msra.gmra.mrb[0].mxu1 %v8225_v26  ;;  %v10025_v26 = vld [vmem:[%s14527_s1 + $0x9c8] ss:$16 sps:$4 sm:$0xff]  }
 0x103   :  { %6682 = vmatpush1.bf16.msra.mxu0 %v9937_v27  ;;  %7498 = vmatpush1.bf16.msra.mxu1 %v9940_v29  ;;  %v10031_v27 = vld [vmem:[%s14527_s1 + $0x9e4] ss:$16 sps:$4 sm:$0xff]   ;;  %v10029_v29 = vld [vmem:[%s14527_s1 + $0x9e0] ss:$16 sps:$4 sm:$0xff]  }
 0x104   :  { %6683 = vmatprep.subr.bf16.mxu0 %v9945_v30  ;;  %7499 = vmatprep.subr.bf16.mxu1 %v9948_v31  ;;  %v10032_v30 = vld [vmem:[%s14527_s1 + $0x9e8] ss:$16 sps:$4 sm:$0xff]   ;;  %v10037_v31 = vld [vmem:[%s14527_s1 + $0xa04] ss:$16 sps:$4 sm:$0xff]  }
 0x105   :  { %6672 = vmatprep.mubr.bf16.mxu0 %v8258_v32  ;;  %7488 = vmatprep.mubr.bf16.mxu1 %v8258_v32  ;;  %v10040_v32 = vld [vmem:[%s14527_s1 + $0xa0c] ss:$16 sps:$4 sm:$0xff]  }
 0x107   :  { %6684 = vmatpush1.bf16.msra.mxu0 %v9943_v33  ;;  %7500 = vmatpush1.bf16.msra.mxu1 %v9946_v34  ;;  %v49_v33 = vld [vmem:[%s14528_s0 + $0x120] sm:$0xff]  ;;  %v8227_v34 = vcombine.low %v11999_v38, %v12004_v40  ;;  %v10046_v38 = vld [vmem:[%s14527_s1 + $0xa2c] ss:$16 sps:$4 sm:$0xff]   ;;  %v10044_v40 = vld [vmem:[%s14527_s1 + $0xa28] ss:$16 sps:$4 sm:$0xff]  }
 0x108   :  { %6685 = vmatprep.subr.bf16.mxu0 %v9951_v35  ;;  %7501 = vmatprep.subr.bf16.mxu1 %v9954_v36  ;;  %v10035_v35 = vld [vmem:[%s14527_s1 + $0xa00] ss:$16 sps:$4 sm:$0xff]   ;;  %v10038_v36 = vld [vmem:[%s14527_s1 + $0xa08] ss:$16 sps:$4 sm:$0xff]  }
 0x10a   :  { %6673 = vmatmul.mubr.bf16.gmra.mrb[4].mxu0 %v8257_v39  ;;  %7489 = vmatmul.mubr.bf16.gmra.mrb[4].mxu1 %v8257_v39  ;;  %v10041_v39 = vld [vmem:[%s14527_s1 + $0xa20] ss:$16 sps:$4 sm:$0xff]  }
 0x10b   :  { %6686 = vmatpush1.bf16.msra.mxu0 %v9949_v37  ;;  %7502 = vmatpush1.bf16.msra.mxu1 %v9952_v41  ;;  %v10043_v37 = vld [vmem:[%s14527_s1 + $0xa24] ss:$16 sps:$4 sm:$0xff]   ;;  %v8260_v41 = vcombine.high %v49_v33, %v49_v33 }
 0x10c   :  { %6687 = vmatprep.subr.bf16.mxu0 %v9957_v42  ;;  %7503 = vmatprep.subr.bf16.mxu1 %v9960_v43  ;;  %v10049_v42 = vld [vmem:[%s14527_s1 + $0xa44] ss:$16 sps:$4 sm:$0xff]   ;;  %v10052_v43 = vld [vmem:[%s14527_s1 + $0xa4c] ss:$16 sps:$4 sm:$0xff]  }
 0x10d   :  { %6713 = vmatprep.mubr.bf16.mxu0 %v8228_v44  ;;  %7529 = vmatprep.mubr.bf16.mxu1 %v8228_v44  ;;  %v12205_v44 = vld [vmem:[%s14528_s0 + $0x28] sm:$0xff] }
 0x10f   :  { %6688 = vmatpush1.bf16.msra.mxu0 %v9955_v45  ;;  %7504 = vmatpush1.bf16.msra.mxu1 %v9958_v46  ;;  %v12210_v45 = vld [vmem:[%s14528_s0 + $0xa8] sm:$0xff]  ;;  %v8259_v46 = vcombine.low %v49_v33, %v49_v33 }
 0x110   :  { %6689 = vmatprep.subr.bf16.mxu0 %v9963_v47  ;;  %7505 = vmatprep.subr.bf16.mxu1 %v9966_v48  ;;  %v10047_v47 = vld [vmem:[%s14527_s1 + $0xa40] ss:$16 sps:$4 sm:$0xff]   ;;  %v10050_v48 = vld [vmem:[%s14527_s1 + $0xa48] ss:$16 sps:$4 sm:$0xff]  }
 0x111   :  { %v10123_v33 = vld [vmem:[%s14527_s1 + $0xbc8] ss:$16 sps:$4 sm:$0xff]  }
 0x113   :  { %6690 = vmatpush1.bf16.msra.mxu0 %v9961_v49  ;;  %7506 = vmatpush1.bf16.msra.mxu1 %v9964_v50  ;;  %v10055_v49 = vld [vmem:[%s14527_s1 + $0xa64] ss:$16 sps:$4 sm:$0xff]   ;;  %v10058_v50 = vld [vmem:[%s14527_s1 + $0xa6c] ss:$16 sps:$4 sm:$0xff]  }
 0x114   :  { %6691 = vmatprep.subr.bf16.mxu0 %v9969_v51  ;;  %7507 = vmatprep.subr.bf16.mxu1 %v9972_v52  ;;  %v8230_v51 = vcombine.high %v12205_v44, %v12210_v45  ;;  %v10053_v52 = vld [vmem:[%s14527_s1 + $0xa60] ss:$16 sps:$4 sm:$0xff]  }
 0x117   :  { %6692 = vmatpush1.bf16.msra.mxu0 %v9967_v53  ;;  %7508 = vmatpush1.bf16.msra.mxu1 %v9970_v54  ;;  %v10056_v53 = vld [vmem:[%s14527_s1 + $0xa68] ss:$16 sps:$4 sm:$0xff]   ;;  %v10061_v54 = vld [vmem:[%s14527_s1 + $0xa84] ss:$16 sps:$4 sm:$0xff]  }
 0x118   :  { %6693 = vmatprep.subr.bf16.mxu0 %v9975_v55  ;;  %7509 = vmatprep.subr.bf16.mxu1 %v9978_v56  ;;  %v10064_v55 = vld [vmem:[%s14527_s1 + $0xa8c] ss:$16 sps:$4 sm:$0xff]   ;;  %v10059_v56 = vld [vmem:[%s14527_s1 + $0xa80] ss:$16 sps:$4 sm:$0xff]  }
 0x11b   :  { %6694 = vmatpush1.bf16.msra.mxu0 %v9973_v57  ;;  %7510 = vmatpush1.bf16.msra.mxu1 %v9976_v58  ;;  %v10062_v57 = vld [vmem:[%s14527_s1 + $0xa88] ss:$16 sps:$4 sm:$0xff]   ;;  %v10067_v58 = vld [vmem:[%s14527_s1 + $0xaa4] ss:$16 sps:$4 sm:$0xff]  }
 0x11c   :  { %6695 = vmatprep.subr.bf16.mxu0 %v9981_v59  ;;  %7511 = vmatprep.subr.bf16.mxu1 %v9984_v60  ;;  %v10070_v59 = vld [vmem:[%s14527_s1 + $0xaac] ss:$16 sps:$4 sm:$0xff]   ;;  %v10065_v60 = vld [vmem:[%s14527_s1 + $0xaa0] ss:$16 sps:$4 sm:$0xff]  }
 0x11f   :  { %6696 = vmatpush1.bf16.msra.mxu0 %v9979_v61  ;;  %7512 = vmatpush1.bf16.msra.mxu1 %v9982_v62  ;;  %v10068_v61 = vld [vmem:[%s14527_s1 + $0xaa8] ss:$16 sps:$4 sm:$0xff]   ;;  %v10073_v62 = vld [vmem:[%s14527_s1 + $0xac4] ss:$16 sps:$4 sm:$0xff]  }
 0x120   :  { %6697 = vmatprep.subr.bf16.mxu0 %v9987_v63  ;;  %7513 = vmatprep.subr.bf16.mxu1 %v9990_v0  ;;  %v10076_v63 = vld [vmem:[%s14527_s1 + $0xacc] ss:$16 sps:$4 sm:$0xff]   ;;  %v10071_v0 = vld [vmem:[%s14527_s1 + $0xac0] ss:$16 sps:$4 sm:$0xff]  }
 0x123   :  { %6698 = vmatpush1.bf16.msra.mxu0 %v9985_v1  ;;  %7514 = vmatpush1.bf16.msra.mxu1 %v9988_v2  ;;  %v10074_v1 = vld [vmem:[%s14527_s1 + $0xac8] ss:$16 sps:$4 sm:$0xff]   ;;  %v10079_v2 = vld [vmem:[%s14527_s1 + $0xae4] ss:$16 sps:$4 sm:$0xff]  }
 0x124   :  { %6699 = vmatprep.subr.bf16.mxu0 %v9993_v3  ;;  %7515 = vmatprep.subr.bf16.mxu1 %v9996_v4  ;;  %v10082_v3 = vld [vmem:[%s14527_s1 + $0xaec] ss:$16 sps:$4 sm:$0xff]   ;;  %v10077_v4 = vld [vmem:[%s14527_s1 + $0xae0] ss:$16 sps:$4 sm:$0xff]  }
 0x127   :  { %6700 = vmatpush1.bf16.msra.mxu0 %v9991_v5  ;;  %7516 = vmatpush1.bf16.msra.mxu1 %v9994_v6  ;;  %v10080_v5 = vld [vmem:[%s14527_s1 + $0xae8] ss:$16 sps:$4 sm:$0xff]   ;;  %v10085_v6 = vld [vmem:[%s14527_s1 + $0xb04] ss:$16 sps:$4 sm:$0xff]  }
 0x128   :  { %6701 = vmatprep.subr.bf16.mxu0 %v9999_v7  ;;  %7517 = vmatprep.subr.bf16.mxu1 %v10002_v8  ;;  %v10088_v7 = vld [vmem:[%s14527_s1 + $0xb0c] ss:$16 sps:$4 sm:$0xff]   ;;  %v10083_v8 = vld [vmem:[%s14527_s1 + $0xb00] ss:$16 sps:$4 sm:$0xff]  }
 0x12b   :  { %6702 = vmatpush1.bf16.msra.mxu0 %v9997_v9  ;;  %7518 = vmatpush1.bf16.msra.mxu1 %v10000_v10  ;;  %v10086_v9 = vld [vmem:[%s14527_s1 + $0xb08] ss:$16 sps:$4 sm:$0xff]   ;;  %v10091_v10 = vld [vmem:[%s14527_s1 + $0xb24] ss:$16 sps:$4 sm:$0xff]  }
 0x12c   :  { %6703 = vmatprep.subr.bf16.mxu0 %v10005_v11  ;;  %7519 = vmatprep.subr.bf16.mxu1 %v10008_v12  ;;  %v10094_v11 = vld [vmem:[%s14527_s1 + $0xb2c] ss:$16 sps:$4 sm:$0xff]   ;;  %v10089_v12 = vld [vmem:[%s14527_s1 + $0xb20] ss:$16 sps:$4 sm:$0xff]  }
 0x12f   :  { %6704 = vmatpush1.bf16.msra.mxu0 %v10003_v13  ;;  %7520 = vmatpush1.bf16.msra.mxu1 %v10006_v14  ;;  %v10092_v13 = vld [vmem:[%s14527_s1 + $0xb28] ss:$16 sps:$4 sm:$0xff]   ;;  %v10097_v14 = vld [vmem:[%s14527_s1 + $0xb44] ss:$16 sps:$4 sm:$0xff]  }
 0x130   :  { %6705 = vmatprep.subr.bf16.mxu0 %v10011_v15  ;;  %7521 = vmatprep.subr.bf16.mxu1 %v10014_v16  ;;  %v10100_v15 = vld [vmem:[%s14527_s1 + $0xb4c] ss:$16 sps:$4 sm:$0xff]   ;;  %v10095_v16 = vld [vmem:[%s14527_s1 + $0xb40] ss:$16 sps:$4 sm:$0xff]  }
 0x133   :  { %6706 = vmatpush1.bf16.msra.mxu0 %v10009_v17  ;;  %7522 = vmatpush1.bf16.msra.mxu1 %v10012_v18  ;;  %v10098_v17 = vld [vmem:[%s14527_s1 + $0xb48] ss:$16 sps:$4 sm:$0xff]   ;;  %v10103_v18 = vld [vmem:[%s14527_s1 + $0xb64] ss:$16 sps:$4 sm:$0xff]  }
 0x134   :  { %6707 = vmatprep.subr.bf16.mxu0 %v10017_v19  ;;  %7523 = vmatprep.subr.bf16.mxu1 %v10020_v20  ;;  %v10106_v19 = vld [vmem:[%s14527_s1 + $0xb6c] ss:$16 sps:$4 sm:$0xff]   ;;  %v10101_v20 = vld [vmem:[%s14527_s1 + $0xb60] ss:$16 sps:$4 sm:$0xff]  }
 0x137   :  { %6708 = vmatpush1.bf16.msra.mxu0 %v10015_v21  ;;  %7524 = vmatpush1.bf16.msra.mxu1 %v10018_v22  ;;  %v10104_v21 = vld [vmem:[%s14527_s1 + $0xb68] ss:$16 sps:$4 sm:$0xff]   ;;  %v10109_v22 = vld [vmem:[%s14527_s1 + $0xb84] ss:$16 sps:$4 sm:$0xff]  }
 0x138   :  { %6709 = vmatprep.subr.bf16.mxu0 %v10024_v23  ;;  %7525 = vmatprep.subr.bf16.mxu1 %v10027_v24  ;;  %v10112_v23 = vld [vmem:[%s14527_s1 + $0xb8c] ss:$16 sps:$4 sm:$0xff]   ;;  %v10107_v24 = vld [vmem:[%s14527_s1 + $0xb80] ss:$16 sps:$4 sm:$0xff]  }
 0x13b   :  { %6710 = vmatpush1.bf16.msra.mxu0 %v10022_v25  ;;  %7526 = vmatpush1.bf16.msra.mxu1 %v10025_v26  ;;  %v10110_v25 = vld [vmem:[%s14527_s1 + $0xb88] ss:$16 sps:$4 sm:$0xff]   ;;  %v10115_v26 = vld [vmem:[%s14527_s1 + $0xba4] ss:$16 sps:$4 sm:$0xff]  }
 0x13c   :  { %6711 = vmatprep.subr.bf16.mxu0 %v10031_v27  ;;  %7527 = vmatprep.subr.bf16.mxu1 %v10034_v28  ;;  %v10118_v27 = vld [vmem:[%s14527_s1 + $0xbac] ss:$16 sps:$4 sm:$0xff]   ;;  %v10113_v28 = vld [vmem:[%s14527_s1 + $0xba0] ss:$16 sps:$4 sm:$0xff]  }
 0x13f   :  { %6712 = vmatpush1.bf16.msra.mxu0 %v10029_v29  ;;  %7528 = vmatpush1.bf16.msra.mxu1 %v10032_v30  ;;  %v10116_v29 = vld [vmem:[%s14527_s1 + $0xba8] ss:$16 sps:$4 sm:$0xff]   ;;  %v10122_v30 = vld [vmem:[%s14527_s1 + $0xbc4] ss:$16 sps:$4 sm:$0xff]  }
 0x140   :  { %6732 = vmatprep.subr.bf16.mxu0 %v10037_v31  ;;  %7548 = vmatprep.subr.bf16.mxu1 %v10040_v32  ;;  %v10125_v31 = vld [vmem:[%s14527_s1 + $0xbcc] ss:$16 sps:$4 sm:$0xff]   ;;  %v10120_v32 = vld [vmem:[%s14527_s1 + $0xbc0] ss:$16 sps:$4 sm:$0xff]  }
 0x142   :  { %6714 = vmatmul.mubr.bf16.vlgmr.msra.gmra.mrb[0].mxu0 %v8227_v34  ;;  %7530 = vmatmul.mubr.bf16.vlgmr.msra.gmra.mrb[0].mxu1 %v8227_v34  ;;  %v10129_v34 = vld [vmem:[%s14527_s1 + $0xbe4] ss:$16 sps:$4 sm:$0xff]  }
 0x143   :  { %6733 = vmatpush1.bf16.msra.mxu0 %v10035_v35  ;;  %7549 = vmatpush1.bf16.msra.mxu1 %v10038_v36  ;;  %v10132_v35 = vld [vmem:[%s14527_s1 + $0xbec] ss:$16 sps:$4 sm:$0xff]   ;;  %v10127_v36 = vld [vmem:[%s14527_s1 + $0xbe0] ss:$16 sps:$4 sm:$0xff]  }
 0x144   :  { %6734 = vmatprep.subr.bf16.mxu0 %v10043_v37  ;;  %7550 = vmatprep.subr.bf16.mxu1 %v10046_v38  ;;  %v10130_v37 = vld [vmem:[%s14527_s1 + $0xbe8] ss:$16 sps:$4 sm:$0xff]   ;;  %v10135_v38 = vld [vmem:[%s14527_s1 + $0xc04] ss:$16 sps:$4 sm:$0xff]  }
 0x145   :  { %6723 = vmatprep.mubr.bf16.mxu0 %v8260_v41  ;;  %7539 = vmatprep.mubr.bf16.mxu1 %v8260_v41  ;;  %v8229_v41 = vcombine.low %v12205_v44, %v12210_v45  ;;  %v10144_v44 = vld [vmem:[%s14527_s1 + $0xc2c] ss:$16 sps:$4 sm:$0xff]   ;;  %v10139_v45 = vld [vmem:[%s14527_s1 + $0xc20] ss:$16 sps:$4 sm:$0xff]  }
 0x147   :  { %6735 = vmatpush1.bf16.msra.mxu0 %v10041_v39  ;;  %7551 = vmatpush1.bf16.msra.mxu1 %v10044_v40  ;;  %v10138_v39 = vld [vmem:[%s14527_s1 + $0xc0c] ss:$16 sps:$4 sm:$0xff]  }
 0x148   :  { %6736 = vmatprep.subr.bf16.mxu0 %v10049_v42  ;;  %7552 = vmatprep.subr.bf16.mxu1 %v10052_v43  ;;  %v50_v40 = vld [vmem:[%s14528_s0 + $0x128] sm:$0xff]  ;;  %v10133_v42 = vld [vmem:[%s14527_s1 + $0xc00] ss:$16 sps:$4 sm:$0xff]  }
 0x149   :  { %v10136_v43 = vld [vmem:[%s14527_s1 + $0xc08] ss:$16 sps:$4 sm:$0xff]  }
 0x14a   :  { %6724 = vmatmul.mubr.bf16.gmra.mrb[4].mxu0 %v8259_v46  ;;  %7540 = vmatmul.mubr.bf16.gmra.mrb[4].mxu1 %v8259_v46  ;;  %v10141_v46 = vld [vmem:[%s14527_s1 + $0xc24] ss:$16 sps:$4 sm:$0xff]  }
 0x14b   :  { %6737 = vmatpush1.bf16.msra.mxu0 %v10047_v47  ;;  %7553 = vmatpush1.bf16.msra.mxu1 %v10050_v48  ;;  %v10142_v47 = vld [vmem:[%s14527_s1 + $0xc28] ss:$16 sps:$4 sm:$0xff]   ;;  %v8262_v48 = vcombine.high %v50_v40, %v50_v40 }
 0x14c   :  { %6738 = vmatprep.subr.bf16.mxu0 %v10055_v49  ;;  %7554 = vmatprep.subr.bf16.mxu1 %v10058_v50  ;;  %v10147_v49 = vld [vmem:[%s14527_s1 + $0xc44] ss:$16 sps:$4 sm:$0xff]   ;;  %v10150_v50 = vld [vmem:[%s14527_s1 + $0xc4c] ss:$16 sps:$4 sm:$0xff]  }
 0x14d   :  { %6764 = vmatprep.mubr.bf16.mxu0 %v8230_v51  ;;  %7580 = vmatprep.mubr.bf16.mxu1 %v8230_v51  ;;  %v12414_v51 = vld [vmem:[%s14528_s0 + $0x30] sm:$0xff] }
 0x14f   :  { %6739 = vmatpush1.bf16.msra.mxu0 %v10053_v52  ;;  %7555 = vmatpush1.bf16.msra.mxu1 %v10056_v53  ;;  %v12419_v52 = vld [vmem:[%s14528_s0 + $0xb0] sm:$0xff]  ;;  %v8261_v53 = vcombine.low %v50_v40, %v50_v40  ;;  %v10221_v40 = vld [vmem:[%s14527_s1 + $0xdc8] ss:$16 sps:$4 sm:$0xff]  }
 0x150   :  { %6740 = vmatprep.subr.bf16.mxu0 %v10061_v54  ;;  %7556 = vmatprep.subr.bf16.mxu1 %v10064_v55  ;;  %v10145_v54 = vld [vmem:[%s14527_s1 + $0xc40] ss:$16 sps:$4 sm:$0xff]   ;;  %v10148_v55 = vld [vmem:[%s14527_s1 + $0xc48] ss:$16 sps:$4 sm:$0xff]  }
 0x153   :  { %6741 = vmatpush1.bf16.msra.mxu0 %v10059_v56  ;;  %7557 = vmatpush1.bf16.msra.mxu1 %v10062_v57  ;;  %v10153_v56 = vld [vmem:[%s14527_s1 + $0xc64] ss:$16 sps:$4 sm:$0xff]   ;;  %v10156_v57 = vld [vmem:[%s14527_s1 + $0xc6c] ss:$16 sps:$4 sm:$0xff]  }
 0x154   :  { %6742 = vmatprep.subr.bf16.mxu0 %v10067_v58  ;;  %7558 = vmatprep.subr.bf16.mxu1 %v10070_v59  ;;  %v8232_v58 = vcombine.high %v12414_v51, %v12419_v52  ;;  %v10151_v59 = vld [vmem:[%s14527_s1 + $0xc60] ss:$16 sps:$4 sm:$0xff]  }
 0x157   :  { %6743 = vmatpush1.bf16.msra.mxu0 %v10065_v60  ;;  %7559 = vmatpush1.bf16.msra.mxu1 %v10068_v61  ;;  %v10154_v60 = vld [vmem:[%s14527_s1 + $0xc68] ss:$16 sps:$4 sm:$0xff]   ;;  %v10159_v61 = vld [vmem:[%s14527_s1 + $0xc84] ss:$16 sps:$4 sm:$0xff]  }
 0x158   :  { %6744 = vmatprep.subr.bf16.mxu0 %v10073_v62  ;;  %7560 = vmatprep.subr.bf16.mxu1 %v10076_v63  ;;  %v10162_v62 = vld [vmem:[%s14527_s1 + $0xc8c] ss:$16 sps:$4 sm:$0xff]   ;;  %v10157_v63 = vld [vmem:[%s14527_s1 + $0xc80] ss:$16 sps:$4 sm:$0xff]  }
 0x15b   :  { %6745 = vmatpush1.bf16.msra.mxu0 %v10071_v0  ;;  %7561 = vmatpush1.bf16.msra.mxu1 %v10074_v1  ;;  %v10160_v0 = vld [vmem:[%s14527_s1 + $0xc88] ss:$16 sps:$4 sm:$0xff]   ;;  %v10165_v1 = vld [vmem:[%s14527_s1 + $0xca4] ss:$16 sps:$4 sm:$0xff]  }
 0x15c   :  { %6746 = vmatprep.subr.bf16.mxu0 %v10079_v2  ;;  %7562 = vmatprep.subr.bf16.mxu1 %v10082_v3  ;;  %v10168_v2 = vld [vmem:[%s14527_s1 + $0xcac] ss:$16 sps:$4 sm:$0xff]   ;;  %v10163_v3 = vld [vmem:[%s14527_s1 + $0xca0] ss:$16 sps:$4 sm:$0xff]  }
 0x15f   :  { %6747 = vmatpush1.bf16.msra.mxu0 %v10077_v4  ;;  %7563 = vmatpush1.bf16.msra.mxu1 %v10080_v5  ;;  %v10166_v4 = vld [vmem:[%s14527_s1 + $0xca8] ss:$16 sps:$4 sm:$0xff]   ;;  %v10171_v5 = vld [vmem:[%s14527_s1 + $0xcc4] ss:$16 sps:$4 sm:$0xff]  }
 0x160   :  { %6748 = vmatprep.subr.bf16.mxu0 %v10085_v6  ;;  %7564 = vmatprep.subr.bf16.mxu1 %v10088_v7  ;;  %v10174_v6 = vld [vmem:[%s14527_s1 + $0xccc] ss:$16 sps:$4 sm:$0xff]   ;;  %v10169_v7 = vld [vmem:[%s14527_s1 + $0xcc0] ss:$16 sps:$4 sm:$0xff]  }
 0x163   :  { %6749 = vmatpush1.bf16.msra.mxu0 %v10083_v8  ;;  %7565 = vmatpush1.bf16.msra.mxu1 %v10086_v9  ;;  %v10172_v8 = vld [vmem:[%s14527_s1 + $0xcc8] ss:$16 sps:$4 sm:$0xff]   ;;  %v10177_v9 = vld [vmem:[%s14527_s1 + $0xce4] ss:$16 sps:$4 sm:$0xff]  }
 0x164   :  { %6750 = vmatprep.subr.bf16.mxu0 %v10091_v10  ;;  %7566 = vmatprep.subr.bf16.mxu1 %v10094_v11  ;;  %v10180_v10 = vld [vmem:[%s14527_s1 + $0xcec] ss:$16 sps:$4 sm:$0xff]   ;;  %v10175_v11 = vld [vmem:[%s14527_s1 + $0xce0] ss:$16 sps:$4 sm:$0xff]  }
 0x167   :  { %6751 = vmatpush1.bf16.msra.mxu0 %v10089_v12  ;;  %7567 = vmatpush1.bf16.msra.mxu1 %v10092_v13  ;;  %v10178_v12 = vld [vmem:[%s14527_s1 + $0xce8] ss:$16 sps:$4 sm:$0xff]   ;;  %v10183_v13 = vld [vmem:[%s14527_s1 + $0xd04] ss:$16 sps:$4 sm:$0xff]  }
 0x168   :  { %6752 = vmatprep.subr.bf16.mxu0 %v10097_v14  ;;  %7568 = vmatprep.subr.bf16.mxu1 %v10100_v15  ;;  %v10186_v14 = vld [vmem:[%s14527_s1 + $0xd0c] ss:$16 sps:$4 sm:$0xff]   ;;  %v10181_v15 = vld [vmem:[%s14527_s1 + $0xd00] ss:$16 sps:$4 sm:$0xff]  }
 0x16b   :  { %6753 = vmatpush1.bf16.msra.mxu0 %v10095_v16  ;;  %7569 = vmatpush1.bf16.msra.mxu1 %v10098_v17  ;;  %v10184_v16 = vld [vmem:[%s14527_s1 + $0xd08] ss:$16 sps:$4 sm:$0xff]   ;;  %v10189_v17 = vld [vmem:[%s14527_s1 + $0xd24] ss:$16 sps:$4 sm:$0xff]  }
 0x16c   :  { %6754 = vmatprep.subr.bf16.mxu0 %v10103_v18  ;;  %7570 = vmatprep.subr.bf16.mxu1 %v10106_v19  ;;  %v10192_v18 = vld [vmem:[%s14527_s1 + $0xd2c] ss:$16 sps:$4 sm:$0xff]   ;;  %v10187_v19 = vld [vmem:[%s14527_s1 + $0xd20] ss:$16 sps:$4 sm:$0xff]  }
 0x16f   :  { %6755 = vmatpush1.bf16.msra.mxu0 %v10101_v20  ;;  %7571 = vmatpush1.bf16.msra.mxu1 %v10104_v21  ;;  %v10190_v20 = vld [vmem:[%s14527_s1 + $0xd28] ss:$16 sps:$4 sm:$0xff]   ;;  %v10195_v21 = vld [vmem:[%s14527_s1 + $0xd44] ss:$16 sps:$4 sm:$0xff]  }
 0x170   :  { %6756 = vmatprep.subr.bf16.mxu0 %v10109_v22  ;;  %7572 = vmatprep.subr.bf16.mxu1 %v10112_v23  ;;  %v10198_v22 = vld [vmem:[%s14527_s1 + $0xd4c] ss:$16 sps:$4 sm:$0xff]   ;;  %v10193_v23 = vld [vmem:[%s14527_s1 + $0xd40] ss:$16 sps:$4 sm:$0xff]  }
 0x173   :  { %6757 = vmatpush1.bf16.msra.mxu0 %v10107_v24  ;;  %7573 = vmatpush1.bf16.msra.mxu1 %v10110_v25  ;;  %v10196_v24 = vld [vmem:[%s14527_s1 + $0xd48] ss:$16 sps:$4 sm:$0xff]   ;;  %v10201_v25 = vld [vmem:[%s14527_s1 + $0xd64] ss:$16 sps:$4 sm:$0xff]  }
 0x174   :  { %6758 = vmatprep.subr.bf16.mxu0 %v10115_v26  ;;  %7574 = vmatprep.subr.bf16.mxu1 %v10118_v27  ;;  %v10204_v26 = vld [vmem:[%s14527_s1 + $0xd6c] ss:$16 sps:$4 sm:$0xff]   ;;  %v10199_v27 = vld [vmem:[%s14527_s1 + $0xd60] ss:$16 sps:$4 sm:$0xff]  }
 0x177   :  { %6759 = vmatpush1.bf16.msra.mxu0 %v10113_v28  ;;  %7575 = vmatpush1.bf16.msra.mxu1 %v10116_v29  ;;  %v10202_v28 = vld [vmem:[%s14527_s1 + $0xd68] ss:$16 sps:$4 sm:$0xff]   ;;  %v10207_v29 = vld [vmem:[%s14527_s1 + $0xd84] ss:$16 sps:$4 sm:$0xff]  }
 0x178   :  { %6760 = vmatprep.subr.bf16.mxu0 %v10122_v30  ;;  %7576 = vmatprep.subr.bf16.mxu1 %v10125_v31  ;;  %v10210_v30 = vld [vmem:[%s14527_s1 + $0xd8c] ss:$16 sps:$4 sm:$0xff]   ;;  %v10205_v31 = vld [vmem:[%s14527_s1 + $0xd80] ss:$16 sps:$4 sm:$0xff]  }
 0x17b   :  { %6761 = vmatpush1.bf16.msra.mxu0 %v10120_v32  ;;  %7577 = vmatpush1.bf16.msra.mxu1 %v10123_v33  ;;  %v10208_v32 = vld [vmem:[%s14527_s1 + $0xd88] ss:$16 sps:$4 sm:$0xff]   ;;  %v10213_v33 = vld [vmem:[%s14527_s1 + $0xda4] ss:$16 sps:$4 sm:$0xff]  }
 0x17c   :  { %6762 = vmatprep.subr.bf16.mxu0 %v10129_v34  ;;  %7578 = vmatprep.subr.bf16.mxu1 %v10132_v35  ;;  %v10216_v34 = vld [vmem:[%s14527_s1 + $0xdac] ss:$16 sps:$4 sm:$0xff]   ;;  %v10211_v35 = vld [vmem:[%s14527_s1 + $0xda0] ss:$16 sps:$4 sm:$0xff]  }
 0x17f   :  { %6763 = vmatpush1.bf16.msra.mxu0 %v10127_v36  ;;  %7579 = vmatpush1.bf16.msra.mxu1 %v10130_v37  ;;  %v10214_v36 = vld [vmem:[%s14527_s1 + $0xda8] ss:$16 sps:$4 sm:$0xff]   ;;  %v10220_v37 = vld [vmem:[%s14527_s1 + $0xdc4] ss:$16 sps:$4 sm:$0xff]  }
 0x180   :  { %6783 = vmatprep.subr.bf16.mxu0 %v10135_v38  ;;  %7599 = vmatprep.subr.bf16.mxu1 %v10138_v39  ;;  %v10223_v38 = vld [vmem:[%s14527_s1 + $0xdcc] ss:$16 sps:$4 sm:$0xff]   ;;  %v10218_v39 = vld [vmem:[%s14527_s1 + $0xdc0] ss:$16 sps:$4 sm:$0xff]  }
 0x182   :  { %6765 = vmatmul.mubr.bf16.vlgmr.msra.gmra.mrb[0].mxu0 %v8229_v41  ;;  %7581 = vmatmul.mubr.bf16.vlgmr.msra.gmra.mrb[0].mxu1 %v8229_v41  ;;  %v10227_v41 = vld [vmem:[%s14527_s1 + $0xde4] ss:$16 sps:$4 sm:$0xff]  }
 0x183   :  { %6784 = vmatpush1.bf16.msra.mxu0 %v10133_v42  ;;  %7600 = vmatpush1.bf16.msra.mxu1 %v10136_v43  ;;  %v10230_v42 = vld [vmem:[%s14527_s1 + $0xdec] ss:$16 sps:$4 sm:$0xff]   ;;  %v10225_v43 = vld [vmem:[%s14527_s1 + $0xde0] ss:$16 sps:$4 sm:$0xff]  }
 0x184   :  { %6785 = vmatprep.subr.bf16.mxu0 %v10141_v46  ;;  %7601 = vmatprep.subr.bf16.mxu1 %v10144_v44  ;;  %v10228_v46 = vld [vmem:[%s14527_s1 + $0xde8] ss:$16 sps:$4 sm:$0xff]   ;;  %v10233_v44 = vld [vmem:[%s14527_s1 + $0xe04] ss:$16 sps:$4 sm:$0xff]  }
 0x185   :  { %6774 = vmatprep.mubr.bf16.mxu0 %v8262_v48  ;;  %7590 = vmatprep.mubr.bf16.mxu1 %v8262_v48  ;;  %v8231_v48 = vcombine.low %v12414_v51, %v12419_v52  ;;  %v10242_v51 = vld [vmem:[%s14527_s1 + $0xe2c] ss:$16 sps:$4 sm:$0xff]   ;;  %v10237_v52 = vld [vmem:[%s14527_s1 + $0xe20] ss:$16 sps:$4 sm:$0xff]  }
 0x187   :  { %6786 = vmatpush1.bf16.msra.mxu0 %v10139_v45  ;;  %7602 = vmatpush1.bf16.msra.mxu1 %v10142_v47  ;;  %v10236_v45 = vld [vmem:[%s14527_s1 + $0xe0c] ss:$16 sps:$4 sm:$0xff]   ;;  %v51_v47 = vld [vmem:[%s14528_s0 + $0x130] sm:$0xff] }
 0x188   :  { %6787 = vmatprep.subr.bf16.mxu0 %v10147_v49  ;;  %7603 = vmatprep.subr.bf16.mxu1 %v10150_v50  ;;  %v10231_v49 = vld [vmem:[%s14527_s1 + $0xe00] ss:$16 sps:$4 sm:$0xff]   ;;  %v10234_v50 = vld [vmem:[%s14527_s1 + $0xe08] ss:$16 sps:$4 sm:$0xff]  }
 0x18a   :  { %6775 = vmatmul.mubr.bf16.gmra.mrb[4].mxu0 %v8261_v53  ;;  %7591 = vmatmul.mubr.bf16.gmra.mrb[4].mxu1 %v8261_v53  ;;  %v10239_v53 = vld [vmem:[%s14527_s1 + $0xe24] ss:$16 sps:$4 sm:$0xff]  }
 0x18b   :  { %6788 = vmatpush1.bf16.msra.mxu0 %v10145_v54  ;;  %7604 = vmatpush1.bf16.msra.mxu1 %v10148_v55  ;;  %v10240_v54 = vld [vmem:[%s14527_s1 + $0xe28] ss:$16 sps:$4 sm:$0xff]   ;;  %v8264_v55 = vcombine.high %v51_v47, %v51_v47 }
 0x18c   :  { %6789 = vmatprep.subr.bf16.mxu0 %v10153_v56  ;;  %7605 = vmatprep.subr.bf16.mxu1 %v10156_v57  ;;  %v10245_v56 = vld [vmem:[%s14527_s1 + $0xe44] ss:$16 sps:$4 sm:$0xff]   ;;  %v10248_v57 = vld [vmem:[%s14527_s1 + $0xe4c] ss:$16 sps:$4 sm:$0xff]  }
 0x18d   :  { %6815 = vmatprep.mubr.bf16.mxu0 %v8232_v58  ;;  %7631 = vmatprep.mubr.bf16.mxu1 %v8232_v58  ;;  %v12623_v58 = vld [vmem:[%s14528_s0 + $0x38] sm:$0xff] }
 0x18f   :  { %6790 = vmatpush1.bf16.msra.mxu0 %v10151_v59  ;;  %7606 = vmatpush1.bf16.msra.mxu1 %v10154_v60  ;;  %v12628_v59 = vld [vmem:[%s14528_s0 + $0xb8] sm:$0xff]  ;;  %v8263_v60 = vcombine.low %v51_v47, %v51_v47 }
 0x190   :  { %6791 = vmatprep.subr.bf16.mxu0 %v10159_v61  ;;  %7607 = vmatprep.subr.bf16.mxu1 %v10162_v62  ;;  %v10243_v61 = vld [vmem:[%s14527_s1 + $0xe40] ss:$16 sps:$4 sm:$0xff]   ;;  %v10246_v62 = vld [vmem:[%s14527_s1 + $0xe48] ss:$16 sps:$4 sm:$0xff]  }
 0x191   :  { %v10319_v47 = vld [vmem:[%s14527_s1 + $0xfc8] ss:$16 sps:$4 sm:$0xff]  }
 0x193   :  { %6792 = vmatpush1.bf16.msra.mxu0 %v10157_v63  ;;  %7608 = vmatpush1.bf16.msra.mxu1 %v10160_v0  ;;  %v10251_v63 = vld [vmem:[%s14527_s1 + $0xe64] ss:$16 sps:$4 sm:$0xff]   ;;  %v10254_v0 = vld [vmem:[%s14527_s1 + $0xe6c] ss:$16 sps:$4 sm:$0xff]  }
 0x194   :  { %6793 = vmatprep.subr.bf16.mxu0 %v10165_v1  ;;  %7609 = vmatprep.subr.bf16.mxu1 %v10168_v2  ;;  %v8234_v1 = vcombine.high %v12623_v58, %v12628_v59  ;;  %v10249_v2 = vld [vmem:[%s14527_s1 + $0xe60] ss:$16 sps:$4 sm:$0xff]  }
 0x197   :  { %6794 = vmatpush1.bf16.msra.mxu0 %v10163_v3  ;;  %7610 = vmatpush1.bf16.msra.mxu1 %v10166_v4  ;;  %v10252_v3 = vld [vmem:[%s14527_s1 + $0xe68] ss:$16 sps:$4 sm:$0xff]   ;;  %v10257_v4 = vld [vmem:[%s14527_s1 + $0xe84] ss:$16 sps:$4 sm:$0xff]  }
 0x198   :  { %6795 = vmatprep.subr.bf16.mxu0 %v10171_v5  ;;  %7611 = vmatprep.subr.bf16.mxu1 %v10174_v6  ;;  %v10260_v5 = vld [vmem:[%s14527_s1 + $0xe8c] ss:$16 sps:$4 sm:$0xff]   ;;  %v10255_v6 = vld [vmem:[%s14527_s1 + $0xe80] ss:$16 sps:$4 sm:$0xff]  }
 0x19b   :  { %6796 = vmatpush1.bf16.msra.mxu0 %v10169_v7  ;;  %7612 = vmatpush1.bf16.msra.mxu1 %v10172_v8  ;;  %v10258_v7 = vld [vmem:[%s14527_s1 + $0xe88] ss:$16 sps:$4 sm:$0xff]   ;;  %v10263_v8 = vld [vmem:[%s14527_s1 + $0xea4] ss:$16 sps:$4 sm:$0xff]  }
 0x19c   :  { %6797 = vmatprep.subr.bf16.mxu0 %v10177_v9  ;;  %7613 = vmatprep.subr.bf16.mxu1 %v10180_v10  ;;  %v10266_v9 = vld [vmem:[%s14527_s1 + $0xeac] ss:$16 sps:$4 sm:$0xff]   ;;  %v10261_v10 = vld [vmem:[%s14527_s1 + $0xea0] ss:$16 sps:$4 sm:$0xff]  }
 0x19f   :  { %6798 = vmatpush1.bf16.msra.mxu0 %v10175_v11  ;;  %7614 = vmatpush1.bf16.msra.mxu1 %v10178_v12  ;;  %v10264_v11 = vld [vmem:[%s14527_s1 + $0xea8] ss:$16 sps:$4 sm:$0xff]   ;;  %v10269_v12 = vld [vmem:[%s14527_s1 + $0xec4] ss:$16 sps:$4 sm:$0xff]  }
 0x1a0   :  { %6799 = vmatprep.subr.bf16.mxu0 %v10183_v13  ;;  %7615 = vmatprep.subr.bf16.mxu1 %v10186_v14  ;;  %v10272_v13 = vld [vmem:[%s14527_s1 + $0xecc] ss:$16 sps:$4 sm:$0xff]   ;;  %v10267_v14 = vld [vmem:[%s14527_s1 + $0xec0] ss:$16 sps:$4 sm:$0xff]  }
 0x1a3   :  { %6800 = vmatpush1.bf16.msra.mxu0 %v10181_v15  ;;  %7616 = vmatpush1.bf16.msra.mxu1 %v10184_v16  ;;  %v10270_v15 = vld [vmem:[%s14527_s1 + $0xec8] ss:$16 sps:$4 sm:$0xff]   ;;  %v10275_v16 = vld [vmem:[%s14527_s1 + $0xee4] ss:$16 sps:$4 sm:$0xff]  }
 0x1a4   :  { %6801 = vmatprep.subr.bf16.mxu0 %v10189_v17  ;;  %7617 = vmatprep.subr.bf16.mxu1 %v10192_v18  ;;  %v10278_v17 = vld [vmem:[%s14527_s1 + $0xeec] ss:$16 sps:$4 sm:$0xff]   ;;  %v10273_v18 = vld [vmem:[%s14527_s1 + $0xee0] ss:$16 sps:$4 sm:$0xff]  }
 0x1a7   :  { %6802 = vmatpush1.bf16.msra.mxu0 %v10187_v19  ;;  %7618 = vmatpush1.bf16.msra.mxu1 %v10190_v20  ;;  %v10276_v19 = vld [vmem:[%s14527_s1 + $0xee8] ss:$16 sps:$4 sm:$0xff]   ;;  %v10281_v20 = vld [vmem:[%s14527_s1 + $0xf04] ss:$16 sps:$4 sm:$0xff]  }
 0x1a8   :  { %6803 = vmatprep.subr.bf16.mxu0 %v10195_v21  ;;  %7619 = vmatprep.subr.bf16.mxu1 %v10198_v22  ;;  %v10284_v21 = vld [vmem:[%s14527_s1 + $0xf0c] ss:$16 sps:$4 sm:$0xff]   ;;  %v10279_v22 = vld [vmem:[%s14527_s1 + $0xf00] ss:$16 sps:$4 sm:$0xff]  }
 0x1ab   :  { %6804 = vmatpush1.bf16.msra.mxu0 %v10193_v23  ;;  %7620 = vmatpush1.bf16.msra.mxu1 %v10196_v24  ;;  %v10282_v23 = vld [vmem:[%s14527_s1 + $0xf08] ss:$16 sps:$4 sm:$0xff]   ;;  %v10287_v24 = vld [vmem:[%s14527_s1 + $0xf24] ss:$16 sps:$4 sm:$0xff]  }
 0x1ac   :  { %6805 = vmatprep.subr.bf16.mxu0 %v10201_v25  ;;  %7621 = vmatprep.subr.bf16.mxu1 %v10204_v26  ;;  %v10290_v25 = vld [vmem:[%s14527_s1 + $0xf2c] ss:$16 sps:$4 sm:$0xff]   ;;  %v10285_v26 = vld [vmem:[%s14527_s1 + $0xf20] ss:$16 sps:$4 sm:$0xff]  }
 0x1af   :  { %6806 = vmatpush1.bf16.msra.mxu0 %v10199_v27  ;;  %7622 = vmatpush1.bf16.msra.mxu1 %v10202_v28  ;;  %v10288_v27 = vld [vmem:[%s14527_s1 + $0xf28] ss:$16 sps:$4 sm:$0xff]   ;;  %v10293_v28 = vld [vmem:[%s14527_s1 + $0xf44] ss:$16 sps:$4 sm:$0xff]  }
 0x1b0   :  { %6807 = vmatprep.subr.bf16.mxu0 %v10207_v29  ;;  %7623 = vmatprep.subr.bf16.mxu1 %v10210_v30  ;;  %v10296_v29 = vld [vmem:[%s14527_s1 + $0xf4c] ss:$16 sps:$4 sm:$0xff]   ;;  %v10291_v30 = vld [vmem:[%s14527_s1 + $0xf40] ss:$16 sps:$4 sm:$0xff]  }
 0x1b3   :  { %6808 = vmatpush1.bf16.msra.mxu0 %v10205_v31  ;;  %7624 = vmatpush1.bf16.msra.mxu1 %v10208_v32  ;;  %v10294_v31 = vld [vmem:[%s14527_s1 + $0xf48] ss:$16 sps:$4 sm:$0xff]   ;;  %v10299_v32 = vld [vmem:[%s14527_s1 + $0xf64] ss:$16 sps:$4 sm:$0xff]  }
 0x1b4   :  { %6809 = vmatprep.subr.bf16.mxu0 %v10213_v33  ;;  %7625 = vmatprep.subr.bf16.mxu1 %v10216_v34  ;;  %v10302_v33 = vld [vmem:[%s14527_s1 + $0xf6c] ss:$16 sps:$4 sm:$0xff]   ;;  %v10297_v34 = vld [vmem:[%s14527_s1 + $0xf60] ss:$16 sps:$4 sm:$0xff]  }
 0x1b7   :  { %6810 = vmatpush1.bf16.msra.mxu0 %v10211_v35  ;;  %7626 = vmatpush1.bf16.msra.mxu1 %v10214_v36  ;;  %v10300_v35 = vld [vmem:[%s14527_s1 + $0xf68] ss:$16 sps:$4 sm:$0xff]   ;;  %v10305_v36 = vld [vmem:[%s14527_s1 + $0xf84] ss:$16 sps:$4 sm:$0xff]  }
 0x1b8   :  { %6811 = vmatprep.subr.bf16.mxu0 %v10220_v37  ;;  %7627 = vmatprep.subr.bf16.mxu1 %v10223_v38  ;;  %v10308_v37 = vld [vmem:[%s14527_s1 + $0xf8c] ss:$16 sps:$4 sm:$0xff]   ;;  %v10303_v38 = vld [vmem:[%s14527_s1 + $0xf80] ss:$16 sps:$4 sm:$0xff]  }
 0x1bb   :  { %6812 = vmatpush1.bf16.msra.mxu0 %v10218_v39  ;;  %7628 = vmatpush1.bf16.msra.mxu1 %v10221_v40  ;;  %v10306_v39 = vld [vmem:[%s14527_s1 + $0xf88] ss:$16 sps:$4 sm:$0xff]   ;;  %v10311_v40 = vld [vmem:[%s14527_s1 + $0xfa4] ss:$16 sps:$4 sm:$0xff]  }
 0x1bc   :  { %6813 = vmatprep.subr.bf16.mxu0 %v10227_v41  ;;  %7629 = vmatprep.subr.bf16.mxu1 %v10230_v42  ;;  %v10314_v41 = vld [vmem:[%s14527_s1 + $0xfac] ss:$16 sps:$4 sm:$0xff]   ;;  %v10309_v42 = vld [vmem:[%s14527_s1 + $0xfa0] ss:$16 sps:$4 sm:$0xff]  }
 0x1bf   :  { %6814 = vmatpush1.bf16.msra.mxu0 %v10225_v43  ;;  %7630 = vmatpush1.bf16.msra.mxu1 %v10228_v46  ;;  %v10312_v43 = vld [vmem:[%s14527_s1 + $0xfa8] ss:$16 sps:$4 sm:$0xff]   ;;  %v10318_v46 = vld [vmem:[%s14527_s1 + $0xfc4] ss:$16 sps:$4 sm:$0xff]  }
 0x1c0   :  { %6834 = vmatprep.subr.bf16.mxu0 %v10233_v44  ;;  %7650 = vmatprep.subr.bf16.mxu1 %v10236_v45  ;;  %v10321_v44 = vld [vmem:[%s14527_s1 + $0xfcc] ss:$16 sps:$4 sm:$0xff]   ;;  %v10316_v45 = vld [vmem:[%s14527_s1 + $0xfc0] ss:$16 sps:$4 sm:$0xff]  }
 0x1c2   :  { %6816 = vmatmul.mubr.bf16.vlgmr.msra.gmra.mrb[0].mxu0 %v8231_v48  ;;  %7632 = vmatmul.mubr.bf16.vlgmr.msra.gmra.mrb[0].mxu1 %v8231_v48  ;;  %v10325_v48 = vld [vmem:[%s14527_s1 + $0xfe4] ss:$16 sps:$4 sm:$0xff]  }
 0x1c3   :  { %6835 = vmatpush1.bf16.msra.mxu0 %v10231_v49  ;;  %7651 = vmatpush1.bf16.msra.mxu1 %v10234_v50  ;;  %v10328_v49 = vld [vmem:[%s14527_s1 + $0xfec] ss:$16 sps:$4 sm:$0xff]   ;;  %v10323_v50 = vld [vmem:[%s14527_s1 + $0xfe0] ss:$16 sps:$4 sm:$0xff]  }
 0x1c4   :  { %6836 = vmatprep.subr.bf16.mxu0 %v10239_v53  ;;  %7652 = vmatprep.subr.bf16.mxu1 %v10242_v51  ;;  %v10326_v53 = vld [vmem:[%s14527_s1 + $0xfe8] ss:$16 sps:$4 sm:$0xff]   ;;  %v10331_v51 = vld [vmem:[%s14527_s1 + $0x1004] ss:$16 sps:$4 sm:$0xff]  }
 0x1c5   :  { %6825 = vmatprep.mubr.bf16.mxu0 %v8264_v55  ;;  %7641 = vmatprep.mubr.bf16.mxu1 %v8264_v55  ;;  %v8233_v55 = vcombine.low %v12623_v58, %v12628_v59  ;;  %v10340_v58 = vld [vmem:[%s14527_s1 + $0x102c] ss:$16 sps:$4 sm:$0xff]   ;;  %v10335_v59 = vld [vmem:[%s14527_s1 + $0x1020] ss:$16 sps:$4 sm:$0xff]  }
 0x1c7   :  { %6837 = vmatpush1.bf16.msra.mxu0 %v10237_v52  ;;  %7653 = vmatpush1.bf16.msra.mxu1 %v10240_v54  ;;  %v10334_v52 = vld [vmem:[%s14527_s1 + $0x100c] ss:$16 sps:$4 sm:$0xff]  }
 0x1c8   :  { %6838 = vmatprep.subr.bf16.mxu0 %v10245_v56  ;;  %7654 = vmatprep.subr.bf16.mxu1 %v10248_v57  ;;  %v52_v54 = vld [vmem:[%s14528_s0 + $0x138] sm:$0xff]  ;;  %v10329_v56 = vld [vmem:[%s14527_s1 + $0x1000] ss:$16 sps:$4 sm:$0xff]  }
 0x1c9   :  { %v10332_v57 = vld [vmem:[%s14527_s1 + $0x1008] ss:$16 sps:$4 sm:$0xff]  }
 0x1ca   :  { %6826 = vmatmul.mubr.bf16.gmra.mrb[4].mxu0 %v8263_v60  ;;  %7642 = vmatmul.mubr.bf16.gmra.mrb[4].mxu1 %v8263_v60  ;;  %v10337_v60 = vld [vmem:[%s14527_s1 + $0x1024] ss:$16 sps:$4 sm:$0xff]  }
 0x1cb   :  { %6839 = vmatpush1.bf16.msra.mxu0 %v10243_v61  ;;  %7655 = vmatpush1.bf16.msra.mxu1 %v10246_v62  ;;  %v10338_v61 = vld [vmem:[%s14527_s1 + $0x1028] ss:$16 sps:$4 sm:$0xff]   ;;  %v8266_v62 = vcombine.high %v52_v54, %v52_v54 }
 0x1cc   :  { %6840 = vmatprep.subr.bf16.mxu0 %v10251_v63  ;;  %7656 = vmatprep.subr.bf16.mxu1 %v10254_v0  ;;  %v10343_v63 = vld [vmem:[%s14527_s1 + $0x1044] ss:$16 sps:$4 sm:$0xff]   ;;  %v10346_v0 = vld [vmem:[%s14527_s1 + $0x104c] ss:$16 sps:$4 sm:$0xff]  }
 0x1cd   :  { %6866 = vmatprep.mubr.bf16.mxu0 %v8234_v1  ;;  %7682 = vmatprep.mubr.bf16.mxu1 %v8234_v1  ;;  %v12832_v1 = vld [vmem:[%s14528_s0 + $0x40] sm:$0xff] }
 0x1cf   :  { %6841 = vmatpush1.bf16.msra.mxu0 %v10249_v2  ;;  %7657 = vmatpush1.bf16.msra.mxu1 %v10252_v3  ;;  %v12837_v2 = vld [vmem:[%s14528_s0 + $0xc0] sm:$0xff]  ;;  %v8265_v3 = vcombine.low %v52_v54, %v52_v54  ;;  %v10417_v54 = vld [vmem:[%s14527_s1 + $0x11c8] ss:$16 sps:$4 sm:$0xff]  }
 0x1d0   :  { %6842 = vmatprep.subr.bf16.mxu0 %v10257_v4  ;;  %7658 = vmatprep.subr.bf16.mxu1 %v10260_v5  ;;  %v10341_v4 = vld [vmem:[%s14527_s1 + $0x1040] ss:$16 sps:$4 sm:$0xff]   ;;  %v10344_v5 = vld [vmem:[%s14527_s1 + $0x1048] ss:$16 sps:$4 sm:$0xff]  }
 0x1d3   :  { %6843 = vmatpush1.bf16.msra.mxu0 %v10255_v6  ;;  %7659 = vmatpush1.bf16.msra.mxu1 %v10258_v7  ;;  %v10349_v6 = vld [vmem:[%s14527_s1 + $0x1064] ss:$16 sps:$4 sm:$0xff]   ;;  %v10352_v7 = vld [vmem:[%s14527_s1 + $0x106c] ss:$16 sps:$4 sm:$0xff]  }
 0x1d4   :  { %6844 = vmatprep.subr.bf16.mxu0 %v10263_v8  ;;  %7660 = vmatprep.subr.bf16.mxu1 %v10266_v9  ;;  %v8236_v8 = vcombine.high %v12832_v1, %v12837_v2  ;;  %v10347_v9 = vld [vmem:[%s14527_s1 + $0x1060] ss:$16 sps:$4 sm:$0xff]  }
 0x1d7   :  { %6845 = vmatpush1.bf16.msra.mxu0 %v10261_v10  ;;  %7661 = vmatpush1.bf16.msra.mxu1 %v10264_v11  ;;  %v10350_v10 = vld [vmem:[%s14527_s1 + $0x1068] ss:$16 sps:$4 sm:$0xff]   ;;  %v10355_v11 = vld [vmem:[%s14527_s1 + $0x1084] ss:$16 sps:$4 sm:$0xff]  }
 0x1d8   :  { %6846 = vmatprep.subr.bf16.mxu0 %v10269_v12  ;;  %7662 = vmatprep.subr.bf16.mxu1 %v10272_v13  ;;  %v10358_v12 = vld [vmem:[%s14527_s1 + $0x108c] ss:$16 sps:$4 sm:$0xff]   ;;  %v10353_v13 = vld [vmem:[%s14527_s1 + $0x1080] ss:$16 sps:$4 sm:$0xff]  }
 0x1db   :  { %6847 = vmatpush1.bf16.msra.mxu0 %v10267_v14  ;;  %7663 = vmatpush1.bf16.msra.mxu1 %v10270_v15  ;;  %v10356_v14 = vld [vmem:[%s14527_s1 + $0x1088] ss:$16 sps:$4 sm:$0xff]   ;;  %v10361_v15 = vld [vmem:[%s14527_s1 + $0x10a4] ss:$16 sps:$4 sm:$0xff]  }
 0x1dc   :  { %6848 = vmatprep.subr.bf16.mxu0 %v10275_v16  ;;  %7664 = vmatprep.subr.bf16.mxu1 %v10278_v17  ;;  %v10364_v16 = vld [vmem:[%s14527_s1 + $0x10ac] ss:$16 sps:$4 sm:$0xff]   ;;  %v10359_v17 = vld [vmem:[%s14527_s1 + $0x10a0] ss:$16 sps:$4 sm:$0xff]  }
 0x1df   :  { %6849 = vmatpush1.bf16.msra.mxu0 %v10273_v18  ;;  %7665 = vmatpush1.bf16.msra.mxu1 %v10276_v19  ;;  %v10362_v18 = vld [vmem:[%s14527_s1 + $0x10a8] ss:$16 sps:$4 sm:$0xff]   ;;  %v10367_v19 = vld [vmem:[%s14527_s1 + $0x10c4] ss:$16 sps:$4 sm:$0xff]  }
 0x1e0   :  { %6850 = vmatprep.subr.bf16.mxu0 %v10281_v20  ;;  %7666 = vmatprep.subr.bf16.mxu1 %v10284_v21  ;;  %v10370_v20 = vld [vmem:[%s14527_s1 + $0x10cc] ss:$16 sps:$4 sm:$0xff]   ;;  %v10365_v21 = vld [vmem:[%s14527_s1 + $0x10c0] ss:$16 sps:$4 sm:$0xff]  }
 0x1e3   :  { %6851 = vmatpush1.bf16.msra.mxu0 %v10279_v22  ;;  %7667 = vmatpush1.bf16.msra.mxu1 %v10282_v23  ;;  %v10368_v22 = vld [vmem:[%s14527_s1 + $0x10c8] ss:$16 sps:$4 sm:$0xff]   ;;  %v10373_v23 = vld [vmem:[%s14527_s1 + $0x10e4] ss:$16 sps:$4 sm:$0xff]  }
 0x1e4   :  { %6852 = vmatprep.subr.bf16.mxu0 %v10287_v24  ;;  %7668 = vmatprep.subr.bf16.mxu1 %v10290_v25  ;;  %v10376_v24 = vld [vmem:[%s14527_s1 + $0x10ec] ss:$16 sps:$4 sm:$0xff]   ;;  %v10371_v25 = vld [vmem:[%s14527_s1 + $0x10e0] ss:$16 sps:$4 sm:$0xff]  }
 0x1e7   :  { %6853 = vmatpush1.bf16.msra.mxu0 %v10285_v26  ;;  %7669 = vmatpush1.bf16.msra.mxu1 %v10288_v27  ;;  %v10374_v26 = vld [vmem:[%s14527_s1 + $0x10e8] ss:$16 sps:$4 sm:$0xff]   ;;  %v10379_v27 = vld [vmem:[%s14527_s1 + $0x1104] ss:$16 sps:$4 sm:$0xff]  }
 0x1e8   :  { %6854 = vmatprep.subr.bf16.mxu0 %v10293_v28  ;;  %7670 = vmatprep.subr.bf16.mxu1 %v10296_v29  ;;  %v10382_v28 = vld [vmem:[%s14527_s1 + $0x110c] ss:$16 sps:$4 sm:$0xff]   ;;  %v10377_v29 = vld [vmem:[%s14527_s1 + $0x1100] ss:$16 sps:$4 sm:$0xff]  }
 0x1eb   :  { %6855 = vmatpush1.bf16.msra.mxu0 %v10291_v30  ;;  %7671 = vmatpush1.bf16.msra.mxu1 %v10294_v31  ;;  %v10380_v30 = vld [vmem:[%s14527_s1 + $0x1108] ss:$16 sps:$4 sm:$0xff]   ;;  %v10385_v31 = vld [vmem:[%s14527_s1 + $0x1124] ss:$16 sps:$4 sm:$0xff]  }
 0x1ec   :  { %6856 = vmatprep.subr.bf16.mxu0 %v10299_v32  ;;  %7672 = vmatprep.subr.bf16.mxu1 %v10302_v33  ;;  %v10388_v32 = vld [vmem:[%s14527_s1 + $0x112c] ss:$16 sps:$4 sm:$0xff]   ;;  %v10383_v33 = vld [vmem:[%s14527_s1 + $0x1120] ss:$16 sps:$4 sm:$0xff]  }
 0x1ef   :  { %6857 = vmatpush1.bf16.msra.mxu0 %v10297_v34  ;;  %7673 = vmatpush1.bf16.msra.mxu1 %v10300_v35  ;;  %v10386_v34 = vld [vmem:[%s14527_s1 + $0x1128] ss:$16 sps:$4 sm:$0xff]   ;;  %v10391_v35 = vld [vmem:[%s14527_s1 + $0x1144] ss:$16 sps:$4 sm:$0xff]  }
 0x1f0   :  { %6858 = vmatprep.subr.bf16.mxu0 %v10305_v36  ;;  %7674 = vmatprep.subr.bf16.mxu1 %v10308_v37  ;;  %v10394_v36 = vld [vmem:[%s14527_s1 + $0x114c] ss:$16 sps:$4 sm:$0xff]   ;;  %v10389_v37 = vld [vmem:[%s14527_s1 + $0x1140] ss:$16 sps:$4 sm:$0xff]  }
 0x1f3   :  { %6859 = vmatpush1.bf16.msra.mxu0 %v10303_v38  ;;  %7675 = vmatpush1.bf16.msra.mxu1 %v10306_v39  ;;  %v10392_v38 = vld [vmem:[%s14527_s1 + $0x1148] ss:$16 sps:$4 sm:$0xff]   ;;  %v10397_v39 = vld [vmem:[%s14527_s1 + $0x1164] ss:$16 sps:$4 sm:$0xff]  }
 0x1f4   :  { %6860 = vmatprep.subr.bf16.mxu0 %v10311_v40  ;;  %7676 = vmatprep.subr.bf16.mxu1 %v10314_v41  ;;  %v10400_v40 = vld [vmem:[%s14527_s1 + $0x116c] ss:$16 sps:$4 sm:$0xff]   ;;  %v10395_v41 = vld [vmem:[%s14527_s1 + $0x1160] ss:$16 sps:$4 sm:$0xff]  }
 0x1f7   :  { %6861 = vmatpush1.bf16.msra.mxu0 %v10309_v42  ;;  %7677 = vmatpush1.bf16.msra.mxu1 %v10312_v43  ;;  %v10398_v42 = vld [vmem:[%s14527_s1 + $0x1168] ss:$16 sps:$4 sm:$0xff]   ;;  %v10403_v43 = vld [vmem:[%s14527_s1 + $0x1184] ss:$16 sps:$4 sm:$0xff]  }
 0x1f8   :  { %6862 = vmatprep.subr.bf16.mxu0 %v10318_v46  ;;  %7678 = vmatprep.subr.bf16.mxu1 %v10321_v44  ;;  %v10406_v46 = vld [vmem:[%s14527_s1 + $0x118c] ss:$16 sps:$4 sm:$0xff]   ;;  %v10401_v44 = vld [vmem:[%s14527_s1 + $0x1180] ss:$16 sps:$4 sm:$0xff]  }
 0x1fb   :  { %6863 = vmatpush1.bf16.msra.mxu0 %v10316_v45  ;;  %7679 = vmatpush1.bf16.msra.mxu1 %v10319_v47  ;;  %v10404_v45 = vld [vmem:[%s14527_s1 + $0x1188] ss:$16 sps:$4 sm:$0xff]   ;;  %v10409_v47 = vld [vmem:[%s14527_s1 + $0x11a4] ss:$16 sps:$4 sm:$0xff]  }
 0x1fc   :  { %6864 = vmatprep.subr.bf16.mxu0 %v10325_v48  ;;  %7680 = vmatprep.subr.bf16.mxu1 %v10328_v49  ;;  %v10412_v48 = vld [vmem:[%s14527_s1 + $0x11ac] ss:$16 sps:$4 sm:$0xff]   ;;  %v10407_v49 = vld [vmem:[%s14527_s1 + $0x11a0] ss:$16 sps:$4 sm:$0xff]  }
 0x1ff   :  { %6865 = vmatpush1.bf16.msra.mxu0 %v10323_v50  ;;  %7681 = vmatpush1.bf16.msra.mxu1 %v10326_v53  ;;  %v10410_v50 = vld [vmem:[%s14527_s1 + $0x11a8] ss:$16 sps:$4 sm:$0xff]   ;;  %v10416_v53 = vld [vmem:[%s14527_s1 + $0x11c4] ss:$16 sps:$4 sm:$0xff]  }
 0x200   :  { %6885 = vmatprep.subr.bf16.mxu0 %v10331_v51  ;;  %7701 = vmatprep.subr.bf16.mxu1 %v10334_v52  ;;  %v10419_v51 = vld [vmem:[%s14527_s1 + $0x11cc] ss:$16 sps:$4 sm:$0xff]   ;;  %v10414_v52 = vld [vmem:[%s14527_s1 + $0x11c0] ss:$16 sps:$4 sm:$0xff]  }
 0x202   :  { %6867 = vmatmul.mubr.bf16.vlgmr.msra.gmra.mrb[0].mxu0 %v8233_v55  ;;  %7683 = vmatmul.mubr.bf16.vlgmr.msra.gmra.mrb[0].mxu1 %v8233_v55  ;;  %v10423_v55 = vld [vmem:[%s14527_s1 + $0x11e4] ss:$16 sps:$4 sm:$0xff]  }
 0x203   :  { %6886 = vmatpush1.bf16.msra.mxu0 %v10329_v56  ;;  %7702 = vmatpush1.bf16.msra.mxu1 %v10332_v57  ;;  %v10426_v56 = vld [vmem:[%s14527_s1 + $0x11ec] ss:$16 sps:$4 sm:$0xff]   ;;  %v10421_v57 = vld [vmem:[%s14527_s1 + $0x11e0] ss:$16 sps:$4 sm:$0xff]  }
 0x204   :  { %6887 = vmatprep.subr.bf16.mxu0 %v10337_v60  ;;  %7703 = vmatprep.subr.bf16.mxu1 %v10340_v58  ;;  %v10424_v60 = vld [vmem:[%s14527_s1 + $0x11e8] ss:$16 sps:$4 sm:$0xff]   ;;  %v10429_v58 = vld [vmem:[%s14527_s1 + $0x1204] ss:$16 sps:$4 sm:$0xff]  }
 0x205   :  { %6876 = vmatprep.mubr.bf16.mxu0 %v8266_v62  ;;  %7692 = vmatprep.mubr.bf16.mxu1 %v8266_v62  ;;  %v8235_v62 = vcombine.low %v12832_v1, %v12837_v2  ;;  %v10438_v1 = vld [vmem:[%s14527_s1 + $0x122c] ss:$16 sps:$4 sm:$0xff]   ;;  %v10433_v2 = vld [vmem:[%s14527_s1 + $0x1220] ss:$16 sps:$4 sm:$0xff]  }
 0x207   :  { %6888 = vmatpush1.bf16.msra.mxu0 %v10335_v59  ;;  %7704 = vmatpush1.bf16.msra.mxu1 %v10338_v61  ;;  %v10432_v59 = vld [vmem:[%s14527_s1 + $0x120c] ss:$16 sps:$4 sm:$0xff]   ;;  %v53_v61 = vld [vmem:[%s14528_s0 + $0x140] sm:$0xff] }
 0x208   :  { %6889 = vmatprep.subr.bf16.mxu0 %v10343_v63  ;;  %7705 = vmatprep.subr.bf16.mxu1 %v10346_v0  ;;  %v10427_v63 = vld [vmem:[%s14527_s1 + $0x1200] ss:$16 sps:$4 sm:$0xff]   ;;  %v10430_v0 = vld [vmem:[%s14527_s1 + $0x1208] ss:$16 sps:$4 sm:$0xff]  }
 0x20a   :  { %6877 = vmatmul.mubr.bf16.gmra.mrb[4].mxu0 %v8265_v3  ;;  %7693 = vmatmul.mubr.bf16.gmra.mrb[4].mxu1 %v8265_v3  ;;  %v10435_v3 = vld [vmem:[%s14527_s1 + $0x1224] ss:$16 sps:$4 sm:$0xff]  }
 0x20b   :  { %6890 = vmatpush1.bf16.msra.mxu0 %v10341_v4  ;;  %7706 = vmatpush1.bf16.msra.mxu1 %v10344_v5  ;;  %v10436_v4 = vld [vmem:[%s14527_s1 + $0x1228] ss:$16 sps:$4 sm:$0xff]   ;;  %v8268_v5 = vcombine.high %v53_v61, %v53_v61 }
 0x20c   :  { %6891 = vmatprep.subr.bf16.mxu0 %v10349_v6  ;;  %7707 = vmatprep.subr.bf16.mxu1 %v10352_v7  ;;  %v10441_v6 = vld [vmem:[%s14527_s1 + $0x1244] ss:$16 sps:$4 sm:$0xff]   ;;  %v10444_v7 = vld [vmem:[%s14527_s1 + $0x124c] ss:$16 sps:$4 sm:$0xff]  }
 0x20d   :  { %6917 = vmatprep.mubr.bf16.mxu0 %v8236_v8  ;;  %7733 = vmatprep.mubr.bf16.mxu1 %v8236_v8  ;;  %v13041_v8 = vld [vmem:[%s14528_s0 + $0x48] sm:$0xff] }
 0x20f   :  { %6892 = vmatpush1.bf16.msra.mxu0 %v10347_v9  ;;  %7708 = vmatpush1.bf16.msra.mxu1 %v10350_v10  ;;  %v13046_v9 = vld [vmem:[%s14528_s0 + $0xc8] sm:$0xff]  ;;  %v8267_v10 = vcombine.low %v53_v61, %v53_v61 }
 0x210   :  { %6893 = vmatprep.subr.bf16.mxu0 %v10355_v11  ;;  %7709 = vmatprep.subr.bf16.mxu1 %v10358_v12  ;;  %v10439_v11 = vld [vmem:[%s14527_s1 + $0x1240] ss:$16 sps:$4 sm:$0xff]   ;;  %v10442_v12 = vld [vmem:[%s14527_s1 + $0x1248] ss:$16 sps:$4 sm:$0xff]  }
 0x211   :  { %v10515_v61 = vld [vmem:[%s14527_s1 + $0x13c8] ss:$16 sps:$4 sm:$0xff]  }
 0x213   :  { %6894 = vmatpush1.bf16.msra.mxu0 %v10353_v13  ;;  %7710 = vmatpush1.bf16.msra.mxu1 %v10356_v14  ;;  %v10447_v13 = vld [vmem:[%s14527_s1 + $0x1264] ss:$16 sps:$4 sm:$0xff]   ;;  %v10450_v14 = vld [vmem:[%s14527_s1 + $0x126c] ss:$16 sps:$4 sm:$0xff]  }
 0x214   :  { %6895 = vmatprep.subr.bf16.mxu0 %v10361_v15  ;;  %7711 = vmatprep.subr.bf16.mxu1 %v10364_v16  ;;  %v8238_v15 = vcombine.high %v13041_v8, %v13046_v9  ;;  %v10445_v16 = vld [vmem:[%s14527_s1 + $0x1260] ss:$16 sps:$4 sm:$0xff]  }
 0x217   :  { %6896 = vmatpush1.bf16.msra.mxu0 %v10359_v17  ;;  %7712 = vmatpush1.bf16.msra.mxu1 %v10362_v18  ;;  %v10448_v17 = vld [vmem:[%s14527_s1 + $0x1268] ss:$16 sps:$4 sm:$0xff]   ;;  %v10453_v18 = vld [vmem:[%s14527_s1 + $0x1284] ss:$16 sps:$4 sm:$0xff]  }
 0x218   :  { %6897 = vmatprep.subr.bf16.mxu0 %v10367_v19  ;;  %7713 = vmatprep.subr.bf16.mxu1 %v10370_v20  ;;  %v10456_v19 = vld [vmem:[%s14527_s1 + $0x128c] ss:$16 sps:$4 sm:$0xff]   ;;  %v10451_v20 = vld [vmem:[%s14527_s1 + $0x1280] ss:$16 sps:$4 sm:$0xff]  }
 0x21b   :  { %6898 = vmatpush1.bf16.msra.mxu0 %v10365_v21  ;;  %7714 = vmatpush1.bf16.msra.mxu1 %v10368_v22  ;;  %v10454_v21 = vld [vmem:[%s14527_s1 + $0x1288] ss:$16 sps:$4 sm:$0xff]   ;;  %v10459_v22 = vld [vmem:[%s14527_s1 + $0x12a4] ss:$16 sps:$4 sm:$0xff]  }
 0x21c   :  { %6899 = vmatprep.subr.bf16.mxu0 %v10373_v23  ;;  %7715 = vmatprep.subr.bf16.mxu1 %v10376_v24  ;;  %v10462_v23 = vld [vmem:[%s14527_s1 + $0x12ac] ss:$16 sps:$4 sm:$0xff]   ;;  %v10457_v24 = vld [vmem:[%s14527_s1 + $0x12a0] ss:$16 sps:$4 sm:$0xff]  }
 0x21f   :  { %6900 = vmatpush1.bf16.msra.mxu0 %v10371_v25  ;;  %7716 = vmatpush1.bf16.msra.mxu1 %v10374_v26  ;;  %v10460_v25 = vld [vmem:[%s14527_s1 + $0x12a8] ss:$16 sps:$4 sm:$0xff]   ;;  %v10465_v26 = vld [vmem:[%s14527_s1 + $0x12c4] ss:$16 sps:$4 sm:$0xff]  }
 0x220   :  { %6901 = vmatprep.subr.bf16.mxu0 %v10379_v27  ;;  %7717 = vmatprep.subr.bf16.mxu1 %v10382_v28  ;;  %v10468_v27 = vld [vmem:[%s14527_s1 + $0x12cc] ss:$16 sps:$4 sm:$0xff]   ;;  %v10463_v28 = vld [vmem:[%s14527_s1 + $0x12c0] ss:$16 sps:$4 sm:$0xff]  }
 0x223   :  { %6902 = vmatpush1.bf16.msra.mxu0 %v10377_v29  ;;  %7718 = vmatpush1.bf16.msra.mxu1 %v10380_v30  ;;  %v10466_v29 = vld [vmem:[%s14527_s1 + $0x12c8] ss:$16 sps:$4 sm:$0xff]   ;;  %v10471_v30 = vld [vmem:[%s14527_s1 + $0x12e4] ss:$16 sps:$4 sm:$0xff]  }
 0x224   :  { %6903 = vmatprep.subr.bf16.mxu0 %v10385_v31  ;;  %7719 = vmatprep.subr.bf16.mxu1 %v10388_v32  ;;  %v10474_v31 = vld [vmem:[%s14527_s1 + $0x12ec] ss:$16 sps:$4 sm:$0xff]   ;;  %v10469_v32 = vld [vmem:[%s14527_s1 + $0x12e0] ss:$16 sps:$4 sm:$0xff]  }
 0x227   :  { %6904 = vmatpush1.bf16.msra.mxu0 %v10383_v33  ;;  %7720 = vmatpush1.bf16.msra.mxu1 %v10386_v34  ;;  %v10472_v33 = vld [vmem:[%s14527_s1 + $0x12e8] ss:$16 sps:$4 sm:$0xff]   ;;  %v10477_v34 = vld [vmem:[%s14527_s1 + $0x1304] ss:$16 sps:$4 sm:$0xff]  }
 0x228   :  { %6905 = vmatprep.subr.bf16.mxu0 %v10391_v35  ;;  %7721 = vmatprep.subr.bf16.mxu1 %v10394_v36  ;;  %v10480_v35 = vld [vmem:[%s14527_s1 + $0x130c] ss:$16 sps:$4 sm:$0xff]   ;;  %v10475_v36 = vld [vmem:[%s14527_s1 + $0x1300] ss:$16 sps:$4 sm:$0xff]  }
 0x22b   :  { %6906 = vmatpush1.bf16.msra.mxu0 %v10389_v37  ;;  %7722 = vmatpush1.bf16.msra.mxu1 %v10392_v38  ;;  %v10478_v37 = vld [vmem:[%s14527_s1 + $0x1308] ss:$16 sps:$4 sm:$0xff]   ;;  %v10483_v38 = vld [vmem:[%s14527_s1 + $0x1324] ss:$16 sps:$4 sm:$0xff]  }
 0x22c   :  { %6907 = vmatprep.subr.bf16.mxu0 %v10397_v39  ;;  %7723 = vmatprep.subr.bf16.mxu1 %v10400_v40  ;;  %v10486_v39 = vld [vmem:[%s14527_s1 + $0x132c] ss:$16 sps:$4 sm:$0xff]   ;;  %v10481_v40 = vld [vmem:[%s14527_s1 + $0x1320] ss:$16 sps:$4 sm:$0xff]  }
 0x22f   :  { %6908 = vmatpush1.bf16.msra.mxu0 %v10395_v41  ;;  %7724 = vmatpush1.bf16.msra.mxu1 %v10398_v42  ;;  %v10484_v41 = vld [vmem:[%s14527_s1 + $0x1328] ss:$16 sps:$4 sm:$0xff]   ;;  %v10489_v42 = vld [vmem:[%s14527_s1 + $0x1344] ss:$16 sps:$4 sm:$0xff]  }
 0x230   :  { %6909 = vmatprep.subr.bf16.mxu0 %v10403_v43  ;;  %7725 = vmatprep.subr.bf16.mxu1 %v10406_v46  ;;  %v10492_v43 = vld [vmem:[%s14527_s1 + $0x134c] ss:$16 sps:$4 sm:$0xff]   ;;  %v10487_v46 = vld [vmem:[%s14527_s1 + $0x1340] ss:$16 sps:$4 sm:$0xff]  }
 0x233   :  { %6910 = vmatpush1.bf16.msra.mxu0 %v10401_v44  ;;  %7726 = vmatpush1.bf16.msra.mxu1 %v10404_v45  ;;  %v10490_v44 = vld [vmem:[%s14527_s1 + $0x1348] ss:$16 sps:$4 sm:$0xff]   ;;  %v10495_v45 = vld [vmem:[%s14527_s1 + $0x1364] ss:$16 sps:$4 sm:$0xff]  }
 0x234   :  { %6911 = vmatprep.subr.bf16.mxu0 %v10409_v47  ;;  %7727 = vmatprep.subr.bf16.mxu1 %v10412_v48  ;;  %v10498_v47 = vld [vmem:[%s14527_s1 + $0x136c] ss:$16 sps:$4 sm:$0xff]   ;;  %v10493_v48 = vld [vmem:[%s14527_s1 + $0x1360] ss:$16 sps:$4 sm:$0xff]  }
 0x237   :  { %6912 = vmatpush1.bf16.msra.mxu0 %v10407_v49  ;;  %7728 = vmatpush1.bf16.msra.mxu1 %v10410_v50  ;;  %v10496_v49 = vld [vmem:[%s14527_s1 + $0x1368] ss:$16 sps:$4 sm:$0xff]   ;;  %v10501_v50 = vld [vmem:[%s14527_s1 + $0x1384] ss:$16 sps:$4 sm:$0xff]  }
 0x238   :  { %6913 = vmatprep.subr.bf16.mxu0 %v10416_v53  ;;  %7729 = vmatprep.subr.bf16.mxu1 %v10419_v51  ;;  %v10504_v53 = vld [vmem:[%s14527_s1 + $0x138c] ss:$16 sps:$4 sm:$0xff]   ;;  %v10499_v51 = vld [vmem:[%s14527_s1 + $0x1380] ss:$16 sps:$4 sm:$0xff]  }
 0x23b   :  { %6914 = vmatpush1.bf16.msra.mxu0 %v10414_v52  ;;  %7730 = vmatpush1.bf16.msra.mxu1 %v10417_v54  ;;  %v10502_v52 = vld [vmem:[%s14527_s1 + $0x1388] ss:$16 sps:$4 sm:$0xff]   ;;  %v10507_v54 = vld [vmem:[%s14527_s1 + $0x13a4] ss:$16 sps:$4 sm:$0xff]  }
 0x23c   :  { %6915 = vmatprep.subr.bf16.mxu0 %v10423_v55  ;;  %7731 = vmatprep.subr.bf16.mxu1 %v10426_v56  ;;  %v10510_v55 = vld [vmem:[%s14527_s1 + $0x13ac] ss:$16 sps:$4 sm:$0xff]   ;;  %v10505_v56 = vld [vmem:[%s14527_s1 + $0x13a0] ss:$16 sps:$4 sm:$0xff]  }
 0x23f   :  { %6916 = vmatpush1.bf16.msra.mxu0 %v10421_v57  ;;  %7732 = vmatpush1.bf16.msra.mxu1 %v10424_v60  ;;  %v10508_v57 = vld [vmem:[%s14527_s1 + $0x13a8] ss:$16 sps:$4 sm:$0xff]   ;;  %v10514_v60 = vld [vmem:[%s14527_s1 + $0x13c4] ss:$16 sps:$4 sm:$0xff]  }
 0x240   :  { %6936 = vmatprep.subr.bf16.mxu0 %v10429_v58  ;;  %7752 = vmatprep.subr.bf16.mxu1 %v10432_v59  ;;  %v10517_v58 = vld [vmem:[%s14527_s1 + $0x13cc] ss:$16 sps:$4 sm:$0xff]   ;;  %v10512_v59 = vld [vmem:[%s14527_s1 + $0x13c0] ss:$16 sps:$4 sm:$0xff]  }
 0x242   :  { %6918 = vmatmul.mubr.bf16.vlgmr.msra.gmra.mrb[0].mxu0 %v8235_v62  ;;  %7734 = vmatmul.mubr.bf16.vlgmr.msra.gmra.mrb[0].mxu1 %v8235_v62  ;;  %v10521_v62 = vld [vmem:[%s14527_s1 + $0x13e4] ss:$16 sps:$4 sm:$0xff]  }
 0x243   :  { %6937 = vmatpush1.bf16.msra.mxu0 %v10427_v63  ;;  %7753 = vmatpush1.bf16.msra.mxu1 %v10430_v0  ;;  %v10524_v63 = vld [vmem:[%s14527_s1 + $0x13ec] ss:$16 sps:$4 sm:$0xff]   ;;  %v10519_v0 = vld [vmem:[%s14527_s1 + $0x13e0] ss:$16 sps:$4 sm:$0xff]  }
 0x244   :  { %6938 = vmatprep.subr.bf16.mxu0 %v10435_v3  ;;  %7754 = vmatprep.subr.bf16.mxu1 %v10438_v1  ;;  %v10522_v3 = vld [vmem:[%s14527_s1 + $0x13e8] ss:$16 sps:$4 sm:$0xff]   ;;  %v10527_v1 = vld [vmem:[%s14527_s1 + $0x1404] ss:$16 sps:$4 sm:$0xff]  }
 0x245   :  { %6927 = vmatprep.mubr.bf16.mxu0 %v8268_v5  ;;  %7743 = vmatprep.mubr.bf16.mxu1 %v8268_v5  ;;  %v54_v5 = vld [vmem:[%s14528_s0 + $0x148] sm:$0xff] }
 0x247   :  { %6939 = vmatpush1.bf16.msra.mxu0 %v10433_v2  ;;  %7755 = vmatpush1.bf16.msra.mxu1 %v10436_v4  ;;  %v10530_v2 = vld [vmem:[%s14527_s1 + $0x140c] ss:$16 sps:$4 sm:$0xff]   ;;  %v8237_v4 = vcombine.low %v13041_v8, %v13046_v9  ;;  %v10533_v8 = vld [vmem:[%s14527_s1 + $0x1424] ss:$16 sps:$4 sm:$0xff]  }
 0x248   :  { %6940 = vmatprep.subr.bf16.mxu0 %v10441_v6  ;;  %7756 = vmatprep.subr.bf16.mxu1 %v10444_v7  ;;  %v10525_v6 = vld [vmem:[%s14527_s1 + $0x1400] ss:$16 sps:$4 sm:$0xff]   ;;  %v10528_v7 = vld [vmem:[%s14527_s1 + $0x1408] ss:$16 sps:$4 sm:$0xff]   ;;  %v10536_v9 = vld [vmem:[%s14527_s1 + $0x142c] ss:$16 sps:$4 sm:$0xff]  }
 0x24a   :  { %6928 = vmatmul.mubr.bf16.gmra.mrb[4].mxu0 %v8267_v10  ;;  %7744 = vmatmul.mubr.bf16.gmra.mrb[4].mxu1 %v8267_v10  ;;  %v8270_v10 = vcombine.high %v54_v5, %v54_v5 }
 0x24b   :  { %6941 = vmatpush1.bf16.msra.mxu0 %v10439_v11  ;;  %7757 = vmatpush1.bf16.msra.mxu1 %v10442_v12  ;;  %v10531_v11 = vld [vmem:[%s14527_s1 + $0x1420] ss:$16 sps:$4 sm:$0xff]   ;;  %v10534_v12 = vld [vmem:[%s14527_s1 + $0x1428] ss:$16 sps:$4 sm:$0xff]  }
 0x24c   :  { %6942 = vmatprep.subr.bf16.mxu0 %v10447_v13  ;;  %7758 = vmatprep.subr.bf16.mxu1 %v10450_v14  ;;  %v10539_v13 = vld [vmem:[%s14527_s1 + $0x1444] ss:$16 sps:$4 sm:$0xff]   ;;  %v10542_v14 = vld [vmem:[%s14527_s1 + $0x144c] ss:$16 sps:$4 sm:$0xff]  }
 0x24d   :  { %6968 = vmatprep.mubr.bf16.mxu0 %v8238_v15  ;;  %7784 = vmatprep.mubr.bf16.mxu1 %v8238_v15  ;;  %v8269_v15 = vcombine.low %v54_v5, %v54_v5  ;;  %v10619_v5 = vld [vmem:[%s14527_s1 + $0x15e4] ss:$16 sps:$4 sm:$0xff]  }
 0x24f   :  { %6943 = vmatpush1.bf16.msra.mxu0 %v10445_v16  ;;  %7759 = vmatpush1.bf16.msra.mxu1 %v10448_v17  ;;  %v13250_v16 = vld [vmem:[%s14528_s0 + $0x50] sm:$0xff] }
 0x250   :  { %6944 = vmatprep.subr.bf16.mxu0 %v10453_v18  ;;  %7760 = vmatprep.subr.bf16.mxu1 %v10456_v19  ;;  %v13255_v17 = vld [vmem:[%s14528_s0 + $0xd0] sm:$0xff]  ;;  %v10540_v19 = vld [vmem:[%s14527_s1 + $0x1448] ss:$16 sps:$4 sm:$0xff]  }
 0x251   :  { %v10537_v18 = vld [vmem:[%s14527_s1 + $0x1440] ss:$16 sps:$4 sm:$0xff]  }
 0x253   :  { %6945 = vmatpush1.bf16.msra.mxu0 %v10451_v20  ;;  %7761 = vmatpush1.bf16.msra.mxu1 %v10454_v21  ;;  %v10545_v20 = vld [vmem:[%s14527_s1 + $0x1464] ss:$16 sps:$4 sm:$0xff]   ;;  %v10548_v21 = vld [vmem:[%s14527_s1 + $0x146c] ss:$16 sps:$4 sm:$0xff]  }
 0x254   :  { %6946 = vmatprep.subr.bf16.mxu0 %v10459_v22  ;;  %7762 = vmatprep.subr.bf16.mxu1 %v10462_v23  ;;  %v8240_v22 = vcombine.high %v13250_v16, %v13255_v17  ;;  %v10543_v23 = vld [vmem:[%s14527_s1 + $0x1460] ss:$16 sps:$4 sm:$0xff]  }
 0x257   :  { %6947 = vmatpush1.bf16.msra.mxu0 %v10457_v24  ;;  %7763 = vmatpush1.bf16.msra.mxu1 %v10460_v25  ;;  %v10546_v24 = vld [vmem:[%s14527_s1 + $0x1468] ss:$16 sps:$4 sm:$0xff]   ;;  %v10551_v25 = vld [vmem:[%s14527_s1 + $0x1484] ss:$16 sps:$4 sm:$0xff]  }
 0x258   :  { %6948 = vmatprep.subr.bf16.mxu0 %v10465_v26  ;;  %7764 = vmatprep.subr.bf16.mxu1 %v10468_v27  ;;  %v10554_v26 = vld [vmem:[%s14527_s1 + $0x148c] ss:$16 sps:$4 sm:$0xff]   ;;  %v10549_v27 = vld [vmem:[%s14527_s1 + $0x1480] ss:$16 sps:$4 sm:$0xff]  }
 0x25b   :  { %6949 = vmatpush1.bf16.msra.mxu0 %v10463_v28  ;;  %7765 = vmatpush1.bf16.msra.mxu1 %v10466_v29  ;;  %v10552_v28 = vld [vmem:[%s14527_s1 + $0x1488] ss:$16 sps:$4 sm:$0xff]   ;;  %v10557_v29 = vld [vmem:[%s14527_s1 + $0x14a4] ss:$16 sps:$4 sm:$0xff]  }
 0x25c   :  { %6950 = vmatprep.subr.bf16.mxu0 %v10471_v30  ;;  %7766 = vmatprep.subr.bf16.mxu1 %v10474_v31  ;;  %v10560_v30 = vld [vmem:[%s14527_s1 + $0x14ac] ss:$16 sps:$4 sm:$0xff]   ;;  %v10555_v31 = vld [vmem:[%s14527_s1 + $0x14a0] ss:$16 sps:$4 sm:$0xff]  }
 0x25f   :  { %6951 = vmatpush1.bf16.msra.mxu0 %v10469_v32  ;;  %7767 = vmatpush1.bf16.msra.mxu1 %v10472_v33  ;;  %v10558_v32 = vld [vmem:[%s14527_s1 + $0x14a8] ss:$16 sps:$4 sm:$0xff]   ;;  %v10563_v33 = vld [vmem:[%s14527_s1 + $0x14c4] ss:$16 sps:$4 sm:$0xff]  }
 0x260   :  { %6952 = vmatprep.subr.bf16.mxu0 %v10477_v34  ;;  %7768 = vmatprep.subr.bf16.mxu1 %v10480_v35  ;;  %v10566_v34 = vld [vmem:[%s14527_s1 + $0x14cc] ss:$16 sps:$4 sm:$0xff]   ;;  %v10561_v35 = vld [vmem:[%s14527_s1 + $0x14c0] ss:$16 sps:$4 sm:$0xff]  }
 0x263   :  { %6953 = vmatpush1.bf16.msra.mxu0 %v10475_v36  ;;  %7769 = vmatpush1.bf16.msra.mxu1 %v10478_v37  ;;  %v10564_v36 = vld [vmem:[%s14527_s1 + $0x14c8] ss:$16 sps:$4 sm:$0xff]   ;;  %v10569_v37 = vld [vmem:[%s14527_s1 + $0x14e4] ss:$16 sps:$4 sm:$0xff]  }
 0x264   :  { %6954 = vmatprep.subr.bf16.mxu0 %v10483_v38  ;;  %7770 = vmatprep.subr.bf16.mxu1 %v10486_v39  ;;  %v10572_v38 = vld [vmem:[%s14527_s1 + $0x14ec] ss:$16 sps:$4 sm:$0xff]   ;;  %v10567_v39 = vld [vmem:[%s14527_s1 + $0x14e0] ss:$16 sps:$4 sm:$0xff]  }
 0x267   :  { %6955 = vmatpush1.bf16.msra.mxu0 %v10481_v40  ;;  %7771 = vmatpush1.bf16.msra.mxu1 %v10484_v41  ;;  %v10570_v40 = vld [vmem:[%s14527_s1 + $0x14e8] ss:$16 sps:$4 sm:$0xff]   ;;  %v10575_v41 = vld [vmem:[%s14527_s1 + $0x1504] ss:$16 sps:$4 sm:$0xff]  }
 0x268   :  { %6956 = vmatprep.subr.bf16.mxu0 %v10489_v42  ;;  %7772 = vmatprep.subr.bf16.mxu1 %v10492_v43  ;;  %v10578_v42 = vld [vmem:[%s14527_s1 + $0x150c] ss:$16 sps:$4 sm:$0xff]   ;;  %v10573_v43 = vld [vmem:[%s14527_s1 + $0x1500] ss:$16 sps:$4 sm:$0xff]  }
 0x26b   :  { %6957 = vmatpush1.bf16.msra.mxu0 %v10487_v46  ;;  %7773 = vmatpush1.bf16.msra.mxu1 %v10490_v44  ;;  %v10576_v46 = vld [vmem:[%s14527_s1 + $0x1508] ss:$16 sps:$4 sm:$0xff]   ;;  %v10581_v44 = vld [vmem:[%s14527_s1 + $0x1524] ss:$16 sps:$4 sm:$0xff]  }
 0x26c   :  { %6958 = vmatprep.subr.bf16.mxu0 %v10495_v45  ;;  %7774 = vmatprep.subr.bf16.mxu1 %v10498_v47  ;;  %v10584_v45 = vld [vmem:[%s14527_s1 + $0x152c] ss:$16 sps:$4 sm:$0xff]   ;;  %v10579_v47 = vld [vmem:[%s14527_s1 + $0x1520] ss:$16 sps:$4 sm:$0xff]  }
 0x26f   :  { %6959 = vmatpush1.bf16.msra.mxu0 %v10493_v48  ;;  %7775 = vmatpush1.bf16.msra.mxu1 %v10496_v49  ;;  %v10582_v48 = vld [vmem:[%s14527_s1 + $0x1528] ss:$16 sps:$4 sm:$0xff]   ;;  %v10587_v49 = vld [vmem:[%s14527_s1 + $0x1544] ss:$16 sps:$4 sm:$0xff]  }
 0x270   :  { %6960 = vmatprep.subr.bf16.mxu0 %v10501_v50  ;;  %7776 = vmatprep.subr.bf16.mxu1 %v10504_v53  ;;  %v10590_v50 = vld [vmem:[%s14527_s1 + $0x154c] ss:$16 sps:$4 sm:$0xff]   ;;  %v10585_v53 = vld [vmem:[%s14527_s1 + $0x1540] ss:$16 sps:$4 sm:$0xff]  }
 0x273   :  { %6961 = vmatpush1.bf16.msra.mxu0 %v10499_v51  ;;  %7777 = vmatpush1.bf16.msra.mxu1 %v10502_v52  ;;  %v10588_v51 = vld [vmem:[%s14527_s1 + $0x1548] ss:$16 sps:$4 sm:$0xff]   ;;  %v10593_v52 = vld [vmem:[%s14527_s1 + $0x1564] ss:$16 sps:$4 sm:$0xff]  }
 0x274   :  { %6962 = vmatprep.subr.bf16.mxu0 %v10507_v54  ;;  %7778 = vmatprep.subr.bf16.mxu1 %v10510_v55  ;;  %v10596_v54 = vld [vmem:[%s14527_s1 + $0x156c] ss:$16 sps:$4 sm:$0xff]   ;;  %v10591_v55 = vld [vmem:[%s14527_s1 + $0x1560] ss:$16 sps:$4 sm:$0xff]  }
 0x277   :  { %6963 = vmatpush1.bf16.msra.mxu0 %v10505_v56  ;;  %7779 = vmatpush1.bf16.msra.mxu1 %v10508_v57  ;;  %v10594_v56 = vld [vmem:[%s14527_s1 + $0x1568] ss:$16 sps:$4 sm:$0xff]   ;;  %v10599_v57 = vld [vmem:[%s14527_s1 + $0x1584] ss:$16 sps:$4 sm:$0xff]  }
 0x278   :  { %6964 = vmatprep.subr.bf16.mxu0 %v10514_v60  ;;  %7780 = vmatprep.subr.bf16.mxu1 %v10517_v58  ;;  %v10602_v60 = vld [vmem:[%s14527_s1 + $0x158c] ss:$16 sps:$4 sm:$0xff]   ;;  %v10597_v58 = vld [vmem:[%s14527_s1 + $0x1580] ss:$16 sps:$4 sm:$0xff]  }
 0x27b   :  { %6965 = vmatpush1.bf16.msra.mxu0 %v10512_v59  ;;  %7781 = vmatpush1.bf16.msra.mxu1 %v10515_v61  ;;  %v10600_v59 = vld [vmem:[%s14527_s1 + $0x1588] ss:$16 sps:$4 sm:$0xff]   ;;  %v10605_v61 = vld [vmem:[%s14527_s1 + $0x15a4] ss:$16 sps:$4 sm:$0xff]  }
 0x27c   :  { %6966 = vmatprep.subr.bf16.mxu0 %v10521_v62  ;;  %7782 = vmatprep.subr.bf16.mxu1 %v10524_v63  ;;  %v10608_v62 = vld [vmem:[%s14527_s1 + $0x15ac] ss:$16 sps:$4 sm:$0xff]   ;;  %v10603_v63 = vld [vmem:[%s14527_s1 + $0x15a0] ss:$16 sps:$4 sm:$0xff]  }
 0x27f   :  { %6967 = vmatpush1.bf16.msra.mxu0 %v10519_v0  ;;  %7783 = vmatpush1.bf16.msra.mxu1 %v10522_v3  ;;  %v10606_v0 = vld [vmem:[%s14527_s1 + $0x15a8] ss:$16 sps:$4 sm:$0xff]   ;;  %v10612_v3 = vld [vmem:[%s14527_s1 + $0x15c4] ss:$16 sps:$4 sm:$0xff]  }
 0x280   :  { %6987 = vmatprep.subr.bf16.mxu0 %v10527_v1  ;;  %7803 = vmatprep.subr.bf16.mxu1 %v10530_v2  ;;  %v10615_v1 = vld [vmem:[%s14527_s1 + $0x15cc] ss:$16 sps:$4 sm:$0xff]   ;;  %v10610_v2 = vld [vmem:[%s14527_s1 + $0x15c0] ss:$16 sps:$4 sm:$0xff]  }
 0x282   :  { %6969 = vmatmul.mubr.bf16.vlgmr.msra.gmra.mrb[0].mxu0 %v8237_v4  ;;  %7785 = vmatmul.mubr.bf16.vlgmr.msra.gmra.mrb[0].mxu1 %v8237_v4  ;;  %v10613_v4 = vld [vmem:[%s14527_s1 + $0x15c8] ss:$16 sps:$4 sm:$0xff]  }
 0x283   :  { %6988 = vmatpush1.bf16.msra.mxu0 %v10525_v6  ;;  %7804 = vmatpush1.bf16.msra.mxu1 %v10528_v7  ;;  %v10622_v6 = vld [vmem:[%s14527_s1 + $0x15ec] ss:$16 sps:$4 sm:$0xff]   ;;  %v10617_v7 = vld [vmem:[%s14527_s1 + $0x15e0] ss:$16 sps:$4 sm:$0xff]  }
 0x284   :  { %6989 = vmatprep.subr.bf16.mxu0 %v10533_v8  ;;  %7805 = vmatprep.subr.bf16.mxu1 %v10536_v9  ;;  %v10620_v8 = vld [vmem:[%s14527_s1 + $0x15e8] ss:$16 sps:$4 sm:$0xff]   ;;  %v10625_v9 = vld [vmem:[%s14527_s1 + $0x1604] ss:$16 sps:$4 sm:$0xff]  }
 0x285   :  { %6978 = vmatprep.mubr.bf16.mxu0 %v8270_v10  ;;  %7794 = vmatprep.mubr.bf16.mxu1 %v8270_v10  ;;  %v10628_v10 = vld [vmem:[%s14527_s1 + $0x160c] ss:$16 sps:$4 sm:$0xff]  }
 0x287   :  { %6990 = vmatpush1.bf16.msra.mxu0 %v10531_v11  ;;  %7806 = vmatpush1.bf16.msra.mxu1 %v10534_v12  ;;  %v8239_v11 = vcombine.low %v13250_v16, %v13255_v17  ;;  %v55_v12 = vld [vmem:[%s14528_s0 + $0x150] sm:$0xff]  ;;  %v10634_v16 = vld [vmem:[%s14527_s1 + $0x162c] ss:$16 sps:$4 sm:$0xff]  }
 0x288   :  { %6991 = vmatprep.subr.bf16.mxu0 %v10539_v13  ;;  %7807 = vmatprep.subr.bf16.mxu1 %v10542_v14  ;;  %v10623_v13 = vld [vmem:[%s14527_s1 + $0x1600] ss:$16 sps:$4 sm:$0xff]   ;;  %v10626_v14 = vld [vmem:[%s14527_s1 + $0x1608] ss:$16 sps:$4 sm:$0xff]   ;;  %v8272_v17 = vcombine.high %v55_v12, %v55_v12 }
 0x28a   :  { %6979 = vmatmul.mubr.bf16.gmra.mrb[4].mxu0 %v8269_v15  ;;  %7795 = vmatmul.mubr.bf16.gmra.mrb[4].mxu1 %v8269_v15  ;;  %v10631_v15 = vld [vmem:[%s14527_s1 + $0x1624] ss:$16 sps:$4 sm:$0xff]  }
 0x28b   :  { %6992 = vmatpush1.bf16.msra.mxu0 %v10537_v18  ;;  %7808 = vmatpush1.bf16.msra.mxu1 %v10540_v19  ;;  %v10629_v18 = vld [vmem:[%s14527_s1 + $0x1620] ss:$16 sps:$4 sm:$0xff]   ;;  %v10632_v19 = vld [vmem:[%s14527_s1 + $0x1628] ss:$16 sps:$4 sm:$0xff]  }
 0x28c   :  { %6993 = vmatprep.subr.bf16.mxu0 %v10545_v20  ;;  %7809 = vmatprep.subr.bf16.mxu1 %v10548_v21  ;;  %v10637_v20 = vld [vmem:[%s14527_s1 + $0x1644] ss:$16 sps:$4 sm:$0xff]   ;;  %v10640_v21 = vld [vmem:[%s14527_s1 + $0x164c] ss:$16 sps:$4 sm:$0xff]  }
 0x28d   :  { %7019 = vmatprep.mubr.bf16.mxu0 %v8240_v22  ;;  %7835 = vmatprep.mubr.bf16.mxu1 %v8240_v22  ;;  %v8271_v22 = vcombine.low %v55_v12, %v55_v12  ;;  %v10717_v12 = vld [vmem:[%s14527_s1 + $0x17e4] ss:$16 sps:$4 sm:$0xff]  }
 0x28f   :  { %6994 = vmatpush1.bf16.msra.mxu0 %v10543_v23  ;;  %7810 = vmatpush1.bf16.msra.mxu1 %v10546_v24  ;;  %v13459_v23 = vld [vmem:[%s14528_s0 + $0x58] sm:$0xff] }
 0x290   :  { %6995 = vmatprep.subr.bf16.mxu0 %v10551_v25  ;;  %7811 = vmatprep.subr.bf16.mxu1 %v10554_v26  ;;  %v13464_v24 = vld [vmem:[%s14528_s0 + $0xd8] sm:$0xff]  ;;  %v10635_v25 = vld [vmem:[%s14527_s1 + $0x1640] ss:$16 sps:$4 sm:$0xff]  }
 0x291   :  { %v10638_v26 = vld [vmem:[%s14527_s1 + $0x1648] ss:$16 sps:$4 sm:$0xff]  }
 0x293   :  { %6996 = vmatpush1.bf16.msra.mxu0 %v10549_v27  ;;  %7812 = vmatpush1.bf16.msra.mxu1 %v10552_v28  ;;  %v10643_v27 = vld [vmem:[%s14527_s1 + $0x1664] ss:$16 sps:$4 sm:$0xff]   ;;  %v10646_v28 = vld [vmem:[%s14527_s1 + $0x166c] ss:$16 sps:$4 sm:$0xff]  }
 0x294   :  { %6997 = vmatprep.subr.bf16.mxu0 %v10557_v29  ;;  %7813 = vmatprep.subr.bf16.mxu1 %v10560_v30  ;;  %v8242_v29 = vcombine.high %v13459_v23, %v13464_v24  ;;  %v10641_v30 = vld [vmem:[%s14527_s1 + $0x1660] ss:$16 sps:$4 sm:$0xff]  }
 0x297   :  { %6998 = vmatpush1.bf16.msra.mxu0 %v10555_v31  ;;  %7814 = vmatpush1.bf16.msra.mxu1 %v10558_v32  ;;  %v10644_v31 = vld [vmem:[%s14527_s1 + $0x1668] ss:$16 sps:$4 sm:$0xff]   ;;  %v10649_v32 = vld [vmem:[%s14527_s1 + $0x1684] ss:$16 sps:$4 sm:$0xff]  }
 0x298   :  { %6999 = vmatprep.subr.bf16.mxu0 %v10563_v33  ;;  %7815 = vmatprep.subr.bf16.mxu1 %v10566_v34  ;;  %v10652_v33 = vld [vmem:[%s14527_s1 + $0x168c] ss:$16 sps:$4 sm:$0xff]   ;;  %v10647_v34 = vld [vmem:[%s14527_s1 + $0x1680] ss:$16 sps:$4 sm:$0xff]  }
 0x29b   :  { %7000 = vmatpush1.bf16.msra.mxu0 %v10561_v35  ;;  %7816 = vmatpush1.bf16.msra.mxu1 %v10564_v36  ;;  %v10650_v35 = vld [vmem:[%s14527_s1 + $0x1688] ss:$16 sps:$4 sm:$0xff]   ;;  %v10655_v36 = vld [vmem:[%s14527_s1 + $0x16a4] ss:$16 sps:$4 sm:$0xff]  }
 0x29c   :  { %7001 = vmatprep.subr.bf16.mxu0 %v10569_v37  ;;  %7817 = vmatprep.subr.bf16.mxu1 %v10572_v38  ;;  %v10658_v37 = vld [vmem:[%s14527_s1 + $0x16ac] ss:$16 sps:$4 sm:$0xff]   ;;  %v10653_v38 = vld [vmem:[%s14527_s1 + $0x16a0] ss:$16 sps:$4 sm:$0xff]  }
 0x29f   :  { %7002 = vmatpush1.bf16.msra.mxu0 %v10567_v39  ;;  %7818 = vmatpush1.bf16.msra.mxu1 %v10570_v40  ;;  %v10656_v39 = vld [vmem:[%s14527_s1 + $0x16a8] ss:$16 sps:$4 sm:$0xff]   ;;  %v10661_v40 = vld [vmem:[%s14527_s1 + $0x16c4] ss:$16 sps:$4 sm:$0xff]  }
 0x2a0   :  { %7003 = vmatprep.subr.bf16.mxu0 %v10575_v41  ;;  %7819 = vmatprep.subr.bf16.mxu1 %v10578_v42  ;;  %v10664_v41 = vld [vmem:[%s14527_s1 + $0x16cc] ss:$16 sps:$4 sm:$0xff]   ;;  %v10659_v42 = vld [vmem:[%s14527_s1 + $0x16c0] ss:$16 sps:$4 sm:$0xff]  }
 0x2a3   :  { %7004 = vmatpush1.bf16.msra.mxu0 %v10573_v43  ;;  %7820 = vmatpush1.bf16.msra.mxu1 %v10576_v46  ;;  %v10662_v43 = vld [vmem:[%s14527_s1 + $0x16c8] ss:$16 sps:$4 sm:$0xff]   ;;  %v10667_v46 = vld [vmem:[%s14527_s1 + $0x16e4] ss:$16 sps:$4 sm:$0xff]  }
 0x2a4   :  { %7005 = vmatprep.subr.bf16.mxu0 %v10581_v44  ;;  %7821 = vmatprep.subr.bf16.mxu1 %v10584_v45  ;;  %v10670_v44 = vld [vmem:[%s14527_s1 + $0x16ec] ss:$16 sps:$4 sm:$0xff]   ;;  %v10665_v45 = vld [vmem:[%s14527_s1 + $0x16e0] ss:$16 sps:$4 sm:$0xff]  }
 0x2a7   :  { %7006 = vmatpush1.bf16.msra.mxu0 %v10579_v47  ;;  %7822 = vmatpush1.bf16.msra.mxu1 %v10582_v48  ;;  %v10668_v47 = vld [vmem:[%s14527_s1 + $0x16e8] ss:$16 sps:$4 sm:$0xff]   ;;  %v10673_v48 = vld [vmem:[%s14527_s1 + $0x1704] ss:$16 sps:$4 sm:$0xff]  }
 0x2a8   :  { %7007 = vmatprep.subr.bf16.mxu0 %v10587_v49  ;;  %7823 = vmatprep.subr.bf16.mxu1 %v10590_v50  ;;  %v10676_v49 = vld [vmem:[%s14527_s1 + $0x170c] ss:$16 sps:$4 sm:$0xff]   ;;  %v10671_v50 = vld [vmem:[%s14527_s1 + $0x1700] ss:$16 sps:$4 sm:$0xff]  }
 0x2ab   :  { %7008 = vmatpush1.bf16.msra.mxu0 %v10585_v53  ;;  %7824 = vmatpush1.bf16.msra.mxu1 %v10588_v51  ;;  %v10674_v53 = vld [vmem:[%s14527_s1 + $0x1708] ss:$16 sps:$4 sm:$0xff]   ;;  %v10679_v51 = vld [vmem:[%s14527_s1 + $0x1724] ss:$16 sps:$4 sm:$0xff]  }
 0x2ac   :  { %7009 = vmatprep.subr.bf16.mxu0 %v10593_v52  ;;  %7825 = vmatprep.subr.bf16.mxu1 %v10596_v54  ;;  %v10682_v52 = vld [vmem:[%s14527_s1 + $0x172c] ss:$16 sps:$4 sm:$0xff]   ;;  %v10677_v54 = vld [vmem:[%s14527_s1 + $0x1720] ss:$16 sps:$4 sm:$0xff]  }
 0x2af   :  { %7010 = vmatpush1.bf16.msra.mxu0 %v10591_v55  ;;  %7826 = vmatpush1.bf16.msra.mxu1 %v10594_v56  ;;  %v10680_v55 = vld [vmem:[%s14527_s1 + $0x1728] ss:$16 sps:$4 sm:$0xff]   ;;  %v10685_v56 = vld [vmem:[%s14527_s1 + $0x1744] ss:$16 sps:$4 sm:$0xff]  }
 0x2b0   :  { %7011 = vmatprep.subr.bf16.mxu0 %v10599_v57  ;;  %7827 = vmatprep.subr.bf16.mxu1 %v10602_v60  ;;  %v10688_v57 = vld [vmem:[%s14527_s1 + $0x174c] ss:$16 sps:$4 sm:$0xff]   ;;  %v10683_v60 = vld [vmem:[%s14527_s1 + $0x1740] ss:$16 sps:$4 sm:$0xff]  }
 0x2b3   :  { %7012 = vmatpush1.bf16.msra.mxu0 %v10597_v58  ;;  %7828 = vmatpush1.bf16.msra.mxu1 %v10600_v59  ;;  %v10686_v58 = vld [vmem:[%s14527_s1 + $0x1748] ss:$16 sps:$4 sm:$0xff]   ;;  %v10691_v59 = vld [vmem:[%s14527_s1 + $0x1764] ss:$16 sps:$4 sm:$0xff]  }
 0x2b4   :  { %7013 = vmatprep.subr.bf16.mxu0 %v10605_v61  ;;  %7829 = vmatprep.subr.bf16.mxu1 %v10608_v62  ;;  %v10694_v61 = vld [vmem:[%s14527_s1 + $0x176c] ss:$16 sps:$4 sm:$0xff]   ;;  %v10689_v62 = vld [vmem:[%s14527_s1 + $0x1760] ss:$16 sps:$4 sm:$0xff]  }
 0x2b7   :  { %7014 = vmatpush1.bf16.msra.mxu0 %v10603_v63  ;;  %7830 = vmatpush1.bf16.msra.mxu1 %v10606_v0  ;;  %v10692_v63 = vld [vmem:[%s14527_s1 + $0x1768] ss:$16 sps:$4 sm:$0xff]   ;;  %v10697_v0 = vld [vmem:[%s14527_s1 + $0x1784] ss:$16 sps:$4 sm:$0xff]  }
 0x2b8   :  { %7015 = vmatprep.subr.bf16.mxu0 %v10612_v3  ;;  %7831 = vmatprep.subr.bf16.mxu1 %v10615_v1  ;;  %v10700_v3 = vld [vmem:[%s14527_s1 + $0x178c] ss:$16 sps:$4 sm:$0xff]   ;;  %v10695_v1 = vld [vmem:[%s14527_s1 + $0x1780] ss:$16 sps:$4 sm:$0xff]  }
 0x2bb   :  { %7016 = vmatpush1.bf16.msra.mxu0 %v10610_v2  ;;  %7832 = vmatpush1.bf16.msra.mxu1 %v10613_v4  ;;  %v10698_v2 = vld [vmem:[%s14527_s1 + $0x1788] ss:$16 sps:$4 sm:$0xff]   ;;  %v10703_v4 = vld [vmem:[%s14527_s1 + $0x17a4] ss:$16 sps:$4 sm:$0xff]  }
 0x2bc   :  { %7017 = vmatprep.subr.bf16.mxu0 %v10619_v5  ;;  %7833 = vmatprep.subr.bf16.mxu1 %v10622_v6  ;;  %v10706_v5 = vld [vmem:[%s14527_s1 + $0x17ac] ss:$16 sps:$4 sm:$0xff]   ;;  %v10701_v6 = vld [vmem:[%s14527_s1 + $0x17a0] ss:$16 sps:$4 sm:$0xff]  }
 0x2bf   :  { %7018 = vmatpush1.bf16.msra.mxu0 %v10617_v7  ;;  %7834 = vmatpush1.bf16.msra.mxu1 %v10620_v8  ;;  %v10704_v7 = vld [vmem:[%s14527_s1 + $0x17a8] ss:$16 sps:$4 sm:$0xff]   ;;  %v10710_v8 = vld [vmem:[%s14527_s1 + $0x17c4] ss:$16 sps:$4 sm:$0xff]  }
 0x2c0   :  { %7038 = vmatprep.subr.bf16.mxu0 %v10625_v9  ;;  %7854 = vmatprep.subr.bf16.mxu1 %v10628_v10  ;;  %v10713_v9 = vld [vmem:[%s14527_s1 + $0x17cc] ss:$16 sps:$4 sm:$0xff]   ;;  %v10708_v10 = vld [vmem:[%s14527_s1 + $0x17c0] ss:$16 sps:$4 sm:$0xff]  }
 0x2c2   :  { %7020 = vmatmul.mubr.bf16.vlgmr.msra.gmra.mrb[0].mxu0 %v8239_v11  ;;  %7836 = vmatmul.mubr.bf16.vlgmr.msra.gmra.mrb[0].mxu1 %v8239_v11  ;;  %v10711_v11 = vld [vmem:[%s14527_s1 + $0x17c8] ss:$16 sps:$4 sm:$0xff]  }
 0x2c3   :  { %7039 = vmatpush1.bf16.msra.mxu0 %v10623_v13  ;;  %7855 = vmatpush1.bf16.msra.mxu1 %v10626_v14  ;;  %v10720_v13 = vld [vmem:[%s14527_s1 + $0x17ec] ss:$16 sps:$4 sm:$0xff]   ;;  %v10715_v14 = vld [vmem:[%s14527_s1 + $0x17e0] ss:$16 sps:$4 sm:$0xff]  }
 0x2c4   :  { %7040 = vmatprep.subr.bf16.mxu0 %v10631_v15  ;;  %7856 = vmatprep.subr.bf16.mxu1 %v10634_v16  ;;  %v10718_v15 = vld [vmem:[%s14527_s1 + $0x17e8] ss:$16 sps:$4 sm:$0xff]   ;;  %v10723_v16 = vld [vmem:[%s14527_s1 + $0x1804] ss:$16 sps:$4 sm:$0xff]  }
 0x2c5   :  { %7029 = vmatprep.mubr.bf16.mxu0 %v8272_v17  ;;  %7845 = vmatprep.mubr.bf16.mxu1 %v8272_v17  ;;  %v10726_v17 = vld [vmem:[%s14527_s1 + $0x180c] ss:$16 sps:$4 sm:$0xff]  }
 0x2c7   :  { %7041 = vmatpush1.bf16.msra.mxu0 %v10629_v18  ;;  %7857 = vmatpush1.bf16.msra.mxu1 %v10632_v19  ;;  %v8241_v18 = vcombine.low %v13459_v23, %v13464_v24  ;;  %v56_v19 = vld [vmem:[%s14528_s0 + $0x158] sm:$0xff] }
 0x2c8   :  { %7042 = vmatprep.subr.bf16.mxu0 %v10637_v20  ;;  %7858 = vmatprep.subr.bf16.mxu1 %v10640_v21  ;;  %v10721_v20 = vld [vmem:[%s14527_s1 + $0x1800] ss:$16 sps:$4 sm:$0xff]   ;;  %v10724_v21 = vld [vmem:[%s14527_s1 + $0x1808] ss:$16 sps:$4 sm:$0xff]   ;;  %v10732_v23 = vld [vmem:[%s14527_s1 + $0x182c] ss:$16 sps:$4 sm:$0xff]   ;;  %v8274_v24 = vcombine.high %v56_v19, %v56_v19 }
 0x2ca   :  { %7030 = vmatmul.mubr.bf16.gmra.mrb[4].mxu0 %v8271_v22  ;;  %7846 = vmatmul.mubr.bf16.gmra.mrb[4].mxu1 %v8271_v22  ;;  %v10729_v22 = vld [vmem:[%s14527_s1 + $0x1824] ss:$16 sps:$4 sm:$0xff]  }
 0x2cb   :  { %7043 = vmatpush1.bf16.msra.mxu0 %v10635_v25  ;;  %7859 = vmatpush1.bf16.msra.mxu1 %v10638_v26  ;;  %v10727_v25 = vld [vmem:[%s14527_s1 + $0x1820] ss:$16 sps:$4 sm:$0xff]   ;;  %v10730_v26 = vld [vmem:[%s14527_s1 + $0x1828] ss:$16 sps:$4 sm:$0xff]  }
 0x2cc   :  { %7044 = vmatprep.subr.bf16.mxu0 %v10643_v27  ;;  %7860 = vmatprep.subr.bf16.mxu1 %v10646_v28  ;;  %v10735_v27 = vld [vmem:[%s14527_s1 + $0x1844] ss:$16 sps:$4 sm:$0xff]   ;;  %v10738_v28 = vld [vmem:[%s14527_s1 + $0x184c] ss:$16 sps:$4 sm:$0xff]  }
 0x2cd   :  { %7070 = vmatprep.mubr.bf16.mxu0 %v8242_v29  ;;  %7886 = vmatprep.mubr.bf16.mxu1 %v8242_v29  ;;  %v8273_v29 = vcombine.low %v56_v19, %v56_v19  ;;  %v10815_v19 = vld [vmem:[%s14527_s1 + $0x19e4] ss:$16 sps:$4 sm:$0xff]  }
 0x2cf   :  { %7045 = vmatpush1.bf16.msra.mxu0 %v10641_v30  ;;  %7861 = vmatpush1.bf16.msra.mxu1 %v10644_v31  ;;  %v13668_v30 = vld [vmem:[%s14528_s0 + $0x60] sm:$0xff] }
 0x2d0   :  { %7046 = vmatprep.subr.bf16.mxu0 %v10649_v32  ;;  %7862 = vmatprep.subr.bf16.mxu1 %v10652_v33  ;;  %v13673_v31 = vld [vmem:[%s14528_s0 + $0xe0] sm:$0xff]  ;;  %v10736_v33 = vld [vmem:[%s14527_s1 + $0x1848] ss:$16 sps:$4 sm:$0xff]  }
 0x2d1   :  { %v10733_v32 = vld [vmem:[%s14527_s1 + $0x1840] ss:$16 sps:$4 sm:$0xff]  }
 0x2d3   :  { %7047 = vmatpush1.bf16.msra.mxu0 %v10647_v34  ;;  %7863 = vmatpush1.bf16.msra.mxu1 %v10650_v35  ;;  %v10741_v34 = vld [vmem:[%s14527_s1 + $0x1864] ss:$16 sps:$4 sm:$0xff]   ;;  %v10744_v35 = vld [vmem:[%s14527_s1 + $0x186c] ss:$16 sps:$4 sm:$0xff]  }
 0x2d4   :  { %7048 = vmatprep.subr.bf16.mxu0 %v10655_v36  ;;  %7864 = vmatprep.subr.bf16.mxu1 %v10658_v37  ;;  %v8244_v36 = vcombine.high %v13668_v30, %v13673_v31  ;;  %v10739_v37 = vld [vmem:[%s14527_s1 + $0x1860] ss:$16 sps:$4 sm:$0xff]  }
 0x2d7   :  { %7049 = vmatpush1.bf16.msra.mxu0 %v10653_v38  ;;  %7865 = vmatpush1.bf16.msra.mxu1 %v10656_v39  ;;  %v10742_v38 = vld [vmem:[%s14527_s1 + $0x1868] ss:$16 sps:$4 sm:$0xff]   ;;  %v10747_v39 = vld [vmem:[%s14527_s1 + $0x1884] ss:$16 sps:$4 sm:$0xff]  }
 0x2d8   :  { %7050 = vmatprep.subr.bf16.mxu0 %v10661_v40  ;;  %7866 = vmatprep.subr.bf16.mxu1 %v10664_v41  ;;  %v10750_v40 = vld [vmem:[%s14527_s1 + $0x188c] ss:$16 sps:$4 sm:$0xff]   ;;  %v10745_v41 = vld [vmem:[%s14527_s1 + $0x1880] ss:$16 sps:$4 sm:$0xff]  }
 0x2db   :  { %7051 = vmatpush1.bf16.msra.mxu0 %v10659_v42  ;;  %7867 = vmatpush1.bf16.msra.mxu1 %v10662_v43  ;;  %v10748_v42 = vld [vmem:[%s14527_s1 + $0x1888] ss:$16 sps:$4 sm:$0xff]   ;;  %v10753_v43 = vld [vmem:[%s14527_s1 + $0x18a4] ss:$16 sps:$4 sm:$0xff]  }
 0x2dc   :  { %7052 = vmatprep.subr.bf16.mxu0 %v10667_v46  ;;  %7868 = vmatprep.subr.bf16.mxu1 %v10670_v44  ;;  %v10756_v46 = vld [vmem:[%s14527_s1 + $0x18ac] ss:$16 sps:$4 sm:$0xff]   ;;  %v10751_v44 = vld [vmem:[%s14527_s1 + $0x18a0] ss:$16 sps:$4 sm:$0xff]  }
 0x2df   :  { %7053 = vmatpush1.bf16.msra.mxu0 %v10665_v45  ;;  %7869 = vmatpush1.bf16.msra.mxu1 %v10668_v47  ;;  %v10754_v45 = vld [vmem:[%s14527_s1 + $0x18a8] ss:$16 sps:$4 sm:$0xff]   ;;  %v10759_v47 = vld [vmem:[%s14527_s1 + $0x18c4] ss:$16 sps:$4 sm:$0xff]  }
 0x2e0   :  { %7054 = vmatprep.subr.bf16.mxu0 %v10673_v48  ;;  %7870 = vmatprep.subr.bf16.mxu1 %v10676_v49  ;;  %v10762_v48 = vld [vmem:[%s14527_s1 + $0x18cc] ss:$16 sps:$4 sm:$0xff]   ;;  %v10757_v49 = vld [vmem:[%s14527_s1 + $0x18c0] ss:$16 sps:$4 sm:$0xff]  }
 0x2e3   :  { %7055 = vmatpush1.bf16.msra.mxu0 %v10671_v50  ;;  %7871 = vmatpush1.bf16.msra.mxu1 %v10674_v53  ;;  %v10760_v50 = vld [vmem:[%s14527_s1 + $0x18c8] ss:$16 sps:$4 sm:$0xff]   ;;  %v10765_v53 = vld [vmem:[%s14527_s1 + $0x18e4] ss:$16 sps:$4 sm:$0xff]  }
 0x2e4   :  { %7056 = vmatprep.subr.bf16.mxu0 %v10679_v51  ;;  %7872 = vmatprep.subr.bf16.mxu1 %v10682_v52  ;;  %v10768_v51 = vld [vmem:[%s14527_s1 + $0x18ec] ss:$16 sps:$4 sm:$0xff]   ;;  %v10763_v52 = vld [vmem:[%s14527_s1 + $0x18e0] ss:$16 sps:$4 sm:$0xff]  }
 0x2e7   :  { %7057 = vmatpush1.bf16.msra.mxu0 %v10677_v54  ;;  %7873 = vmatpush1.bf16.msra.mxu1 %v10680_v55  ;;  %v10766_v54 = vld [vmem:[%s14527_s1 + $0x18e8] ss:$16 sps:$4 sm:$0xff]   ;;  %v10771_v55 = vld [vmem:[%s14527_s1 + $0x1904] ss:$16 sps:$4 sm:$0xff]  }
 0x2e8   :  { %7058 = vmatprep.subr.bf16.mxu0 %v10685_v56  ;;  %7874 = vmatprep.subr.bf16.mxu1 %v10688_v57  ;;  %v10774_v56 = vld [vmem:[%s14527_s1 + $0x190c] ss:$16 sps:$4 sm:$0xff]   ;;  %v10769_v57 = vld [vmem:[%s14527_s1 + $0x1900] ss:$16 sps:$4 sm:$0xff]  }
 0x2eb   :  { %7059 = vmatpush1.bf16.msra.mxu0 %v10683_v60  ;;  %7875 = vmatpush1.bf16.msra.mxu1 %v10686_v58  ;;  %v10772_v60 = vld [vmem:[%s14527_s1 + $0x1908] ss:$16 sps:$4 sm:$0xff]   ;;  %v10777_v58 = vld [vmem:[%s14527_s1 + $0x1924] ss:$16 sps:$4 sm:$0xff]  }
 0x2ec   :  { %7060 = vmatprep.subr.bf16.mxu0 %v10691_v59  ;;  %7876 = vmatprep.subr.bf16.mxu1 %v10694_v61  ;;  %v10780_v59 = vld [vmem:[%s14527_s1 + $0x192c] ss:$16 sps:$4 sm:$0xff]   ;;  %v10775_v61 = vld [vmem:[%s14527_s1 + $0x1920] ss:$16 sps:$4 sm:$0xff]  }
 0x2ef   :  { %7061 = vmatpush1.bf16.msra.mxu0 %v10689_v62  ;;  %7877 = vmatpush1.bf16.msra.mxu1 %v10692_v63  ;;  %v10778_v62 = vld [vmem:[%s14527_s1 + $0x1928] ss:$16 sps:$4 sm:$0xff]   ;;  %v10783_v63 = vld [vmem:[%s14527_s1 + $0x1944] ss:$16 sps:$4 sm:$0xff]  }
 0x2f0   :  { %7062 = vmatprep.subr.bf16.mxu0 %v10697_v0  ;;  %7878 = vmatprep.subr.bf16.mxu1 %v10700_v3  ;;  %v10786_v0 = vld [vmem:[%s14527_s1 + $0x194c] ss:$16 sps:$4 sm:$0xff]   ;;  %v10781_v3 = vld [vmem:[%s14527_s1 + $0x1940] ss:$16 sps:$4 sm:$0xff]  }
 0x2f3   :  { %7063 = vmatpush1.bf16.msra.mxu0 %v10695_v1  ;;  %7879 = vmatpush1.bf16.msra.mxu1 %v10698_v2  ;;  %v10784_v1 = vld [vmem:[%s14527_s1 + $0x1948] ss:$16 sps:$4 sm:$0xff]   ;;  %v10789_v2 = vld [vmem:[%s14527_s1 + $0x1964] ss:$16 sps:$4 sm:$0xff]  }
 0x2f4   :  { %7064 = vmatprep.subr.bf16.mxu0 %v10703_v4  ;;  %7880 = vmatprep.subr.bf16.mxu1 %v10706_v5  ;;  %v10792_v4 = vld [vmem:[%s14527_s1 + $0x196c] ss:$16 sps:$4 sm:$0xff]   ;;  %v10787_v5 = vld [vmem:[%s14527_s1 + $0x1960] ss:$16 sps:$4 sm:$0xff]  }
 0x2f7   :  { %7065 = vmatpush1.bf16.msra.mxu0 %v10701_v6  ;;  %7881 = vmatpush1.bf16.msra.mxu1 %v10704_v7  ;;  %v10790_v6 = vld [vmem:[%s14527_s1 + $0x1968] ss:$16 sps:$4 sm:$0xff]   ;;  %v10795_v7 = vld [vmem:[%s14527_s1 + $0x1984] ss:$16 sps:$4 sm:$0xff]  }
 0x2f8   :  { %7066 = vmatprep.subr.bf16.mxu0 %v10710_v8  ;;  %7882 = vmatprep.subr.bf16.mxu1 %v10713_v9  ;;  %v10798_v8 = vld [vmem:[%s14527_s1 + $0x198c] ss:$16 sps:$4 sm:$0xff]   ;;  %v10793_v9 = vld [vmem:[%s14527_s1 + $0x1980] ss:$16 sps:$4 sm:$0xff]  }
 0x2fb   :  { %7067 = vmatpush1.bf16.msra.mxu0 %v10708_v10  ;;  %7883 = vmatpush1.bf16.msra.mxu1 %v10711_v11  ;;  %v10796_v10 = vld [vmem:[%s14527_s1 + $0x1988] ss:$16 sps:$4 sm:$0xff]   ;;  %v10801_v11 = vld [vmem:[%s14527_s1 + $0x19a4] ss:$16 sps:$4 sm:$0xff]  }
 0x2fc   :  { %7068 = vmatprep.subr.bf16.mxu0 %v10717_v12  ;;  %7884 = vmatprep.subr.bf16.mxu1 %v10720_v13  ;;  %v10804_v12 = vld [vmem:[%s14527_s1 + $0x19ac] ss:$16 sps:$4 sm:$0xff]   ;;  %v10799_v13 = vld [vmem:[%s14527_s1 + $0x19a0] ss:$16 sps:$4 sm:$0xff]  }
 0x2ff   :  { %7069 = vmatpush1.bf16.msra.mxu0 %v10715_v14  ;;  %7885 = vmatpush1.bf16.msra.mxu1 %v10718_v15  ;;  %v10802_v14 = vld [vmem:[%s14527_s1 + $0x19a8] ss:$16 sps:$4 sm:$0xff]   ;;  %v10808_v15 = vld [vmem:[%s14527_s1 + $0x19c4] ss:$16 sps:$4 sm:$0xff]  }
 0x300   :  { %7089 = vmatprep.subr.bf16.mxu0 %v10723_v16  ;;  %7905 = vmatprep.subr.bf16.mxu1 %v10726_v17  ;;  %v10811_v16 = vld [vmem:[%s14527_s1 + $0x19cc] ss:$16 sps:$4 sm:$0xff]   ;;  %v10806_v17 = vld [vmem:[%s14527_s1 + $0x19c0] ss:$16 sps:$4 sm:$0xff]  }
 0x302   :  { %7071 = vmatmul.mubr.bf16.vlgmr.msra.gmra.mrb[0].mxu0 %v8241_v18  ;;  %7887 = vmatmul.mubr.bf16.vlgmr.msra.gmra.mrb[0].mxu1 %v8241_v18  ;;  %v10809_v18 = vld [vmem:[%s14527_s1 + $0x19c8] ss:$16 sps:$4 sm:$0xff]  }
 0x303   :  { %7090 = vmatpush1.bf16.msra.mxu0 %v10721_v20  ;;  %7906 = vmatpush1.bf16.msra.mxu1 %v10724_v21  ;;  %v10818_v20 = vld [vmem:[%s14527_s1 + $0x19ec] ss:$16 sps:$4 sm:$0xff]   ;;  %v10813_v21 = vld [vmem:[%s14527_s1 + $0x19e0] ss:$16 sps:$4 sm:$0xff]  }
 0x304   :  { %7091 = vmatprep.subr.bf16.mxu0 %v10729_v22  ;;  %7907 = vmatprep.subr.bf16.mxu1 %v10732_v23  ;;  %v10816_v22 = vld [vmem:[%s14527_s1 + $0x19e8] ss:$16 sps:$4 sm:$0xff]   ;;  %v10821_v23 = vld [vmem:[%s14527_s1 + $0x1a04] ss:$16 sps:$4 sm:$0xff]  }
 0x305   :  { %7080 = vmatprep.mubr.bf16.mxu0 %v8274_v24  ;;  %7896 = vmatprep.mubr.bf16.mxu1 %v8274_v24  ;;  %v10824_v24 = vld [vmem:[%s14527_s1 + $0x1a0c] ss:$16 sps:$4 sm:$0xff]  }
 0x307   :  { %7092 = vmatpush1.bf16.msra.mxu0 %v10727_v25  ;;  %7908 = vmatpush1.bf16.msra.mxu1 %v10730_v26  ;;  %v8243_v25 = vcombine.low %v13668_v30, %v13673_v31  ;;  %v57_v26 = vld [vmem:[%s14528_s0 + $0x160] sm:$0xff]  ;;  %v10830_v30 = vld [vmem:[%s14527_s1 + $0x1a2c] ss:$16 sps:$4 sm:$0xff]  }
 0x308   :  { %7093 = vmatprep.subr.bf16.mxu0 %v10735_v27  ;;  %7909 = vmatprep.subr.bf16.mxu1 %v10738_v28  ;;  %v10819_v27 = vld [vmem:[%s14527_s1 + $0x1a00] ss:$16 sps:$4 sm:$0xff]   ;;  %v10822_v28 = vld [vmem:[%s14527_s1 + $0x1a08] ss:$16 sps:$4 sm:$0xff]   ;;  %v8276_v31 = vcombine.high %v57_v26, %v57_v26 }
 0x30a   :  { %7081 = vmatmul.mubr.bf16.gmra.mrb[4].mxu0 %v8273_v29  ;;  %7897 = vmatmul.mubr.bf16.gmra.mrb[4].mxu1 %v8273_v29  ;;  %v10827_v29 = vld [vmem:[%s14527_s1 + $0x1a24] ss:$16 sps:$4 sm:$0xff]  }
 0x30b   :  { %7094 = vmatpush1.bf16.msra.mxu0 %v10733_v32  ;;  %7910 = vmatpush1.bf16.msra.mxu1 %v10736_v33  ;;  %v10825_v32 = vld [vmem:[%s14527_s1 + $0x1a20] ss:$16 sps:$4 sm:$0xff]   ;;  %v10828_v33 = vld [vmem:[%s14527_s1 + $0x1a28] ss:$16 sps:$4 sm:$0xff]  }
 0x30c   :  { %7095 = vmatprep.subr.bf16.mxu0 %v10741_v34  ;;  %7911 = vmatprep.subr.bf16.mxu1 %v10744_v35  ;;  %v10833_v34 = vld [vmem:[%s14527_s1 + $0x1a44] ss:$16 sps:$4 sm:$0xff]   ;;  %v10836_v35 = vld [vmem:[%s14527_s1 + $0x1a4c] ss:$16 sps:$4 sm:$0xff]  }
 0x30d   :  { %7121 = vmatprep.mubr.bf16.mxu0 %v8244_v36  ;;  %7937 = vmatprep.mubr.bf16.mxu1 %v8244_v36  ;;  %v8275_v36 = vcombine.low %v57_v26, %v57_v26  ;;  %v10913_v26 = vld [vmem:[%s14527_s1 + $0x1be4] ss:$16 sps:$4 sm:$0xff]  }
 0x30f   :  { %7096 = vmatpush1.bf16.msra.mxu0 %v10739_v37  ;;  %7912 = vmatpush1.bf16.msra.mxu1 %v10742_v38  ;;  %v13877_v37 = vld [vmem:[%s14528_s0 + $0x68] sm:$0xff] }
 0x310   :  { %7097 = vmatprep.subr.bf16.mxu0 %v10747_v39  ;;  %7913 = vmatprep.subr.bf16.mxu1 %v10750_v40  ;;  %v13882_v38 = vld [vmem:[%s14528_s0 + $0xe8] sm:$0xff]  ;;  %v10831_v39 = vld [vmem:[%s14527_s1 + $0x1a40] ss:$16 sps:$4 sm:$0xff]  }
 0x311   :  { %v10834_v40 = vld [vmem:[%s14527_s1 + $0x1a48] ss:$16 sps:$4 sm:$0xff]  }
 0x313   :  { %7098 = vmatpush1.bf16.msra.mxu0 %v10745_v41  ;;  %7914 = vmatpush1.bf16.msra.mxu1 %v10748_v42  ;;  %v10839_v41 = vld [vmem:[%s14527_s1 + $0x1a64] ss:$16 sps:$4 sm:$0xff]   ;;  %v10842_v42 = vld [vmem:[%s14527_s1 + $0x1a6c] ss:$16 sps:$4 sm:$0xff]  }
 0x314   :  { %7099 = vmatprep.subr.bf16.mxu0 %v10753_v43  ;;  %7915 = vmatprep.subr.bf16.mxu1 %v10756_v46  ;;  %v8246_v43 = vcombine.high %v13877_v37, %v13882_v38  ;;  %v10837_v46 = vld [vmem:[%s14527_s1 + $0x1a60] ss:$16 sps:$4 sm:$0xff]  }
 0x317   :  { %7100 = vmatpush1.bf16.msra.mxu0 %v10751_v44  ;;  %7916 = vmatpush1.bf16.msra.mxu1 %v10754_v45  ;;  %v10840_v44 = vld [vmem:[%s14527_s1 + $0x1a68] ss:$16 sps:$4 sm:$0xff]   ;;  %v10845_v45 = vld [vmem:[%s14527_s1 + $0x1a84] ss:$16 sps:$4 sm:$0xff]  }
 0x318   :  { %7101 = vmatprep.subr.bf16.mxu0 %v10759_v47  ;;  %7917 = vmatprep.subr.bf16.mxu1 %v10762_v48  ;;  %v10848_v47 = vld [vmem:[%s14527_s1 + $0x1a8c] ss:$16 sps:$4 sm:$0xff]   ;;  %v10843_v48 = vld [vmem:[%s14527_s1 + $0x1a80] ss:$16 sps:$4 sm:$0xff]  }
 0x31b   :  { %7102 = vmatpush1.bf16.msra.mxu0 %v10757_v49  ;;  %7918 = vmatpush1.bf16.msra.mxu1 %v10760_v50  ;;  %v10846_v49 = vld [vmem:[%s14527_s1 + $0x1a88] ss:$16 sps:$4 sm:$0xff]   ;;  %v10851_v50 = vld [vmem:[%s14527_s1 + $0x1aa4] ss:$16 sps:$4 sm:$0xff]  }
 0x31c   :  { %7103 = vmatprep.subr.bf16.mxu0 %v10765_v53  ;;  %7919 = vmatprep.subr.bf16.mxu1 %v10768_v51  ;;  %v10854_v53 = vld [vmem:[%s14527_s1 + $0x1aac] ss:$16 sps:$4 sm:$0xff]   ;;  %v10849_v51 = vld [vmem:[%s14527_s1 + $0x1aa0] ss:$16 sps:$4 sm:$0xff]  }
 0x31f   :  { %7104 = vmatpush1.bf16.msra.mxu0 %v10763_v52  ;;  %7920 = vmatpush1.bf16.msra.mxu1 %v10766_v54  ;;  %v10852_v52 = vld [vmem:[%s14527_s1 + $0x1aa8] ss:$16 sps:$4 sm:$0xff]   ;;  %v10857_v54 = vld [vmem:[%s14527_s1 + $0x1ac4] ss:$16 sps:$4 sm:$0xff]  }
 0x320   :  { %7105 = vmatprep.subr.bf16.mxu0 %v10771_v55  ;;  %7921 = vmatprep.subr.bf16.mxu1 %v10774_v56  ;;  %v10860_v55 = vld [vmem:[%s14527_s1 + $0x1acc] ss:$16 sps:$4 sm:$0xff]   ;;  %v10855_v56 = vld [vmem:[%s14527_s1 + $0x1ac0] ss:$16 sps:$4 sm:$0xff]  }
 0x323   :  { %7106 = vmatpush1.bf16.msra.mxu0 %v10769_v57  ;;  %7922 = vmatpush1.bf16.msra.mxu1 %v10772_v60  ;;  %v10858_v57 = vld [vmem:[%s14527_s1 + $0x1ac8] ss:$16 sps:$4 sm:$0xff]   ;;  %v10863_v60 = vld [vmem:[%s14527_s1 + $0x1ae4] ss:$16 sps:$4 sm:$0xff]  }
 0x324   :  { %7107 = vmatprep.subr.bf16.mxu0 %v10777_v58  ;;  %7923 = vmatprep.subr.bf16.mxu1 %v10780_v59  ;;  %v10866_v58 = vld [vmem:[%s14527_s1 + $0x1aec] ss:$16 sps:$4 sm:$0xff]   ;;  %v10861_v59 = vld [vmem:[%s14527_s1 + $0x1ae0] ss:$16 sps:$4 sm:$0xff]  }
 0x327   :  { %7108 = vmatpush1.bf16.msra.mxu0 %v10775_v61  ;;  %7924 = vmatpush1.bf16.msra.mxu1 %v10778_v62  ;;  %v10864_v61 = vld [vmem:[%s14527_s1 + $0x1ae8] ss:$16 sps:$4 sm:$0xff]   ;;  %v10869_v62 = vld [vmem:[%s14527_s1 + $0x1b04] ss:$16 sps:$4 sm:$0xff]  }
 0x328   :  { %7109 = vmatprep.subr.bf16.mxu0 %v10783_v63  ;;  %7925 = vmatprep.subr.bf16.mxu1 %v10786_v0  ;;  %v10872_v63 = vld [vmem:[%s14527_s1 + $0x1b0c] ss:$16 sps:$4 sm:$0xff]   ;;  %v10867_v0 = vld [vmem:[%s14527_s1 + $0x1b00] ss:$16 sps:$4 sm:$0xff]  }
 0x32b   :  { %7110 = vmatpush1.bf16.msra.mxu0 %v10781_v3  ;;  %7926 = vmatpush1.bf16.msra.mxu1 %v10784_v1  ;;  %v10870_v3 = vld [vmem:[%s14527_s1 + $0x1b08] ss:$16 sps:$4 sm:$0xff]   ;;  %v10875_v1 = vld [vmem:[%s14527_s1 + $0x1b24] ss:$16 sps:$4 sm:$0xff]  }
 0x32c   :  { %7111 = vmatprep.subr.bf16.mxu0 %v10789_v2  ;;  %7927 = vmatprep.subr.bf16.mxu1 %v10792_v4  ;;  %v10878_v2 = vld [vmem:[%s14527_s1 + $0x1b2c] ss:$16 sps:$4 sm:$0xff]   ;;  %v10873_v4 = vld [vmem:[%s14527_s1 + $0x1b20] ss:$16 sps:$4 sm:$0xff]  }
 0x32f   :  { %7112 = vmatpush1.bf16.msra.mxu0 %v10787_v5  ;;  %7928 = vmatpush1.bf16.msra.mxu1 %v10790_v6  ;;  %v10876_v5 = vld [vmem:[%s14527_s1 + $0x1b28] ss:$16 sps:$4 sm:$0xff]   ;;  %v10881_v6 = vld [vmem:[%s14527_s1 + $0x1b44] ss:$16 sps:$4 sm:$0xff]  }
 0x330   :  { %7113 = vmatprep.subr.bf16.mxu0 %v10795_v7  ;;  %7929 = vmatprep.subr.bf16.mxu1 %v10798_v8  ;;  %v10884_v7 = vld [vmem:[%s14527_s1 + $0x1b4c] ss:$16 sps:$4 sm:$0xff]   ;;  %v10879_v8 = vld [vmem:[%s14527_s1 + $0x1b40] ss:$16 sps:$4 sm:$0xff]  }
 0x333   :  { %7114 = vmatpush1.bf16.msra.mxu0 %v10793_v9  ;;  %7930 = vmatpush1.bf16.msra.mxu1 %v10796_v10  ;;  %v10882_v9 = vld [vmem:[%s14527_s1 + $0x1b48] ss:$16 sps:$4 sm:$0xff]   ;;  %v10887_v10 = vld [vmem:[%s14527_s1 + $0x1b64] ss:$16 sps:$4 sm:$0xff]  }
 0x334   :  { %7115 = vmatprep.subr.bf16.mxu0 %v10801_v11  ;;  %7931 = vmatprep.subr.bf16.mxu1 %v10804_v12  ;;  %v10890_v11 = vld [vmem:[%s14527_s1 + $0x1b6c] ss:$16 sps:$4 sm:$0xff]   ;;  %v10885_v12 = vld [vmem:[%s14527_s1 + $0x1b60] ss:$16 sps:$4 sm:$0xff]  }
 0x337   :  { %7116 = vmatpush1.bf16.msra.mxu0 %v10799_v13  ;;  %7932 = vmatpush1.bf16.msra.mxu1 %v10802_v14  ;;  %v10888_v13 = vld [vmem:[%s14527_s1 + $0x1b68] ss:$16 sps:$4 sm:$0xff]   ;;  %v10893_v14 = vld [vmem:[%s14527_s1 + $0x1b84] ss:$16 sps:$4 sm:$0xff]  }
 0x338   :  { %7117 = vmatprep.subr.bf16.mxu0 %v10808_v15  ;;  %7933 = vmatprep.subr.bf16.mxu1 %v10811_v16  ;;  %v10896_v15 = vld [vmem:[%s14527_s1 + $0x1b8c] ss:$16 sps:$4 sm:$0xff]   ;;  %v10891_v16 = vld [vmem:[%s14527_s1 + $0x1b80] ss:$16 sps:$4 sm:$0xff]  }
 0x33b   :  { %7118 = vmatpush1.bf16.msra.mxu0 %v10806_v17  ;;  %7934 = vmatpush1.bf16.msra.mxu1 %v10809_v18  ;;  %v10894_v17 = vld [vmem:[%s14527_s1 + $0x1b88] ss:$16 sps:$4 sm:$0xff]   ;;  %v10899_v18 = vld [vmem:[%s14527_s1 + $0x1ba4] ss:$16 sps:$4 sm:$0xff]  }
 0x33c   :  { %7119 = vmatprep.subr.bf16.mxu0 %v10815_v19  ;;  %7935 = vmatprep.subr.bf16.mxu1 %v10818_v20  ;;  %v10902_v19 = vld [vmem:[%s14527_s1 + $0x1bac] ss:$16 sps:$4 sm:$0xff]   ;;  %v10897_v20 = vld [vmem:[%s14527_s1 + $0x1ba0] ss:$16 sps:$4 sm:$0xff]  }
 0x33f   :  { %7120 = vmatpush1.bf16.msra.mxu0 %v10813_v21  ;;  %7936 = vmatpush1.bf16.msra.mxu1 %v10816_v22  ;;  %v10900_v21 = vld [vmem:[%s14527_s1 + $0x1ba8] ss:$16 sps:$4 sm:$0xff]   ;;  %v10906_v22 = vld [vmem:[%s14527_s1 + $0x1bc4] ss:$16 sps:$4 sm:$0xff]  }
 0x340   :  { %7140 = vmatprep.subr.bf16.mxu0 %v10821_v23  ;;  %7956 = vmatprep.subr.bf16.mxu1 %v10824_v24  ;;  %v10909_v23 = vld [vmem:[%s14527_s1 + $0x1bcc] ss:$16 sps:$4 sm:$0xff]   ;;  %v10904_v24 = vld [vmem:[%s14527_s1 + $0x1bc0] ss:$16 sps:$4 sm:$0xff]  }
 0x342   :  { %7122 = vmatmul.mubr.bf16.vlgmr.msra.gmra.mrb[0].mxu0 %v8243_v25  ;;  %7938 = vmatmul.mubr.bf16.vlgmr.msra.gmra.mrb[0].mxu1 %v8243_v25  ;;  %v10907_v25 = vld [vmem:[%s14527_s1 + $0x1bc8] ss:$16 sps:$4 sm:$0xff]  }
 0x343   :  { %7141 = vmatpush1.bf16.msra.mxu0 %v10819_v27  ;;  %7957 = vmatpush1.bf16.msra.mxu1 %v10822_v28  ;;  %v10916_v27 = vld [vmem:[%s14527_s1 + $0x1bec] ss:$16 sps:$4 sm:$0xff]   ;;  %v10911_v28 = vld [vmem:[%s14527_s1 + $0x1be0] ss:$16 sps:$4 sm:$0xff]  }
 0x344   :  { %7142 = vmatprep.subr.bf16.mxu0 %v10827_v29  ;;  %7958 = vmatprep.subr.bf16.mxu1 %v10830_v30  ;;  %v10914_v29 = vld [vmem:[%s14527_s1 + $0x1be8] ss:$16 sps:$4 sm:$0xff]   ;;  %v10919_v30 = vld [vmem:[%s14527_s1 + $0x1c04] ss:$16 sps:$4 sm:$0xff]  }
 0x345   :  { %7131 = vmatprep.mubr.bf16.mxu0 %v8276_v31  ;;  %7947 = vmatprep.mubr.bf16.mxu1 %v8276_v31  ;;  %v10922_v31 = vld [vmem:[%s14527_s1 + $0x1c0c] ss:$16 sps:$4 sm:$0xff]  }
 0x347   :  { %7143 = vmatpush1.bf16.msra.mxu0 %v10825_v32  ;;  %7959 = vmatpush1.bf16.msra.mxu1 %v10828_v33  ;;  %v8245_v32 = vcombine.low %v13877_v37, %v13882_v38  ;;  %v58_v33 = vld [vmem:[%s14528_s0 + $0x168] sm:$0xff] }
 0x348   :  { %7144 = vmatprep.subr.bf16.mxu0 %v10833_v34  ;;  %7960 = vmatprep.subr.bf16.mxu1 %v10836_v35  ;;  %v10917_v34 = vld [vmem:[%s14527_s1 + $0x1c00] ss:$16 sps:$4 sm:$0xff]   ;;  %v10920_v35 = vld [vmem:[%s14527_s1 + $0x1c08] ss:$16 sps:$4 sm:$0xff]   ;;  %v10928_v37 = vld [vmem:[%s14527_s1 + $0x1c2c] ss:$16 sps:$4 sm:$0xff]   ;;  %v8278_v38 = vcombine.high %v58_v33, %v58_v33 }
 0x34a   :  { %7132 = vmatmul.mubr.bf16.gmra.mrb[4].mxu0 %v8275_v36  ;;  %7948 = vmatmul.mubr.bf16.gmra.mrb[4].mxu1 %v8275_v36  ;;  %v10925_v36 = vld [vmem:[%s14527_s1 + $0x1c24] ss:$16 sps:$4 sm:$0xff]  }
 0x34b   :  { %7145 = vmatpush1.bf16.msra.mxu0 %v10831_v39  ;;  %7961 = vmatpush1.bf16.msra.mxu1 %v10834_v40  ;;  %v10923_v39 = vld [vmem:[%s14527_s1 + $0x1c20] ss:$16 sps:$4 sm:$0xff]   ;;  %v10926_v40 = vld [vmem:[%s14527_s1 + $0x1c28] ss:$16 sps:$4 sm:$0xff]  }
 0x34c   :  { %7146 = vmatprep.subr.bf16.mxu0 %v10839_v41  ;;  %7962 = vmatprep.subr.bf16.mxu1 %v10842_v42  ;;  %v10931_v41 = vld [vmem:[%s14527_s1 + $0x1c44] ss:$16 sps:$4 sm:$0xff]   ;;  %v10934_v42 = vld [vmem:[%s14527_s1 + $0x1c4c] ss:$16 sps:$4 sm:$0xff]  }
 0x34d   :  { %7172 = vmatprep.mubr.bf16.mxu0 %v8246_v43  ;;  %7988 = vmatprep.mubr.bf16.mxu1 %v8246_v43  ;;  %v8277_v43 = vcombine.low %v58_v33, %v58_v33  ;;  %v11011_v33 = vld [vmem:[%s14527_s1 + $0x1de4] ss:$16 sps:$4 sm:$0xff]  }
 0x34f   :  { %7147 = vmatpush1.bf16.msra.mxu0 %v10837_v46  ;;  %7963 = vmatpush1.bf16.msra.mxu1 %v10840_v44  ;;  %v14086_v46 = vld [vmem:[%s14528_s0 + $0x70] sm:$0xff] }
 0x350   :  { %7148 = vmatprep.subr.bf16.mxu0 %v10845_v45  ;;  %7964 = vmatprep.subr.bf16.mxu1 %v10848_v47  ;;  %v14091_v44 = vld [vmem:[%s14528_s0 + $0xf0] sm:$0xff]  ;;  %v10932_v47 = vld [vmem:[%s14527_s1 + $0x1c48] ss:$16 sps:$4 sm:$0xff]  }
 0x351   :  { %v10929_v45 = vld [vmem:[%s14527_s1 + $0x1c40] ss:$16 sps:$4 sm:$0xff]  }
 0x353   :  { %7149 = vmatpush1.bf16.msra.mxu0 %v10843_v48  ;;  %7965 = vmatpush1.bf16.msra.mxu1 %v10846_v49  ;;  %v10937_v48 = vld [vmem:[%s14527_s1 + $0x1c64] ss:$16 sps:$4 sm:$0xff]   ;;  %v10940_v49 = vld [vmem:[%s14527_s1 + $0x1c6c] ss:$16 sps:$4 sm:$0xff]  }
 0x354   :  { %7150 = vmatprep.subr.bf16.mxu0 %v10851_v50  ;;  %7966 = vmatprep.subr.bf16.mxu1 %v10854_v53  ;;  %v8248_v50 = vcombine.high %v14086_v46, %v14091_v44  ;;  %v10935_v53 = vld [vmem:[%s14527_s1 + $0x1c60] ss:$16 sps:$4 sm:$0xff]  }
 0x357   :  { %7151 = vmatpush1.bf16.msra.mxu0 %v10849_v51  ;;  %7967 = vmatpush1.bf16.msra.mxu1 %v10852_v52  ;;  %v10938_v51 = vld [vmem:[%s14527_s1 + $0x1c68] ss:$16 sps:$4 sm:$0xff]   ;;  %v10943_v52 = vld [vmem:[%s14527_s1 + $0x1c84] ss:$16 sps:$4 sm:$0xff]  }
 0x358   :  { %7152 = vmatprep.subr.bf16.mxu0 %v10857_v54  ;;  %7968 = vmatprep.subr.bf16.mxu1 %v10860_v55  ;;  %v10946_v54 = vld [vmem:[%s14527_s1 + $0x1c8c] ss:$16 sps:$4 sm:$0xff]   ;;  %v10941_v55 = vld [vmem:[%s14527_s1 + $0x1c80] ss:$16 sps:$4 sm:$0xff]  }
 0x35b   :  { %7153 = vmatpush1.bf16.msra.mxu0 %v10855_v56  ;;  %7969 = vmatpush1.bf16.msra.mxu1 %v10858_v57  ;;  %v10944_v56 = vld [vmem:[%s14527_s1 + $0x1c88] ss:$16 sps:$4 sm:$0xff]   ;;  %v10949_v57 = vld [vmem:[%s14527_s1 + $0x1ca4] ss:$16 sps:$4 sm:$0xff]  }
 0x35c   :  { %7154 = vmatprep.subr.bf16.mxu0 %v10863_v60  ;;  %7970 = vmatprep.subr.bf16.mxu1 %v10866_v58  ;;  %v10952_v60 = vld [vmem:[%s14527_s1 + $0x1cac] ss:$16 sps:$4 sm:$0xff]   ;;  %v10947_v58 = vld [vmem:[%s14527_s1 + $0x1ca0] ss:$16 sps:$4 sm:$0xff]  }
 0x35f   :  { %7155 = vmatpush1.bf16.msra.mxu0 %v10861_v59  ;;  %7971 = vmatpush1.bf16.msra.mxu1 %v10864_v61  ;;  %v10950_v59 = vld [vmem:[%s14527_s1 + $0x1ca8] ss:$16 sps:$4 sm:$0xff]   ;;  %v10955_v61 = vld [vmem:[%s14527_s1 + $0x1cc4] ss:$16 sps:$4 sm:$0xff]  }
 0x360   :  { %7156 = vmatprep.subr.bf16.mxu0 %v10869_v62  ;;  %7972 = vmatprep.subr.bf16.mxu1 %v10872_v63  ;;  %v10958_v62 = vld [vmem:[%s14527_s1 + $0x1ccc] ss:$16 sps:$4 sm:$0xff]   ;;  %v10953_v63 = vld [vmem:[%s14527_s1 + $0x1cc0] ss:$16 sps:$4 sm:$0xff]  }
 0x363   :  { %7157 = vmatpush1.bf16.msra.mxu0 %v10867_v0  ;;  %7973 = vmatpush1.bf16.msra.mxu1 %v10870_v3  ;;  %v10956_v0 = vld [vmem:[%s14527_s1 + $0x1cc8] ss:$16 sps:$4 sm:$0xff]   ;;  %v10961_v3 = vld [vmem:[%s14527_s1 + $0x1ce4] ss:$16 sps:$4 sm:$0xff]  }
 0x364   :  { %7158 = vmatprep.subr.bf16.mxu0 %v10875_v1  ;;  %7974 = vmatprep.subr.bf16.mxu1 %v10878_v2  ;;  %v10964_v1 = vld [vmem:[%s14527_s1 + $0x1cec] ss:$16 sps:$4 sm:$0xff]   ;;  %v10959_v2 = vld [vmem:[%s14527_s1 + $0x1ce0] ss:$16 sps:$4 sm:$0xff]  }
 0x367   :  { %7159 = vmatpush1.bf16.msra.mxu0 %v10873_v4  ;;  %7975 = vmatpush1.bf16.msra.mxu1 %v10876_v5  ;;  %v10962_v4 = vld [vmem:[%s14527_s1 + $0x1ce8] ss:$16 sps:$4 sm:$0xff]   ;;  %v10967_v5 = vld [vmem:[%s14527_s1 + $0x1d04] ss:$16 sps:$4 sm:$0xff]  }
 0x368   :  { %7160 = vmatprep.subr.bf16.mxu0 %v10881_v6  ;;  %7976 = vmatprep.subr.bf16.mxu1 %v10884_v7  ;;  %v10970_v6 = vld [vmem:[%s14527_s1 + $0x1d0c] ss:$16 sps:$4 sm:$0xff]   ;;  %v10965_v7 = vld [vmem:[%s14527_s1 + $0x1d00] ss:$16 sps:$4 sm:$0xff]  }
 0x36b   :  { %7161 = vmatpush1.bf16.msra.mxu0 %v10879_v8  ;;  %7977 = vmatpush1.bf16.msra.mxu1 %v10882_v9  ;;  %v10968_v8 = vld [vmem:[%s14527_s1 + $0x1d08] ss:$16 sps:$4 sm:$0xff]   ;;  %v10973_v9 = vld [vmem:[%s14527_s1 + $0x1d24] ss:$16 sps:$4 sm:$0xff]  }
 0x36c   :  { %7162 = vmatprep.subr.bf16.mxu0 %v10887_v10  ;;  %7978 = vmatprep.subr.bf16.mxu1 %v10890_v11  ;;  %v10976_v10 = vld [vmem:[%s14527_s1 + $0x1d2c] ss:$16 sps:$4 sm:$0xff]   ;;  %v10971_v11 = vld [vmem:[%s14527_s1 + $0x1d20] ss:$16 sps:$4 sm:$0xff]  }
 0x36f   :  { %7163 = vmatpush1.bf16.msra.mxu0 %v10885_v12  ;;  %7979 = vmatpush1.bf16.msra.mxu1 %v10888_v13  ;;  %v10974_v12 = vld [vmem:[%s14527_s1 + $0x1d28] ss:$16 sps:$4 sm:$0xff]   ;;  %v10979_v13 = vld [vmem:[%s14527_s1 + $0x1d44] ss:$16 sps:$4 sm:$0xff]  }
 0x370   :  { %7164 = vmatprep.subr.bf16.mxu0 %v10893_v14  ;;  %7980 = vmatprep.subr.bf16.mxu1 %v10896_v15  ;;  %v10982_v14 = vld [vmem:[%s14527_s1 + $0x1d4c] ss:$16 sps:$4 sm:$0xff]   ;;  %v10977_v15 = vld [vmem:[%s14527_s1 + $0x1d40] ss:$16 sps:$4 sm:$0xff]  }
 0x373   :  { %7165 = vmatpush1.bf16.msra.mxu0 %v10891_v16  ;;  %7981 = vmatpush1.bf16.msra.mxu1 %v10894_v17  ;;  %v10980_v16 = vld [vmem:[%s14527_s1 + $0x1d48] ss:$16 sps:$4 sm:$0xff]   ;;  %v10985_v17 = vld [vmem:[%s14527_s1 + $0x1d64] ss:$16 sps:$4 sm:$0xff]  }
 0x374   :  { %7166 = vmatprep.subr.bf16.mxu0 %v10899_v18  ;;  %7982 = vmatprep.subr.bf16.mxu1 %v10902_v19  ;;  %v10988_v18 = vld [vmem:[%s14527_s1 + $0x1d6c] ss:$16 sps:$4 sm:$0xff]   ;;  %v10983_v19 = vld [vmem:[%s14527_s1 + $0x1d60] ss:$16 sps:$4 sm:$0xff]  }
 0x377   :  { %7167 = vmatpush1.bf16.msra.mxu0 %v10897_v20  ;;  %7983 = vmatpush1.bf16.msra.mxu1 %v10900_v21  ;;  %v10986_v20 = vld [vmem:[%s14527_s1 + $0x1d68] ss:$16 sps:$4 sm:$0xff]   ;;  %v10991_v21 = vld [vmem:[%s14527_s1 + $0x1d84] ss:$16 sps:$4 sm:$0xff]  }
 0x378   :  { %7168 = vmatprep.subr.bf16.mxu0 %v10906_v22  ;;  %7984 = vmatprep.subr.bf16.mxu1 %v10909_v23  ;;  %v10994_v22 = vld [vmem:[%s14527_s1 + $0x1d8c] ss:$16 sps:$4 sm:$0xff]   ;;  %v10989_v23 = vld [vmem:[%s14527_s1 + $0x1d80] ss:$16 sps:$4 sm:$0xff]  }
 0x37b   :  { %7169 = vmatpush1.bf16.msra.mxu0 %v10904_v24  ;;  %7985 = vmatpush1.bf16.msra.mxu1 %v10907_v25  ;;  %v10992_v24 = vld [vmem:[%s14527_s1 + $0x1d88] ss:$16 sps:$4 sm:$0xff]   ;;  %v10997_v25 = vld [vmem:[%s14527_s1 + $0x1da4] ss:$16 sps:$4 sm:$0xff]  }
 0x37c   :  { %7170 = vmatprep.subr.bf16.mxu0 %v10913_v26  ;;  %7986 = vmatprep.subr.bf16.mxu1 %v10916_v27  ;;  %v11000_v26 = vld [vmem:[%s14527_s1 + $0x1dac] ss:$16 sps:$4 sm:$0xff]   ;;  %v10995_v27 = vld [vmem:[%s14527_s1 + $0x1da0] ss:$16 sps:$4 sm:$0xff]  }
 0x37f   :  { %7171 = vmatpush1.bf16.msra.mxu0 %v10911_v28  ;;  %7987 = vmatpush1.bf16.msra.mxu1 %v10914_v29  ;;  %v10998_v28 = vld [vmem:[%s14527_s1 + $0x1da8] ss:$16 sps:$4 sm:$0xff]   ;;  %v11004_v29 = vld [vmem:[%s14527_s1 + $0x1dc4] ss:$16 sps:$4 sm:$0xff]  }
 0x380   :  { %7191 = vmatprep.subr.bf16.mxu0 %v10919_v30  ;;  %8007 = vmatprep.subr.bf16.mxu1 %v10922_v31  ;;  %v11007_v30 = vld [vmem:[%s14527_s1 + $0x1dcc] ss:$16 sps:$4 sm:$0xff]   ;;  %v11002_v31 = vld [vmem:[%s14527_s1 + $0x1dc0] ss:$16 sps:$4 sm:$0xff]  }
 0x382   :  { %7173 = vmatmul.mubr.bf16.vlgmr.msra.gmra.mrb[0].mxu0 %v8245_v32  ;;  %7989 = vmatmul.mubr.bf16.vlgmr.msra.gmra.mrb[0].mxu1 %v8245_v32  ;;  %v11005_v32 = vld [vmem:[%s14527_s1 + $0x1dc8] ss:$16 sps:$4 sm:$0xff]  }
 0x383   :  { %7192 = vmatpush1.bf16.msra.mxu0 %v10917_v34  ;;  %8008 = vmatpush1.bf16.msra.mxu1 %v10920_v35  ;;  %v11014_v34 = vld [vmem:[%s14527_s1 + $0x1dec] ss:$16 sps:$4 sm:$0xff]   ;;  %v11009_v35 = vld [vmem:[%s14527_s1 + $0x1de0] ss:$16 sps:$4 sm:$0xff]  }
 0x384   :  { %7193 = vmatprep.subr.bf16.mxu0 %v10925_v36  ;;  %8009 = vmatprep.subr.bf16.mxu1 %v10928_v37  ;;  %v11012_v36 = vld [vmem:[%s14527_s1 + $0x1de8] ss:$16 sps:$4 sm:$0xff]   ;;  %v11017_v37 = vld [vmem:[%s14527_s1 + $0x1e04] ss:$16 sps:$4 sm:$0xff]  }
 0x385   :  { %7182 = vmatprep.mubr.bf16.mxu0 %v8278_v38  ;;  %7998 = vmatprep.mubr.bf16.mxu1 %v8278_v38  ;;  %v11020_v38 = vld [vmem:[%s14527_s1 + $0x1e0c] ss:$16 sps:$4 sm:$0xff]  }
 0x387   :  { %7194 = vmatpush1.bf16.msra.mxu0 %v10923_v39  ;;  %8010 = vmatpush1.bf16.msra.mxu1 %v10926_v40  ;;  %v8247_v39 = vcombine.low %v14086_v46, %v14091_v44  ;;  %v59_v40 = vld [vmem:[%s14528_s0 + $0x170] sm:$0xff]  ;;  %v11026_v46 = vld [vmem:[%s14527_s1 + $0x1e2c] ss:$16 sps:$4 sm:$0xff]  }
 0x388   :  { %7195 = vmatprep.subr.bf16.mxu0 %v10931_v41  ;;  %8011 = vmatprep.subr.bf16.mxu1 %v10934_v42  ;;  %v11015_v41 = vld [vmem:[%s14527_s1 + $0x1e00] ss:$16 sps:$4 sm:$0xff]   ;;  %v11018_v42 = vld [vmem:[%s14527_s1 + $0x1e08] ss:$16 sps:$4 sm:$0xff]   ;;  %v8280_v44 = vcombine.high %v59_v40, %v59_v40 }
 0x38a   :  { %7183 = vmatmul.mubr.bf16.gmra.mrb[4].mxu0 %v8277_v43  ;;  %7999 = vmatmul.mubr.bf16.gmra.mrb[4].mxu1 %v8277_v43  ;;  %v11023_v43 = vld [vmem:[%s14527_s1 + $0x1e24] ss:$16 sps:$4 sm:$0xff]  }
 0x38b   :  { %7196 = vmatpush1.bf16.msra.mxu0 %v10929_v45  ;;  %8012 = vmatpush1.bf16.msra.mxu1 %v10932_v47  ;;  %v11021_v45 = vld [vmem:[%s14527_s1 + $0x1e20] ss:$16 sps:$4 sm:$0xff]   ;;  %v11024_v47 = vld [vmem:[%s14527_s1 + $0x1e28] ss:$16 sps:$4 sm:$0xff]  }
 0x38c   :  { %7197 = vmatprep.subr.bf16.mxu0 %v10937_v48  ;;  %8013 = vmatprep.subr.bf16.mxu1 %v10940_v49  ;;  %v11029_v48 = vld [vmem:[%s14527_s1 + $0x1e44] ss:$16 sps:$4 sm:$0xff]   ;;  %v11032_v49 = vld [vmem:[%s14527_s1 + $0x1e4c] ss:$16 sps:$4 sm:$0xff]  }
 0x38d   :  { %7223 = vmatprep.mubr.bf16.mxu0 %v8248_v50  ;;  %8039 = vmatprep.mubr.bf16.mxu1 %v8248_v50  ;;  %v8279_v50 = vcombine.low %v59_v40, %v59_v40  ;;  %v11109_v40 = vld [vmem:[%s14527_s1 + $0x1fe4] ss:$16 sps:$4 sm:$0xff]  }
 0x38f   :  { %7198 = vmatpush1.bf16.msra.mxu0 %v10935_v53  ;;  %8014 = vmatpush1.bf16.msra.mxu1 %v10938_v51  ;;  %v14295_v53 = vld [vmem:[%s14528_s0 + $0x78] sm:$0xff] }
 0x390   :  { %7199 = vmatprep.subr.bf16.mxu0 %v10943_v52  ;;  %8015 = vmatprep.subr.bf16.mxu1 %v10946_v54  ;;  %v14300_v51 = vld [vmem:[%s14528_s0 + $0xf8] sm:$0xff]  ;;  %v11027_v52 = vld [vmem:[%s14527_s1 + $0x1e40] ss:$16 sps:$4 sm:$0xff]  }
 0x391   :  { %v11030_v54 = vld [vmem:[%s14527_s1 + $0x1e48] ss:$16 sps:$4 sm:$0xff]  }
 0x393   :  { %7200 = vmatpush1.bf16.msra.mxu0 %v10941_v55  ;;  %8016 = vmatpush1.bf16.msra.mxu1 %v10944_v56  ;;  %v11035_v55 = vld [vmem:[%s14527_s1 + $0x1e64] ss:$16 sps:$4 sm:$0xff]   ;;  %v11038_v56 = vld [vmem:[%s14527_s1 + $0x1e6c] ss:$16 sps:$4 sm:$0xff]  }
 0x394   :  { %7201 = vmatprep.subr.bf16.mxu0 %v10949_v57  ;;  %8017 = vmatprep.subr.bf16.mxu1 %v10952_v60  ;;  %v8250_v57 = vcombine.high %v14295_v53, %v14300_v51  ;;  %v11033_v60 = vld [vmem:[%s14527_s1 + $0x1e60] ss:$16 sps:$4 sm:$0xff]  }
 0x397   :  { %7202 = vmatpush1.bf16.msra.mxu0 %v10947_v58  ;;  %8018 = vmatpush1.bf16.msra.mxu1 %v10950_v59  ;;  %v11036_v58 = vld [vmem:[%s14527_s1 + $0x1e68] ss:$16 sps:$4 sm:$0xff]   ;;  %v11041_v59 = vld [vmem:[%s14527_s1 + $0x1e84] ss:$16 sps:$4 sm:$0xff]  }
 0x398   :  { %7203 = vmatprep.subr.bf16.mxu0 %v10955_v61  ;;  %8019 = vmatprep.subr.bf16.mxu1 %v10958_v62  ;;  %v11044_v61 = vld [vmem:[%s14527_s1 + $0x1e8c] ss:$16 sps:$4 sm:$0xff]   ;;  %v11039_v62 = vld [vmem:[%s14527_s1 + $0x1e80] ss:$16 sps:$4 sm:$0xff]  }
 0x39b   :  { %7204 = vmatpush1.bf16.msra.mxu0 %v10953_v63  ;;  %8020 = vmatpush1.bf16.msra.mxu1 %v10956_v0  ;;  %v11042_v63 = vld [vmem:[%s14527_s1 + $0x1e88] ss:$16 sps:$4 sm:$0xff]   ;;  %v11047_v0 = vld [vmem:[%s14527_s1 + $0x1ea4] ss:$16 sps:$4 sm:$0xff]  }
 0x39c   :  { %7205 = vmatprep.subr.bf16.mxu0 %v10961_v3  ;;  %8021 = vmatprep.subr.bf16.mxu1 %v10964_v1  ;;  %v11050_v3 = vld [vmem:[%s14527_s1 + $0x1eac] ss:$16 sps:$4 sm:$0xff]   ;;  %v11045_v1 = vld [vmem:[%s14527_s1 + $0x1ea0] ss:$16 sps:$4 sm:$0xff]  }
 0x39f   :  { %7206 = vmatpush1.bf16.msra.mxu0 %v10959_v2  ;;  %8022 = vmatpush1.bf16.msra.mxu1 %v10962_v4  ;;  %v11048_v2 = vld [vmem:[%s14527_s1 + $0x1ea8] ss:$16 sps:$4 sm:$0xff]   ;;  %v11053_v4 = vld [vmem:[%s14527_s1 + $0x1ec4] ss:$16 sps:$4 sm:$0xff]  }
 0x3a0   :  { %7207 = vmatprep.subr.bf16.mxu0 %v10967_v5  ;;  %8023 = vmatprep.subr.bf16.mxu1 %v10970_v6  ;;  %v11056_v5 = vld [vmem:[%s14527_s1 + $0x1ecc] ss:$16 sps:$4 sm:$0xff]   ;;  %v11051_v6 = vld [vmem:[%s14527_s1 + $0x1ec0] ss:$16 sps:$4 sm:$0xff]  }
 0x3a3   :  { %7208 = vmatpush1.bf16.msra.mxu0 %v10965_v7  ;;  %8024 = vmatpush1.bf16.msra.mxu1 %v10968_v8  ;;  %v11054_v7 = vld [vmem:[%s14527_s1 + $0x1ec8] ss:$16 sps:$4 sm:$0xff]   ;;  %v11059_v8 = vld [vmem:[%s14527_s1 + $0x1ee4] ss:$16 sps:$4 sm:$0xff]  }
 0x3a4   :  { %7209 = vmatprep.subr.bf16.mxu0 %v10973_v9  ;;  %8025 = vmatprep.subr.bf16.mxu1 %v10976_v10  ;;  %v11062_v9 = vld [vmem:[%s14527_s1 + $0x1eec] ss:$16 sps:$4 sm:$0xff]   ;;  %v11057_v10 = vld [vmem:[%s14527_s1 + $0x1ee0] ss:$16 sps:$4 sm:$0xff]  }
 0x3a7   :  { %7210 = vmatpush1.bf16.msra.mxu0 %v10971_v11  ;;  %8026 = vmatpush1.bf16.msra.mxu1 %v10974_v12  ;;  %v11060_v11 = vld [vmem:[%s14527_s1 + $0x1ee8] ss:$16 sps:$4 sm:$0xff]   ;;  %v11065_v12 = vld [vmem:[%s14527_s1 + $0x1f04] ss:$16 sps:$4 sm:$0xff]  }
 0x3a8   :  { %7211 = vmatprep.subr.bf16.mxu0 %v10979_v13  ;;  %8027 = vmatprep.subr.bf16.mxu1 %v10982_v14  ;;  %v11068_v13 = vld [vmem:[%s14527_s1 + $0x1f0c] ss:$16 sps:$4 sm:$0xff]   ;;  %v11063_v14 = vld [vmem:[%s14527_s1 + $0x1f00] ss:$16 sps:$4 sm:$0xff]  }
 0x3ab   :  { %7212 = vmatpush1.bf16.msra.mxu0 %v10977_v15  ;;  %8028 = vmatpush1.bf16.msra.mxu1 %v10980_v16  ;;  %v11066_v15 = vld [vmem:[%s14527_s1 + $0x1f08] ss:$16 sps:$4 sm:$0xff]   ;;  %v11071_v16 = vld [vmem:[%s14527_s1 + $0x1f24] ss:$16 sps:$4 sm:$0xff]  }
 0x3ac   :  { %7213 = vmatprep.subr.bf16.mxu0 %v10985_v17  ;;  %8029 = vmatprep.subr.bf16.mxu1 %v10988_v18  ;;  %v11074_v17 = vld [vmem:[%s14527_s1 + $0x1f2c] ss:$16 sps:$4 sm:$0xff]   ;;  %v11069_v18 = vld [vmem:[%s14527_s1 + $0x1f20] ss:$16 sps:$4 sm:$0xff]  }
 0x3af   :  { %7214 = vmatpush1.bf16.msra.mxu0 %v10983_v19  ;;  %8030 = vmatpush1.bf16.msra.mxu1 %v10986_v20  ;;  %v11072_v19 = vld [vmem:[%s14527_s1 + $0x1f28] ss:$16 sps:$4 sm:$0xff]   ;;  %v11077_v20 = vld [vmem:[%s14527_s1 + $0x1f44] ss:$16 sps:$4 sm:$0xff]  }
 0x3b0   :  { %7215 = vmatprep.subr.bf16.mxu0 %v10991_v21  ;;  %8031 = vmatprep.subr.bf16.mxu1 %v10994_v22  ;;  %v11080_v21 = vld [vmem:[%s14527_s1 + $0x1f4c] ss:$16 sps:$4 sm:$0xff]   ;;  %v11075_v22 = vld [vmem:[%s14527_s1 + $0x1f40] ss:$16 sps:$4 sm:$0xff]  }
 0x3b3   :  { %7216 = vmatpush1.bf16.msra.mxu0 %v10989_v23  ;;  %8032 = vmatpush1.bf16.msra.mxu1 %v10992_v24  ;;  %v11078_v23 = vld [vmem:[%s14527_s1 + $0x1f48] ss:$16 sps:$4 sm:$0xff]   ;;  %v11083_v24 = vld [vmem:[%s14527_s1 + $0x1f64] ss:$16 sps:$4 sm:$0xff]  }
 0x3b4   :  { %7217 = vmatprep.subr.bf16.mxu0 %v10997_v25  ;;  %8033 = vmatprep.subr.bf16.mxu1 %v11000_v26  ;;  %v11086_v25 = vld [vmem:[%s14527_s1 + $0x1f6c] ss:$16 sps:$4 sm:$0xff]   ;;  %v11081_v26 = vld [vmem:[%s14527_s1 + $0x1f60] ss:$16 sps:$4 sm:$0xff]  }
 0x3b7   :  { %7218 = vmatpush1.bf16.msra.mxu0 %v10995_v27  ;;  %8034 = vmatpush1.bf16.msra.mxu1 %v10998_v28  ;;  %v11084_v27 = vld [vmem:[%s14527_s1 + $0x1f68] ss:$16 sps:$4 sm:$0xff]   ;;  %v11089_v28 = vld [vmem:[%s14527_s1 + $0x1f84] ss:$16 sps:$4 sm:$0xff]  }
 0x3b8   :  { %7219 = vmatprep.subr.bf16.mxu0 %v11004_v29  ;;  %8035 = vmatprep.subr.bf16.mxu1 %v11007_v30  ;;  %v11092_v29 = vld [vmem:[%s14527_s1 + $0x1f8c] ss:$16 sps:$4 sm:$0xff]   ;;  %v11087_v30 = vld [vmem:[%s14527_s1 + $0x1f80] ss:$16 sps:$4 sm:$0xff]  }
 0x3bb   :  { %7220 = vmatpush1.bf16.msra.mxu0 %v11002_v31  ;;  %8036 = vmatpush1.bf16.msra.mxu1 %v11005_v32  ;;  %v11090_v31 = vld [vmem:[%s14527_s1 + $0x1f88] ss:$16 sps:$4 sm:$0xff]   ;;  %v11095_v32 = vld [vmem:[%s14527_s1 + $0x1fa4] ss:$16 sps:$4 sm:$0xff]  }
 0x3bc   :  { %7221 = vmatprep.subr.bf16.mxu0 %v11011_v33  ;;  %8037 = vmatprep.subr.bf16.mxu1 %v11014_v34  ;;  %v11098_v33 = vld [vmem:[%s14527_s1 + $0x1fac] ss:$16 sps:$4 sm:$0xff]   ;;  %v11093_v34 = vld [vmem:[%s14527_s1 + $0x1fa0] ss:$16 sps:$4 sm:$0xff]  }
 0x3bf   :  { %7222 = vmatpush1.bf16.msra.mxu0 %v11009_v35  ;;  %8038 = vmatpush1.bf16.msra.mxu1 %v11012_v36  ;;  %v11096_v35 = vld [vmem:[%s14527_s1 + $0x1fa8] ss:$16 sps:$4 sm:$0xff]   ;;  %v11103_v36 = vld [vmem:[%s14527_s1 + $0x1fc4] ss:$16 sps:$4 sm:$0xff]  }
 0x3c0   :  { %7242 = vmatprep.subr.bf16.mxu0 %v11017_v37  ;;  %8058 = vmatprep.subr.bf16.mxu1 %v11020_v38  ;;  %v11106_v37 = vld [vmem:[%s14527_s1 + $0x1fcc] ss:$16 sps:$4 sm:$0xff]   ;;  %v11101_v38 = vld [vmem:[%s14527_s1 + $0x1fc0] ss:$16 sps:$4 sm:$0xff]  }
 0x3c2   :  { %7224 = vmatmul.mubr.bf16.vlgmr.msra.gmra.mrb[0].mxu0 %v8247_v39  ;;  %8040 = vmatmul.mubr.bf16.vlgmr.msra.gmra.mrb[0].mxu1 %v8247_v39  ;;  %v11104_v39 = vld [vmem:[%s14527_s1 + $0x1fc8] ss:$16 sps:$4 sm:$0xff]  }
 0x3c3   :  { %7243 = vmatpush1.bf16.msra.mxu0 %v11015_v41  ;;  %8059 = vmatpush1.bf16.msra.mxu1 %v11018_v42  ;;  %v11112_v41 = vld [vmem:[%s14527_s1 + $0x1fec] ss:$16 sps:$4 sm:$0xff]   ;;  %v11107_v42 = vld [vmem:[%s14527_s1 + $0x1fe0] ss:$16 sps:$4 sm:$0xff]  }
 0x3c4   :  { %7244 = vmatprep.subr.bf16.mxu0 %v11023_v43  ;;  %8060 = vmatprep.subr.bf16.mxu1 %v11026_v46  ;;  %v11110_v43 = vld [vmem:[%s14527_s1 + $0x1fe8] ss:$16 sps:$4 sm:$0xff]  }
 0x3c5   :  { %7233 = vmatprep.mubr.bf16.mxu0 %v8280_v44  ;;  %8049 = vmatprep.mubr.bf16.mxu1 %v8280_v44  ;;  %v60_v46 = vld [vmem:[%s14528_s0 + $0x178] sm:$0xff]  ;;  %v8249_v44 = vcombine.low %v14295_v53, %v14300_v51 }
 0x3c7   :  { %7245 = vmatpush1.bf16.msra.mxu0 %v11021_v45  ;;  %8061 = vmatpush1.bf16.msra.mxu1 %v11024_v47  ;;  %v8282_v45 = vcombine.high %v60_v46, %v60_v46  ;;  %v8281_v47 = vcombine.low %v60_v46, %v60_v46 }
 0x3c8   :  { %7246 = vmatprep.subr.bf16.mxu0 %v11029_v48  ;;  %8062 = vmatprep.subr.bf16.mxu1 %v11032_v49 }
 0x3ca   :  { %7234 = vmatmul.mubr.bf16.gmra.mrb[4].mxu0 %v8279_v50  ;;  %8050 = vmatmul.mubr.bf16.gmra.mrb[4].mxu1 %v8279_v50 }
 0x3cb   :  { %7247 = vmatpush1.bf16.msra.mxu0 %v11027_v52  ;;  %8063 = vmatpush1.bf16.msra.mxu1 %v11030_v54 }
 0x3cc   :  { %7248 = vmatprep.subr.bf16.mxu0 %v11035_v55  ;;  %8064 = vmatprep.subr.bf16.mxu1 %v11038_v56 }
 0x3cd   :  { %7274 = vmatprep.mubr.bf16.mxu0 %v8250_v57  ;;  %8090 = vmatprep.mubr.bf16.mxu1 %v8250_v57 }
 0x3cf   :  { %7249 = vmatpush1.bf16.msra.mxu0 %v11033_v60  ;;  %8065 = vmatpush1.bf16.msra.mxu1 %v11036_v58 }
 0x3d0   :  { %7250 = vmatprep.subr.bf16.mxu0 %v11041_v59  ;;  %8066 = vmatprep.subr.bf16.mxu1 %v11044_v61 }
 0x3d3   :  { %7251 = vmatpush1.bf16.msra.mxu0 %v11039_v62  ;;  %8067 = vmatpush1.bf16.msra.mxu1 %v11042_v63 }
 0x3d4   :  { %7252 = vmatprep.subr.bf16.mxu0 %v11047_v0  ;;  %8068 = vmatprep.subr.bf16.mxu1 %v11050_v3 }
 0x3d7   :  { %7253 = vmatpush1.bf16.msra.mxu0 %v11045_v1  ;;  %8069 = vmatpush1.bf16.msra.mxu1 %v11048_v2 }
 0x3d8   :  { %7254 = vmatprep.subr.bf16.mxu0 %v11053_v4  ;;  %8070 = vmatprep.subr.bf16.mxu1 %v11056_v5 }
 0x3db   :  { %7255 = vmatpush1.bf16.msra.mxu0 %v11051_v6  ;;  %8071 = vmatpush1.bf16.msra.mxu1 %v11054_v7 }
 0x3dc   :  { %7256 = vmatprep.subr.bf16.mxu0 %v11059_v8  ;;  %8072 = vmatprep.subr.bf16.mxu1 %v11062_v9 }
 0x3df   :  { %7257 = vmatpush1.bf16.msra.mxu0 %v11057_v10  ;;  %8073 = vmatpush1.bf16.msra.mxu1 %v11060_v11 }
 0x3e0   :  { %7258 = vmatprep.subr.bf16.mxu0 %v11065_v12  ;;  %8074 = vmatprep.subr.bf16.mxu1 %v11068_v13 }
 0x3e3   :  { %7259 = vmatpush1.bf16.msra.mxu0 %v11063_v14  ;;  %8075 = vmatpush1.bf16.msra.mxu1 %v11066_v15 }
 0x3e4   :  { %7260 = vmatprep.subr.bf16.mxu0 %v11071_v16  ;;  %8076 = vmatprep.subr.bf16.mxu1 %v11074_v17 }
 0x3e7   :  { %7261 = vmatpush1.bf16.msra.mxu0 %v11069_v18  ;;  %8077 = vmatpush1.bf16.msra.mxu1 %v11072_v19 }
 0x3e8   :  { %7262 = vmatprep.subr.bf16.mxu0 %v11077_v20  ;;  %8078 = vmatprep.subr.bf16.mxu1 %v11080_v21 }
 0x3eb   :  { %7263 = vmatpush1.bf16.msra.mxu0 %v11075_v22  ;;  %8079 = vmatpush1.bf16.msra.mxu1 %v11078_v23 }
 0x3ec   :  { %7264 = vmatprep.subr.bf16.mxu0 %v11083_v24  ;;  %8080 = vmatprep.subr.bf16.mxu1 %v11086_v25 }
 0x3ef   :  { %7265 = vmatpush1.bf16.msra.mxu0 %v11081_v26  ;;  %8081 = vmatpush1.bf16.msra.mxu1 %v11084_v27 }
 0x3f0   :  { %7266 = vmatprep.subr.bf16.mxu0 %v11089_v28  ;;  %8082 = vmatprep.subr.bf16.mxu1 %v11092_v29 }
 0x3f3   :  { %7267 = vmatpush1.bf16.msra.mxu0 %v11087_v30  ;;  %8083 = vmatpush1.bf16.msra.mxu1 %v11090_v31 }
 0x3f4   :  { %7268 = vmatprep.subr.bf16.mxu0 %v11095_v32  ;;  %8084 = vmatprep.subr.bf16.mxu1 %v11098_v33 }
 0x3f7   :  { %7269 = vmatpush1.bf16.msra.mxu0 %v11093_v34  ;;  %8085 = vmatpush1.bf16.msra.mxu1 %v11096_v35 }
 0x3f8   :  { %7270 = vmatprep.subr.bf16.mxu0 %v11103_v36  ;;  %8086 = vmatprep.subr.bf16.mxu1 %v11106_v37 }
 0x3fb   :  { %7271 = vmatpush1.bf16.msra.mxu0 %v11101_v38  ;;  %8087 = vmatpush1.bf16.msra.mxu1 %v11104_v39 }
 0x3fc   :  { %7272 = vmatprep.subr.bf16.mxu0 %v11109_v40  ;;  %8088 = vmatprep.subr.bf16.mxu1 %v11112_v41 }
 0x3ff   :  { %7273 = vmatpush1.bf16.msra.mxu0 %v11107_v42  ;;  %8089 = vmatpush1.bf16.msra.mxu1 %v11110_v43 }
 0x402   :  { %7275 = vmatmul.mubr.bf16.vlgmr.msra.gmra.mrb[0].mxu0 %v8249_v44  ;;  %8091 = vmatmul.mubr.bf16.vlgmr.msra.gmra.mrb[0].mxu1 %v8249_v44 }
 0x403   :  { %7284 = vmatprep.mubr.bf16.mxu0 %v8282_v45  ;;  %8100 = vmatprep.mubr.bf16.mxu1 %v8282_v45 }
 0x40a   :  { %7285 = vmatmul.mubr.bf16.gmra.mrb[4].mxu0 %v8281_v47  ;;  %8101 = vmatmul.mubr.bf16.gmra.mrb[4].mxu1 %v8281_v47 }
 0x4d5   :  { %v7276_v48 = vpop.f32.mrb[0].mxu0  ;;  %v8092_v49 = vpop.f32.mrb[0].mxu1 }
 0x4d6   :  { %8109 = vst [vmem:[%s14529_s2] sm:$0xff] %v7276_v48  ;;  %8111 = vst [vmem:[%s14529_s2 + $0x10] sm:$0xff] %v8092_v49  ;;  %v7278_v50 = vpop.f32.mrb[1].mxu0  ;;  %v8094_v53 = vpop.f32.mrb[1].mxu1  ;;  %v8153_v51 = vmul.f32 %v7276_v48, %v7276_v48  ;;  %v8155_v52 = vmul.f32 %v8092_v49, %v8092_v49 }
 0x4d7   :  { %8110 = vst [vmem:[%s14529_s2 + $0x8] sm:$0xff] %v7278_v50  ;;  %v8154_v54 = vmul.f32 %v7278_v50, %v7278_v50  ;;  %8112 = vst [vmem:[%s14529_s2 + $0x18] sm:$0xff] %v8094_v53  ;;  %v8156_v55 = vmul.f32 %v8094_v53, %v8094_v53  ;;  %v7280_v56 = vpop.f32.mrb[2].mxu0  ;;  %v8096_v57 = vpop.f32.mrb[2].mxu1 }
 0x4d8   :  { %8113 = vst [vmem:[%s14529_s2 + $0x20] sm:$0xff] %v7280_v56  ;;  %v8121_v60 = vadd.f32 %v7280_v56, %v7276_v48  ;;  %v8157_v58 = vmul.f32 %v7280_v56, %v7280_v56  ;;  %8115 = vst [vmem:[%s14529_s2 + $0x30] sm:$0xff] %v8096_v57  ;;  %v8137_v59 = vadd.f32 %v8096_v57, %v8092_v49  ;;  %v7282_v62 = vpop.f32.mrb[3].mxu0  ;;  %v8098_v63 = vpop.f32.mrb[3].mxu1 }
 0x4d9   :  { %v8159_v61 = vmul.f32 %v8096_v57, %v8096_v57  ;;  %8114 = vst [vmem:[%s14529_s2 + $0x28] sm:$0xff] %v7282_v62  ;;  %v8129_v0 = vadd.f32 %v7282_v62, %v7278_v50  ;;  %v8158_v3 = vmul.f32 %v7282_v62, %v7282_v62  ;;  %8116 = vst [vmem:[%s14529_s2 + $0x38] sm:$0xff] %v8098_v63 }
 0x4da   :  { %v8145_v1 = vadd.f32 %v8098_v63, %v8094_v53  ;;  %v8160_v2 = vmul.f32 %v8098_v63, %v8098_v63  ;;  %v8165_v4 = vadd.f32 %v8157_v58, %v8153_v51 }
 0x4db   :  { %v8181_v5 = vadd.f32 %v8159_v61, %v8155_v52  ;;  %v8173_v6 = vadd.f32 %v8158_v3, %v8154_v54 }
 0x4dc   :  { %v8189_v7 = vadd.f32 %v8160_v2, %v8156_v55 }
 0x4dd   :  { %v7286_v8 = vpop.f32.mrb[4].mxu0  ;;  %v8102_v9 = vpop.f32.mrb[4].mxu1 }
 0x4de   :  { %8117 = vst [vmem:[%s14529_s2 + $0x40] sm:$0xff] %v7286_v8  ;;  %v8122_v10 = vadd.f32 %v8121_v60, %v7286_v8  ;;  %v8161_v11 = vmul.f32 %v7286_v8, %v7286_v8  ;;  %8119 = vst [vmem:[%s14529_s2 + $0x50] sm:$0xff] %v8102_v9  ;;  %v8138_v12 = vadd.f32 %v8137_v59, %v8102_v9  ;;  %v7288_v14 = vpop.f32.mrb[5].mxu0  ;;  %v8104_v15 = vpop.f32.mrb[5].mxu1 }
 0x4df   :  { %v8163_v13 = vmul.f32 %v8102_v9, %v8102_v9  ;;  %8118 = vst [vmem:[%s14529_s2 + $0x48] sm:$0xff] %v7288_v14  ;;  %v8130_v16 = vadd.f32 %v8129_v0, %v7288_v14  ;;  %v8162_v17 = vmul.f32 %v7288_v14, %v7288_v14  ;;  %8120 = vst [vmem:[%s14529_s2 + $0x58] sm:$0xff] %v8104_v15  ;;  %v7290_v20 = vpop.f32.mrb[6].mxu0  ;;  %v8106_v21 = vpop.f32.mrb[6].mxu1 }
 0x4e0   :  { %v8146_v18 = vadd.f32 %v8145_v1, %v8104_v15  ;;  %v8164_v19 = vmul.f32 %v8104_v15, %v8104_v15  ;;  %v8123_v22 = vrot.slane %v8122_v10, 4  ;;  %v8166_v23 = vadd.f32 %v8165_v4, %v8161_v11  ;;  %v7291_v26 = vpop.f32.mrb[7].mxu0  ;;  %v8107_v27 = vpop.f32.mrb[7].mxu1 }
 0x4e1   :  { %v8139_v24 = vrot.slane %v8138_v12, 4  ;;  %v8182_v25 = vadd.f32 %v8181_v5, %v8163_v13  ;;  %v8131_v28 = vrot.slane %v8130_v16, 4  ;;  %v8174_v29 = vadd.f32 %v8173_v6, %v8162_v17 }
 0x4e2   :  { %v8147_v30 = vrot.slane %v8146_v18, 4  ;;  %v8190_v31 = vadd.f32 %v8189_v7, %v8164_v19  ;;  %v8124_v32 = vadd.f32 %v8123_v22, %v8122_v10  ;;  %v8167_v33 = vrot.slane %v8166_v23, 4 }
 0x4e3   :  { %v8140_v34 = vadd.f32 %v8139_v24, %v8138_v12  ;;  %v8183_v35 = vrot.slane %v8182_v25, 4  ;;  %v8132_v36 = vadd.f32 %v8131_v28, %v8130_v16  ;;  %v8175_v37 = vrot.slane %v8174_v29, 4 }
 0x4e4   :  { %v8148_v38 = vadd.f32 %v8147_v30, %v8146_v18  ;;  %v8191_v39 = vrot.slane %v8190_v31, 4  ;;  %v8125_v40 = vrot.slane %v8124_v32, 2  ;;  %v8168_v41 = vadd.f32 %v8167_v33, %v8166_v23 }
 0x4e5   :  { %v8141_v42 = vrot.slane %v8140_v34, 2  ;;  %v8184_v43 = vadd.f32 %v8183_v35, %v8182_v25  ;;  %v8133_v46 = vrot.slane %v8132_v36, 2  ;;  %v8176_v44 = vadd.f32 %v8175_v37, %v8174_v29 }
 0x4e6   :  { %v8149_v45 = vrot.slane %v8148_v38, 2  ;;  %v8192_v47 = vadd.f32 %v8191_v39, %v8190_v31  ;;  %v8126_v48 = vadd.f32 %v8125_v40, %v8124_v32  ;;  %v8169_v49 = vrot.slane %v8168_v41, 2 }
 0x4e7   :  { %v8142_v50 = vadd.f32 %v8141_v42, %v8140_v34  ;;  %v8185_v53 = vrot.slane %v8184_v43, 2  ;;  %v8134_v51 = vadd.f32 %v8133_v46, %v8132_v36  ;;  %v8177_v52 = vrot.slane %v8176_v44, 2 }
 0x4e8   :  { %v8150_v54 = vadd.f32 %v8149_v45, %v8148_v38  ;;  %v8193_v55 = vrot.slane %v8192_v47, 2  ;;  %v8127_v56 = vrot.slane %v8126_v48, 1  ;;  %v8170_v57 = vadd.f32 %v8169_v49, %v8168_v41 }
 0x4e9   :  { %v8143_v60 = vrot.slane %v8142_v50, 1  ;;  %v8186_v58 = vadd.f32 %v8185_v53, %v8184_v43  ;;  %v8135_v59 = vrot.slane %v8134_v51, 1  ;;  %v8178_v61 = vadd.f32 %v8177_v52, %v8176_v44 }
 0x4ea   :  { %v8151_v62 = vrot.slane %v8150_v54, 1  ;;  %v8194_v63 = vadd.f32 %v8193_v55, %v8192_v47  ;;  %v8171_v0 = vrot.slane %v8170_v57, 1  ;;  %v8128_v4 = vadd.f32 %v8127_v56, %v8126_v48 }
 0x4eb   :  { %v8187_v3 = vrot.slane %v8186_v58, 1  ;;  %v8179_v1 = vrot.slane %v8178_v61, 1  ;;  %v8144_v6 = vadd.f32 %v8143_v60, %v8142_v50  ;;  %v8136_v8 = vadd.f32 %v8135_v59, %v8134_v51 }
 0x4ec   :  { %v8195_v2 = vrot.slane %v8194_v63, 1  ;;  %v8172_v5 = vadd.f32 %v8171_v0, %v8170_v57  ;;  %v8152_v10 = vadd.f32 %v8151_v62, %v8150_v54 }
 0x4ed   :  { %v8188_v7 = vadd.f32 %v8187_v3, %v8186_v58  ;;  %v8180_v9 = vadd.f32 %v8179_v1, %v8178_v61 }
 0x4ee   :  { %v8196_v11 = vadd.f32 %v8195_v2, %v8194_v63  ;;  %v8198_v12 = vsel %vm8197_vm0, %v8128_v4, %v8172_v5 }
 0x4ef   :  { %v8200_v13 = vsel %vm8197_vm0, %v8144_v6, %v8188_v7  ;;  %v8203_v14 = vsel %vm8202_vm1, %v8198_v12, 0.0  ;;  %v8199_v16 = vsel %vm8197_vm0, %v8136_v8, %v8180_v9 }
 0x4f0   :  { %v8205_v15 = vsel %vm8202_vm1, %v8200_v13, 0.0  ;;  %v8201_v17 = vsel %vm8197_vm0, %v8152_v10, %v8196_v11  ;;  %8207 = vst [vmem:[%s14530_s3] sm:$0xff] %v8203_v14  ;;  %v8204_v18 = vsel %vm8202_vm1, %v8199_v16, 0.0 }
 0x4f1   :  { %8209 = vst [vmem:[%s14530_s3 + $0x10] sm:$0xff] %v8205_v15  ;;  %v8206_v19 = vsel %vm8202_vm1, %v8201_v17, 0.0  ;;  %8208 = vst [vmem:[%s14530_s3 + $0x8] sm:$0xff] %v8204_v18 }
 0x4f2   :  { %8210 = vst [vmem:[%s14530_s3 + $0x18] sm:$0xff] %v8206_v19 }

// kernel: nlayer_discriminator.15
= control target key start
LH: loop header
LB: loop body
LE: loop exit
PB: predicated region body
PF: predicated region fallthrough
CT: control target
= control target key end

     0   :  { %s9198_s1 = inlined_call_operand.vmem [shape: bf16[8192,128], index: 1, kind: input, shape index: {}]   ;;  %s9199_s0 = inlined_call_operand.vmem [shape: bf16[8,8192], index: 0, kind: input, shape index: {}]   ;;  %s9200_s2 = inlined_call_operand.vmem [shape: f32[1,128], index: 2, kind: input, shape index: {}]   ;;  %s9201_s3 = inlined_call_operand.vmem [shape: f32[8,128], index: 3, kind: output, shape index: {}]  }
   0x1   :  { %v6940_v0 = vld [vmem:[%s9198_s1 + $0x40] sm:$0xff]   ;;  %v6944_v4 = vld [vmem:[%s9198_s1 + $0x48] sm:$0xff]   ;;  %v6948_v8 = vld [vmem:[%s9198_s1 + $0x50] sm:$0xff]  }
   0x2   :  { %v6941_v1 = vld [vmem:[%s9198_s1 + $0xc0] sm:$0xff]   ;;  %6236 = vmatprep.subr.bf16.mxu0 %v6940_v0  ;;  %v6945_v5 = vld [vmem:[%s9198_s1 + $0xc8] sm:$0xff]   ;;  %v6949_v9 = vld [vmem:[%s9198_s1 + $0xd0] sm:$0xff]  }
   0x3   :  { %v6942_v2 = vld [vmem:[%s9198_s1] sm:$0xff]   ;;  %6258 = vmatprep.subr.bf16.mxu1 %v6941_v1  ;;  %v6946_v6 = vld [vmem:[%s9198_s1 + $0x8] sm:$0xff]   ;;  %v6950_v10 = vld [vmem:[%s9198_s1 + $0x10] sm:$0xff]  }
   0x4   :  { %v6943_v3 = vld [vmem:[%s9198_s1 + $0x80] sm:$0xff]   ;;  %6237 = vmatpush3.bf16.msra.mxu0 %v6942_v2  ;;  %v6947_v7 = vld [vmem:[%s9198_s1 + $0x88] sm:$0xff]   ;;  %v6951_v11 = vld [vmem:[%s9198_s1 + $0x90] sm:$0xff]  }
   0x5   :  { %6259 = vmatpush3.bf16.msra.mxu1 %v6943_v3  ;;  %6238 = vmatprep.subr.bf16.mxu0 %v6944_v4  ;;  %v6952_v12 = vld [vmem:[%s9198_s1 + $0x58] sm:$0xff]   ;;  %v6956_v16 = vld [vmem:[%s9198_s1 + $0x60] sm:$0xff]   ;;  %v6960_v20 = vld [vmem:[%s9198_s1 + $0x68] sm:$0xff]  }
   0x6   :  { %6260 = vmatprep.subr.bf16.mxu1 %v6945_v5  ;;  %v6953_v13 = vld [vmem:[%s9198_s1 + $0xd8] sm:$0xff]   ;;  %v6957_v17 = vld [vmem:[%s9198_s1 + $0xe0] sm:$0xff]   ;;  %v6961_v21 = vld [vmem:[%s9198_s1 + $0xe8] sm:$0xff]  }
   0x7   :  { %v6954_v14 = vld [vmem:[%s9198_s1 + $0x18] sm:$0xff]   ;;  %v6958_v18 = vld [vmem:[%s9198_s1 + $0x20] sm:$0xff]   ;;  %v6962_v22 = vld [vmem:[%s9198_s1 + $0x28] sm:$0xff]  }
   0x8   :  { %6239 = vmatpush3.bf16.msra.mxu0 %v6946_v6  ;;  %v6955_v15 = vld [vmem:[%s9198_s1 + $0x98] sm:$0xff]   ;;  %v6959_v19 = vld [vmem:[%s9198_s1 + $0xa0] sm:$0xff]   ;;  %v6963_v23 = vld [vmem:[%s9198_s1 + $0xa8] sm:$0xff]  }
   0x9   :  { %6261 = vmatpush3.bf16.msra.mxu1 %v6947_v7  ;;  %6240 = vmatprep.subr.bf16.mxu0 %v6948_v8  ;;  %v6964_v24 = vld [vmem:[%s9198_s1 + $0x70] sm:$0xff]   ;;  %v6968_v28 = vld [vmem:[%s9198_s1 + $0x78] sm:$0xff]   ;;  %v15_v32 = vld [vmem:[%s9199_s0] sm:$0xff] }
   0xa   :  { %6262 = vmatprep.subr.bf16.mxu1 %v6949_v9  ;;  %v6965_v25 = vld [vmem:[%s9198_s1 + $0xf0] sm:$0xff]   ;;  %v6969_v29 = vld [vmem:[%s9198_s1 + $0xf8] sm:$0xff]   ;;  %v16_v33 = vld [vmem:[%s9199_s0 + $0x8] sm:$0xff]  ;;  %v5660_v34 = vcombine.low %v15_v32, %v15_v32  ;;  %v5661_v35 = vcombine.high %v15_v32, %v15_v32 }
   0xb   :  { %v6966_v26 = vld [vmem:[%s9198_s1 + $0x30] sm:$0xff]   ;;  %v6970_v30 = vld [vmem:[%s9198_s1 + $0x38] sm:$0xff]   ;;  %v5662_v36 = vcombine.low %v16_v33, %v16_v33  ;;  %v5663_v37 = vcombine.high %v16_v33, %v16_v33  ;;  %v6976_v38 = vld [vmem:[%s9198_s1 + $0x140] sm:$0xff]  }
   0xc   :  { %6241 = vmatpush3.bf16.msra.mxu0 %v6950_v10  ;;  %v6967_v27 = vld [vmem:[%s9198_s1 + $0xb0] sm:$0xff]   ;;  %v6971_v31 = vld [vmem:[%s9198_s1 + $0xb8] sm:$0xff]   ;;  %v6977_v39 = vld [vmem:[%s9198_s1 + $0x1c0] sm:$0xff]   ;;  %4406 = vmatprep.mubr.bf16.mxu0 %v5661_v35 }
   0xd   :  { %6263 = vmatpush3.bf16.msra.mxu1 %v6951_v11  ;;  %6242 = vmatprep.subr.bf16.mxu0 %v6952_v12  ;;  %v6978_v40 = vld [vmem:[%s9198_s1 + $0x100] sm:$0xff]   ;;  %v6980_v42 = vld [vmem:[%s9198_s1 + $0x148] sm:$0xff]   ;;  %v6984_v46 = vld [vmem:[%s9198_s1 + $0x150] sm:$0xff]  }
   0xe   :  { %6264 = vmatprep.subr.bf16.mxu1 %v6953_v13  ;;  %4446 = vmatprep.mubr.bf16.mxu1 %v5663_v37  ;;  %v6979_v41 = vld [vmem:[%s9198_s1 + $0x180] sm:$0xff]   ;;  %v6981_v43 = vld [vmem:[%s9198_s1 + $0x1c8] sm:$0xff]   ;;  %v6985_v47 = vld [vmem:[%s9198_s1 + $0x1d0] sm:$0xff]  }
   0xf   :  { %v6982_v44 = vld [vmem:[%s9198_s1 + $0x108] sm:$0xff]   ;;  %v6986_v48 = vld [vmem:[%s9198_s1 + $0x110] sm:$0xff]   ;;  %v6988_v50 = vld [vmem:[%s9198_s1 + $0x158] sm:$0xff]  }
  0x10   :  { %6243 = vmatpush3.bf16.msra.mxu0 %v6954_v14  ;;  %v6983_v45 = vld [vmem:[%s9198_s1 + $0x188] sm:$0xff]   ;;  %v6987_v49 = vld [vmem:[%s9198_s1 + $0x190] sm:$0xff]   ;;  %v6989_v51 = vld [vmem:[%s9198_s1 + $0x1d8] sm:$0xff]  }
  0x11   :  { %6265 = vmatpush3.bf16.msra.mxu1 %v6955_v15  ;;  %6244 = vmatprep.subr.bf16.mxu0 %v6956_v16  ;;  %v6990_v52 = vld [vmem:[%s9198_s1 + $0x118] sm:$0xff]   ;;  %v6992_v54 = vld [vmem:[%s9198_s1 + $0x160] sm:$0xff]   ;;  %v6996_v58 = vld [vmem:[%s9198_s1 + $0x168] sm:$0xff]  }
  0x12   :  { %6266 = vmatprep.subr.bf16.mxu1 %v6957_v17  ;;  %v6991_v53 = vld [vmem:[%s9198_s1 + $0x198] sm:$0xff]   ;;  %v6993_v55 = vld [vmem:[%s9198_s1 + $0x1e0] sm:$0xff]   ;;  %v6997_v59 = vld [vmem:[%s9198_s1 + $0x1e8] sm:$0xff]  }
  0x13   :  { %v6994_v56 = vld [vmem:[%s9198_s1 + $0x120] sm:$0xff]   ;;  %v6998_v60 = vld [vmem:[%s9198_s1 + $0x128] sm:$0xff]   ;;  %v7000_v62 = vld [vmem:[%s9198_s1 + $0x170] sm:$0xff]  }
  0x14   :  { %6245 = vmatpush3.bf16.msra.mxu0 %v6958_v18  ;;  %v6995_v57 = vld [vmem:[%s9198_s1 + $0x1a0] sm:$0xff]   ;;  %v6999_v61 = vld [vmem:[%s9198_s1 + $0x1a8] sm:$0xff]   ;;  %v7001_v63 = vld [vmem:[%s9198_s1 + $0x1f0] sm:$0xff]  }
  0x15   :  { %6267 = vmatpush3.bf16.msra.mxu1 %v6959_v19  ;;  %6246 = vmatprep.subr.bf16.mxu0 %v6960_v20  ;;  %v7002_v0 = vld [vmem:[%s9198_s1 + $0x130] sm:$0xff]   ;;  %v7004_v2 = vld [vmem:[%s9198_s1 + $0x178] sm:$0xff]   ;;  %v7012_v12 = vld [vmem:[%s9198_s1 + $0x240] sm:$0xff]  }
  0x16   :  { %6268 = vmatprep.subr.bf16.mxu1 %v6961_v21  ;;  %v7003_v1 = vld [vmem:[%s9198_s1 + $0x1b0] sm:$0xff]   ;;  %v7005_v3 = vld [vmem:[%s9198_s1 + $0x1f8] sm:$0xff]   ;;  %v7013_v13 = vld [vmem:[%s9198_s1 + $0x2c0] sm:$0xff]  }
  0x17   :  { %v7006_v4 = vld [vmem:[%s9198_s1 + $0x138] sm:$0xff]   ;;  %v17_v6 = vld [vmem:[%s9199_s0 + $0x10] sm:$0xff]  ;;  %v7014_v14 = vld [vmem:[%s9198_s1 + $0x200] sm:$0xff]  }
  0x18   :  { %6247 = vmatpush3.bf16.msra.mxu0 %v6962_v22  ;;  %v7007_v5 = vld [vmem:[%s9198_s1 + $0x1b8] sm:$0xff]   ;;  %v5664_v7 = vcombine.low %v17_v6, %v17_v6  ;;  %v5665_v8 = vcombine.high %v17_v6, %v17_v6  ;;  %v7015_v15 = vld [vmem:[%s9198_s1 + $0x280] sm:$0xff]   ;;  %v7016_v16 = vld [vmem:[%s9198_s1 + $0x248] sm:$0xff]  }
  0x19   :  { %6269 = vmatpush3.bf16.msra.mxu1 %v6963_v23  ;;  %6248 = vmatprep.subr.bf16.mxu0 %v6964_v24  ;;  %v18_v9 = vld [vmem:[%s9199_s0 + $0x18] sm:$0xff]  ;;  %v7017_v17 = vld [vmem:[%s9198_s1 + $0x2c8] sm:$0xff]   ;;  %v7020_v20 = vld [vmem:[%s9198_s1 + $0x250] sm:$0xff]  }
  0x1a   :  { %6270 = vmatprep.subr.bf16.mxu1 %v6965_v25  ;;  %v5666_v10 = vcombine.low %v18_v9, %v18_v9  ;;  %v5667_v11 = vcombine.high %v18_v9, %v18_v9  ;;  %v7018_v18 = vld [vmem:[%s9198_s1 + $0x208] sm:$0xff]   ;;  %v7021_v21 = vld [vmem:[%s9198_s1 + $0x2d0] sm:$0xff]   ;;  %v7024_v24 = vld [vmem:[%s9198_s1 + $0x258] sm:$0xff]  }
  0x1b   :  { %v7019_v19 = vld [vmem:[%s9198_s1 + $0x288] sm:$0xff]   ;;  %v7022_v22 = vld [vmem:[%s9198_s1 + $0x210] sm:$0xff]   ;;  %v7025_v25 = vld [vmem:[%s9198_s1 + $0x2d8] sm:$0xff]  }
  0x1c   :  { %6249 = vmatpush3.bf16.msra.mxu0 %v6966_v26  ;;  %v7023_v23 = vld [vmem:[%s9198_s1 + $0x290] sm:$0xff]   ;;  %v7026_v26 = vld [vmem:[%s9198_s1 + $0x218] sm:$0xff]   ;;  %v7032_v32 = vld [vmem:[%s9198_s1 + $0x268] sm:$0xff]  }
  0x1d   :  { %6271 = vmatpush3.bf16.msra.mxu1 %v6967_v27  ;;  %6250 = vmatprep.subr.bf16.mxu0 %v6968_v28  ;;  %v7027_v27 = vld [vmem:[%s9198_s1 + $0x298] sm:$0xff]   ;;  %v7028_v28 = vld [vmem:[%s9198_s1 + $0x260] sm:$0xff]   ;;  %v7033_v33 = vld [vmem:[%s9198_s1 + $0x2e8] sm:$0xff]  }
  0x1e   :  { %6272 = vmatprep.subr.bf16.mxu1 %v6969_v29  ;;  %v7029_v29 = vld [vmem:[%s9198_s1 + $0x2e0] sm:$0xff]   ;;  %v7035_v35 = vld [vmem:[%s9198_s1 + $0x2a8] sm:$0xff]   ;;  %v7037_v37 = vld [vmem:[%s9198_s1 + $0x2f0] sm:$0xff]  }
  0x1f   :  { %v7068_v6 = vld [vmem:[%s9198_s1 + $0x368] sm:$0xff]  }
  0x20   :  { %6251 = vmatpush3.bf16.msra.mxu0 %v6970_v30  ;;  %v7030_v30 = vld [vmem:[%s9198_s1 + $0x220] sm:$0xff]   ;;  %v7071_v9 = vld [vmem:[%s9198_s1 + $0x3a8] sm:$0xff]  }
  0x21   :  { %6273 = vmatpush3.bf16.msra.mxu1 %v6971_v31  ;;  %6280 = vmatprep.subr.bf16.mxu0 %v6976_v38  ;;  %v7031_v31 = vld [vmem:[%s9198_s1 + $0x2a0] sm:$0xff]   ;;  %v7038_v38 = vld [vmem:[%s9198_s1 + $0x230] sm:$0xff]  }
  0x22   :  { %6302 = vmatprep.subr.bf16.mxu1 %v6977_v39  ;;  %v7039_v39 = vld [vmem:[%s9198_s1 + $0x2b0] sm:$0xff]  }
  0x23   :  { %4407 = vmatmul.mubr.bf16.vlgmr.msra.gmra.mrb[0].mxu0 %v5660_v34  ;;  %v7034_v34 = vld [vmem:[%s9198_s1 + $0x228] sm:$0xff]  }
  0x24   :  { %4447 = vmatmul.mubr.bf16.vlgmr.msra.gmra.mrb[0].mxu1 %v5662_v36  ;;  %6281 = vmatpush3.bf16.msra.mxu0 %v6978_v40  ;;  %v7036_v36 = vld [vmem:[%s9198_s1 + $0x270] sm:$0xff]   ;;  %v7040_v40 = vld [vmem:[%s9198_s1 + $0x278] sm:$0xff]  }
  0x25   :  { %6303 = vmatpush3.bf16.msra.mxu1 %v6979_v41  ;;  %6282 = vmatprep.subr.bf16.mxu0 %v6980_v42  ;;  %v7041_v41 = vld [vmem:[%s9198_s1 + $0x2f8] sm:$0xff]  }
  0x26   :  { %6304 = vmatprep.subr.bf16.mxu1 %v6981_v43  ;;  %4486 = vmatprep.mubr.bf16.mxu0 %v5665_v8  ;;  %v7042_v42 = vld [vmem:[%s9198_s1 + $0x238] sm:$0xff]   ;;  %v7070_v8 = vld [vmem:[%s9198_s1 + $0x328] sm:$0xff]  }
  0x27   :  { %4526 = vmatprep.mubr.bf16.mxu1 %v5667_v11  ;;  %v7043_v43 = vld [vmem:[%s9198_s1 + $0x2b8] sm:$0xff]   ;;  %v7073_v11 = vld [vmem:[%s9198_s1 + $0x3f0] sm:$0xff]  }
  0x28   :  { %6283 = vmatpush3.bf16.msra.mxu0 %v6982_v44  ;;  %v19_v44 = vld [vmem:[%s9199_s0 + $0x20] sm:$0xff] }
  0x29   :  { %6305 = vmatpush3.bf16.msra.mxu1 %v6983_v45  ;;  %6284 = vmatprep.subr.bf16.mxu0 %v6984_v46  ;;  %v20_v45 = vld [vmem:[%s9199_s0 + $0x28] sm:$0xff]  ;;  %v5668_v46 = vcombine.low %v19_v44, %v19_v44 }
  0x2a   :  { %6306 = vmatprep.subr.bf16.mxu1 %v6985_v47  ;;  %v5669_v47 = vcombine.high %v19_v44, %v19_v44  ;;  %v7104_v44 = vld [vmem:[%s9198_s1 + $0x468] sm:$0xff]  }
  0x2c   :  { %6285 = vmatpush3.bf16.msra.mxu0 %v6986_v48  ;;  %v5670_v48 = vcombine.low %v20_v45, %v20_v45 }
  0x2d   :  { %6307 = vmatpush3.bf16.msra.mxu1 %v6987_v49  ;;  %6286 = vmatprep.subr.bf16.mxu0 %v6988_v50  ;;  %v5671_v49 = vcombine.high %v20_v45, %v20_v45  ;;  %v7048_v50 = vld [vmem:[%s9198_s1 + $0x340] sm:$0xff]   ;;  %v7105_v45 = vld [vmem:[%s9198_s1 + $0x4e8] sm:$0xff]  }
  0x2e   :  { %6308 = vmatprep.subr.bf16.mxu1 %v6989_v51  ;;  %v7049_v51 = vld [vmem:[%s9198_s1 + $0x3c0] sm:$0xff]  }
  0x30   :  { %6287 = vmatpush3.bf16.msra.mxu0 %v6990_v52  ;;  %v7050_v52 = vld [vmem:[%s9198_s1 + $0x300] sm:$0xff]  }
  0x31   :  { %6309 = vmatpush3.bf16.msra.mxu1 %v6991_v53  ;;  %6288 = vmatprep.subr.bf16.mxu0 %v6992_v54  ;;  %v7051_v53 = vld [vmem:[%s9198_s1 + $0x380] sm:$0xff]   ;;  %v7052_v54 = vld [vmem:[%s9198_s1 + $0x348] sm:$0xff]  }
  0x32   :  { %6310 = vmatprep.subr.bf16.mxu1 %v6993_v55  ;;  %v7053_v55 = vld [vmem:[%s9198_s1 + $0x3c8] sm:$0xff]  }
  0x34   :  { %6289 = vmatpush3.bf16.msra.mxu0 %v6994_v56  ;;  %v7054_v56 = vld [vmem:[%s9198_s1 + $0x308] sm:$0xff]  }
  0x35   :  { %6311 = vmatpush3.bf16.msra.mxu1 %v6995_v57  ;;  %6290 = vmatprep.subr.bf16.mxu0 %v6996_v58  ;;  %v7055_v57 = vld [vmem:[%s9198_s1 + $0x388] sm:$0xff]   ;;  %v7056_v58 = vld [vmem:[%s9198_s1 + $0x350] sm:$0xff]  }
  0x36   :  { %6312 = vmatprep.subr.bf16.mxu1 %v6997_v59  ;;  %v7057_v59 = vld [vmem:[%s9198_s1 + $0x3d0] sm:$0xff]  }
  0x38   :  { %6291 = vmatpush3.bf16.msra.mxu0 %v6998_v60  ;;  %v7058_v60 = vld [vmem:[%s9198_s1 + $0x310] sm:$0xff]  }
  0x39   :  { %6313 = vmatpush3.bf16.msra.mxu1 %v6999_v61  ;;  %6292 = vmatprep.subr.bf16.mxu0 %v7000_v62  ;;  %v7059_v61 = vld [vmem:[%s9198_s1 + $0x390] sm:$0xff]   ;;  %v7060_v62 = vld [vmem:[%s9198_s1 + $0x358] sm:$0xff]  }
  0x3a   :  { %6314 = vmatprep.subr.bf16.mxu1 %v7001_v63  ;;  %v7061_v63 = vld [vmem:[%s9198_s1 + $0x3d8] sm:$0xff]  }
  0x3c   :  { %6293 = vmatpush3.bf16.msra.mxu0 %v7002_v0  ;;  %v7062_v0 = vld [vmem:[%s9198_s1 + $0x318] sm:$0xff]  }
  0x3d   :  { %6315 = vmatpush3.bf16.msra.mxu1 %v7003_v1  ;;  %6294 = vmatprep.subr.bf16.mxu0 %v7004_v2  ;;  %v7063_v1 = vld [vmem:[%s9198_s1 + $0x398] sm:$0xff]   ;;  %v7064_v2 = vld [vmem:[%s9198_s1 + $0x360] sm:$0xff]  }
  0x3e   :  { %6316 = vmatprep.subr.bf16.mxu1 %v7005_v3  ;;  %v7065_v3 = vld [vmem:[%s9198_s1 + $0x3e0] sm:$0xff]  }
  0x40   :  { %6295 = vmatpush3.bf16.msra.mxu0 %v7006_v4  ;;  %v7066_v4 = vld [vmem:[%s9198_s1 + $0x320] sm:$0xff]  }
  0x41   :  { %6317 = vmatpush3.bf16.msra.mxu1 %v7007_v5  ;;  %6324 = vmatprep.subr.bf16.mxu0 %v7012_v12  ;;  %v7067_v5 = vld [vmem:[%s9198_s1 + $0x3a0] sm:$0xff]   ;;  %v7074_v12 = vld [vmem:[%s9198_s1 + $0x330] sm:$0xff]  }
  0x42   :  { %6346 = vmatprep.subr.bf16.mxu1 %v7013_v13  ;;  %v7075_v13 = vld [vmem:[%s9198_s1 + $0x3b0] sm:$0xff]  }
  0x43   :  { %4487 = vmatmul.mubr.bf16.vlgmr.msra.gmra.mrb[4].mxu0 %v5664_v7  ;;  %v7069_v7 = vld [vmem:[%s9198_s1 + $0x3e8] sm:$0xff]  }
  0x44   :  { %4527 = vmatmul.mubr.bf16.vlgmr.msra.gmra.mrb[4].mxu1 %v5666_v10  ;;  %6325 = vmatpush3.bf16.msra.mxu0 %v7014_v14  ;;  %v7072_v10 = vld [vmem:[%s9198_s1 + $0x370] sm:$0xff]   ;;  %v7076_v14 = vld [vmem:[%s9198_s1 + $0x378] sm:$0xff]  }
  0x45   :  { %6347 = vmatpush3.bf16.msra.mxu1 %v7015_v15  ;;  %6326 = vmatprep.subr.bf16.mxu0 %v7016_v16  ;;  %v7077_v15 = vld [vmem:[%s9198_s1 + $0x3f8] sm:$0xff]  }
  0x46   :  { %6348 = vmatprep.subr.bf16.mxu1 %v7017_v17  ;;  %4566 = vmatprep.mubr.bf16.mxu0 %v5669_v47  ;;  %v7078_v16 = vld [vmem:[%s9198_s1 + $0x338] sm:$0xff]   ;;  %v7107_v47 = vld [vmem:[%s9198_s1 + $0x4a8] sm:$0xff]  }
  0x47   :  { %4606 = vmatprep.mubr.bf16.mxu1 %v5671_v49  ;;  %v7079_v17 = vld [vmem:[%s9198_s1 + $0x3b8] sm:$0xff]   ;;  %v7109_v49 = vld [vmem:[%s9198_s1 + $0x4f0] sm:$0xff]  }
  0x48   :  { %6327 = vmatpush3.bf16.msra.mxu0 %v7018_v18  ;;  %v21_v18 = vld [vmem:[%s9199_s0 + $0x30] sm:$0xff] }
  0x49   :  { %6349 = vmatpush3.bf16.msra.mxu1 %v7019_v19  ;;  %6328 = vmatprep.subr.bf16.mxu0 %v7020_v20  ;;  %v22_v19 = vld [vmem:[%s9199_s0 + $0x38] sm:$0xff]  ;;  %v5672_v20 = vcombine.low %v21_v18, %v21_v18 }
  0x4a   :  { %6350 = vmatprep.subr.bf16.mxu1 %v7021_v21  ;;  %v5673_v21 = vcombine.high %v21_v18, %v21_v18  ;;  %v7140_v18 = vld [vmem:[%s9198_s1 + $0x568] sm:$0xff]  }
  0x4c   :  { %6329 = vmatpush3.bf16.msra.mxu0 %v7022_v22  ;;  %v5674_v22 = vcombine.low %v22_v19, %v22_v19 }
  0x4d   :  { %6351 = vmatpush3.bf16.msra.mxu1 %v7023_v23  ;;  %6330 = vmatprep.subr.bf16.mxu0 %v7024_v24  ;;  %v7084_v23 = vld [vmem:[%s9198_s1 + $0x440] sm:$0xff]   ;;  %v5675_v24 = vcombine.high %v22_v19, %v22_v19  ;;  %v7141_v19 = vld [vmem:[%s9198_s1 + $0x5e8] sm:$0xff]  }
  0x4e   :  { %6352 = vmatprep.subr.bf16.mxu1 %v7025_v25  ;;  %v7085_v25 = vld [vmem:[%s9198_s1 + $0x4c0] sm:$0xff]  }
  0x50   :  { %6331 = vmatpush3.bf16.msra.mxu0 %v7026_v26  ;;  %v7086_v26 = vld [vmem:[%s9198_s1 + $0x400] sm:$0xff]  }
  0x51   :  { %6353 = vmatpush3.bf16.msra.mxu1 %v7027_v27  ;;  %6332 = vmatprep.subr.bf16.mxu0 %v7028_v28  ;;  %v7087_v27 = vld [vmem:[%s9198_s1 + $0x480] sm:$0xff]   ;;  %v7088_v28 = vld [vmem:[%s9198_s1 + $0x448] sm:$0xff]  }
  0x52   :  { %6354 = vmatprep.subr.bf16.mxu1 %v7029_v29  ;;  %v7089_v29 = vld [vmem:[%s9198_s1 + $0x4c8] sm:$0xff]  }
  0x54   :  { %6333 = vmatpush3.bf16.msra.mxu0 %v7030_v30  ;;  %v7090_v30 = vld [vmem:[%s9198_s1 + $0x408] sm:$0xff]  }
  0x55   :  { %6355 = vmatpush3.bf16.msra.mxu1 %v7031_v31  ;;  %6334 = vmatprep.subr.bf16.mxu0 %v7032_v32  ;;  %v7091_v31 = vld [vmem:[%s9198_s1 + $0x488] sm:$0xff]   ;;  %v7092_v32 = vld [vmem:[%s9198_s1 + $0x450] sm:$0xff]  }
  0x56   :  { %6356 = vmatprep.subr.bf16.mxu1 %v7033_v33  ;;  %v7093_v33 = vld [vmem:[%s9198_s1 + $0x4d0] sm:$0xff]  }
  0x58   :  { %6335 = vmatpush3.bf16.msra.mxu0 %v7034_v34  ;;  %v7094_v34 = vld [vmem:[%s9198_s1 + $0x410] sm:$0xff]  }
  0x59   :  { %6357 = vmatpush3.bf16.msra.mxu1 %v7035_v35  ;;  %6336 = vmatprep.subr.bf16.mxu0 %v7036_v36  ;;  %v7095_v35 = vld [vmem:[%s9198_s1 + $0x490] sm:$0xff]   ;;  %v7096_v36 = vld [vmem:[%s9198_s1 + $0x458] sm:$0xff]  }
  0x5a   :  { %6358 = vmatprep.subr.bf16.mxu1 %v7037_v37  ;;  %v7097_v37 = vld [vmem:[%s9198_s1 + $0x4d8] sm:$0xff]  }
  0x5c   :  { %6337 = vmatpush3.bf16.msra.mxu0 %v7038_v38  ;;  %v7098_v38 = vld [vmem:[%s9198_s1 + $0x418] sm:$0xff]  }
  0x5d   :  { %6359 = vmatpush3.bf16.msra.mxu1 %v7039_v39  ;;  %6338 = vmatprep.subr.bf16.mxu0 %v7040_v40  ;;  %v7099_v39 = vld [vmem:[%s9198_s1 + $0x498] sm:$0xff]   ;;  %v7100_v40 = vld [vmem:[%s9198_s1 + $0x460] sm:$0xff]  }
  0x5e   :  { %6360 = vmatprep.subr.bf16.mxu1 %v7041_v41  ;;  %v7101_v41 = vld [vmem:[%s9198_s1 + $0x4e0] sm:$0xff]  }
  0x60   :  { %6339 = vmatpush3.bf16.msra.mxu0 %v7042_v42  ;;  %v7102_v42 = vld [vmem:[%s9198_s1 + $0x420] sm:$0xff]  }
  0x61   :  { %6361 = vmatpush3.bf16.msra.mxu1 %v7043_v43  ;;  %6368 = vmatprep.subr.bf16.mxu0 %v7048_v50  ;;  %v7103_v43 = vld [vmem:[%s9198_s1 + $0x4a0] sm:$0xff]   ;;  %v7110_v50 = vld [vmem:[%s9198_s1 + $0x430] sm:$0xff]  }
  0x62   :  { %6390 = vmatprep.subr.bf16.mxu1 %v7049_v51  ;;  %v7111_v51 = vld [vmem:[%s9198_s1 + $0x4b0] sm:$0xff]  }
  0x63   :  { %4567 = vmatmul.mubr.bf16.vlgmr.msra.gmra.mrb[8].mxu0 %v5668_v46  ;;  %v7106_v46 = vld [vmem:[%s9198_s1 + $0x428] sm:$0xff]  }
  0x64   :  { %4607 = vmatmul.mubr.bf16.vlgmr.msra.gmra.mrb[8].mxu1 %v5670_v48  ;;  %6369 = vmatpush3.bf16.msra.mxu0 %v7050_v52  ;;  %v7108_v48 = vld [vmem:[%s9198_s1 + $0x470] sm:$0xff]   ;;  %v7112_v52 = vld [vmem:[%s9198_s1 + $0x478] sm:$0xff]  }
  0x65   :  { %6391 = vmatpush3.bf16.msra.mxu1 %v7051_v53  ;;  %6370 = vmatprep.subr.bf16.mxu0 %v7052_v54  ;;  %v7113_v53 = vld [vmem:[%s9198_s1 + $0x4f8] sm:$0xff]  }
  0x66   :  { %6392 = vmatprep.subr.bf16.mxu1 %v7053_v55  ;;  %4646 = vmatprep.mubr.bf16.mxu0 %v5673_v21  ;;  %v7114_v54 = vld [vmem:[%s9198_s1 + $0x438] sm:$0xff]   ;;  %v7143_v21 = vld [vmem:[%s9198_s1 + $0x5a8] sm:$0xff]  }
  0x67   :  { %4686 = vmatprep.mubr.bf16.mxu1 %v5675_v24  ;;  %v7115_v55 = vld [vmem:[%s9198_s1 + $0x4b8] sm:$0xff]   ;;  %v7146_v24 = vld [vmem:[%s9198_s1 + $0x530] sm:$0xff]  }
  0x68   :  { %6371 = vmatpush3.bf16.msra.mxu0 %v7054_v56  ;;  %v23_v56 = vld [vmem:[%s9199_s0 + $0x40] sm:$0xff] }
  0x69   :  { %6393 = vmatpush3.bf16.msra.mxu1 %v7055_v57  ;;  %6372 = vmatprep.subr.bf16.mxu0 %v7056_v58  ;;  %v5676_v57 = vcombine.low %v23_v56, %v23_v56  ;;  %v5677_v58 = vcombine.high %v23_v56, %v23_v56  ;;  %v7176_v56 = vld [vmem:[%s9198_s1 + $0x668] sm:$0xff]  }
  0x6a   :  { %6394 = vmatprep.subr.bf16.mxu1 %v7057_v59  ;;  %v24_v59 = vld [vmem:[%s9199_s0 + $0x48] sm:$0xff] }
  0x6c   :  { %6373 = vmatpush3.bf16.msra.mxu0 %v7058_v60  ;;  %v5678_v60 = vcombine.low %v24_v59, %v24_v59 }
  0x6d   :  { %6395 = vmatpush3.bf16.msra.mxu1 %v7059_v61  ;;  %6374 = vmatprep.subr.bf16.mxu0 %v7060_v62  ;;  %v5679_v61 = vcombine.high %v24_v59, %v24_v59  ;;  %v7120_v62 = vld [vmem:[%s9198_s1 + $0x540] sm:$0xff]   ;;  %v7179_v59 = vld [vmem:[%s9198_s1 + $0x6a8] sm:$0xff]  }
  0x6e   :  { %6396 = vmatprep.subr.bf16.mxu1 %v7061_v63  ;;  %v7121_v63 = vld [vmem:[%s9198_s1 + $0x5c0] sm:$0xff]  }
  0x70   :  { %6375 = vmatpush3.bf16.msra.mxu0 %v7062_v0  ;;  %v7122_v0 = vld [vmem:[%s9198_s1 + $0x500] sm:$0xff]  }
  0x71   :  { %6397 = vmatpush3.bf16.msra.mxu1 %v7063_v1  ;;  %6376 = vmatprep.subr.bf16.mxu0 %v7064_v2  ;;  %v7123_v1 = vld [vmem:[%s9198_s1 + $0x580] sm:$0xff]   ;;  %v7124_v2 = vld [vmem:[%s9198_s1 + $0x548] sm:$0xff]  }
  0x72   :  { %6398 = vmatprep.subr.bf16.mxu1 %v7065_v3  ;;  %v7125_v3 = vld [vmem:[%s9198_s1 + $0x5c8] sm:$0xff]  }
  0x74   :  { %6377 = vmatpush3.bf16.msra.mxu0 %v7066_v4  ;;  %v7126_v4 = vld [vmem:[%s9198_s1 + $0x508] sm:$0xff]  }
  0x75   :  { %6399 = vmatpush3.bf16.msra.mxu1 %v7067_v5  ;;  %6378 = vmatprep.subr.bf16.mxu0 %v7068_v6  ;;  %v7127_v5 = vld [vmem:[%s9198_s1 + $0x588] sm:$0xff]   ;;  %v7128_v6 = vld [vmem:[%s9198_s1 + $0x550] sm:$0xff]  }
  0x76   :  { %6400 = vmatprep.subr.bf16.mxu1 %v7069_v7  ;;  %v7129_v7 = vld [vmem:[%s9198_s1 + $0x5d0] sm:$0xff]  }
  0x78   :  { %6379 = vmatpush3.bf16.msra.mxu0 %v7070_v8  ;;  %v7130_v8 = vld [vmem:[%s9198_s1 + $0x510] sm:$0xff]  }
  0x79   :  { %6401 = vmatpush3.bf16.msra.mxu1 %v7071_v9  ;;  %6380 = vmatprep.subr.bf16.mxu0 %v7072_v10  ;;  %v7131_v9 = vld [vmem:[%s9198_s1 + $0x590] sm:$0xff]   ;;  %v7132_v10 = vld [vmem:[%s9198_s1 + $0x558] sm:$0xff]  }
  0x7a   :  { %6402 = vmatprep.subr.bf16.mxu1 %v7073_v11  ;;  %v7133_v11 = vld [vmem:[%s9198_s1 + $0x5d8] sm:$0xff]  }
  0x7c   :  { %6381 = vmatpush3.bf16.msra.mxu0 %v7074_v12  ;;  %v7134_v12 = vld [vmem:[%s9198_s1 + $0x518] sm:$0xff]  }
  0x7d   :  { %6403 = vmatpush3.bf16.msra.mxu1 %v7075_v13  ;;  %6382 = vmatprep.subr.bf16.mxu0 %v7076_v14  ;;  %v7135_v13 = vld [vmem:[%s9198_s1 + $0x598] sm:$0xff]   ;;  %v7136_v14 = vld [vmem:[%s9198_s1 + $0x560] sm:$0xff]  }
  0x7e   :  { %6404 = vmatprep.subr.bf16.mxu1 %v7077_v15  ;;  %v7137_v15 = vld [vmem:[%s9198_s1 + $0x5e0] sm:$0xff]  }
  0x80   :  { %6383 = vmatpush3.bf16.msra.mxu0 %v7078_v16  ;;  %v7138_v16 = vld [vmem:[%s9198_s1 + $0x520] sm:$0xff]  }
  0x81   :  { %6405 = vmatpush3.bf16.msra.mxu1 %v7079_v17  ;;  %6412 = vmatprep.subr.bf16.mxu0 %v7084_v23  ;;  %v7139_v17 = vld [vmem:[%s9198_s1 + $0x5a0] sm:$0xff]   ;;  %v7145_v23 = vld [vmem:[%s9198_s1 + $0x5f0] sm:$0xff]  }
  0x82   :  { %6434 = vmatprep.subr.bf16.mxu1 %v7085_v25  ;;  %v7147_v25 = vld [vmem:[%s9198_s1 + $0x5b0] sm:$0xff]  }
  0x83   :  { %4647 = vmatmul.mubr.bf16.vlgmr.msra.gmra.mrb[12].mxu0 %v5672_v20  ;;  %v7142_v20 = vld [vmem:[%s9198_s1 + $0x528] sm:$0xff]  }
  0x84   :  { %4687 = vmatmul.mubr.bf16.vlgmr.msra.gmra.mrb[12].mxu1 %v5674_v22  ;;  %6413 = vmatpush3.bf16.msra.mxu0 %v7086_v26  ;;  %v7144_v22 = vld [vmem:[%s9198_s1 + $0x570] sm:$0xff]   ;;  %v7148_v26 = vld [vmem:[%s9198_s1 + $0x578] sm:$0xff]  }
  0x85   :  { %6435 = vmatpush3.bf16.msra.mxu1 %v7087_v27  ;;  %6414 = vmatprep.subr.bf16.mxu0 %v7088_v28  ;;  %v7149_v27 = vld [vmem:[%s9198_s1 + $0x5f8] sm:$0xff]  }
  0x86   :  { %6436 = vmatprep.subr.bf16.mxu1 %v7089_v29  ;;  %4726 = vmatprep.mubr.bf16.mxu0 %v5677_v58  ;;  %v7150_v28 = vld [vmem:[%s9198_s1 + $0x538] sm:$0xff]   ;;  %v7178_v58 = vld [vmem:[%s9198_s1 + $0x628] sm:$0xff]  }
  0x87   :  { %4766 = vmatprep.mubr.bf16.mxu1 %v5679_v61  ;;  %v7151_v29 = vld [vmem:[%s9198_s1 + $0x5b8] sm:$0xff]   ;;  %v7181_v61 = vld [vmem:[%s9198_s1 + $0x6f0] sm:$0xff]  }
  0x88   :  { %6415 = vmatpush3.bf16.msra.mxu0 %v7090_v30  ;;  %v25_v30 = vld [vmem:[%s9199_s0 + $0x50] sm:$0xff] }
  0x89   :  { %6437 = vmatpush3.bf16.msra.mxu1 %v7091_v31  ;;  %6416 = vmatprep.subr.bf16.mxu0 %v7092_v32  ;;  %v26_v31 = vld [vmem:[%s9199_s0 + $0x58] sm:$0xff]  ;;  %v5680_v32 = vcombine.low %v25_v30, %v25_v30 }
  0x8a   :  { %6438 = vmatprep.subr.bf16.mxu1 %v7093_v33  ;;  %v5681_v33 = vcombine.high %v25_v30, %v25_v30  ;;  %v7211_v30 = vld [vmem:[%s9198_s1 + $0x7a0] sm:$0xff]  }
  0x8c   :  { %6417 = vmatpush3.bf16.msra.mxu0 %v7094_v34  ;;  %v5682_v34 = vcombine.low %v26_v31, %v26_v31 }
  0x8d   :  { %6439 = vmatpush3.bf16.msra.mxu1 %v7095_v35  ;;  %6418 = vmatprep.subr.bf16.mxu0 %v7096_v36  ;;  %v5683_v35 = vcombine.high %v26_v31, %v26_v31  ;;  %v7156_v36 = vld [vmem:[%s9198_s1 + $0x640] sm:$0xff]  }
  0x8e   :  { %6440 = vmatprep.subr.bf16.mxu1 %v7097_v37  ;;  %v7157_v37 = vld [vmem:[%s9198_s1 + $0x6c0] sm:$0xff]  }
  0x90   :  { %6419 = vmatpush3.bf16.msra.mxu0 %v7098_v38  ;;  %v7158_v38 = vld [vmem:[%s9198_s1 + $0x600] sm:$0xff]  }
  0x91   :  { %6441 = vmatpush3.bf16.msra.mxu1 %v7099_v39  ;;  %6420 = vmatprep.subr.bf16.mxu0 %v7100_v40  ;;  %v7159_v39 = vld [vmem:[%s9198_s1 + $0x680] sm:$0xff]   ;;  %v7160_v40 = vld [vmem:[%s9198_s1 + $0x648] sm:$0xff]  }
  0x92   :  { %6442 = vmatprep.subr.bf16.mxu1 %v7101_v41  ;;  %v7161_v41 = vld [vmem:[%s9198_s1 + $0x6c8] sm:$0xff]  }
  0x94   :  { %6421 = vmatpush3.bf16.msra.mxu0 %v7102_v42  ;;  %v7162_v42 = vld [vmem:[%s9198_s1 + $0x608] sm:$0xff]  }
  0x95   :  { %6443 = vmatpush3.bf16.msra.mxu1 %v7103_v43  ;;  %6422 = vmatprep.subr.bf16.mxu0 %v7104_v44  ;;  %v7163_v43 = vld [vmem:[%s9198_s1 + $0x688] sm:$0xff]   ;;  %v7164_v44 = vld [vmem:[%s9198_s1 + $0x650] sm:$0xff]  }
  0x96   :  { %6444 = vmatprep.subr.bf16.mxu1 %v7105_v45  ;;  %v7165_v45 = vld [vmem:[%s9198_s1 + $0x6d0] sm:$0xff]  }
  0x98   :  { %6423 = vmatpush3.bf16.msra.mxu0 %v7106_v46  ;;  %v7166_v46 = vld [vmem:[%s9198_s1 + $0x610] sm:$0xff]  }
  0x99   :  { %6445 = vmatpush3.bf16.msra.mxu1 %v7107_v47  ;;  %6424 = vmatprep.subr.bf16.mxu0 %v7108_v48  ;;  %v7167_v47 = vld [vmem:[%s9198_s1 + $0x690] sm:$0xff]   ;;  %v7168_v48 = vld [vmem:[%s9198_s1 + $0x658] sm:$0xff]  }
  0x9a   :  { %6446 = vmatprep.subr.bf16.mxu1 %v7109_v49  ;;  %v7169_v49 = vld [vmem:[%s9198_s1 + $0x6d8] sm:$0xff]  }
  0x9c   :  { %6425 = vmatpush3.bf16.msra.mxu0 %v7110_v50  ;;  %v7170_v50 = vld [vmem:[%s9198_s1 + $0x618] sm:$0xff]  }
  0x9d   :  { %6447 = vmatpush3.bf16.msra.mxu1 %v7111_v51  ;;  %6426 = vmatprep.subr.bf16.mxu0 %v7112_v52  ;;  %v7171_v51 = vld [vmem:[%s9198_s1 + $0x698] sm:$0xff]   ;;  %v7172_v52 = vld [vmem:[%s9198_s1 + $0x660] sm:$0xff]  }
  0x9e   :  { %6448 = vmatprep.subr.bf16.mxu1 %v7113_v53  ;;  %v7173_v53 = vld [vmem:[%s9198_s1 + $0x6e0] sm:$0xff]  }
  0xa0   :  { %6427 = vmatpush3.bf16.msra.mxu0 %v7114_v54  ;;  %v7174_v54 = vld [vmem:[%s9198_s1 + $0x620] sm:$0xff]  }
  0xa1   :  { %6449 = vmatpush3.bf16.msra.mxu1 %v7115_v55  ;;  %6456 = vmatprep.subr.bf16.mxu0 %v7120_v62  ;;  %v7175_v55 = vld [vmem:[%s9198_s1 + $0x6a0] sm:$0xff]   ;;  %v7182_v62 = vld [vmem:[%s9198_s1 + $0x630] sm:$0xff]  }
  0xa2   :  { %6478 = vmatprep.subr.bf16.mxu1 %v7121_v63  ;;  %v7183_v63 = vld [vmem:[%s9198_s1 + $0x6b0] sm:$0xff]  }
  0xa3   :  { %4727 = vmatmul.mubr.bf16.vlgmr.msra.gmra.mrb[16].mxu0 %v5676_v57  ;;  %v7177_v57 = vld [vmem:[%s9198_s1 + $0x6e8] sm:$0xff]  }
  0xa4   :  { %4767 = vmatmul.mubr.bf16.vlgmr.msra.gmra.mrb[16].mxu1 %v5678_v60  ;;  %6457 = vmatpush3.bf16.msra.mxu0 %v7122_v0  ;;  %v7180_v60 = vld [vmem:[%s9198_s1 + $0x670] sm:$0xff]   ;;  %v7184_v0 = vld [vmem:[%s9198_s1 + $0x678] sm:$0xff]  }
  0xa5   :  { %6479 = vmatpush3.bf16.msra.mxu1 %v7123_v1  ;;  %6458 = vmatprep.subr.bf16.mxu0 %v7124_v2  ;;  %v7185_v1 = vld [vmem:[%s9198_s1 + $0x6f8] sm:$0xff]  }
  0xa6   :  { %6480 = vmatprep.subr.bf16.mxu1 %v7125_v3  ;;  %4806 = vmatprep.mubr.bf16.mxu0 %v5681_v33  ;;  %v7186_v2 = vld [vmem:[%s9198_s1 + $0x638] sm:$0xff]  }
  0xa7   :  { %4846 = vmatprep.mubr.bf16.mxu1 %v5683_v35  ;;  %v7187_v3 = vld [vmem:[%s9198_s1 + $0x6b8] sm:$0xff]  }
  0xa8   :  { %6459 = vmatpush3.bf16.msra.mxu0 %v7126_v4  ;;  %v27_v4 = vld [vmem:[%s9199_s0 + $0x60] sm:$0xff] }
  0xa9   :  { %6481 = vmatpush3.bf16.msra.mxu1 %v7127_v5  ;;  %6460 = vmatprep.subr.bf16.mxu0 %v7128_v6  ;;  %v28_v5 = vld [vmem:[%s9199_s0 + $0x68] sm:$0xff]  ;;  %v5684_v6 = vcombine.low %v27_v4, %v27_v4 }
  0xaa   :  { %6482 = vmatprep.subr.bf16.mxu1 %v7129_v7  ;;  %v5685_v7 = vcombine.high %v27_v4, %v27_v4  ;;  %v7235_v4 = vld [vmem:[%s9198_s1 + $0x888] sm:$0xff]  }
  0xac   :  { %6461 = vmatpush3.bf16.msra.mxu0 %v7130_v8  ;;  %v5686_v8 = vcombine.low %v28_v5, %v28_v5 }
  0xad   :  { %6483 = vmatpush3.bf16.msra.mxu1 %v7131_v9  ;;  %6462 = vmatprep.subr.bf16.mxu0 %v7132_v10  ;;  %v7192_v9 = vld [vmem:[%s9198_s1 + $0x740] sm:$0xff]   ;;  %v5687_v10 = vcombine.high %v28_v5, %v28_v5  ;;  %v7236_v5 = vld [vmem:[%s9198_s1 + $0x850] sm:$0xff]  }
  0xae   :  { %6484 = vmatprep.subr.bf16.mxu1 %v7133_v11  ;;  %v7193_v11 = vld [vmem:[%s9198_s1 + $0x7c0] sm:$0xff]  }
  0xb0   :  { %6463 = vmatpush3.bf16.msra.mxu0 %v7134_v12  ;;  %v7194_v12 = vld [vmem:[%s9198_s1 + $0x700] sm:$0xff]  }
  0xb1   :  { %6485 = vmatpush3.bf16.msra.mxu1 %v7135_v13  ;;  %6464 = vmatprep.subr.bf16.mxu0 %v7136_v14  ;;  %v7195_v13 = vld [vmem:[%s9198_s1 + $0x780] sm:$0xff]   ;;  %v7196_v14 = vld [vmem:[%s9198_s1 + $0x748] sm:$0xff]  }
  0xb2   :  { %6486 = vmatprep.subr.bf16.mxu1 %v7137_v15  ;;  %v7197_v15 = vld [vmem:[%s9198_s1 + $0x7c8] sm:$0xff]  }
  0xb4   :  { %6465 = vmatpush3.bf16.msra.mxu0 %v7138_v16  ;;  %v7198_v16 = vld [vmem:[%s9198_s1 + $0x708] sm:$0xff]  }
  0xb5   :  { %6487 = vmatpush3.bf16.msra.mxu1 %v7139_v17  ;;  %6466 = vmatprep.subr.bf16.mxu0 %v7140_v18  ;;  %v7199_v17 = vld [vmem:[%s9198_s1 + $0x788] sm:$0xff]   ;;  %v7200_v18 = vld [vmem:[%s9198_s1 + $0x750] sm:$0xff]  }
  0xb6   :  { %6488 = vmatprep.subr.bf16.mxu1 %v7141_v19  ;;  %v7201_v19 = vld [vmem:[%s9198_s1 + $0x7d0] sm:$0xff]  }
  0xb8   :  { %6467 = vmatpush3.bf16.msra.mxu0 %v7142_v20  ;;  %v7202_v20 = vld [vmem:[%s9198_s1 + $0x710] sm:$0xff]  }
  0xb9   :  { %6489 = vmatpush3.bf16.msra.mxu1 %v7143_v21  ;;  %6468 = vmatprep.subr.bf16.mxu0 %v7144_v22  ;;  %v7203_v21 = vld [vmem:[%s9198_s1 + $0x790] sm:$0xff]   ;;  %v7204_v22 = vld [vmem:[%s9198_s1 + $0x758] sm:$0xff]  }
  0xba   :  { %6490 = vmatprep.subr.bf16.mxu1 %v7145_v23  ;;  %v7205_v23 = vld [vmem:[%s9198_s1 + $0x7d8] sm:$0xff]  }
  0xbc   :  { %6469 = vmatpush3.bf16.msra.mxu0 %v7146_v24  ;;  %v7206_v24 = vld [vmem:[%s9198_s1 + $0x718] sm:$0xff]  }
  0xbd   :  { %6491 = vmatpush3.bf16.msra.mxu1 %v7147_v25  ;;  %6470 = vmatprep.subr.bf16.mxu0 %v7148_v26  ;;  %v7207_v25 = vld [vmem:[%s9198_s1 + $0x798] sm:$0xff]   ;;  %v7208_v26 = vld [vmem:[%s9198_s1 + $0x760] sm:$0xff]  }
  0xbe   :  { %6492 = vmatprep.subr.bf16.mxu1 %v7149_v27  ;;  %v7209_v27 = vld [vmem:[%s9198_s1 + $0x7e0] sm:$0xff]  }
  0xc0   :  { %6471 = vmatpush3.bf16.msra.mxu0 %v7150_v28  ;;  %v7210_v28 = vld [vmem:[%s9198_s1 + $0x720] sm:$0xff]  }
  0xc1   :  { %6493 = vmatpush3.bf16.msra.mxu1 %v7151_v29  ;;  %6500 = vmatprep.subr.bf16.mxu0 %v7156_v36 }
  0xc2   :  { %6522 = vmatprep.subr.bf16.mxu1 %v7157_v37  ;;  %v7212_v37 = vld [vmem:[%s9198_s1 + $0x768] sm:$0xff]  }
  0xc3   :  { %4807 = vmatmul.mubr.bf16.vlgmr.msra.gmra.mrb[20].mxu0 %v5680_v32  ;;  %v5659_v32 = vld [vmem:[%s9200_s2] ss:$0 sm:$0xff] }
  0xc4   :  { %4847 = vmatmul.mubr.bf16.vlgmr.msra.gmra.mrb[20].mxu1 %v5682_v34  ;;  %6501 = vmatpush3.bf16.msra.mxu0 %v7158_v38 }
  0xc5   :  { %6523 = vmatpush3.bf16.msra.mxu1 %v7159_v39  ;;  %6502 = vmatprep.subr.bf16.mxu0 %v7160_v40  ;;  %v7213_v39 = vld [vmem:[%s9198_s1 + $0x7e8] sm:$0xff]  }
  0xc6   :  { %6524 = vmatprep.subr.bf16.mxu1 %v7161_v41  ;;  %4886 = vmatprep.mubr.bf16.mxu0 %v5685_v7  ;;  %v7238_v7 = vld [vmem:[%s9198_s1 + $0x810] sm:$0xff]  }
  0xc7   :  { %4926 = vmatprep.mubr.bf16.mxu1 %v5687_v10  ;;  %v7241_v10 = vld [vmem:[%s9198_s1 + $0x8d8] sm:$0xff]  }
  0xc8   :  { %6503 = vmatpush3.bf16.msra.mxu0 %v7162_v42  ;;  %v7214_v42 = vld [vmem:[%s9198_s1 + $0x728] sm:$0xff]  }
  0xc9   :  { %6525 = vmatpush3.bf16.msra.mxu1 %v7163_v43  ;;  %6504 = vmatprep.subr.bf16.mxu0 %v7164_v44  ;;  %v7215_v44 = vld [vmem:[%s9198_s1 + $0x7a8] sm:$0xff]  }
  0xca   :  { %6526 = vmatprep.subr.bf16.mxu1 %v7165_v45 }
  0xcc   :  { %6505 = vmatpush3.bf16.msra.mxu0 %v7166_v46 }
  0xcd   :  { %6527 = vmatpush3.bf16.msra.mxu1 %v7167_v47  ;;  %6506 = vmatprep.subr.bf16.mxu0 %v7168_v48  ;;  %v7216_v47 = vld [vmem:[%s9198_s1 + $0x770] sm:$0xff]  }
  0xce   :  { %6528 = vmatprep.subr.bf16.mxu1 %v7169_v49  ;;  %v7217_v48 = vld [vmem:[%s9198_s1 + $0x7f0] sm:$0xff]  }
  0xcf   :  { %v7218_v49 = vld [vmem:[%s9198_s1 + $0x730] sm:$0xff]  }
  0xd0   :  { %6507 = vmatpush3.bf16.msra.mxu0 %v7170_v50  ;;  %v7219_v50 = vld [vmem:[%s9198_s1 + $0x7b0] sm:$0xff]  }
  0xd1   :  { %6529 = vmatpush3.bf16.msra.mxu1 %v7171_v51  ;;  %6508 = vmatprep.subr.bf16.mxu0 %v7172_v52  ;;  %v7220_v51 = vld [vmem:[%s9198_s1 + $0x778] sm:$0xff]  }
  0xd2   :  { %6530 = vmatprep.subr.bf16.mxu1 %v7173_v53  ;;  %v7221_v52 = vld [vmem:[%s9198_s1 + $0x7f8] sm:$0xff]  }
  0xd3   :  { %v7222_v53 = vld [vmem:[%s9198_s1 + $0x738] sm:$0xff]  }
  0xd4   :  { %6509 = vmatpush3.bf16.msra.mxu0 %v7174_v54  ;;  %v7223_v54 = vld [vmem:[%s9198_s1 + $0x7b8] sm:$0xff]  }
  0xd5   :  { %6531 = vmatpush3.bf16.msra.mxu1 %v7175_v55  ;;  %6510 = vmatprep.subr.bf16.mxu0 %v7176_v56  ;;  %v29_v55 = vld [vmem:[%s9199_s0 + $0x70] sm:$0xff]  ;;  %v30_v56 = vld [vmem:[%s9199_s0 + $0x78] sm:$0xff] }
  0xd6   :  { %6532 = vmatprep.subr.bf16.mxu1 %v7177_v57  ;;  %v5688_v57 = vcombine.low %v29_v55, %v29_v55 }
  0xd8   :  { %6511 = vmatpush3.bf16.msra.mxu0 %v7178_v58  ;;  %v5689_v58 = vcombine.high %v29_v55, %v29_v55  ;;  %v7272_v55 = vld [vmem:[%s9198_s1 + $0x950] sm:$0xff]  }
  0xd9   :  { %6533 = vmatpush3.bf16.msra.mxu1 %v7179_v59  ;;  %6512 = vmatprep.subr.bf16.mxu0 %v7180_v60  ;;  %v5690_v59 = vcombine.low %v30_v56, %v30_v56  ;;  %v5691_v60 = vcombine.high %v30_v56, %v30_v56  ;;  %v7273_v56 = vld [vmem:[%s9198_s1 + $0x9d0] sm:$0xff]  }
  0xda   :  { %6534 = vmatprep.subr.bf16.mxu1 %v7181_v61  ;;  %v7228_v61 = vld [vmem:[%s9198_s1 + $0x840] sm:$0xff]  }
  0xdc   :  { %6513 = vmatpush3.bf16.msra.mxu0 %v7182_v62  ;;  %v7229_v62 = vld [vmem:[%s9198_s1 + $0x8c0] sm:$0xff]  }
  0xdd   :  { %6535 = vmatpush3.bf16.msra.mxu1 %v7183_v63  ;;  %6514 = vmatprep.subr.bf16.mxu0 %v7184_v0  ;;  %v7230_v63 = vld [vmem:[%s9198_s1 + $0x800] sm:$0xff]  }
  0xde   :  { %6536 = vmatprep.subr.bf16.mxu1 %v7185_v1  ;;  %v7231_v0 = vld [vmem:[%s9198_s1 + $0x880] sm:$0xff]   ;;  %v7232_v1 = vld [vmem:[%s9198_s1 + $0x848] sm:$0xff]  }
  0xe0   :  { %6515 = vmatpush3.bf16.msra.mxu0 %v7186_v2  ;;  %v7233_v2 = vld [vmem:[%s9198_s1 + $0x8c8] sm:$0xff]  }
  0xe1   :  { %6537 = vmatpush3.bf16.msra.mxu1 %v7187_v3  ;;  %6544 = vmatprep.subr.bf16.mxu0 %v7192_v9  ;;  %v7234_v3 = vld [vmem:[%s9198_s1 + $0x808] sm:$0xff]   ;;  %v7240_v9 = vld [vmem:[%s9198_s1 + $0x858] sm:$0xff]  }
  0xe2   :  { %6566 = vmatprep.subr.bf16.mxu1 %v7193_v11  ;;  %v7242_v11 = vld [vmem:[%s9198_s1 + $0x818] sm:$0xff]  }
  0xe3   :  { %4887 = vmatmul.mubr.bf16.vlgmr.msra.gmra.mrb[24].mxu0 %v5684_v6  ;;  %v7237_v6 = vld [vmem:[%s9198_s1 + $0x8d0] sm:$0xff]  }
  0xe4   :  { %4927 = vmatmul.mubr.bf16.vlgmr.msra.gmra.mrb[24].mxu1 %v5686_v8  ;;  %6545 = vmatpush3.bf16.msra.mxu0 %v7194_v12  ;;  %v7239_v8 = vld [vmem:[%s9198_s1 + $0x890] sm:$0xff]   ;;  %v7243_v12 = vld [vmem:[%s9198_s1 + $0x898] sm:$0xff]  }
  0xe5   :  { %6567 = vmatpush3.bf16.msra.mxu1 %v7195_v13  ;;  %6546 = vmatprep.subr.bf16.mxu0 %v7196_v14  ;;  %v7244_v13 = vld [vmem:[%s9198_s1 + $0x860] sm:$0xff]  }
  0xe6   :  { %6568 = vmatprep.subr.bf16.mxu1 %v7197_v15  ;;  %4966 = vmatprep.mubr.bf16.mxu0 %v5689_v58  ;;  %v7245_v14 = vld [vmem:[%s9198_s1 + $0x8e0] sm:$0xff]   ;;  %v7275_v58 = vld [vmem:[%s9198_s1 + $0x990] sm:$0xff]  }
  0xe7   :  { %5006 = vmatprep.mubr.bf16.mxu1 %v5691_v60  ;;  %v7246_v15 = vld [vmem:[%s9198_s1 + $0x820] sm:$0xff]   ;;  %v7277_v60 = vld [vmem:[%s9198_s1 + $0x9d8] sm:$0xff]  }
  0xe8   :  { %6547 = vmatpush3.bf16.msra.mxu0 %v7198_v16 }
  0xe9   :  { %6569 = vmatpush3.bf16.msra.mxu1 %v7199_v17  ;;  %6548 = vmatprep.subr.bf16.mxu0 %v7200_v18  ;;  %v7247_v17 = vld [vmem:[%s9198_s1 + $0x8a0] sm:$0xff]  }
  0xea   :  { %6570 = vmatprep.subr.bf16.mxu1 %v7201_v19 }
  0xec   :  { %6549 = vmatpush3.bf16.msra.mxu0 %v7202_v20 }
  0xed   :  { %6571 = vmatpush3.bf16.msra.mxu1 %v7203_v21  ;;  %6550 = vmatprep.subr.bf16.mxu0 %v7204_v22 }
  0xee   :  { %6572 = vmatprep.subr.bf16.mxu1 %v7205_v23  ;;  %v7248_v23 = vld [vmem:[%s9198_s1 + $0x868] sm:$0xff]  }
  0xf0   :  { %6551 = vmatpush3.bf16.msra.mxu0 %v7206_v24 }
  0xf1   :  { %6573 = vmatpush3.bf16.msra.mxu1 %v7207_v25  ;;  %6552 = vmatprep.subr.bf16.mxu0 %v7208_v26  ;;  %v7249_v25 = vld [vmem:[%s9198_s1 + $0x8e8] sm:$0xff]  }
  0xf2   :  { %6574 = vmatprep.subr.bf16.mxu1 %v7209_v27 }
  0xf4   :  { %6553 = vmatpush3.bf16.msra.mxu0 %v7210_v28  ;;  %v7250_v28 = vld [vmem:[%s9198_s1 + $0x828] sm:$0xff]  }
  0xf5   :  { %6575 = vmatpush3.bf16.msra.mxu1 %v7211_v30  ;;  %6554 = vmatprep.subr.bf16.mxu0 %v7212_v37  ;;  %v7251_v30 = vld [vmem:[%s9198_s1 + $0x8a8] sm:$0xff]   ;;  %v7256_v37 = vld [vmem:[%s9198_s1 + $0x878] sm:$0xff]  }
  0xf6   :  { %v6252_v29 = vpop.f32.mrb[0].mxu0  ;;  %6576 = vmatprep.subr.bf16.mxu1 %v7213_v39  ;;  %v7258_v39 = vld [vmem:[%s9198_s1 + $0x838] sm:$0xff]  }
  0xf7   :  { %v6274_v31 = vpop.f32.mrb[0].mxu1  ;;  %v6253_v33 = vpop.f32.mrb[1].mxu0 }
  0xf8   :  { %v6275_v34 = vpop.f32.mrb[1].mxu1  ;;  %v6254_v35 = vadd.f32 %v6253_v33, %v6252_v29  ;;  %v6255_v38 = vpop.f32.mrb[2].mxu0  ;;  %6555 = vmatpush3.bf16.msra.mxu0 %v7214_v42  ;;  %v7252_v33 = vld [vmem:[%s9198_s1 + $0x870] sm:$0xff]   ;;  %v32_v42 = vld [vmem:[%s9199_s0 + $0x88] sm:$0xff] }
  0xf9   :  { %v6276_v36 = vadd.f32 %v6275_v34, %v6274_v31  ;;  %v6277_v40 = vpop.f32.mrb[2].mxu1  ;;  %v6256_v43 = vpop.f32.mrb[3].mxu0  ;;  %6577 = vmatpush3.bf16.msra.mxu1 %v7215_v44  ;;  %6556 = vmatprep.subr.bf16.mxu0 %v7216_v47  ;;  %v7253_v34 = vld [vmem:[%s9198_s1 + $0x8f0] sm:$0xff]   ;;  %v7257_v38 = vld [vmem:[%s9198_s1 + $0x8f8] sm:$0xff]   ;;  %v7264_v47 = vld [vmem:[%s9198_s1 + $0x940] sm:$0xff]  }
  0xfa   :  { %v4409_v41 = vadd.f32 %v6254_v35, %v5659_v32  ;;  %v6278_v45 = vpop.f32.mrb[3].mxu1  ;;  %6578 = vmatprep.subr.bf16.mxu1 %v7217_v48  ;;  %v7254_v35 = vld [vmem:[%s9198_s1 + $0x830] sm:$0xff]   ;;  %v7259_v40 = vld [vmem:[%s9198_s1 + $0x8b8] sm:$0xff]   ;;  %v7265_v48 = vld [vmem:[%s9198_s1 + $0x9c0] sm:$0xff]  }
  0xfb   :  { %v5694_v45 = vcombine.low %v32_v42, %v32_v42 }
  0xfc   :  { %v8325_v46 = vadd.f32 %v6276_v36, %v4409_v41  ;;  %6557 = vmatpush3.bf16.msra.mxu0 %v7218_v49  ;;  %v7255_v36 = vld [vmem:[%s9198_s1 + $0x8b0] sm:$0xff]   ;;  %v31_v41 = vld [vmem:[%s9199_s0 + $0x80] sm:$0xff] }
  0xfd   :  { %6579 = vmatpush3.bf16.msra.mxu1 %v7219_v50  ;;  %6558 = vmatprep.subr.bf16.mxu0 %v7220_v51  ;;  %v5692_v43 = vcombine.low %v31_v41, %v31_v41  ;;  %v5693_v44 = vcombine.high %v31_v41, %v31_v41  ;;  %v7266_v49 = vld [vmem:[%s9198_s1 + $0x900] sm:$0xff]   ;;  %v7268_v51 = vld [vmem:[%s9198_s1 + $0x948] sm:$0xff]   ;;  %v7308_v41 = vld [vmem:[%s9198_s1 + $0xa50] sm:$0xff]  }
  0xfe   :  { %6580 = vmatprep.subr.bf16.mxu1 %v7221_v52  ;;  %v7267_v50 = vld [vmem:[%s9198_s1 + $0x980] sm:$0xff]   ;;  %v7269_v52 = vld [vmem:[%s9198_s1 + $0x9c8] sm:$0xff]  }
 0x100   :  { %6559 = vmatpush3.bf16.msra.mxu0 %v7222_v53  ;;  %v7270_v53 = vld [vmem:[%s9198_s1 + $0x908] sm:$0xff]  }
 0x101   :  { %6581 = vmatpush3.bf16.msra.mxu1 %v7223_v54  ;;  %6588 = vmatprep.subr.bf16.mxu0 %v7228_v61  ;;  %v7271_v54 = vld [vmem:[%s9198_s1 + $0x988] sm:$0xff]   ;;  %v7278_v61 = vld [vmem:[%s9198_s1 + $0x918] sm:$0xff]  }
 0x102   :  { %6610 = vmatprep.subr.bf16.mxu1 %v7229_v62  ;;  %v7279_v62 = vld [vmem:[%s9198_s1 + $0x998] sm:$0xff]  }
 0x103   :  { %4967 = vmatmul.mubr.bf16.vlgmr.msra.gmra.mrb[28].mxu0 %v5688_v57  ;;  %v7274_v57 = vld [vmem:[%s9198_s1 + $0x910] sm:$0xff]  }
 0x104   :  { %5007 = vmatmul.mubr.bf16.vlgmr.msra.gmra.mrb[28].mxu1 %v5690_v59  ;;  %6589 = vmatpush3.bf16.msra.mxu0 %v7230_v63  ;;  %v7276_v59 = vld [vmem:[%s9198_s1 + $0x958] sm:$0xff]   ;;  %v7280_v63 = vld [vmem:[%s9198_s1 + $0x960] sm:$0xff]  }
 0x105   :  { %6611 = vmatpush3.bf16.msra.mxu1 %v7231_v0  ;;  %6590 = vmatprep.subr.bf16.mxu0 %v7232_v1  ;;  %v7281_v0 = vld [vmem:[%s9198_s1 + $0x9e0] sm:$0xff]  }
 0x106   :  { %6612 = vmatprep.subr.bf16.mxu1 %v7233_v2  ;;  %5046 = vmatprep.mubr.bf16.mxu0 %v5693_v44  ;;  %v7282_v2 = vld [vmem:[%s9198_s1 + $0x920] sm:$0xff]   ;;  %v7311_v44 = vld [vmem:[%s9198_s1 + $0xa90] sm:$0xff]  }
 0x108   :  { %6591 = vmatpush3.bf16.msra.mxu0 %v7234_v3 }
 0x109   :  { %6613 = vmatpush3.bf16.msra.mxu1 %v7235_v4  ;;  %6592 = vmatprep.subr.bf16.mxu0 %v7236_v5  ;;  %v7283_v4 = vld [vmem:[%s9198_s1 + $0x9a0] sm:$0xff]  }
 0x10a   :  { %6614 = vmatprep.subr.bf16.mxu1 %v7237_v6 }
 0x10c   :  { %6593 = vmatpush3.bf16.msra.mxu0 %v7238_v7 }
 0x10d   :  { %6615 = vmatpush3.bf16.msra.mxu1 %v7239_v8  ;;  %6594 = vmatprep.subr.bf16.mxu0 %v7240_v9  ;;  %v7284_v8 = vld [vmem:[%s9198_s1 + $0x968] sm:$0xff]  }
 0x10e   :  { %6616 = vmatprep.subr.bf16.mxu1 %v7241_v10  ;;  %v7285_v10 = vld [vmem:[%s9198_s1 + $0x9e8] sm:$0xff]  }
 0x110   :  { %6595 = vmatpush3.bf16.msra.mxu0 %v7242_v11 }
 0x111   :  { %6617 = vmatpush3.bf16.msra.mxu1 %v7243_v12  ;;  %6596 = vmatprep.subr.bf16.mxu0 %v7244_v13 }
 0x112   :  { %6618 = vmatprep.subr.bf16.mxu1 %v7245_v14  ;;  %v7286_v14 = vld [vmem:[%s9198_s1 + $0x928] sm:$0xff]  }
 0x114   :  { %6597 = vmatpush3.bf16.msra.mxu0 %v7246_v15  ;;  %v7287_v15 = vld [vmem:[%s9198_s1 + $0x9a8] sm:$0xff]  }
 0x115   :  { %6619 = vmatpush3.bf16.msra.mxu1 %v7247_v17  ;;  %6598 = vmatprep.subr.bf16.mxu0 %v7248_v23  ;;  %v7292_v23 = vld [vmem:[%s9198_s1 + $0x978] sm:$0xff]  }
 0x116   :  { %v6296_v16 = vpop.f32.mrb[4].mxu0  ;;  %6620 = vmatprep.subr.bf16.mxu1 %v7249_v25  ;;  %v7294_v25 = vld [vmem:[%s9198_s1 + $0x938] sm:$0xff]  }
 0x117   :  { %v6318_v18 = vpop.f32.mrb[4].mxu1  ;;  %v6297_v19 = vpop.f32.mrb[5].mxu0 }
 0x118   :  { %v6319_v20 = vpop.f32.mrb[5].mxu1  ;;  %v6298_v21 = vadd.f32 %v6297_v19, %v6296_v16  ;;  %v6299_v24 = vpop.f32.mrb[6].mxu0  ;;  %6599 = vmatpush3.bf16.msra.mxu0 %v7250_v28  ;;  %v7288_v19 = vld [vmem:[%s9198_s1 + $0x970] sm:$0xff]   ;;  %v34_v28 = vld [vmem:[%s9199_s0 + $0x98] sm:$0xff] }
 0x119   :  { %v6320_v22 = vadd.f32 %v6319_v20, %v6318_v18  ;;  %v6321_v26 = vpop.f32.mrb[6].mxu1  ;;  %v6300_v29 = vpop.f32.mrb[7].mxu0  ;;  %6621 = vmatpush3.bf16.msra.mxu1 %v7251_v30  ;;  %6600 = vmatprep.subr.bf16.mxu0 %v7252_v33  ;;  %v7289_v20 = vld [vmem:[%s9198_s1 + $0x9f0] sm:$0xff]   ;;  %v7293_v24 = vld [vmem:[%s9198_s1 + $0x9f8] sm:$0xff]   ;;  %v5699_v33 = vcombine.high %v34_v28, %v34_v28 }
 0x11a   :  { %v4489_v27 = vadd.f32 %v6298_v21, %v8325_v46  ;;  %v6322_v31 = vpop.f32.mrb[7].mxu1  ;;  %6622 = vmatprep.subr.bf16.mxu1 %v7253_v34  ;;  %v5695_v46 = vcombine.high %v32_v42, %v32_v42  ;;  %v7290_v21 = vld [vmem:[%s9198_s1 + $0x930] sm:$0xff]   ;;  %v7295_v26 = vld [vmem:[%s9198_s1 + $0x9b8] sm:$0xff]   ;;  %v7301_v34 = vld [vmem:[%s9198_s1 + $0xac0] sm:$0xff]  }
 0x11b   :  { %v5698_v31 = vcombine.low %v34_v28, %v34_v28  ;;  %v7309_v42 = vld [vmem:[%s9198_s1 + $0xad0] sm:$0xff]  }
 0x11c   :  { %v8430_v32 = vadd.f32 %v6320_v22, %v4489_v27  ;;  %6601 = vmatpush3.bf16.msra.mxu0 %v7254_v35  ;;  %5086 = vmatprep.mubr.bf16.mxu1 %v5695_v46  ;;  %v7291_v22 = vld [vmem:[%s9198_s1 + $0x9b0] sm:$0xff]   ;;  %v7302_v35 = vld [vmem:[%s9198_s1 + $0xa00] sm:$0xff]   ;;  %v7313_v46 = vld [vmem:[%s9198_s1 + $0xad8] sm:$0xff]  }
 0x11d   :  { %6623 = vmatpush3.bf16.msra.mxu1 %v7255_v36  ;;  %6602 = vmatprep.subr.bf16.mxu0 %v7256_v37  ;;  %v33_v27 = vld [vmem:[%s9199_s0 + $0x90] sm:$0xff]  ;;  %v7303_v36 = vld [vmem:[%s9198_s1 + $0xa80] sm:$0xff]   ;;  %v7304_v37 = vld [vmem:[%s9198_s1 + $0xa48] sm:$0xff]  }
 0x11e   :  { %6624 = vmatprep.subr.bf16.mxu1 %v7257_v38  ;;  %v5696_v29 = vcombine.low %v33_v27, %v33_v27  ;;  %v5697_v30 = vcombine.high %v33_v27, %v33_v27  ;;  %v7305_v38 = vld [vmem:[%s9198_s1 + $0xac8] sm:$0xff]   ;;  %v7344_v27 = vld [vmem:[%s9198_s1 + $0xb50] sm:$0xff]  }
 0x11f   :  { %v7345_v28 = vld [vmem:[%s9198_s1 + $0xbd0] sm:$0xff]  }
 0x120   :  { %6603 = vmatpush3.bf16.msra.mxu0 %v7258_v39  ;;  %v7306_v39 = vld [vmem:[%s9198_s1 + $0xa08] sm:$0xff]  }
 0x121   :  { %6625 = vmatpush3.bf16.msra.mxu1 %v7259_v40  ;;  %6632 = vmatprep.subr.bf16.mxu0 %v7264_v47  ;;  %v7307_v40 = vld [vmem:[%s9198_s1 + $0xa88] sm:$0xff]   ;;  %v7314_v47 = vld [vmem:[%s9198_s1 + $0xa18] sm:$0xff]  }
 0x122   :  { %6654 = vmatprep.subr.bf16.mxu1 %v7265_v48  ;;  %v7315_v48 = vld [vmem:[%s9198_s1 + $0xa98] sm:$0xff]  }
 0x123   :  { %5047 = vmatmul.mubr.bf16.vlgmr.msra.gmra.mrb[32].mxu0 %v5692_v43  ;;  %v7310_v43 = vld [vmem:[%s9198_s1 + $0xa10] sm:$0xff]  }
 0x124   :  { %5087 = vmatmul.mubr.bf16.vlgmr.msra.gmra.mrb[32].mxu1 %v5694_v45  ;;  %6633 = vmatpush3.bf16.msra.mxu0 %v7266_v49  ;;  %v7312_v45 = vld [vmem:[%s9198_s1 + $0xa58] sm:$0xff]   ;;  %v7316_v49 = vld [vmem:[%s9198_s1 + $0xa60] sm:$0xff]  }
 0x125   :  { %6655 = vmatpush3.bf16.msra.mxu1 %v7267_v50  ;;  %6634 = vmatprep.subr.bf16.mxu0 %v7268_v51  ;;  %v7317_v50 = vld [vmem:[%s9198_s1 + $0xae0] sm:$0xff]  }
 0x126   :  { %6656 = vmatprep.subr.bf16.mxu1 %v7269_v52  ;;  %5126 = vmatprep.mubr.bf16.mxu0 %v5697_v30  ;;  %v7318_v52 = vld [vmem:[%s9198_s1 + $0xa20] sm:$0xff]   ;;  %v7347_v30 = vld [vmem:[%s9198_s1 + $0xb90] sm:$0xff]  }
 0x127   :  { %5166 = vmatprep.mubr.bf16.mxu1 %v5699_v33  ;;  %v7350_v33 = vld [vmem:[%s9198_s1 + $0xb18] sm:$0xff]  }
 0x128   :  { %6635 = vmatpush3.bf16.msra.mxu0 %v7270_v53 }
 0x129   :  { %6657 = vmatpush3.bf16.msra.mxu1 %v7271_v54  ;;  %6636 = vmatprep.subr.bf16.mxu0 %v7272_v55  ;;  %v7319_v54 = vld [vmem:[%s9198_s1 + $0xaa0] sm:$0xff]  }
 0x12a   :  { %6658 = vmatprep.subr.bf16.mxu1 %v7273_v56 }
 0x12c   :  { %6637 = vmatpush3.bf16.msra.mxu0 %v7274_v57  ;;  %v7320_v57 = vld [vmem:[%s9198_s1 + $0xa68] sm:$0xff]  }
 0x12d   :  { %6659 = vmatpush3.bf16.msra.mxu1 %v7275_v58  ;;  %6638 = vmatprep.subr.bf16.mxu0 %v7276_v59 }
 0x12e   :  { %6660 = vmatprep.subr.bf16.mxu1 %v7277_v60  ;;  %v7321_v60 = vld [vmem:[%s9198_s1 + $0xae8] sm:$0xff]  }
 0x130   :  { %6639 = vmatpush3.bf16.msra.mxu0 %v7278_v61 }
 0x131   :  { %6661 = vmatpush3.bf16.msra.mxu1 %v7279_v62  ;;  %6640 = vmatprep.subr.bf16.mxu0 %v7280_v63  ;;  %v7322_v63 = vld [vmem:[%s9198_s1 + $0xa28] sm:$0xff]  }
 0x132   :  { %6662 = vmatprep.subr.bf16.mxu1 %v7281_v0 }
 0x134   :  { %6641 = vmatpush3.bf16.msra.mxu0 %v7282_v2 }
 0x135   :  { %6663 = vmatpush3.bf16.msra.mxu1 %v7283_v4  ;;  %6642 = vmatprep.subr.bf16.mxu0 %v7284_v8  ;;  %v7324_v4 = vld [vmem:[%s9198_s1 + $0xa70] sm:$0xff]  }
 0x136   :  { %v6340_v1 = vpop.f32.mrb[8].mxu0  ;;  %6664 = vmatprep.subr.bf16.mxu1 %v7285_v10  ;;  %v7327_v8 = vld [vmem:[%s9198_s1 + $0xab0] sm:$0xff]   ;;  %v7329_v10 = vld [vmem:[%s9198_s1 + $0xaf8] sm:$0xff]  }
 0x137   :  { %v6362_v3 = vpop.f32.mrb[8].mxu1  ;;  %v6341_v5 = vpop.f32.mrb[9].mxu0 }
 0x138   :  { %v6342_v6 = vadd.f32 %v6341_v5, %v6340_v1  ;;  %v6363_v7 = vpop.f32.mrb[9].mxu1  ;;  %v6343_v11 = vpop.f32.mrb[10].mxu0  ;;  %6643 = vmatpush3.bf16.msra.mxu0 %v7286_v14  ;;  %v7323_v1 = vld [vmem:[%s9198_s1 + $0xaa8] sm:$0xff]  }
 0x139   :  { %v6364_v9 = vadd.f32 %v6363_v7, %v6362_v3  ;;  %v6365_v13 = vpop.f32.mrb[10].mxu1  ;;  %v6344_v16 = vpop.f32.mrb[11].mxu0  ;;  %6665 = vmatpush3.bf16.msra.mxu1 %v7287_v15  ;;  %6644 = vmatprep.subr.bf16.mxu0 %v7288_v19  ;;  %v7326_v7 = vld [vmem:[%s9198_s1 + $0xa30] sm:$0xff]   ;;  %v7330_v11 = vld [vmem:[%s9198_s1 + $0xa38] sm:$0xff]   ;;  %v7336_v19 = vld [vmem:[%s9198_s1 + $0xb40] sm:$0xff]  }
 0x13a   :  { %v4569_v12 = vadd.f32 %v6342_v6, %v8430_v32  ;;  %v6366_v18 = vpop.f32.mrb[11].mxu1  ;;  %6666 = vmatprep.subr.bf16.mxu1 %v7289_v20  ;;  %v7300_v32 = vld [vmem:[%s9198_s1 + $0xa40] sm:$0xff]   ;;  %v7325_v6 = vld [vmem:[%s9198_s1 + $0xaf0] sm:$0xff]   ;;  %v36_v16 = vld [vmem:[%s9199_s0 + $0xa8] sm:$0xff] }
 0x13b   :  { %v35_v13 = vld [vmem:[%s9199_s0 + $0xa0] sm:$0xff]  ;;  %v5703_v18 = vcombine.high %v36_v16, %v36_v16 }
 0x13c   :  { %v8535_v17 = vadd.f32 %v6364_v9, %v4569_v12  ;;  %6645 = vmatpush3.bf16.msra.mxu0 %v7290_v21  ;;  %v7328_v9 = vld [vmem:[%s9198_s1 + $0xa78] sm:$0xff]   ;;  %v5700_v14 = vcombine.low %v35_v13, %v35_v13  ;;  %v5701_v15 = vcombine.high %v35_v13, %v35_v13  ;;  %v7337_v20 = vld [vmem:[%s9198_s1 + $0xbc0] sm:$0xff]   ;;  %v7380_v13 = vld [vmem:[%s9198_s1 + $0xc50] sm:$0xff]  }
 0x13d   :  { %6667 = vmatpush3.bf16.msra.mxu1 %v7291_v22  ;;  %6646 = vmatprep.subr.bf16.mxu0 %v7292_v23  ;;  %v7331_v12 = vld [vmem:[%s9198_s1 + $0xab8] sm:$0xff]   ;;  %v7338_v21 = vld [vmem:[%s9198_s1 + $0xb00] sm:$0xff]   ;;  %v7340_v23 = vld [vmem:[%s9198_s1 + $0xb48] sm:$0xff]  }
 0x13e   :  { %6668 = vmatprep.subr.bf16.mxu1 %v7293_v24  ;;  %v7339_v22 = vld [vmem:[%s9198_s1 + $0xb80] sm:$0xff]   ;;  %v7341_v24 = vld [vmem:[%s9198_s1 + $0xbc8] sm:$0xff]  }
 0x140   :  { %6647 = vmatpush3.bf16.msra.mxu0 %v7294_v25  ;;  %v7342_v25 = vld [vmem:[%s9198_s1 + $0xb08] sm:$0xff]  }
 0x141   :  { %6669 = vmatpush3.bf16.msra.mxu1 %v7295_v26  ;;  %6676 = vmatprep.subr.bf16.mxu0 %v7300_v32  ;;  %v7343_v26 = vld [vmem:[%s9198_s1 + $0xb88] sm:$0xff]   ;;  %v7349_v32 = vld [vmem:[%s9198_s1 + $0xbd8] sm:$0xff]  }
 0x142   :  { %6698 = vmatprep.subr.bf16.mxu1 %v7301_v34  ;;  %v7351_v34 = vld [vmem:[%s9198_s1 + $0xb98] sm:$0xff]  }
 0x143   :  { %5127 = vmatmul.mubr.bf16.vlgmr.msra.gmra.mrb[36].mxu0 %v5696_v29  ;;  %v7346_v29 = vld [vmem:[%s9198_s1 + $0xb10] sm:$0xff]  }
 0x144   :  { %5167 = vmatmul.mubr.bf16.vlgmr.msra.gmra.mrb[36].mxu1 %v5698_v31  ;;  %6677 = vmatpush3.bf16.msra.mxu0 %v7302_v35  ;;  %v7348_v31 = vld [vmem:[%s9198_s1 + $0xb58] sm:$0xff]   ;;  %v7352_v35 = vld [vmem:[%s9198_s1 + $0xb60] sm:$0xff]  }
 0x145   :  { %6699 = vmatpush3.bf16.msra.mxu1 %v7303_v36  ;;  %6678 = vmatprep.subr.bf16.mxu0 %v7304_v37  ;;  %v7353_v36 = vld [vmem:[%s9198_s1 + $0xbe0] sm:$0xff]  }
 0x146   :  { %6700 = vmatprep.subr.bf16.mxu1 %v7305_v38  ;;  %5206 = vmatprep.mubr.bf16.mxu0 %v5701_v15  ;;  %v7354_v38 = vld [vmem:[%s9198_s1 + $0xb20] sm:$0xff]   ;;  %v7382_v15 = vld [vmem:[%s9198_s1 + $0xc10] sm:$0xff]  }
 0x147   :  { %5246 = vmatprep.mubr.bf16.mxu1 %v5703_v18  ;;  %v7385_v18 = vld [vmem:[%s9198_s1 + $0xcd8] sm:$0xff]  }
 0x148   :  { %6679 = vmatpush3.bf16.msra.mxu0 %v7306_v39 }
 0x149   :  { %6701 = vmatpush3.bf16.msra.mxu1 %v7307_v40  ;;  %6680 = vmatprep.subr.bf16.mxu0 %v7308_v41  ;;  %v7355_v40 = vld [vmem:[%s9198_s1 + $0xba0] sm:$0xff]  }
 0x14a   :  { %6702 = vmatprep.subr.bf16.mxu1 %v7309_v42 }
 0x14c   :  { %6681 = vmatpush3.bf16.msra.mxu0 %v7310_v43  ;;  %v7356_v43 = vld [vmem:[%s9198_s1 + $0xb68] sm:$0xff]  }
 0x14d   :  { %6703 = vmatpush3.bf16.msra.mxu1 %v7311_v44  ;;  %6682 = vmatprep.subr.bf16.mxu0 %v7312_v45 }
 0x14e   :  { %6704 = vmatprep.subr.bf16.mxu1 %v7313_v46  ;;  %v7357_v46 = vld [vmem:[%s9198_s1 + $0xbe8] sm:$0xff]  }
 0x150   :  { %6683 = vmatpush3.bf16.msra.mxu0 %v7314_v47 }
 0x151   :  { %6705 = vmatpush3.bf16.msra.mxu1 %v7315_v48  ;;  %6684 = vmatprep.subr.bf16.mxu0 %v7316_v49  ;;  %v7358_v49 = vld [vmem:[%s9198_s1 + $0xb28] sm:$0xff]  }
 0x152   :  { %6706 = vmatprep.subr.bf16.mxu1 %v7317_v50 }
 0x154   :  { %6685 = vmatpush3.bf16.msra.mxu0 %v7318_v52 }
 0x155   :  { %6707 = vmatpush3.bf16.msra.mxu1 %v7319_v54  ;;  %6686 = vmatprep.subr.bf16.mxu0 %v7320_v57  ;;  %v7360_v54 = vld [vmem:[%s9198_s1 + $0xb70] sm:$0xff]  }
 0x156   :  { %v6384_v51 = vpop.f32.mrb[12].mxu0  ;;  %6708 = vmatprep.subr.bf16.mxu1 %v7321_v60  ;;  %v7362_v57 = vld [vmem:[%s9198_s1 + $0xb30] sm:$0xff]   ;;  %v7365_v60 = vld [vmem:[%s9198_s1 + $0xbf8] sm:$0xff]  }
 0x157   :  { %v6406_v53 = vpop.f32.mrb[12].mxu1  ;;  %v6385_v55 = vpop.f32.mrb[13].mxu0 }
 0x158   :  { %v6407_v56 = vpop.f32.mrb[13].mxu1  ;;  %v6386_v58 = vadd.f32 %v6385_v55, %v6384_v51  ;;  %v6387_v61 = vpop.f32.mrb[14].mxu0  ;;  %6687 = vmatpush3.bf16.msra.mxu0 %v7322_v63  ;;  %v7359_v51 = vld [vmem:[%s9198_s1 + $0xba8] sm:$0xff]   ;;  %v37_v63 = vld [vmem:[%s9199_s0 + $0xb0] sm:$0xff] }
 0x159   :  { %v6408_v59 = vadd.f32 %v6407_v56, %v6406_v53  ;;  %v6409_v62 = vpop.f32.mrb[14].mxu1  ;;  %v6388_v2 = vpop.f32.mrb[15].mxu0  ;;  %6709 = vmatpush3.bf16.msra.mxu1 %v7323_v1  ;;  %6688 = vmatprep.subr.bf16.mxu0 %v7324_v4  ;;  %v7361_v56 = vld [vmem:[%s9198_s1 + $0xbf0] sm:$0xff]   ;;  %v7366_v61 = vld [vmem:[%s9198_s1 + $0xb38] sm:$0xff]   ;;  %v5704_v1 = vcombine.low %v37_v63, %v37_v63 }
 0x15a   :  { %v4649_v0 = vadd.f32 %v6386_v58, %v8535_v17  ;;  %v6410_v3 = vpop.f32.mrb[15].mxu1  ;;  %6710 = vmatprep.subr.bf16.mxu1 %v7325_v6  ;;  %v5702_v17 = vcombine.low %v36_v16, %v36_v16  ;;  %v7363_v58 = vld [vmem:[%s9198_s1 + $0xbb0] sm:$0xff]   ;;  %v7367_v62 = vld [vmem:[%s9198_s1 + $0xbb8] sm:$0xff]   ;;  %v5705_v2 = vcombine.high %v37_v63, %v37_v63  ;;  %v7373_v6 = vld [vmem:[%s9198_s1 + $0xcc0] sm:$0xff]  }
 0x15b   :  { %v7383_v16 = vld [vmem:[%s9198_s1 + $0xc90] sm:$0xff]  }
 0x15c   :  { %v8643_v5 = vadd.f32 %v6408_v59, %v4649_v0  ;;  %6689 = vmatpush3.bf16.msra.mxu0 %v7326_v7  ;;  %v7364_v59 = vld [vmem:[%s9198_s1 + $0xb78] sm:$0xff]   ;;  %v7374_v7 = vld [vmem:[%s9198_s1 + $0xc00] sm:$0xff]   ;;  %v7416_v63 = vld [vmem:[%s9198_s1 + $0xd50] sm:$0xff]  }
 0x15d   :  { %6711 = vmatpush3.bf16.msra.mxu1 %v7327_v8  ;;  %6690 = vmatprep.subr.bf16.mxu0 %v7328_v9  ;;  %v38_v0 = vld [vmem:[%s9199_s0 + $0xb8] sm:$0xff]  ;;  %v7375_v8 = vld [vmem:[%s9198_s1 + $0xc80] sm:$0xff]   ;;  %v7376_v9 = vld [vmem:[%s9198_s1 + $0xc48] sm:$0xff]  }
 0x15e   :  { %6712 = vmatprep.subr.bf16.mxu1 %v7329_v10  ;;  %v5706_v3 = vcombine.low %v38_v0, %v38_v0  ;;  %v5707_v4 = vcombine.high %v38_v0, %v38_v0  ;;  %v7377_v10 = vld [vmem:[%s9198_s1 + $0xcc8] sm:$0xff]   ;;  %v7417_v0 = vld [vmem:[%s9198_s1 + $0xdd0] sm:$0xff]  }
 0x160   :  { %6691 = vmatpush3.bf16.msra.mxu0 %v7330_v11  ;;  %v7378_v11 = vld [vmem:[%s9198_s1 + $0xc08] sm:$0xff]  }
 0x161   :  { %6713 = vmatpush3.bf16.msra.mxu1 %v7331_v12  ;;  %6720 = vmatprep.subr.bf16.mxu0 %v7336_v19  ;;  %v7379_v12 = vld [vmem:[%s9198_s1 + $0xc88] sm:$0xff]   ;;  %v7386_v19 = vld [vmem:[%s9198_s1 + $0xc18] sm:$0xff]  }
 0x162   :  { %6742 = vmatprep.subr.bf16.mxu1 %v7337_v20  ;;  %v7387_v20 = vld [vmem:[%s9198_s1 + $0xc98] sm:$0xff]  }
 0x163   :  { %5207 = vmatmul.mubr.bf16.vlgmr.msra.gmra.mrb[40].mxu0 %v5700_v14  ;;  %v7381_v14 = vld [vmem:[%s9198_s1 + $0xcd0] sm:$0xff]  }
 0x164   :  { %5247 = vmatmul.mubr.bf16.vlgmr.msra.gmra.mrb[40].mxu1 %v5702_v17  ;;  %6721 = vmatpush3.bf16.msra.mxu0 %v7338_v21  ;;  %v7384_v17 = vld [vmem:[%s9198_s1 + $0xc58] sm:$0xff]   ;;  %v7388_v21 = vld [vmem:[%s9198_s1 + $0xc60] sm:$0xff]  }
 0x165   :  { %6743 = vmatpush3.bf16.msra.mxu1 %v7339_v22  ;;  %6722 = vmatprep.subr.bf16.mxu0 %v7340_v23  ;;  %v7389_v22 = vld [vmem:[%s9198_s1 + $0xce0] sm:$0xff]  }
 0x166   :  { %6744 = vmatprep.subr.bf16.mxu1 %v7341_v24  ;;  %5286 = vmatprep.mubr.bf16.mxu0 %v5705_v2  ;;  %v7390_v24 = vld [vmem:[%s9198_s1 + $0xc20] sm:$0xff]   ;;  %v7419_v2 = vld [vmem:[%s9198_s1 + $0xd90] sm:$0xff]  }
 0x167   :  { %5326 = vmatprep.mubr.bf16.mxu1 %v5707_v4  ;;  %v7421_v4 = vld [vmem:[%s9198_s1 + $0xdd8] sm:$0xff]  }
 0x168   :  { %6723 = vmatpush3.bf16.msra.mxu0 %v7342_v25 }
 0x169   :  { %6745 = vmatpush3.bf16.msra.mxu1 %v7343_v26  ;;  %6724 = vmatprep.subr.bf16.mxu0 %v7344_v27  ;;  %v7391_v26 = vld [vmem:[%s9198_s1 + $0xca0] sm:$0xff]  }
 0x16a   :  { %6746 = vmatprep.subr.bf16.mxu1 %v7345_v28 }
 0x16c   :  { %6725 = vmatpush3.bf16.msra.mxu0 %v7346_v29 }
 0x16d   :  { %6747 = vmatpush3.bf16.msra.mxu1 %v7347_v30  ;;  %6726 = vmatprep.subr.bf16.mxu0 %v7348_v31  ;;  %v7392_v30 = vld [vmem:[%s9198_s1 + $0xc68] sm:$0xff]  }
 0x16e   :  { %6748 = vmatprep.subr.bf16.mxu1 %v7349_v32  ;;  %v7393_v32 = vld [vmem:[%s9198_s1 + $0xce8] sm:$0xff]  }
 0x170   :  { %6727 = vmatpush3.bf16.msra.mxu0 %v7350_v33 }
 0x171   :  { %6749 = vmatpush3.bf16.msra.mxu1 %v7351_v34  ;;  %6728 = vmatprep.subr.bf16.mxu0 %v7352_v35 }
 0x172   :  { %6750 = vmatprep.subr.bf16.mxu1 %v7353_v36  ;;  %v7394_v36 = vld [vmem:[%s9198_s1 + $0xc28] sm:$0xff]  }
 0x174   :  { %6729 = vmatpush3.bf16.msra.mxu0 %v7354_v38 }
 0x175   :  { %6751 = vmatpush3.bf16.msra.mxu1 %v7355_v40  ;;  %6730 = vmatprep.subr.bf16.mxu0 %v7356_v43  ;;  %v7398_v43 = vld [vmem:[%s9198_s1 + $0xc30] sm:$0xff]  }
 0x176   :  { %v6428_v37 = vpop.f32.mrb[16].mxu0  ;;  %6752 = vmatprep.subr.bf16.mxu1 %v7357_v46  ;;  %v7401_v46 = vld [vmem:[%s9198_s1 + $0xcf8] sm:$0xff]  }
 0x177   :  { %v6450_v39 = vpop.f32.mrb[16].mxu1  ;;  %v6429_v41 = vpop.f32.mrb[17].mxu0 }
 0x178   :  { %v6451_v42 = vpop.f32.mrb[17].mxu1  ;;  %v6430_v44 = vadd.f32 %v6429_v41, %v6428_v37  ;;  %v6431_v47 = vpop.f32.mrb[18].mxu0  ;;  %6731 = vmatpush3.bf16.msra.mxu0 %v7358_v49  ;;  %v7395_v37 = vld [vmem:[%s9198_s1 + $0xca8] sm:$0xff]   ;;  %v7396_v41 = vld [vmem:[%s9198_s1 + $0xc70] sm:$0xff]   ;;  %v39_v49 = vld [vmem:[%s9199_s0 + $0xc0] sm:$0xff] }
 0x179   :  { %v6452_v45 = vadd.f32 %v6451_v42, %v6450_v39  ;;  %v6453_v48 = vpop.f32.mrb[18].mxu1  ;;  %v6432_v52 = vpop.f32.mrb[19].mxu0  ;;  %6753 = vmatpush3.bf16.msra.mxu1 %v7359_v51  ;;  %6732 = vmatprep.subr.bf16.mxu0 %v7360_v54  ;;  %v7397_v42 = vld [vmem:[%s9198_s1 + $0xcf0] sm:$0xff]   ;;  %v7402_v47 = vld [vmem:[%s9198_s1 + $0xc38] sm:$0xff]   ;;  %v5708_v51 = vcombine.low %v39_v49, %v39_v49  ;;  %v7408_v54 = vld [vmem:[%s9198_s1 + $0xd40] sm:$0xff]  }
 0x17a   :  { %v4729_v50 = vadd.f32 %v6430_v44, %v8643_v5  ;;  %v6454_v53 = vpop.f32.mrb[19].mxu1  ;;  %6754 = vmatprep.subr.bf16.mxu1 %v7361_v56  ;;  %v7372_v5 = vld [vmem:[%s9198_s1 + $0xc40] sm:$0xff]   ;;  %v7399_v44 = vld [vmem:[%s9198_s1 + $0xcb0] sm:$0xff]   ;;  %v7403_v48 = vld [vmem:[%s9198_s1 + $0xcb8] sm:$0xff]   ;;  %v5709_v52 = vcombine.high %v39_v49, %v39_v49 }
 0x17b   :  { %v7409_v56 = vld [vmem:[%s9198_s1 + $0xdc0] sm:$0xff]   ;;  %v7452_v49 = vld [vmem:[%s9198_s1 + $0xe50] sm:$0xff]  }
 0x17c   :  { %v8748_v55 = vadd.f32 %v6452_v45, %v4729_v50  ;;  %6733 = vmatpush3.bf16.msra.mxu0 %v7362_v57  ;;  %v7400_v45 = vld [vmem:[%s9198_s1 + $0xc78] sm:$0xff]   ;;  %v40_v50 = vld [vmem:[%s9199_s0 + $0xc8] sm:$0xff]  ;;  %v7410_v57 = vld [vmem:[%s9198_s1 + $0xd00] sm:$0xff]  }
 0x17d   :  { %6755 = vmatpush3.bf16.msra.mxu1 %v7363_v58  ;;  %6734 = vmatprep.subr.bf16.mxu0 %v7364_v59  ;;  %v5710_v53 = vcombine.low %v40_v50, %v40_v50  ;;  %v7411_v58 = vld [vmem:[%s9198_s1 + $0xd80] sm:$0xff]   ;;  %v7412_v59 = vld [vmem:[%s9198_s1 + $0xd48] sm:$0xff]  }
 0x17e   :  { %6756 = vmatprep.subr.bf16.mxu1 %v7365_v60  ;;  %v7413_v60 = vld [vmem:[%s9198_s1 + $0xdc8] sm:$0xff]  }
 0x180   :  { %6735 = vmatpush3.bf16.msra.mxu0 %v7366_v61  ;;  %v7414_v61 = vld [vmem:[%s9198_s1 + $0xd08] sm:$0xff]  }
 0x181   :  { %6757 = vmatpush3.bf16.msra.mxu1 %v7367_v62  ;;  %6764 = vmatprep.subr.bf16.mxu0 %v7372_v5  ;;  %v7415_v62 = vld [vmem:[%s9198_s1 + $0xd88] sm:$0xff]   ;;  %v7422_v5 = vld [vmem:[%s9198_s1 + $0xd18] sm:$0xff]  }
 0x182   :  { %6786 = vmatprep.subr.bf16.mxu1 %v7373_v6  ;;  %v7423_v6 = vld [vmem:[%s9198_s1 + $0xd98] sm:$0xff]  }
 0x183   :  { %5287 = vmatmul.mubr.bf16.vlgmr.msra.gmra.mrb[44].mxu0 %v5704_v1  ;;  %v7418_v1 = vld [vmem:[%s9198_s1 + $0xd10] sm:$0xff]  }
 0x184   :  { %5327 = vmatmul.mubr.bf16.vlgmr.msra.gmra.mrb[44].mxu1 %v5706_v3  ;;  %6765 = vmatpush3.bf16.msra.mxu0 %v7374_v7  ;;  %v7420_v3 = vld [vmem:[%s9198_s1 + $0xd58] sm:$0xff]   ;;  %v7424_v7 = vld [vmem:[%s9198_s1 + $0xd60] sm:$0xff]  }
 0x185   :  { %6787 = vmatpush3.bf16.msra.mxu1 %v7375_v8  ;;  %6766 = vmatprep.subr.bf16.mxu0 %v7376_v9  ;;  %v7425_v8 = vld [vmem:[%s9198_s1 + $0xde0] sm:$0xff]  }
 0x186   :  { %6788 = vmatprep.subr.bf16.mxu1 %v7377_v10  ;;  %5366 = vmatprep.mubr.bf16.mxu0 %v5709_v52  ;;  %v7426_v10 = vld [vmem:[%s9198_s1 + $0xd20] sm:$0xff]   ;;  %v7455_v52 = vld [vmem:[%s9198_s1 + $0xe90] sm:$0xff]  }
 0x188   :  { %6767 = vmatpush3.bf16.msra.mxu0 %v7378_v11 }
 0x189   :  { %6789 = vmatpush3.bf16.msra.mxu1 %v7379_v12  ;;  %6768 = vmatprep.subr.bf16.mxu0 %v7380_v13  ;;  %v7427_v12 = vld [vmem:[%s9198_s1 + $0xda0] sm:$0xff]  }
 0x18a   :  { %6790 = vmatprep.subr.bf16.mxu1 %v7381_v14 }
 0x18c   :  { %6769 = vmatpush3.bf16.msra.mxu0 %v7382_v15  ;;  %v7428_v15 = vld [vmem:[%s9198_s1 + $0xd68] sm:$0xff]  }
 0x18d   :  { %6791 = vmatpush3.bf16.msra.mxu1 %v7383_v16  ;;  %6770 = vmatprep.subr.bf16.mxu0 %v7384_v17 }
 0x18e   :  { %6792 = vmatprep.subr.bf16.mxu1 %v7385_v18  ;;  %v7429_v18 = vld [vmem:[%s9198_s1 + $0xde8] sm:$0xff]  }
 0x190   :  { %6771 = vmatpush3.bf16.msra.mxu0 %v7386_v19 }
 0x191   :  { %6793 = vmatpush3.bf16.msra.mxu1 %v7387_v20  ;;  %6772 = vmatprep.subr.bf16.mxu0 %v7388_v21  ;;  %v7430_v21 = vld [vmem:[%s9198_s1 + $0xd28] sm:$0xff]  }
 0x192   :  { %6794 = vmatprep.subr.bf16.mxu1 %v7389_v22 }
 0x194   :  { %6773 = vmatpush3.bf16.msra.mxu0 %v7390_v24 }
 0x195   :  { %6795 = vmatpush3.bf16.msra.mxu1 %v7391_v26  ;;  %6774 = vmatprep.subr.bf16.mxu0 %v7392_v30  ;;  %v7432_v26 = vld [vmem:[%s9198_s1 + $0xd70] sm:$0xff]  }
 0x196   :  { %v6472_v23 = vpop.f32.mrb[20].mxu0  ;;  %6796 = vmatprep.subr.bf16.mxu1 %v7393_v32  ;;  %v7435_v30 = vld [vmem:[%s9198_s1 + $0xdb0] sm:$0xff]   ;;  %v7437_v32 = vld [vmem:[%s9198_s1 + $0xdf8] sm:$0xff]  }
 0x197   :  { %v6494_v25 = vpop.f32.mrb[20].mxu1  ;;  %v6473_v27 = vpop.f32.mrb[21].mxu0 }
 0x198   :  { %v6474_v28 = vadd.f32 %v6473_v27, %v6472_v23  ;;  %v6495_v29 = vpop.f32.mrb[21].mxu1  ;;  %v6475_v33 = vpop.f32.mrb[22].mxu0  ;;  %6775 = vmatpush3.bf16.msra.mxu0 %v7394_v36  ;;  %v7431_v23 = vld [vmem:[%s9198_s1 + $0xda8] sm:$0xff]  }
 0x199   :  { %v6496_v31 = vadd.f32 %v6495_v29, %v6494_v25  ;;  %v6497_v35 = vpop.f32.mrb[22].mxu1  ;;  %v6476_v38 = vpop.f32.mrb[23].mxu0  ;;  %6797 = vmatpush3.bf16.msra.mxu1 %v7395_v37  ;;  %6776 = vmatprep.subr.bf16.mxu0 %v7396_v41  ;;  %v7434_v29 = vld [vmem:[%s9198_s1 + $0xd30] sm:$0xff]   ;;  %v7438_v33 = vld [vmem:[%s9198_s1 + $0xd38] sm:$0xff]   ;;  %v7444_v41 = vld [vmem:[%s9198_s1 + $0xe40] sm:$0xff]  }
 0x19a   :  { %v4809_v34 = vadd.f32 %v6474_v28, %v8748_v55  ;;  %v6498_v40 = vpop.f32.mrb[23].mxu1  ;;  %6798 = vmatprep.subr.bf16.mxu1 %v7397_v42  ;;  %v5711_v55 = vcombine.high %v40_v50, %v40_v50  ;;  %v7433_v28 = vld [vmem:[%s9198_s1 + $0xdf0] sm:$0xff]   ;;  %v42_v38 = vld [vmem:[%s9199_s0 + $0xd8] sm:$0xff]  ;;  %v7445_v42 = vld [vmem:[%s9198_s1 + $0xec0] sm:$0xff]  }
 0x19b   :  { %v41_v35 = vld [vmem:[%s9199_s0 + $0xd0] sm:$0xff]  ;;  %v5715_v40 = vcombine.high %v42_v38, %v42_v38 }
 0x19c   :  { %v8850_v39 = vadd.f32 %v6496_v31, %v4809_v34  ;;  %6777 = vmatpush3.bf16.msra.mxu0 %v7398_v43  ;;  %5406 = vmatprep.mubr.bf16.mxu1 %v5711_v55  ;;  %v7436_v31 = vld [vmem:[%s9198_s1 + $0xd78] sm:$0xff]   ;;  %v5712_v36 = vcombine.low %v41_v35, %v41_v35  ;;  %v5713_v37 = vcombine.high %v41_v35, %v41_v35  ;;  %v7446_v43 = vld [vmem:[%s9198_s1 + $0xe00] sm:$0xff]   ;;  %v7453_v50 = vld [vmem:[%s9198_s1 + $0xed0] sm:$0xff]  }
 0x19d   :  { %6799 = vmatpush3.bf16.msra.mxu1 %v7399_v44  ;;  %6778 = vmatprep.subr.bf16.mxu0 %v7400_v45  ;;  %v7439_v34 = vld [vmem:[%s9198_s1 + $0xdb8] sm:$0xff]   ;;  %v7447_v44 = vld [vmem:[%s9198_s1 + $0xe80] sm:$0xff]   ;;  %v7448_v45 = vld [vmem:[%s9198_s1 + $0xe48] sm:$0xff]  }
 0x19e   :  { %6800 = vmatprep.subr.bf16.mxu1 %v7401_v46  ;;  %v7449_v46 = vld [vmem:[%s9198_s1 + $0xec8] sm:$0xff]   ;;  %v7458_v55 = vld [vmem:[%s9198_s1 + $0xe18] sm:$0xff]   ;;  %v7488_v35 = vld [vmem:[%s9198_s1 + $0xf50] sm:$0xff]  }
 0x1a0   :  { %6779 = vmatpush3.bf16.msra.mxu0 %v7402_v47  ;;  %v7450_v47 = vld [vmem:[%s9198_s1 + $0xe08] sm:$0xff]  }
 0x1a1   :  { %6801 = vmatpush3.bf16.msra.mxu1 %v7403_v48  ;;  %6808 = vmatprep.subr.bf16.mxu0 %v7408_v54  ;;  %v7451_v48 = vld [vmem:[%s9198_s1 + $0xe88] sm:$0xff]   ;;  %v7457_v54 = vld [vmem:[%s9198_s1 + $0xed8] sm:$0xff]  }
 0x1a2   :  { %6830 = vmatprep.subr.bf16.mxu1 %v7409_v56  ;;  %v7459_v56 = vld [vmem:[%s9198_s1 + $0xe98] sm:$0xff]  }
 0x1a3   :  { %5367 = vmatmul.mubr.bf16.vlgmr.msra.gmra.mrb[48].mxu0 %v5708_v51  ;;  %v7454_v51 = vld [vmem:[%s9198_s1 + $0xe10] sm:$0xff]  }
 0x1a4   :  { %5407 = vmatmul.mubr.bf16.vlgmr.msra.gmra.mrb[48].mxu1 %v5710_v53  ;;  %6809 = vmatpush3.bf16.msra.mxu0 %v7410_v57  ;;  %v7456_v53 = vld [vmem:[%s9198_s1 + $0xe58] sm:$0xff]   ;;  %v7460_v57 = vld [vmem:[%s9198_s1 + $0xe60] sm:$0xff]  }
 0x1a5   :  { %6831 = vmatpush3.bf16.msra.mxu1 %v7411_v58  ;;  %6810 = vmatprep.subr.bf16.mxu0 %v7412_v59  ;;  %v7461_v58 = vld [vmem:[%s9198_s1 + $0xee0] sm:$0xff]  }
 0x1a6   :  { %6832 = vmatprep.subr.bf16.mxu1 %v7413_v60  ;;  %5446 = vmatprep.mubr.bf16.mxu0 %v5713_v37  ;;  %v7462_v60 = vld [vmem:[%s9198_s1 + $0xe20] sm:$0xff]   ;;  %v7490_v37 = vld [vmem:[%s9198_s1 + $0xf10] sm:$0xff]  }
 0x1a7   :  { %5486 = vmatprep.mubr.bf16.mxu1 %v5715_v40  ;;  %v7493_v40 = vld [vmem:[%s9198_s1 + $0xfd8] sm:$0xff]  }
 0x1a8   :  { %6811 = vmatpush3.bf16.msra.mxu0 %v7414_v61 }
 0x1a9   :  { %6833 = vmatpush3.bf16.msra.mxu1 %v7415_v62  ;;  %6812 = vmatprep.subr.bf16.mxu0 %v7416_v63  ;;  %v7463_v62 = vld [vmem:[%s9198_s1 + $0xea0] sm:$0xff]  }
 0x1aa   :  { %6834 = vmatprep.subr.bf16.mxu1 %v7417_v0 }
 0x1ac   :  { %6813 = vmatpush3.bf16.msra.mxu0 %v7418_v1  ;;  %v7464_v1 = vld [vmem:[%s9198_s1 + $0xe68] sm:$0xff]  }
 0x1ad   :  { %6835 = vmatpush3.bf16.msra.mxu1 %v7419_v2  ;;  %6814 = vmatprep.subr.bf16.mxu0 %v7420_v3 }
 0x1ae   :  { %6836 = vmatprep.subr.bf16.mxu1 %v7421_v4  ;;  %v7465_v4 = vld [vmem:[%s9198_s1 + $0xee8] sm:$0xff]  }
 0x1b0   :  { %6815 = vmatpush3.bf16.msra.mxu0 %v7422_v5 }
 0x1b1   :  { %6837 = vmatpush3.bf16.msra.mxu1 %v7423_v6  ;;  %6816 = vmatprep.subr.bf16.mxu0 %v7424_v7  ;;  %v7466_v7 = vld [vmem:[%s9198_s1 + $0xe28] sm:$0xff]  }
 0x1b2   :  { %6838 = vmatprep.subr.bf16.mxu1 %v7425_v8 }
 0x1b4   :  { %6817 = vmatpush3.bf16.msra.mxu0 %v7426_v10 }
 0x1b5   :  { %6839 = vmatpush3.bf16.msra.mxu1 %v7427_v12  ;;  %6818 = vmatprep.subr.bf16.mxu0 %v7428_v15  ;;  %v7468_v12 = vld [vmem:[%s9198_s1 + $0xe70] sm:$0xff]  }
 0x1b6   :  { %v6516_v9 = vpop.f32.mrb[24].mxu0  ;;  %6840 = vmatprep.subr.bf16.mxu1 %v7429_v18  ;;  %v7470_v15 = vld [vmem:[%s9198_s1 + $0xe30] sm:$0xff]   ;;  %v7473_v18 = vld [vmem:[%s9198_s1 + $0xef8] sm:$0xff]  }
 0x1b7   :  { %v6538_v11 = vpop.f32.mrb[24].mxu1  ;;  %v6517_v13 = vpop.f32.mrb[25].mxu0 }
 0x1b8   :  { %v6539_v14 = vpop.f32.mrb[25].mxu1  ;;  %v6518_v16 = vadd.f32 %v6517_v13, %v6516_v9  ;;  %v6519_v19 = vpop.f32.mrb[26].mxu0  ;;  %6819 = vmatpush3.bf16.msra.mxu0 %v7430_v21  ;;  %v7467_v9 = vld [vmem:[%s9198_s1 + $0xea8] sm:$0xff]   ;;  %v43_v21 = vld [vmem:[%s9199_s0 + $0xe0] sm:$0xff] }
 0x1b9   :  { %v6540_v17 = vadd.f32 %v6539_v14, %v6538_v11  ;;  %v6541_v20 = vpop.f32.mrb[26].mxu1  ;;  %v6520_v24 = vpop.f32.mrb[27].mxu0  ;;  %6841 = vmatpush3.bf16.msra.mxu1 %v7431_v23  ;;  %6820 = vmatprep.subr.bf16.mxu0 %v7432_v26  ;;  %v7469_v14 = vld [vmem:[%s9198_s1 + $0xef0] sm:$0xff]   ;;  %v7474_v19 = vld [vmem:[%s9198_s1 + $0xe38] sm:$0xff]   ;;  %v5716_v23 = vcombine.low %v43_v21, %v43_v21 }
 0x1ba   :  { %v4889_v22 = vadd.f32 %v6518_v16, %v8850_v39  ;;  %v6542_v25 = vpop.f32.mrb[27].mxu1  ;;  %6842 = vmatprep.subr.bf16.mxu1 %v7433_v28  ;;  %v5714_v39 = vcombine.low %v42_v38, %v42_v38  ;;  %v7471_v16 = vld [vmem:[%s9198_s1 + $0xeb0] sm:$0xff]   ;;  %v7475_v20 = vld [vmem:[%s9198_s1 + $0xeb8] sm:$0xff]   ;;  %v5717_v24 = vcombine.high %v43_v21, %v43_v21  ;;  %v7481_v28 = vld [vmem:[%s9198_s1 + $0xfc0] sm:$0xff]  }
 0x1bb   :  { %v7491_v38 = vld [vmem:[%s9198_s1 + $0xf90] sm:$0xff]  }
 0x1bc   :  { %v8958_v27 = vadd.f32 %v6540_v17, %v4889_v22  ;;  %6821 = vmatpush3.bf16.msra.mxu0 %v7434_v29  ;;  %v7472_v17 = vld [vmem:[%s9198_s1 + $0xe78] sm:$0xff]   ;;  %v44_v22 = vld [vmem:[%s9199_s0 + $0xe8] sm:$0xff]  ;;  %v7482_v29 = vld [vmem:[%s9198_s1 + $0xf00] sm:$0xff]  }
 0x1bd   :  { %6843 = vmatpush3.bf16.msra.mxu1 %v7435_v30  ;;  %6822 = vmatprep.subr.bf16.mxu0 %v7436_v31  ;;  %v5718_v25 = vcombine.low %v44_v22, %v44_v22  ;;  %v5719_v26 = vcombine.high %v44_v22, %v44_v22  ;;  %v7483_v30 = vld [vmem:[%s9198_s1 + $0xf80] sm:$0xff]   ;;  %v7484_v31 = vld [vmem:[%s9198_s1 + $0xf48] sm:$0xff]  }
 0x1be   :  { %6844 = vmatprep.subr.bf16.mxu1 %v7437_v32  ;;  %v7485_v32 = vld [vmem:[%s9198_s1 + $0xfc8] sm:$0xff]  }
 0x1c0   :  { %6823 = vmatpush3.bf16.msra.mxu0 %v7438_v33  ;;  %v7486_v33 = vld [vmem:[%s9198_s1 + $0xf08] sm:$0xff]  }
 0x1c1   :  { %6845 = vmatpush3.bf16.msra.mxu1 %v7439_v34  ;;  %6852 = vmatprep.subr.bf16.mxu0 %v7444_v41  ;;  %v7487_v34 = vld [vmem:[%s9198_s1 + $0xf88] sm:$0xff]   ;;  %v7494_v41 = vld [vmem:[%s9198_s1 + $0xf18] sm:$0xff]  }
 0x1c2   :  { %6874 = vmatprep.subr.bf16.mxu1 %v7445_v42  ;;  %v7495_v42 = vld [vmem:[%s9198_s1 + $0xf98] sm:$0xff]  }
 0x1c3   :  { %5447 = vmatmul.mubr.bf16.vlgmr.msra.gmra.mrb[52].mxu0 %v5712_v36  ;;  %v7489_v36 = vld [vmem:[%s9198_s1 + $0xfd0] sm:$0xff]  }
 0x1c4   :  { %5487 = vmatmul.mubr.bf16.vlgmr.msra.gmra.mrb[52].mxu1 %v5714_v39  ;;  %6853 = vmatpush3.bf16.msra.mxu0 %v7446_v43  ;;  %v7492_v39 = vld [vmem:[%s9198_s1 + $0xf58] sm:$0xff]   ;;  %v7496_v43 = vld [vmem:[%s9198_s1 + $0xf60] sm:$0xff]  }
 0x1c5   :  { %6875 = vmatpush3.bf16.msra.mxu1 %v7447_v44  ;;  %6854 = vmatprep.subr.bf16.mxu0 %v7448_v45  ;;  %v7497_v44 = vld [vmem:[%s9198_s1 + $0xfe0] sm:$0xff]  }
 0x1c6   :  { %6876 = vmatprep.subr.bf16.mxu1 %v7449_v46  ;;  %5526 = vmatprep.mubr.bf16.mxu0 %v5717_v24  ;;  %v7498_v45 = vld [vmem:[%s9198_s1 + $0xf20] sm:$0xff]  }
 0x1c7   :  { %5566 = vmatprep.mubr.bf16.mxu1 %v5719_v26 }
 0x1c8   :  { %6855 = vmatpush3.bf16.msra.mxu0 %v7450_v47  ;;  %v7499_v47 = vld [vmem:[%s9198_s1 + $0xfa0] sm:$0xff]  }
 0x1c9   :  { %6877 = vmatpush3.bf16.msra.mxu1 %v7451_v48  ;;  %6856 = vmatprep.subr.bf16.mxu0 %v7452_v49 }
 0x1ca   :  { %6878 = vmatprep.subr.bf16.mxu1 %v7453_v50 }
 0x1cc   :  { %6857 = vmatpush3.bf16.msra.mxu0 %v7454_v51 }
 0x1cd   :  { %6879 = vmatpush3.bf16.msra.mxu1 %v7455_v52  ;;  %6858 = vmatprep.subr.bf16.mxu0 %v7456_v53  ;;  %v7500_v53 = vld [vmem:[%s9198_s1 + $0xf68] sm:$0xff]  }
 0x1ce   :  { %6880 = vmatprep.subr.bf16.mxu1 %v7457_v54 }
 0x1d0   :  { %6859 = vmatpush3.bf16.msra.mxu0 %v7458_v55  ;;  %v7501_v55 = vld [vmem:[%s9198_s1 + $0xfe8] sm:$0xff]  }
 0x1d1   :  { %6881 = vmatpush3.bf16.msra.mxu1 %v7459_v56  ;;  %6860 = vmatprep.subr.bf16.mxu0 %v7460_v57 }
 0x1d2   :  { %6882 = vmatprep.subr.bf16.mxu1 %v7461_v58  ;;  %v7502_v58 = vld [vmem:[%s9198_s1 + $0xf28] sm:$0xff]  }
 0x1d4   :  { %6861 = vmatpush3.bf16.msra.mxu0 %v7462_v60  ;;  %v7503_v60 = vld [vmem:[%s9198_s1 + $0xfa8] sm:$0xff]  }
 0x1d5   :  { %6883 = vmatpush3.bf16.msra.mxu1 %v7463_v62  ;;  %6862 = vmatprep.subr.bf16.mxu0 %v7464_v1  ;;  %v7506_v1 = vld [vmem:[%s9198_s1 + $0xf30] sm:$0xff]  }
 0x1d6   :  { %v6560_v59 = vpop.f32.mrb[28].mxu0  ;;  %6884 = vmatprep.subr.bf16.mxu1 %v7465_v4  ;;  %v7509_v4 = vld [vmem:[%s9198_s1 + $0xff8] sm:$0xff]  }
 0x1d7   :  { %v6582_v61 = vpop.f32.mrb[28].mxu1  ;;  %v6561_v63 = vpop.f32.mrb[29].mxu0 }
 0x1d8   :  { %v6583_v0 = vpop.f32.mrb[29].mxu1  ;;  %v6562_v2 = vadd.f32 %v6561_v63, %v6560_v59  ;;  %v6563_v5 = vpop.f32.mrb[30].mxu0  ;;  %6863 = vmatpush3.bf16.msra.mxu0 %v7466_v7  ;;  %v7504_v63 = vld [vmem:[%s9198_s1 + $0xf70] sm:$0xff]  }
 0x1d9   :  { %v6584_v3 = vadd.f32 %v6583_v0, %v6582_v61  ;;  %v6585_v6 = vpop.f32.mrb[30].mxu1  ;;  %v6564_v10 = vpop.f32.mrb[31].mxu0  ;;  %6885 = vmatpush3.bf16.msra.mxu1 %v7467_v9  ;;  %6864 = vmatprep.subr.bf16.mxu0 %v7468_v12  ;;  %v7505_v0 = vld [vmem:[%s9198_s1 + $0xff0] sm:$0xff]   ;;  %v7510_v5 = vld [vmem:[%s9198_s1 + $0xf38] sm:$0xff]  }
 0x1da   :  { %v4969_v8 = vadd.f32 %v6562_v2, %v8958_v27  ;;  %v6586_v11 = vpop.f32.mrb[31].mxu1  ;;  %6886 = vmatprep.subr.bf16.mxu1 %v7469_v14  ;;  %v7480_v27 = vld [vmem:[%s9198_s1 + $0xf40] sm:$0xff]   ;;  %v7507_v2 = vld [vmem:[%s9198_s1 + $0xfb0] sm:$0xff]   ;;  %v7511_v6 = vld [vmem:[%s9198_s1 + $0xfb8] sm:$0xff]  }
 0x1db   :  { %v45_v7 = vld [vmem:[%s9199_s0 + $0xf0] sm:$0xff] }
 0x1dc   :  { %v9063_v13 = vadd.f32 %v6584_v3, %v4969_v8  ;;  %6865 = vmatpush3.bf16.msra.mxu0 %v7470_v15  ;;  %v7508_v3 = vld [vmem:[%s9198_s1 + $0xf78] sm:$0xff]   ;;  %v5720_v9 = vcombine.low %v45_v7, %v45_v7  ;;  %v5721_v10 = vcombine.high %v45_v7, %v45_v7 }
 0x1dd   :  { %6887 = vmatpush3.bf16.msra.mxu1 %v7471_v16  ;;  %6866 = vmatprep.subr.bf16.mxu0 %v7472_v17  ;;  %v46_v8 = vld [vmem:[%s9199_s0 + $0xf8] sm:$0xff] }
 0x1de   :  { %6888 = vmatprep.subr.bf16.mxu1 %v7473_v18  ;;  %v5722_v11 = vcombine.low %v46_v8, %v46_v8  ;;  %v5723_v12 = vcombine.high %v46_v8, %v46_v8 }
 0x1e0   :  { %6867 = vmatpush3.bf16.msra.mxu0 %v7474_v19 }
 0x1e1   :  { %6889 = vmatpush3.bf16.msra.mxu1 %v7475_v20  ;;  %6896 = vmatprep.subr.bf16.mxu0 %v7480_v27 }
 0x1e2   :  { %6918 = vmatprep.subr.bf16.mxu1 %v7481_v28 }
 0x1e3   :  { %5527 = vmatmul.mubr.bf16.vlgmr.msra.gmra.mrb[56].mxu0 %v5716_v23 }
 0x1e4   :  { %5567 = vmatmul.mubr.bf16.vlgmr.msra.gmra.mrb[56].mxu1 %v5718_v25  ;;  %6897 = vmatpush3.bf16.msra.mxu0 %v7482_v29 }
 0x1e5   :  { %6919 = vmatpush3.bf16.msra.mxu1 %v7483_v30  ;;  %6898 = vmatprep.subr.bf16.mxu0 %v7484_v31 }
 0x1e6   :  { %6920 = vmatprep.subr.bf16.mxu1 %v7485_v32  ;;  %5606 = vmatprep.mubr.bf16.mxu0 %v5721_v10 }
 0x1e7   :  { %5646 = vmatprep.mubr.bf16.mxu1 %v5723_v12 }
 0x1e8   :  { %6899 = vmatpush3.bf16.msra.mxu0 %v7486_v33 }
 0x1e9   :  { %6921 = vmatpush3.bf16.msra.mxu1 %v7487_v34  ;;  %6900 = vmatprep.subr.bf16.mxu0 %v7488_v35 }
 0x1ea   :  { %6922 = vmatprep.subr.bf16.mxu1 %v7489_v36 }
 0x1ec   :  { %6901 = vmatpush3.bf16.msra.mxu0 %v7490_v37 }
 0x1ed   :  { %6923 = vmatpush3.bf16.msra.mxu1 %v7491_v38  ;;  %6902 = vmatprep.subr.bf16.mxu0 %v7492_v39 }
 0x1ee   :  { %6924 = vmatprep.subr.bf16.mxu1 %v7493_v40 }
 0x1f0   :  { %6903 = vmatpush3.bf16.msra.mxu0 %v7494_v41 }
 0x1f1   :  { %6925 = vmatpush3.bf16.msra.mxu1 %v7495_v42  ;;  %6904 = vmatprep.subr.bf16.mxu0 %v7496_v43 }
 0x1f2   :  { %6926 = vmatprep.subr.bf16.mxu1 %v7497_v44 }
 0x1f4   :  { %6905 = vmatpush3.bf16.msra.mxu0 %v7498_v45 }
 0x1f5   :  { %6927 = vmatpush3.bf16.msra.mxu1 %v7499_v47  ;;  %6906 = vmatprep.subr.bf16.mxu0 %v7500_v53 }
 0x1f6   :  { %v6604_v46 = vpop.f32.mrb[32].mxu0  ;;  %6928 = vmatprep.subr.bf16.mxu1 %v7501_v55 }
 0x1f7   :  { %v6626_v48 = vpop.f32.mrb[32].mxu1  ;;  %v6605_v49 = vpop.f32.mrb[33].mxu0 }
 0x1f8   :  { %v6627_v50 = vpop.f32.mrb[33].mxu1  ;;  %v6606_v51 = vadd.f32 %v6605_v49, %v6604_v46  ;;  %v6607_v54 = vpop.f32.mrb[34].mxu0  ;;  %6907 = vmatpush3.bf16.msra.mxu0 %v7502_v58 }
 0x1f9   :  { %v6628_v52 = vadd.f32 %v6627_v50, %v6626_v48  ;;  %v6629_v56 = vpop.f32.mrb[34].mxu1  ;;  %v6608_v59 = vpop.f32.mrb[35].mxu0  ;;  %6929 = vmatpush3.bf16.msra.mxu1 %v7503_v60  ;;  %6908 = vmatprep.subr.bf16.mxu0 %v7504_v63 }
 0x1fa   :  { %v5049_v57 = vadd.f32 %v6606_v51, %v9063_v13  ;;  %v6630_v61 = vpop.f32.mrb[35].mxu1  ;;  %6930 = vmatprep.subr.bf16.mxu1 %v7505_v0 }
 0x1fc   :  { %v5089_v62 = vadd.f32 %v6628_v52, %v5049_v57  ;;  %6909 = vmatpush3.bf16.msra.mxu0 %v7506_v1 }
 0x1fd   :  { %6931 = vmatpush3.bf16.msra.mxu1 %v7507_v2  ;;  %6910 = vmatprep.subr.bf16.mxu0 %v7508_v3 }
 0x1fe   :  { %6932 = vmatprep.subr.bf16.mxu1 %v7509_v4 }
 0x200   :  { %6911 = vmatpush3.bf16.msra.mxu0 %v7510_v5 }
 0x201   :  { %6933 = vmatpush3.bf16.msra.mxu1 %v7511_v6 }
 0x203   :  { %5607 = vmatmul.mubr.bf16.vlgmr.msra.gmra.mrb[60].mxu0 %v5720_v9 }
 0x204   :  { %5647 = vmatmul.mubr.bf16.vlgmr.msra.gmra.mrb[60].mxu1 %v5722_v11 }
 0x216   :  { %v6648_v13 = vpop.f32.mrb[36].mxu0 }
 0x217   :  { %v6670_v14 = vpop.f32.mrb[36].mxu1  ;;  %v6649_v15 = vpop.f32.mrb[37].mxu0 }
 0x218   :  { %v6650_v16 = vadd.f32 %v6649_v15, %v6648_v13  ;;  %v6671_v17 = vpop.f32.mrb[37].mxu1  ;;  %v6651_v18 = vpop.f32.mrb[38].mxu0 }
 0x219   :  { %v6672_v19 = vadd.f32 %v6671_v17, %v6670_v14  ;;  %v6673_v20 = vpop.f32.mrb[38].mxu1  ;;  %v6652_v21 = vpop.f32.mrb[39].mxu0 }
 0x21a   :  { %v5129_v22 = vadd.f32 %v6650_v16, %v5089_v62  ;;  %v6674_v23 = vpop.f32.mrb[39].mxu1 }
 0x21c   :  { %v5169_v24 = vadd.f32 %v6672_v19, %v5129_v22 }
 0x236   :  { %v6692_v25 = vpop.f32.mrb[40].mxu0 }
 0x237   :  { %v6714_v26 = vpop.f32.mrb[40].mxu1  ;;  %v6693_v27 = vpop.f32.mrb[41].mxu0 }
 0x238   :  { %v6715_v28 = vpop.f32.mrb[41].mxu1  ;;  %v6694_v29 = vadd.f32 %v6693_v27, %v6692_v25  ;;  %v6695_v31 = vpop.f32.mrb[42].mxu0 }
 0x239   :  { %v6716_v30 = vadd.f32 %v6715_v28, %v6714_v26  ;;  %v6717_v32 = vpop.f32.mrb[42].mxu1  ;;  %v6696_v33 = vpop.f32.mrb[43].mxu0 }
 0x23a   :  { %v6718_v34 = vpop.f32.mrb[43].mxu1  ;;  %v5209_v35 = vadd.f32 %v6694_v29, %v5169_v24 }
 0x23c   :  { %v5249_v36 = vadd.f32 %v6716_v30, %v5209_v35 }
 0x256   :  { %v6736_v37 = vpop.f32.mrb[44].mxu0 }
 0x257   :  { %v6758_v38 = vpop.f32.mrb[44].mxu1  ;;  %v6737_v39 = vpop.f32.mrb[45].mxu0 }
 0x258   :  { %v6738_v40 = vadd.f32 %v6737_v39, %v6736_v37  ;;  %v6759_v41 = vpop.f32.mrb[45].mxu1  ;;  %v6739_v42 = vpop.f32.mrb[46].mxu0 }
 0x259   :  { %v6760_v43 = vadd.f32 %v6759_v41, %v6758_v38  ;;  %v6761_v44 = vpop.f32.mrb[46].mxu1  ;;  %v6740_v45 = vpop.f32.mrb[47].mxu0 }
 0x25a   :  { %v5289_v46 = vadd.f32 %v6738_v40, %v5249_v36  ;;  %v6762_v47 = vpop.f32.mrb[47].mxu1 }
 0x25c   :  { %v5329_v48 = vadd.f32 %v6760_v43, %v5289_v46 }
 0x276   :  { %v6780_v49 = vpop.f32.mrb[48].mxu0 }
 0x277   :  { %v6802_v50 = vpop.f32.mrb[48].mxu1  ;;  %v6781_v51 = vpop.f32.mrb[49].mxu0 }
 0x278   :  { %v6782_v52 = vadd.f32 %v6781_v51, %v6780_v49  ;;  %v6803_v53 = vpop.f32.mrb[49].mxu1  ;;  %v6783_v54 = vpop.f32.mrb[50].mxu0 }
 0x279   :  { %v6804_v55 = vadd.f32 %v6803_v53, %v6802_v50  ;;  %v6805_v56 = vpop.f32.mrb[50].mxu1  ;;  %v6784_v57 = vpop.f32.mrb[51].mxu0 }
 0x27a   :  { %v5369_v58 = vadd.f32 %v6782_v52, %v5329_v48  ;;  %v6806_v59 = vpop.f32.mrb[51].mxu1 }
 0x27c   :  { %v5409_v60 = vadd.f32 %v6804_v55, %v5369_v58 }
 0x296   :  { %v6824_v61 = vpop.f32.mrb[52].mxu0 }
 0x297   :  { %v6846_v62 = vpop.f32.mrb[52].mxu1  ;;  %v6825_v63 = vpop.f32.mrb[53].mxu0 }
 0x298   :  { %v6847_v0 = vpop.f32.mrb[53].mxu1  ;;  %v6826_v1 = vadd.f32 %v6825_v63, %v6824_v61  ;;  %v6827_v3 = vpop.f32.mrb[54].mxu0 }
 0x299   :  { %v6848_v2 = vadd.f32 %v6847_v0, %v6846_v62  ;;  %v6849_v4 = vpop.f32.mrb[54].mxu1  ;;  %v6828_v5 = vpop.f32.mrb[55].mxu0 }
 0x29a   :  { %v6850_v6 = vpop.f32.mrb[55].mxu1  ;;  %v5449_v7 = vadd.f32 %v6826_v1, %v5409_v60 }
 0x29c   :  { %v5489_v8 = vadd.f32 %v6848_v2, %v5449_v7 }
 0x2b6   :  { %v6868_v9 = vpop.f32.mrb[56].mxu0 }
 0x2b7   :  { %v6890_v10 = vpop.f32.mrb[56].mxu1  ;;  %v6869_v11 = vpop.f32.mrb[57].mxu0 }
 0x2b8   :  { %v6870_v12 = vadd.f32 %v6869_v11, %v6868_v9  ;;  %v6891_v13 = vpop.f32.mrb[57].mxu1  ;;  %v6871_v14 = vpop.f32.mrb[58].mxu0 }
 0x2b9   :  { %v6892_v15 = vadd.f32 %v6891_v13, %v6890_v10  ;;  %v6893_v16 = vpop.f32.mrb[58].mxu1  ;;  %v6872_v17 = vpop.f32.mrb[59].mxu0 }
 0x2ba   :  { %v5529_v18 = vadd.f32 %v6870_v12, %v5489_v8  ;;  %v6894_v19 = vpop.f32.mrb[59].mxu1 }
 0x2bc   :  { %v5569_v20 = vadd.f32 %v6892_v15, %v5529_v18 }
 0x2d6   :  { %v6912_v21 = vpop.f32.mrb[60].mxu0 }
 0x2d7   :  { %v6934_v22 = vpop.f32.mrb[60].mxu1  ;;  %v6913_v23 = vpop.f32.mrb[61].mxu0 }
 0x2d8   :  { %v6914_v24 = vadd.f32 %v6913_v23, %v6912_v21  ;;  %v6935_v25 = vpop.f32.mrb[61].mxu1  ;;  %v6915_v26 = vpop.f32.mrb[62].mxu0 }
 0x2d9   :  { %v6936_v27 = vadd.f32 %v6935_v25, %v6934_v22  ;;  %v6937_v28 = vpop.f32.mrb[62].mxu1  ;;  %v6916_v29 = vpop.f32.mrb[63].mxu0 }
 0x2da   :  { %v5609_v30 = vadd.f32 %v6914_v24, %v5569_v20  ;;  %v6938_v31 = vpop.f32.mrb[63].mxu1 }
 0x2dc   :  { %v5649_v32 = vadd.f32 %v6936_v27, %v5609_v30 }
 0x2de   :  { %5654 = vst [vmem:[%s9201_s3] sm:$0xff] %v5649_v32 }

</bundles_post_ra>
